<compile_context>
chip_gen: v5e
topology: v5e:2x2
jax: 0.10.0
libtpu: 0.0.40
codegen_flags: <defaults>
</compile_context>

<pallas_src>
import functools
import math

import jax
import jax.numpy as jnp
from jax.experimental import pallas as pl
from jax.experimental.pallas import tpu as pltpu

_CP = 128        # padded channel width (lane dimension)
_CIN_PAD = 8     # padded stem input-channel count


def _round_up(x, m):
    return (x + m - 1) // m * m


# ---------------------------------------------------------------------------
# Fused kernel: stem conv -> BasicBlock -> global avg pool -> classifier
# ---------------------------------------------------------------------------
def _fused_kernel(x_ref, mask_ref,
                  w0_ref, b0_ref, w1_ref, b1_ref, w2_ref, b2_ref,
                  wfc_ref, bfc_ref,
                  pooled_ref, logits_ref,
                  act0, act1, acc,
                  *, h, w, marg):
    wp = w + 2                       # padded width
    nb = (h + 2) * wp                # rows per image in padded-flat layout

    # Only the row margins of the activation scratch are ever read before
    # being written (via the shifted tap windows) -> zero just those.
    zmarg = jnp.zeros((marg, _CP), jnp.float32)
    act0[pl.ds(0, marg), :] = zmarg
    act0[pl.ds(marg + nb, marg), :] = zmarg
    act1[pl.ds(0, marg), :] = zmarg
    act1[pl.ds(marg + nb, marg), :] = zmarg

    mask = mask_ref[...]             # [nb, 1] f32: 1.0 at real spatial positions

    def conv3x3(src_ref, c_in, w_ref, b_ref, res_ref=None):
        """3x3 conv (stride 1, pad 1) + folded-BN shift (+residual) + ReLU."""
        for t in range(9):                               # statically unrolled taps
            dh, dw = divmod(t, 3)
            s = (dh - 1) * wp + (dw - 1)                 # row shift of this tap
            a = src_ref[pl.ds(marg + s, nb), :].astype(jnp.bfloat16)
            wt = w_ref[pl.ds(t * c_in, c_in), :]         # [c_in, 128] bf16
            p = jnp.dot(a, wt, preferred_element_type=jnp.float32)
            if t == 0:
                acc[...] = p                             # init (no zero fill)
            else:
                acc[...] += p
        y = acc[...] + b_ref[...]                        # folded-BN shift
        if res_ref is not None:
            y = y + res_ref[pl.ds(marg, nb), :]          # residual (identity)
        y = jnp.maximum(y, 0.0)                          # ReLU
        return y * mask                                  # keep spatial padding at 0

    # --- stem: Conv3x3 -> BN -> ReLU ---
    y0 = conv3x3(x_ref, _CIN_PAD, w0_ref, b0_ref)
    act0[pl.ds(marg, nb), :] = y0                        # identity for the block

    # --- BasicBlock(16->16): conv-bn-relu, conv-bn, +identity, relu ---
    y1 = conv3x3(act0, _CP, w1_ref, b1_ref)
    act1[pl.ds(marg, nb), :] = y1
    y2 = conv3x3(act1, _CP, w2_ref, b2_ref, res_ref=act0)

    # --- global average pool (padding rows are already zero) ---
    pooled = jnp.sum(y2, axis=0, keepdims=True) * (1.0 / (h * w))   # [1, 128]
    pooled_ref[...] = pooled

    # --- classifier (zero-padded to 128 output lanes) ---
    logits_ref[...] = (jnp.dot(pooled, wfc_ref[...],
                               preferred_element_type=jnp.float32)
                       + bfc_ref[...])


# ---------------------------------------------------------------------------
# Parameter init (deterministic, mirrors CifarResNetDDG.__init__)
# ---------------------------------------------------------------------------
def init_params(key, cin=3, width=16, num_classes=10):
    k = jax.random.split(key, 5)
    eps = 1e-5

    def conv_w(kk, cin_, cout_):
        n = 3 * 3 * cout_                                # k*k*out_channels
        return jax.random.normal(kk, (3, 3, cin_, cout_), jnp.float32) * math.sqrt(2.0 / n)

    def bn_fold(c):
        # weight=1, bias=0, running_mean=0, running_var=1 (eval mode)
        scale = jnp.full((c,), 1.0 / math.sqrt(1.0 + eps), jnp.float32)
        shift = jnp.zeros((c,), jnp.float32)
        return scale, shift

    bn0_s, bn0_b = bn_fold(width)
    bn1_s, bn1_b = bn_fold(width)
    bn2_s, bn2_b = bn_fold(width)

    return {
        "conv0_w": conv_w(k[0], cin, width),
        "bn0_scale": bn0_s, "bn0_shift": bn0_b,
        "b1c1_w": conv_w(k[1], width, width),
        "b1bn1_scale": bn1_s, "b1bn1_shift": bn1_b,
        "b1c2_w": conv_w(k[2], width, width),
        "b1bn2_scale": bn2_s, "b1bn2_shift": bn2_b,
        # Linear: kaiming_normal weight (std = sqrt(2/fan_in)); small uniform bias
        "fc_w": jax.random.normal(k[3], (width, num_classes), jnp.float32) * math.sqrt(2.0 / width),
        "fc_b": jax.random.uniform(k[4], (num_classes,), jnp.float32,
                                   minval=-1.0 / math.sqrt(width),
                                   maxval=1.0 / math.sqrt(width)),
    }


# ---------------------------------------------------------------------------
# Forward pass (== CifarResNetDDG.forward for the instantiated split)
# ---------------------------------------------------------------------------
def cifar_resnet_ddg_forward(x_nchw, params, splits_id=1, num_splits=2):
    x = jnp.transpose(x_nchw, (0, 2, 3, 1)).astype(jnp.float32)   # NCHW -> NHWC
    B, H, W, Cin = x.shape
    width = params["fc_w"].shape[0]
    num_classes = params["fc_w"].shape[1]

    HP, WP = H + 2, W + 2
    NB = HP * WP
    MARG = _round_up(WP + 1, 8)       # sublane-aligned row margin (>= max tap shift)
    NTOT = NB + 2 * MARG

    # Spatially zero-pad, pad stem channels to 8 lanes, flatten per batch and
    # add zero row-margins so shifted tap windows never run out of bounds.
    xp = jnp.pad(x, ((0, 0), (1, 1), (1, 1), (0, _CIN_PAD - Cin)))
    xm = jnp.pad(xp.reshape(B, NB, _CIN_PAD), ((0, 0), (MARG, MARG), (0, 0)))

    # Interior mask: 1.0 at real spatial positions, 0.0 at padding positions.
    rows = jnp.arange(NB)
    ii, jj = rows // WP, rows % WP
    mask = (((ii >= 1) & (ii <= H)) & ((jj >= 1) & (jj <= W))
            ).astype(jnp.float32).reshape(NB, 1)

    def prep_conv(w_key, s_key, b_key, cin_pad):
        wk3 = params[w_key]                                  # [3,3,cin,cout]
        scale, shift = params[s_key], params[b_key]
        cout = wk3.shape[-1]
        wf = wk3 * scale.reshape(1, 1, 1, cout)              # fold BN scale
        wf = jnp.pad(wf, ((0, 0), (0, 0),
                          (0, cin_pad - wk3.shape[2]), (0, _CP - cout)))
        wf = wf.reshape(9 * cin_pad, _CP).astype(jnp.bfloat16)
        sh = jnp.pad(shift.reshape(1, cout),
                     ((0, 0), (0, _CP - cout))).astype(jnp.float32)
        return wf, sh

    w0, b0 = prep_conv("conv0_w", "bn0_scale", "bn0_shift", _CIN_PAD)
    w1, b1 = prep_conv("b1c1_w", "b1bn1_scale", "b1bn1_shift", _CP)
    w2, b2 = prep_conv("b1c2_w", "b1bn2_scale", "b1bn2_shift", _CP)

    wfc = jnp.pad(params["fc_w"],
                  ((0, _CP - width), (0, _CP - num_classes))).astype(jnp.float32)
    bfc = jnp.pad(params["fc_b"],
                  (0, _CP - num_classes)).reshape(1, _CP).astype(jnp.float32)

    kern = functools.partial(_fused_kernel, h=H, w=W, marg=MARG)
    const = lambda b: (0, 0)

    pooled, logits = pl.pallas_call(
        kern,
        out_shape=(jax.ShapeDtypeStruct((B, 1, _CP), jnp.float32),
                   jax.ShapeDtypeStruct((B, 1, _CP), jnp.float32)),
        grid_spec=pltpu.PrefetchScalarGridSpec(
            num_scalar_prefetch=0,
            grid=(B,),
            in_specs=[
                pl.BlockSpec((None, NTOT, _CIN_PAD), lambda b: (b, 0, 0)),  # x
                pl.BlockSpec((NB, 1), const),                               # mask
                pl.BlockSpec((9 * _CIN_PAD, _CP), const),                   # w0
                pl.BlockSpec((1, _CP), const),                              # b0
                pl.BlockSpec((9 * _CP, _CP), const),                        # w1
                pl.BlockSpec((1, _CP), const),                              # b1
                pl.BlockSpec((9 * _CP, _CP), const),                        # w2
                pl.BlockSpec((1, _CP), const),                              # b2
                pl.BlockSpec((_CP, _CP), const),                            # wfc
                pl.BlockSpec((1, _CP), const),                              # bfc
            ],
            out_specs=(pl.BlockSpec((None, 1, _CP), lambda b: (b, 0, 0)),
                       pl.BlockSpec((None, 1, _CP), lambda b: (b, 0, 0))),
            scratch_shapes=[
                pltpu.VMEM((NTOT, _CP), jnp.float32),   # act0: stem out / identity
                pltpu.VMEM((NTOT, _CP), jnp.float32),   # act1: block conv1 out
                pltpu.VMEM((NB, _CP), jnp.float32),     # conv accumulator
            ]),
        compiler_params=pltpu.CompilerParams(
            dimension_semantics=("parallel",)),
    )(xm, mask, w0, b0, w1, b1, w2, b2, wfc, bfc)

    if splits_id == num_splits - 1:
        return logits.reshape(B, _CP)[:, :num_classes]   # flatten + classifier
    return pooled.reshape(B, _CP)[:, :width]             # features of this split


if __name__ == "__main__":
    key = jax.random.PRNGKey(0)
    kx, kp = jax.random.split(key)
    x = jax.random.normal(kx, (2, 3, 16, 16), jnp.float32)   # NCHW, CIFAR-like small
    params = init_params(kp, cin=3, width=16, num_classes=10)

    fwd = jax.jit(functools.partial(cifar_resnet_ddg_forward,
                                    splits_id=1, num_splits=2))
    out = fwd(x, params)
    jax.block_until_ready(out)
    assert out.shape == (2, 10) and out.dtype == jnp.float32
    print("KERNEL_OK")
</pallas_src>

<mosaic_0001>
module attributes {stable_mosaic.version = 11 : i64} {
  func.func @_fused_kernel(%arg0: i32, %arg1: memref<1x372x8xf32, #tpu.memory_space<vmem>>, %arg2: memref<324x1xf32, #tpu.memory_space<vmem>>, %arg3: memref<72x128xbf16, #tpu.memory_space<vmem>>, %arg4: memref<1x128xf32, #tpu.memory_space<vmem>>, %arg5: memref<1152x128xbf16, #tpu.memory_space<vmem>>, %arg6: memref<1x128xf32, #tpu.memory_space<vmem>>, %arg7: memref<1152x128xbf16, #tpu.memory_space<vmem>>, %arg8: memref<1x128xf32, #tpu.memory_space<vmem>>, %arg9: memref<128x128xf32, #tpu.memory_space<vmem>>, %arg10: memref<1x128xf32, #tpu.memory_space<vmem>>, %arg11: memref<1x1x128xf32, #tpu.memory_space<vmem>>, %arg12: memref<1x1x128xf32, #tpu.memory_space<vmem>>, %arg13: memref<372x128xf32, #tpu.memory_space<vmem>>, %arg14: memref<372x128xf32, #tpu.memory_space<vmem>>, %arg15: memref<324x128xf32, #tpu.memory_space<vmem>>) attributes {dimension_semantics = [#tpu.dimension_semantics<parallel>], iteration_bounds = array<i64: 2>, scalar_prefetch = 0 : i64, scratch_operands = 3 : i64, tpu.core_type = #tpu.core_type<tc>, window_params = [{transform_indices = @transform_0, window_bounds = array<i64: 1, 372, 8>}, {pipeline_mode = #tpu.pipeline_mode<synchronous>, transform_indices = @transform_1, window_bounds = array<i64: 324, 1>}, {pipeline_mode = #tpu.pipeline_mode<synchronous>, transform_indices = @transform_2, window_bounds = array<i64: 72, 128>}, {pipeline_mode = #tpu.pipeline_mode<synchronous>, transform_indices = @transform_3, window_bounds = array<i64: 1, 128>}, {pipeline_mode = #tpu.pipeline_mode<synchronous>, transform_indices = @transform_4, window_bounds = array<i64: 1152, 128>}, {pipeline_mode = #tpu.pipeline_mode<synchronous>, transform_indices = @transform_5, window_bounds = array<i64: 1, 128>}, {pipeline_mode = #tpu.pipeline_mode<synchronous>, transform_indices = @transform_6, window_bounds = array<i64: 1152, 128>}, {pipeline_mode = #tpu.pipeline_mode<synchronous>, transform_indices = @transform_7, window_bounds = array<i64: 1, 128>}, {pipeline_mode = #tpu.pipeline_mode<synchronous>, transform_indices = @transform_8, window_bounds = array<i64: 128, 128>}, {pipeline_mode = #tpu.pipeline_mode<synchronous>, transform_indices = @transform_9, window_bounds = array<i64: 1, 128>}, {transform_indices = @transform_10, window_bounds = array<i64: 1, 1, 128>}, {transform_indices = @transform_11, window_bounds = array<i64: 1, 1, 128>}]} {
    %cst = arith.constant 0.000000e+00 : f32
    %0 = vector.broadcast %cst : f32 to vector<24x128xf32>
    %c0 = arith.constant 0 : index
    %c0_0 = arith.constant 0 : index
    %1 = vector.load %arg13[%c0, %c0_0] : memref<372x128xf32, #tpu.memory_space<vmem>>, vector<24x128xf32>
    tpu.vector_store %arg13[%c0, %c0_0], %0 {strides = array<i32>} : memref<372x128xf32, #tpu.memory_space<vmem>>, vector<24x128xf32>,
    %c348 = arith.constant 348 : index
    %c0_1 = arith.constant 0 : index
    %2 = vector.load %arg13[%c348, %c0_1] : memref<372x128xf32, #tpu.memory_space<vmem>>, vector<24x128xf32>
    tpu.vector_store %arg13[%c348, %c0_1], %0 {strides = array<i32>} : memref<372x128xf32, #tpu.memory_space<vmem>>, vector<24x128xf32>,
    %c0_2 = arith.constant 0 : index
    %c0_3 = arith.constant 0 : index
    %3 = vector.load %arg14[%c0_2, %c0_3] : memref<372x128xf32, #tpu.memory_space<vmem>>, vector<24x128xf32>
    tpu.vector_store %arg14[%c0_2, %c0_3], %0 {strides = array<i32>} : memref<372x128xf32, #tpu.memory_space<vmem>>, vector<24x128xf32>,
    %c348_4 = arith.constant 348 : index
    %c0_5 = arith.constant 0 : index
    %4 = vector.load %arg14[%c348_4, %c0_5] : memref<372x128xf32, #tpu.memory_space<vmem>>, vector<24x128xf32>
    tpu.vector_store %arg14[%c348_4, %c0_5], %0 {strides = array<i32>} : memref<372x128xf32, #tpu.memory_space<vmem>>, vector<24x128xf32>,
    %c0_6 = arith.constant 0 : index
    %c0_7 = arith.constant 0 : index
    %5 = vector.load %arg2[%c0_6, %c0_7] : memref<324x1xf32, #tpu.memory_space<vmem>>, vector<324x1xf32>
    %c0_8 = arith.constant 0 : index
    %c5 = arith.constant 5 : index
    %c0_9 = arith.constant 0 : index
    %6 = vector.load %arg1[%c0_8, %c5, %c0_9] : memref<1x372x8xf32, #tpu.memory_space<vmem>>, vector<1x324x8xf32>
    %7 = vector.shape_cast %6 : vector<1x324x8xf32> to vector<324x8xf32>
    %8 = arith.truncf %7 : vector<324x8xf32> to vector<324x8xbf16>
    %c0_10 = arith.constant 0 : index
    %c0_11 = arith.constant 0 : index
    %9 = vector.load %arg3[%c0_10, %c0_11] : memref<72x128xbf16, #tpu.memory_space<vmem>>, vector<8x128xbf16>
    %cst_12 = arith.constant dense<0.000000e+00> : vector<324x128xf32>
    %10 = tpu.matmul %8, %9, %cst_12 {dimension_numbers = #tpu.dot_dimension_numbers<[1], [0], [0], [1], [0, 0, 1, 1], [], []>} : vector<324x8xbf16>, vector<8x128xbf16>, vector<324x128xf32> -> vector<324x128xf32>
    %c0_13 = arith.constant 0 : index
    %c0_14 = arith.constant 0 : index
    %11 = vector.load %arg15[%c0_13, %c0_14] : memref<324x128xf32, #tpu.memory_space<vmem>>, vector<324x128xf32>
    tpu.vector_store %arg15[%c0_13, %c0_14], %10 {strides = array<i32>} : memref<324x128xf32, #tpu.memory_space<vmem>>, vector<324x128xf32>,
    %c0_15 = arith.constant 0 : index
    %c6 = arith.constant 6 : index
    %c0_16 = arith.constant 0 : index
    %12 = vector.load %arg1[%c0_15, %c6, %c0_16] : memref<1x372x8xf32, #tpu.memory_space<vmem>>, vector<1x324x8xf32>
    %13 = vector.shape_cast %12 : vector<1x324x8xf32> to vector<324x8xf32>
    %14 = arith.truncf %13 : vector<324x8xf32> to vector<324x8xbf16>
    %c8 = arith.constant 8 : index
    %c0_17 = arith.constant 0 : index
    %15 = vector.load %arg3[%c8, %c0_17] : memref<72x128xbf16, #tpu.memory_space<vmem>>, vector<8x128xbf16>
    %cst_18 = arith.constant dense<0.000000e+00> : vector<324x128xf32>
    %16 = tpu.matmul %14, %15, %cst_18 {dimension_numbers = #tpu.dot_dimension_numbers<[1], [0], [0], [1], [0, 0, 1, 1], [], []>} : vector<324x8xbf16>, vector<8x128xbf16>, vector<324x128xf32> -> vector<324x128xf32>
    %c0_19 = arith.constant 0 : index
    %c0_20 = arith.constant 0 : index
    %17 = vector.load %arg15[%c0_19, %c0_20] : memref<324x128xf32, #tpu.memory_space<vmem>>, vector<324x128xf32>
    %18 = arith.addf %17, %16 : vector<324x128xf32>
    %c0_21 = arith.constant 0 : index
    %c0_22 = arith.constant 0 : index
    %19 = vector.load %arg15[%c0_21, %c0_22] : memref<324x128xf32, #tpu.memory_space<vmem>>, vector<324x128xf32>
    tpu.vector_store %arg15[%c0_21, %c0_22], %18 {strides = array<i32>} : memref<324x128xf32, #tpu.memory_space<vmem>>, vector<324x128xf32>,
    %c0_23 = arith.constant 0 : index
    %c7 = arith.constant 7 : index
    %c0_24 = arith.constant 0 : index
    %20 = vector.load %arg1[%c0_23, %c7, %c0_24] : memref<1x372x8xf32, #tpu.memory_space<vmem>>, vector<1x324x8xf32>
    %21 = vector.shape_cast %20 : vector<1x324x8xf32> to vector<324x8xf32>
    %22 = arith.truncf %21 : vector<324x8xf32> to vector<324x8xbf16>
    %c16 = arith.constant 16 : index
    %c0_25 = arith.constant 0 : index
    %23 = vector.load %arg3[%c16, %c0_25] : memref<72x128xbf16, #tpu.memory_space<vmem>>, vector<8x128xbf16>
    %cst_26 = arith.constant dense<0.000000e+00> : vector<324x128xf32>
    %24 = tpu.matmul %22, %23, %cst_26 {dimension_numbers = #tpu.dot_dimension_numbers<[1], [0], [0], [1], [0, 0, 1, 1], [], []>} : vector<324x8xbf16>, vector<8x128xbf16>, vector<324x128xf32> -> vector<324x128xf32>
    %c0_27 = arith.constant 0 : index
    %c0_28 = arith.constant 0 : index
    %25 = vector.load %arg15[%c0_27, %c0_28] : memref<324x128xf32, #tpu.memory_space<vmem>>, vector<324x128xf32>
    %26 = arith.addf %25, %24 : vector<324x128xf32>
    %c0_29 = arith.constant 0 : index
    %c0_30 = arith.constant 0 : index
    %27 = vector.load %arg15[%c0_29, %c0_30] : memref<324x128xf32, #tpu.memory_space<vmem>>, vector<324x128xf32>
    tpu.vector_store %arg15[%c0_29, %c0_30], %26 {strides = array<i32>} : memref<324x128xf32, #tpu.memory_space<vmem>>, vector<324x128xf32>,
    %c0_31 = arith.constant 0 : index
    %c23 = arith.constant 23 : index
    %c0_32 = arith.constant 0 : index
    %28 = vector.load %arg1[%c0_31, %c23, %c0_32] : memref<1x372x8xf32, #tpu.memory_space<vmem>>, vector<1x324x8xf32>
    %29 = vector.shape_cast %28 : vector<1x324x8xf32> to vector<324x8xf32>
    %30 = arith.truncf %29 : vector<324x8xf32> to vector<324x8xbf16>
    %c24 = arith.constant 24 : index
    %c0_33 = arith.constant 0 : index
    %31 = vector.load %arg3[%c24, %c0_33] : memref<72x128xbf16, #tpu.memory_space<vmem>>, vector<8x128xbf16>
    %cst_34 = arith.constant dense<0.000000e+00> : vector<324x128xf32>
    %32 = tpu.matmul %30, %31, %cst_34 {dimension_numbers = #tpu.dot_dimension_numbers<[1], [0], [0], [1], [0, 0, 1, 1], [], []>} : vector<324x8xbf16>, vector<8x128xbf16>, vector<324x128xf32> -> vector<324x128xf32>
    %c0_35 = arith.constant 0 : index
    %c0_36 = arith.constant 0 : index
    %33 = vector.load %arg15[%c0_35, %c0_36] : memref<324x128xf32, #tpu.memory_space<vmem>>, vector<324x128xf32>
    %34 = arith.addf %33, %32 : vector<324x128xf32>
    %c0_37 = arith.constant 0 : index
    %c0_38 = arith.constant 0 : index
    %35 = vector.load %arg15[%c0_37, %c0_38] : memref<324x128xf32, #tpu.memory_space<vmem>>, vector<324x128xf32>
    tpu.vector_store %arg15[%c0_37, %c0_38], %34 {strides = array<i32>} : memref<324x128xf32, #tpu.memory_space<vmem>>, vector<324x128xf32>,
    %c0_39 = arith.constant 0 : index
    %c24_40 = arith.constant 24 : index
    %c0_41 = arith.constant 0 : index
    %36 = vector.load %arg1[%c0_39, %c24_40, %c0_41] : memref<1x372x8xf32, #tpu.memory_space<vmem>>, vector<1x324x8xf32>
    %37 = vector.shape_cast %36 : vector<1x324x8xf32> to vector<324x8xf32>
    %38 = arith.truncf %37 : vector<324x8xf32> to vector<324x8xbf16>
    %c32 = arith.constant 32 : index
    %c0_42 = arith.constant 0 : index
    %39 = vector.load %arg3[%c32, %c0_42] : memref<72x128xbf16, #tpu.memory_space<vmem>>, vector<8x128xbf16>
    %cst_43 = arith.constant dense<0.000000e+00> : vector<324x128xf32>
    %40 = tpu.matmul %38, %39, %cst_43 {dimension_numbers = #tpu.dot_dimension_numbers<[1], [0], [0], [1], [0, 0, 1, 1], [], []>} : vector<324x8xbf16>, vector<8x128xbf16>, vector<324x128xf32> -> vector<324x128xf32>
    %c0_44 = arith.constant 0 : index
    %c0_45 = arith.constant 0 : index
    %41 = vector.load %arg15[%c0_44, %c0_45] : memref<324x128xf32, #tpu.memory_space<vmem>>, vector<324x128xf32>
    %42 = arith.addf %41, %40 : vector<324x128xf32>
    %c0_46 = arith.constant 0 : index
    %c0_47 = arith.constant 0 : index
    %43 = vector.load %arg15[%c0_46, %c0_47] : memref<324x128xf32, #tpu.memory_space<vmem>>, vector<324x128xf32>
    tpu.vector_store %arg15[%c0_46, %c0_47], %42 {strides = array<i32>} : memref<324x128xf32, #tpu.memory_space<vmem>>, vector<324x128xf32>,
    %c0_48 = arith.constant 0 : index
    %c25 = arith.constant 25 : index
    %c0_49 = arith.constant 0 : index
    %44 = vector.load %arg1[%c0_48, %c25, %c0_49] : memref<1x372x8xf32, #tpu.memory_space<vmem>>, vector<1x324x8xf32>
    %45 = vector.shape_cast %44 : vector<1x324x8xf32> to vector<324x8xf32>
    %46 = arith.truncf %45 : vector<324x8xf32> to vector<324x8xbf16>
    %c40 = arith.constant 40 : index
    %c0_50 = arith.constant 0 : index
    %47 = vector.load %arg3[%c40, %c0_50] : memref<72x128xbf16, #tpu.memory_space<vmem>>, vector<8x128xbf16>
    %cst_51 = arith.constant dense<0.000000e+00> : vector<324x128xf32>
    %48 = tpu.matmul %46, %47, %cst_51 {dimension_numbers = #tpu.dot_dimension_numbers<[1], [0], [0], [1], [0, 0, 1, 1], [], []>} : vector<324x8xbf16>, vector<8x128xbf16>, vector<324x128xf32> -> vector<324x128xf32>
    %c0_52 = arith.constant 0 : index
    %c0_53 = arith.constant 0 : index
    %49 = vector.load %arg15[%c0_52, %c0_53] : memref<324x128xf32, #tpu.memory_space<vmem>>, vector<324x128xf32>
    %50 = arith.addf %49, %48 : vector<324x128xf32>
    %c0_54 = arith.constant 0 : index
    %c0_55 = arith.constant 0 : index
    %51 = vector.load %arg15[%c0_54, %c0_55] : memref<324x128xf32, #tpu.memory_space<vmem>>, vector<324x128xf32>
    tpu.vector_store %arg15[%c0_54, %c0_55], %50 {strides = array<i32>} : memref<324x128xf32, #tpu.memory_space<vmem>>, vector<324x128xf32>,
    %c0_56 = arith.constant 0 : index
    %c41 = arith.constant 41 : index
    %c0_57 = arith.constant 0 : index
    %52 = vector.load %arg1[%c0_56, %c41, %c0_57] : memref<1x372x8xf32, #tpu.memory_space<vmem>>, vector<1x324x8xf32>
    %53 = vector.shape_cast %52 : vector<1x324x8xf32> to vector<324x8xf32>
    %54 = arith.truncf %53 : vector<324x8xf32> to vector<324x8xbf16>
    %c48 = arith.constant 48 : index
    %c0_58 = arith.constant 0 : index
    %55 = vector.load %arg3[%c48, %c0_58] : memref<72x128xbf16, #tpu.memory_space<vmem>>, vector<8x128xbf16>
    %cst_59 = arith.constant dense<0.000000e+00> : vector<324x128xf32>
    %56 = tpu.matmul %54, %55, %cst_59 {dimension_numbers = #tpu.dot_dimension_numbers<[1], [0], [0], [1], [0, 0, 1, 1], [], []>} : vector<324x8xbf16>, vector<8x128xbf16>, vector<324x128xf32> -> vector<324x128xf32>
    %c0_60 = arith.constant 0 : index
    %c0_61 = arith.constant 0 : index
    %57 = vector.load %arg15[%c0_60, %c0_61] : memref<324x128xf32, #tpu.memory_space<vmem>>, vector<324x128xf32>
    %58 = arith.addf %57, %56 : vector<324x128xf32>
    %c0_62 = arith.constant 0 : index
    %c0_63 = arith.constant 0 : index
    %59 = vector.load %arg15[%c0_62, %c0_63] : memref<324x128xf32, #tpu.memory_space<vmem>>, vector<324x128xf32>
    tpu.vector_store %arg15[%c0_62, %c0_63], %58 {strides = array<i32>} : memref<324x128xf32, #tpu.memory_space<vmem>>, vector<324x128xf32>,
    %c0_64 = arith.constant 0 : index
    %c42 = arith.constant 42 : index
    %c0_65 = arith.constant 0 : index
    %60 = vector.load %arg1[%c0_64, %c42, %c0_65] : memref<1x372x8xf32, #tpu.memory_space<vmem>>, vector<1x324x8xf32>
    %61 = vector.shape_cast %60 : vector<1x324x8xf32> to vector<324x8xf32>
    %62 = arith.truncf %61 : vector<324x8xf32> to vector<324x8xbf16>
    %c56 = arith.constant 56 : index
    %c0_66 = arith.constant 0 : index
    %63 = vector.load %arg3[%c56, %c0_66] : memref<72x128xbf16, #tpu.memory_space<vmem>>, vector<8x128xbf16>
    %cst_67 = arith.constant dense<0.000000e+00> : vector<324x128xf32>
    %64 = tpu.matmul %62, %63, %cst_67 {dimension_numbers = #tpu.dot_dimension_numbers<[1], [0], [0], [1], [0, 0, 1, 1], [], []>} : vector<324x8xbf16>, vector<8x128xbf16>, vector<324x128xf32> -> vector<324x128xf32>
    %c0_68 = arith.constant 0 : index
    %c0_69 = arith.constant 0 : index
    %65 = vector.load %arg15[%c0_68, %c0_69] : memref<324x128xf32, #tpu.memory_space<vmem>>, vector<324x128xf32>
    %66 = arith.addf %65, %64 : vector<324x128xf32>
    %c0_70 = arith.constant 0 : index
    %c0_71 = arith.constant 0 : index
    %67 = vector.load %arg15[%c0_70, %c0_71] : memref<324x128xf32, #tpu.memory_space<vmem>>, vector<324x128xf32>
    tpu.vector_store %arg15[%c0_70, %c0_71], %66 {strides = array<i32>} : memref<324x128xf32, #tpu.memory_space<vmem>>, vector<324x128xf32>,
    %c0_72 = arith.constant 0 : index
    %c43 = arith.constant 43 : index
    %c0_73 = arith.constant 0 : index
    %68 = vector.load %arg1[%c0_72, %c43, %c0_73] : memref<1x372x8xf32, #tpu.memory_space<vmem>>, vector<1x324x8xf32>
    %69 = vector.shape_cast %68 : vector<1x324x8xf32> to vector<324x8xf32>
    %70 = arith.truncf %69 : vector<324x8xf32> to vector<324x8xbf16>
    %c64 = arith.constant 64 : index
    %c0_74 = arith.constant 0 : index
    %71 = vector.load %arg3[%c64, %c0_74] : memref<72x128xbf16, #tpu.memory_space<vmem>>, vector<8x128xbf16>
    %cst_75 = arith.constant dense<0.000000e+00> : vector<324x128xf32>
    %72 = tpu.matmul %70, %71, %cst_75 {dimension_numbers = #tpu.dot_dimension_numbers<[1], [0], [0], [1], [0, 0, 1, 1], [], []>} : vector<324x8xbf16>, vector<8x128xbf16>, vector<324x128xf32> -> vector<324x128xf32>
    %c0_76 = arith.constant 0 : index
    %c0_77 = arith.constant 0 : index
    %73 = vector.load %arg15[%c0_76, %c0_77] : memref<324x128xf32, #tpu.memory_space<vmem>>, vector<324x128xf32>
    %74 = arith.addf %73, %72 : vector<324x128xf32>
    %c0_78 = arith.constant 0 : index
    %c0_79 = arith.constant 0 : index
    %75 = vector.load %arg15[%c0_78, %c0_79] : memref<324x128xf32, #tpu.memory_space<vmem>>, vector<324x128xf32>
    tpu.vector_store %arg15[%c0_78, %c0_79], %74 {strides = array<i32>} : memref<324x128xf32, #tpu.memory_space<vmem>>, vector<324x128xf32>,
    %c0_80 = arith.constant 0 : index
    %c0_81 = arith.constant 0 : index
    %76 = vector.load %arg15[%c0_80, %c0_81] : memref<324x128xf32, #tpu.memory_space<vmem>>, vector<324x128xf32>
    %c0_82 = arith.constant 0 : index
    %c0_83 = arith.constant 0 : index
    %77 = vector.load %arg4[%c0_82, %c0_83] : memref<1x128xf32, #tpu.memory_space<vmem>>, vector<1x128xf32>
    %78 = vector.broadcast %77 : vector<1x128xf32> to vector<324x128xf32>
    %79 = arith.addf %76, %78 : vector<324x128xf32>
    %cst_84 = arith.constant 0.000000e+00 : f32
    %80 = vector.broadcast %cst_84 : f32 to vector<324x128xf32>
    %81 = arith.maximumf %79, %80 : vector<324x128xf32>
    %82 = vector.broadcast %5 : vector<324x1xf32> to vector<324x128xf32>
    %83 = arith.mulf %81, %82 : vector<324x128xf32>
    %c24_85 = arith.constant 24 : index
    %c0_86 = arith.constant 0 : index
    %84 = vector.load %arg13[%c24_85, %c0_86] : memref<372x128xf32, #tpu.memory_space<vmem>>, vector<324x128xf32>
    tpu.vector_store %arg13[%c24_85, %c0_86], %83 {strides = array<i32>} : memref<372x128xf32, #tpu.memory_space<vmem>>, vector<324x128xf32>,
    %c5_87 = arith.constant 5 : index
    %c0_88 = arith.constant 0 : index
    %85 = vector.load %arg13[%c5_87, %c0_88] : memref<372x128xf32, #tpu.memory_space<vmem>>, vector<324x128xf32>
    %86 = arith.truncf %85 : vector<324x128xf32> to vector<324x128xbf16>
    %c0_89 = arith.constant 0 : index
    %c0_90 = arith.constant 0 : index
    %87 = vector.load %arg5[%c0_89, %c0_90] : memref<1152x128xbf16, #tpu.memory_space<vmem>>, vector<128x128xbf16>
    %cst_91 = arith.constant dense<0.000000e+00> : vector<324x128xf32>
    %88 = tpu.matmul %86, %87, %cst_91 {dimension_numbers = #tpu.dot_dimension_numbers<[1], [0], [0], [1], [0, 0, 1, 1], [], []>} : vector<324x128xbf16>, vector<128x128xbf16>, vector<324x128xf32> -> vector<324x128xf32>
    %c0_92 = arith.constant 0 : index
    %c0_93 = arith.constant 0 : index
    %89 = vector.load %arg15[%c0_92, %c0_93] : memref<324x128xf32, #tpu.memory_space<vmem>>, vector<324x128xf32>
    tpu.vector_store %arg15[%c0_92, %c0_93], %88 {strides = array<i32>} : memref<324x128xf32, #tpu.memory_space<vmem>>, vector<324x128xf32>,
    %c6_94 = arith.constant 6 : index
    %c0_95 = arith.constant 0 : index
    %90 = vector.load %arg13[%c6_94, %c0_95] : memref<372x128xf32, #tpu.memory_space<vmem>>, vector<324x128xf32>
    %91 = arith.truncf %90 : vector<324x128xf32> to vector<324x128xbf16>
    %c128 = arith.constant 128 : index
    %c0_96 = arith.constant 0 : index
    %92 = vector.load %arg5[%c128, %c0_96] : memref<1152x128xbf16, #tpu.memory_space<vmem>>, vector<128x128xbf16>
    %cst_97 = arith.constant dense<0.000000e+00> : vector<324x128xf32>
    %93 = tpu.matmul %91, %92, %cst_97 {dimension_numbers = #tpu.dot_dimension_numbers<[1], [0], [0], [1], [0, 0, 1, 1], [], []>} : vector<324x128xbf16>, vector<128x128xbf16>, vector<324x128xf32> -> vector<324x128xf32>
    %c0_98 = arith.constant 0 : index
    %c0_99 = arith.constant 0 : index
    %94 = vector.load %arg15[%c0_98, %c0_99] : memref<324x128xf32, #tpu.memory_space<vmem>>, vector<324x128xf32>
    %95 = arith.addf %94, %93 : vector<324x128xf32>
    %c0_100 = arith.constant 0 : index
    %c0_101 = arith.constant 0 : index
    %96 = vector.load %arg15[%c0_100, %c0_101] : memref<324x128xf32, #tpu.memory_space<vmem>>, vector<324x128xf32>
    tpu.vector_store %arg15[%c0_100, %c0_101], %95 {strides = array<i32>} : memref<324x128xf32, #tpu.memory_space<vmem>>, vector<324x128xf32>,
    %c7_102 = arith.constant 7 : index
    %c0_103 = arith.constant 0 : index
    %97 = vector.load %arg13[%c7_102, %c0_103] : memref<372x128xf32, #tpu.memory_space<vmem>>, vector<324x128xf32>
    %98 = arith.truncf %97 : vector<324x128xf32> to vector<324x128xbf16>
    %c256 = arith.constant 256 : index
    %c0_104 = arith.constant 0 : index
    %99 = vector.load %arg5[%c256, %c0_104] : memref<1152x128xbf16, #tpu.memory_space<vmem>>, vector<128x128xbf16>
    %cst_105 = arith.constant dense<0.000000e+00> : vector<324x128xf32>
    %100 = tpu.matmul %98, %99, %cst_105 {dimension_numbers = #tpu.dot_dimension_numbers<[1], [0], [0], [1], [0, 0, 1, 1], [], []>} : vector<324x128xbf16>, vector<128x128xbf16>, vector<324x128xf32> -> vector<324x128xf32>
    %c0_106 = arith.constant 0 : index
    %c0_107 = arith.constant 0 : index
    %101 = vector.load %arg15[%c0_106, %c0_107] : memref<324x128xf32, #tpu.memory_space<vmem>>, vector<324x128xf32>
    %102 = arith.addf %101, %100 : vector<324x128xf32>
    %c0_108 = arith.constant 0 : index
    %c0_109 = arith.constant 0 : index
    %103 = vector.load %arg15[%c0_108, %c0_109] : memref<324x128xf32, #tpu.memory_space<vmem>>, vector<324x128xf32>
    tpu.vector_store %arg15[%c0_108, %c0_109], %102 {strides = array<i32>} : memref<324x128xf32, #tpu.memory_space<vmem>>, vector<324x128xf32>,
    %c23_110 = arith.constant 23 : index
    %c0_111 = arith.constant 0 : index
    %104 = vector.load %arg13[%c23_110, %c0_111] : memref<372x128xf32, #tpu.memory_space<vmem>>, vector<324x128xf32>
    %105 = arith.truncf %104 : vector<324x128xf32> to vector<324x128xbf16>
    %c384 = arith.constant 384 : index
    %c0_112 = arith.constant 0 : index
    %106 = vector.load %arg5[%c384, %c0_112] : memref<1152x128xbf16, #tpu.memory_space<vmem>>, vector<128x128xbf16>
    %cst_113 = arith.constant dense<0.000000e+00> : vector<324x128xf32>
    %107 = tpu.matmul %105, %106, %cst_113 {dimension_numbers = #tpu.dot_dimension_numbers<[1], [0], [0], [1], [0, 0, 1, 1], [], []>} : vector<324x128xbf16>, vector<128x128xbf16>, vector<324x128xf32> -> vector<324x128xf32>
    %c0_114 = arith.constant 0 : index
    %c0_115 = arith.constant 0 : index
    %108 = vector.load %arg15[%c0_114, %c0_115] : memref<324x128xf32, #tpu.memory_space<vmem>>, vector<324x128xf32>
    %109 = arith.addf %108, %107 : vector<324x128xf32>
    %c0_116 = arith.constant 0 : index
    %c0_117 = arith.constant 0 : index
    %110 = vector.load %arg15[%c0_116, %c0_117] : memref<324x128xf32, #tpu.memory_space<vmem>>, vector<324x128xf32>
    tpu.vector_store %arg15[%c0_116, %c0_117], %109 {strides = array<i32>} : memref<324x128xf32, #tpu.memory_space<vmem>>, vector<324x128xf32>,
    %c24_118 = arith.constant 24 : index
    %c0_119 = arith.constant 0 : index
    %111 = vector.load %arg13[%c24_118, %c0_119] : memref<372x128xf32, #tpu.memory_space<vmem>>, vector<324x128xf32>
    %112 = arith.truncf %111 : vector<324x128xf32> to vector<324x128xbf16>
    %c512 = arith.constant 512 : index
    %c0_120 = arith.constant 0 : index
    %113 = vector.load %arg5[%c512, %c0_120] : memref<1152x128xbf16, #tpu.memory_space<vmem>>, vector<128x128xbf16>
    %cst_121 = arith.constant dense<0.000000e+00> : vector<324x128xf32>
    %114 = tpu.matmul %112, %113, %cst_121 {dimension_numbers = #tpu.dot_dimension_numbers<[1], [0], [0], [1], [0, 0, 1, 1], [], []>} : vector<324x128xbf16>, vector<128x128xbf16>, vector<324x128xf32> -> vector<324x128xf32>
    %c0_122 = arith.constant 0 : index
    %c0_123 = arith.constant 0 : index
    %115 = vector.load %arg15[%c0_122, %c0_123] : memref<324x128xf32, #tpu.memory_space<vmem>>, vector<324x128xf32>
    %116 = arith.addf %115, %114 : vector<324x128xf32>
    %c0_124 = arith.constant 0 : index
    %c0_125 = arith.constant 0 : index
    %117 = vector.load %arg15[%c0_124, %c0_125] : memref<324x128xf32, #tpu.memory_space<vmem>>, vector<324x128xf32>
    tpu.vector_store %arg15[%c0_124, %c0_125], %116 {strides = array<i32>} : memref<324x128xf32, #tpu.memory_space<vmem>>, vector<324x128xf32>,
    %c25_126 = arith.constant 25 : index
    %c0_127 = arith.constant 0 : index
    %118 = vector.load %arg13[%c25_126, %c0_127] : memref<372x128xf32, #tpu.memory_space<vmem>>, vector<324x128xf32>
    %119 = arith.truncf %118 : vector<324x128xf32> to vector<324x128xbf16>
    %c640 = arith.constant 640 : index
    %c0_128 = arith.constant 0 : index
    %120 = vector.load %arg5[%c640, %c0_128] : memref<1152x128xbf16, #tpu.memory_space<vmem>>, vector<128x128xbf16>
    %cst_129 = arith.constant dense<0.000000e+00> : vector<324x128xf32>
    %121 = tpu.matmul %119, %120, %cst_129 {dimension_numbers = #tpu.dot_dimension_numbers<[1], [0], [0], [1], [0, 0, 1, 1], [], []>} : vector<324x128xbf16>, vector<128x128xbf16>, vector<324x128xf32> -> vector<324x128xf32>
    %c0_130 = arith.constant 0 : index
    %c0_131 = arith.constant 0 : index
    %122 = vector.load %arg15[%c0_130, %c0_131] : memref<324x128xf32, #tpu.memory_space<vmem>>, vector<324x128xf32>
    %123 = arith.addf %122, %121 : vector<324x128xf32>
    %c0_132 = arith.constant 0 : index
    %c0_133 = arith.constant 0 : index
    %124 = vector.load %arg15[%c0_132, %c0_133] : memref<324x128xf32, #tpu.memory_space<vmem>>, vector<324x128xf32>
    tpu.vector_store %arg15[%c0_132, %c0_133], %123 {strides = array<i32>} : memref<324x128xf32, #tpu.memory_space<vmem>>, vector<324x128xf32>,
    %c41_134 = arith.constant 41 : index
    %c0_135 = arith.constant 0 : index
    %125 = vector.load %arg13[%c41_134, %c0_135] : memref<372x128xf32, #tpu.memory_space<vmem>>, vector<324x128xf32>
    %126 = arith.truncf %125 : vector<324x128xf32> to vector<324x128xbf16>
    %c768 = arith.constant 768 : index
    %c0_136 = arith.constant 0 : index
    %127 = vector.load %arg5[%c768, %c0_136] : memref<1152x128xbf16, #tpu.memory_space<vmem>>, vector<128x128xbf16>
    %cst_137 = arith.constant dense<0.000000e+00> : vector<324x128xf32>
    %128 = tpu.matmul %126, %127, %cst_137 {dimension_numbers = #tpu.dot_dimension_numbers<[1], [0], [0], [1], [0, 0, 1, 1], [], []>} : vector<324x128xbf16>, vector<128x128xbf16>, vector<324x128xf32> -> vector<324x128xf32>
    %c0_138 = arith.constant 0 : index
    %c0_139 = arith.constant 0 : index
    %129 = vector.load %arg15[%c0_138, %c0_139] : memref<324x128xf32, #tpu.memory_space<vmem>>, vector<324x128xf32>
    %130 = arith.addf %129, %128 : vector<324x128xf32>
    %c0_140 = arith.constant 0 : index
    %c0_141 = arith.constant 0 : index
    %131 = vector.load %arg15[%c0_140, %c0_141] : memref<324x128xf32, #tpu.memory_space<vmem>>, vector<324x128xf32>
    tpu.vector_store %arg15[%c0_140, %c0_141], %130 {strides = array<i32>} : memref<324x128xf32, #tpu.memory_space<vmem>>, vector<324x128xf32>,
    %c42_142 = arith.constant 42 : index
    %c0_143 = arith.constant 0 : index
    %132 = vector.load %arg13[%c42_142, %c0_143] : memref<372x128xf32, #tpu.memory_space<vmem>>, vector<324x128xf32>
    %133 = arith.truncf %132 : vector<324x128xf32> to vector<324x128xbf16>
    %c896 = arith.constant 896 : index
    %c0_144 = arith.constant 0 : index
    %134 = vector.load %arg5[%c896, %c0_144] : memref<1152x128xbf16, #tpu.memory_space<vmem>>, vector<128x128xbf16>
    %cst_145 = arith.constant dense<0.000000e+00> : vector<324x128xf32>
    %135 = tpu.matmul %133, %134, %cst_145 {dimension_numbers = #tpu.dot_dimension_numbers<[1], [0], [0], [1], [0, 0, 1, 1], [], []>} : vector<324x128xbf16>, vector<128x128xbf16>, vector<324x128xf32> -> vector<324x128xf32>
    %c0_146 = arith.constant 0 : index
    %c0_147 = arith.constant 0 : index
    %136 = vector.load %arg15[%c0_146, %c0_147] : memref<324x128xf32, #tpu.memory_space<vmem>>, vector<324x128xf32>
    %137 = arith.addf %136, %135 : vector<324x128xf32>
    %c0_148 = arith.constant 0 : index
    %c0_149 = arith.constant 0 : index
    %138 = vector.load %arg15[%c0_148, %c0_149] : memref<324x128xf32, #tpu.memory_space<vmem>>, vector<324x128xf32>
    tpu.vector_store %arg15[%c0_148, %c0_149], %137 {strides = array<i32>} : memref<324x128xf32, #tpu.memory_space<vmem>>, vector<324x128xf32>,
    %c43_150 = arith.constant 43 : index
    %c0_151 = arith.constant 0 : index
    %139 = vector.load %arg13[%c43_150, %c0_151] : memref<372x128xf32, #tpu.memory_space<vmem>>, vector<324x128xf32>
    %140 = arith.truncf %139 : vector<324x128xf32> to vector<324x128xbf16>
    %c1024 = arith.constant 1024 : index
    %c0_152 = arith.constant 0 : index
    %141 = vector.load %arg5[%c1024, %c0_152] : memref<1152x128xbf16, #tpu.memory_space<vmem>>, vector<128x128xbf16>
    %cst_153 = arith.constant dense<0.000000e+00> : vector<324x128xf32>
    %142 = tpu.matmul %140, %141, %cst_153 {dimension_numbers = #tpu.dot_dimension_numbers<[1], [0], [0], [1], [0, 0, 1, 1], [], []>} : vector<324x128xbf16>, vector<128x128xbf16>, vector<324x128xf32> -> vector<324x128xf32>
    %c0_154 = arith.constant 0 : index
    %c0_155 = arith.constant 0 : index
    %143 = vector.load %arg15[%c0_154, %c0_155] : memref<324x128xf32, #tpu.memory_space<vmem>>, vector<324x128xf32>
    %144 = arith.addf %143, %142 : vector<324x128xf32>
    %c0_156 = arith.constant 0 : index
    %c0_157 = arith.constant 0 : index
    %145 = vector.load %arg15[%c0_156, %c0_157] : memref<324x128xf32, #tpu.memory_space<vmem>>, vector<324x128xf32>
    tpu.vector_store %arg15[%c0_156, %c0_157], %144 {strides = array<i32>} : memref<324x128xf32, #tpu.memory_space<vmem>>, vector<324x128xf32>,
    %c0_158 = arith.constant 0 : index
    %c0_159 = arith.constant 0 : index
    %146 = vector.load %arg15[%c0_158, %c0_159] : memref<324x128xf32, #tpu.memory_space<vmem>>, vector<324x128xf32>
    %c0_160 = arith.constant 0 : index
    %c0_161 = arith.constant 0 : index
    %147 = vector.load %arg6[%c0_160, %c0_161] : memref<1x128xf32, #tpu.memory_space<vmem>>, vector<1x128xf32>
    %148 = vector.broadcast %147 : vector<1x128xf32> to vector<324x128xf32>
    %149 = arith.addf %146, %148 : vector<324x128xf32>
    %cst_162 = arith.constant 0.000000e+00 : f32
    %150 = vector.broadcast %cst_162 : f32 to vector<324x128xf32>
    %151 = arith.maximumf %149, %150 : vector<324x128xf32>
    %152 = vector.broadcast %5 : vector<324x1xf32> to vector<324x128xf32>
    %153 = arith.mulf %151, %152 : vector<324x128xf32>
    %c24_163 = arith.constant 24 : index
    %c0_164 = arith.constant 0 : index
    %154 = vector.load %arg14[%c24_163, %c0_164] : memref<372x128xf32, #tpu.memory_space<vmem>>, vector<324x128xf32>
    tpu.vector_store %arg14[%c24_163, %c0_164], %153 {strides = array<i32>} : memref<372x128xf32, #tpu.memory_space<vmem>>, vector<324x128xf32>,
    %c5_165 = arith.constant 5 : index
    %c0_166 = arith.constant 0 : index
    %155 = vector.load %arg14[%c5_165, %c0_166] : memref<372x128xf32, #tpu.memory_space<vmem>>, vector<324x128xf32>
    %156 = arith.truncf %155 : vector<324x128xf32> to vector<324x128xbf16>
    %c0_167 = arith.constant 0 : index
    %c0_168 = arith.constant 0 : index
    %157 = vector.load %arg7[%c0_167, %c0_168] : memref<1152x128xbf16, #tpu.memory_space<vmem>>, vector<128x128xbf16>
    %cst_169 = arith.constant dense<0.000000e+00> : vector<324x128xf32>
    %158 = tpu.matmul %156, %157, %cst_169 {dimension_numbers = #tpu.dot_dimension_numbers<[1], [0], [0], [1], [0, 0, 1, 1], [], []>} : vector<324x128xbf16>, vector<128x128xbf16>, vector<324x128xf32> -> vector<324x128xf32>
    %c0_170 = arith.constant 0 : index
    %c0_171 = arith.constant 0 : index
    %159 = vector.load %arg15[%c0_170, %c0_171] : memref<324x128xf32, #tpu.memory_space<vmem>>, vector<324x128xf32>
    tpu.vector_store %arg15[%c0_170, %c0_171], %158 {strides = array<i32>} : memref<324x128xf32, #tpu.memory_space<vmem>>, vector<324x128xf32>,
    %c6_172 = arith.constant 6 : index
    %c0_173 = arith.constant 0 : index
    %160 = vector.load %arg14[%c6_172, %c0_173] : memref<372x128xf32, #tpu.memory_space<vmem>>, vector<324x128xf32>
    %161 = arith.truncf %160 : vector<324x128xf32> to vector<324x128xbf16>
    %c128_174 = arith.constant 128 : index
    %c0_175 = arith.constant 0 : index
    %162 = vector.load %arg7[%c128_174, %c0_175] : memref<1152x128xbf16, #tpu.memory_space<vmem>>, vector<128x128xbf16>
    %cst_176 = arith.constant dense<0.000000e+00> : vector<324x128xf32>
    %163 = tpu.matmul %161, %162, %cst_176 {dimension_numbers = #tpu.dot_dimension_numbers<[1], [0], [0], [1], [0, 0, 1, 1], [], []>} : vector<324x128xbf16>, vector<128x128xbf16>, vector<324x128xf32> -> vector<324x128xf32>
    %c0_177 = arith.constant 0 : index
    %c0_178 = arith.constant 0 : index
    %164 = vector.load %arg15[%c0_177, %c0_178] : memref<324x128xf32, #tpu.memory_space<vmem>>, vector<324x128xf32>
    %165 = arith.addf %164, %163 : vector<324x128xf32>
    %c0_179 = arith.constant 0 : index
    %c0_180 = arith.constant 0 : index
    %166 = vector.load %arg15[%c0_179, %c0_180] : memref<324x128xf32, #tpu.memory_space<vmem>>, vector<324x128xf32>
    tpu.vector_store %arg15[%c0_179, %c0_180], %165 {strides = array<i32>} : memref<324x128xf32, #tpu.memory_space<vmem>>, vector<324x128xf32>,
    %c7_181 = arith.constant 7 : index
    %c0_182 = arith.constant 0 : index
    %167 = vector.load %arg14[%c7_181, %c0_182] : memref<372x128xf32, #tpu.memory_space<vmem>>, vector<324x128xf32>
    %168 = arith.truncf %167 : vector<324x128xf32> to vector<324x128xbf16>
    %c256_183 = arith.constant 256 : index
    %c0_184 = arith.constant 0 : index
    %169 = vector.load %arg7[%c256_183, %c0_184] : memref<1152x128xbf16, #tpu.memory_space<vmem>>, vector<128x128xbf16>
    %cst_185 = arith.constant dense<0.000000e+00> : vector<324x128xf32>
    %170 = tpu.matmul %168, %169, %cst_185 {dimension_numbers = #tpu.dot_dimension_numbers<[1], [0], [0], [1], [0, 0, 1, 1], [], []>} : vector<324x128xbf16>, vector<128x128xbf16>, vector<324x128xf32> -> vector<324x128xf32>
    %c0_186 = arith.constant 0 : index
    %c0_187 = arith.constant 0 : index
    %171 = vector.load %arg15[%c0_186, %c0_187] : memref<324x128xf32, #tpu.memory_space<vmem>>, vector<324x128xf32>
    %172 = arith.addf %171, %170 : vector<324x128xf32>
    %c0_188 = arith.constant 0 : index
    %c0_189 = arith.constant 0 : index
    %173 = vector.load %arg15[%c0_188, %c0_189] : memref<324x128xf32, #tpu.memory_space<vmem>>, vector<324x128xf32>
    tpu.vector_store %arg15[%c0_188, %c0_189], %172 {strides = array<i32>} : memref<324x128xf32, #tpu.memory_space<vmem>>, vector<324x128xf32>,
    %c23_190 = arith.constant 23 : index
    %c0_191 = arith.constant 0 : index
    %174 = vector.load %arg14[%c23_190, %c0_191] : memref<372x128xf32, #tpu.memory_space<vmem>>, vector<324x128xf32>
    %175 = arith.truncf %174 : vector<324x128xf32> to vector<324x128xbf16>
    %c384_192 = arith.constant 384 : index
    %c0_193 = arith.constant 0 : index
    %176 = vector.load %arg7[%c384_192, %c0_193] : memref<1152x128xbf16, #tpu.memory_space<vmem>>, vector<128x128xbf16>
    %cst_194 = arith.constant dense<0.000000e+00> : vector<324x128xf32>
    %177 = tpu.matmul %175, %176, %cst_194 {dimension_numbers = #tpu.dot_dimension_numbers<[1], [0], [0], [1], [0, 0, 1, 1], [], []>} : vector<324x128xbf16>, vector<128x128xbf16>, vector<324x128xf32> -> vector<324x128xf32>
    %c0_195 = arith.constant 0 : index
    %c0_196 = arith.constant 0 : index
    %178 = vector.load %arg15[%c0_195, %c0_196] : memref<324x128xf32, #tpu.memory_space<vmem>>, vector<324x128xf32>
    %179 = arith.addf %178, %177 : vector<324x128xf32>
    %c0_197 = arith.constant 0 : index
    %c0_198 = arith.constant 0 : index
    %180 = vector.load %arg15[%c0_197, %c0_198] : memref<324x128xf32, #tpu.memory_space<vmem>>, vector<324x128xf32>
    tpu.vector_store %arg15[%c0_197, %c0_198], %179 {strides = array<i32>} : memref<324x128xf32, #tpu.memory_space<vmem>>, vector<324x128xf32>,
    %c24_199 = arith.constant 24 : index
    %c0_200 = arith.constant 0 : index
    %181 = vector.load %arg14[%c24_199, %c0_200] : memref<372x128xf32, #tpu.memory_space<vmem>>, vector<324x128xf32>
    %182 = arith.truncf %181 : vector<324x128xf32> to vector<324x128xbf16>
    %c512_201 = arith.constant 512 : index
    %c0_202 = arith.constant 0 : index
    %183 = vector.load %arg7[%c512_201, %c0_202] : memref<1152x128xbf16, #tpu.memory_space<vmem>>, vector<128x128xbf16>
    %cst_203 = arith.constant dense<0.000000e+00> : vector<324x128xf32>
    %184 = tpu.matmul %182, %183, %cst_203 {dimension_numbers = #tpu.dot_dimension_numbers<[1], [0], [0], [1], [0, 0, 1, 1], [], []>} : vector<324x128xbf16>, vector<128x128xbf16>, vector<324x128xf32> -> vector<324x128xf32>
    %c0_204 = arith.constant 0 : index
    %c0_205 = arith.constant 0 : index
    %185 = vector.load %arg15[%c0_204, %c0_205] : memref<324x128xf32, #tpu.memory_space<vmem>>, vector<324x128xf32>
    %186 = arith.addf %185, %184 : vector<324x128xf32>
    %c0_206 = arith.constant 0 : index
    %c0_207 = arith.constant 0 : index
    %187 = vector.load %arg15[%c0_206, %c0_207] : memref<324x128xf32, #tpu.memory_space<vmem>>, vector<324x128xf32>
    tpu.vector_store %arg15[%c0_206, %c0_207], %186 {strides = array<i32>} : memref<324x128xf32, #tpu.memory_space<vmem>>, vector<324x128xf32>,
    %c25_208 = arith.constant 25 : index
    %c0_209 = arith.constant 0 : index
    %188 = vector.load %arg14[%c25_208, %c0_209] : memref<372x128xf32, #tpu.memory_space<vmem>>, vector<324x128xf32>
    %189 = arith.truncf %188 : vector<324x128xf32> to vector<324x128xbf16>
    %c640_210 = arith.constant 640 : index
    %c0_211 = arith.constant 0 : index
    %190 = vector.load %arg7[%c640_210, %c0_211] : memref<1152x128xbf16, #tpu.memory_space<vmem>>, vector<128x128xbf16>
    %cst_212 = arith.constant dense<0.000000e+00> : vector<324x128xf32>
    %191 = tpu.matmul %189, %190, %cst_212 {dimension_numbers = #tpu.dot_dimension_numbers<[1], [0], [0], [1], [0, 0, 1, 1], [], []>} : vector<324x128xbf16>, vector<128x128xbf16>, vector<324x128xf32> -> vector<324x128xf32>
    %c0_213 = arith.constant 0 : index
    %c0_214 = arith.constant 0 : index
    %192 = vector.load %arg15[%c0_213, %c0_214] : memref<324x128xf32, #tpu.memory_space<vmem>>, vector<324x128xf32>
    %193 = arith.addf %192, %191 : vector<324x128xf32>
    %c0_215 = arith.constant 0 : index
    %c0_216 = arith.constant 0 : index
    %194 = vector.load %arg15[%c0_215, %c0_216] : memref<324x128xf32, #tpu.memory_space<vmem>>, vector<324x128xf32>
    tpu.vector_store %arg15[%c0_215, %c0_216], %193 {strides = array<i32>} : memref<324x128xf32, #tpu.memory_space<vmem>>, vector<324x128xf32>,
    %c41_217 = arith.constant 41 : index
    %c0_218 = arith.constant 0 : index
    %195 = vector.load %arg14[%c41_217, %c0_218] : memref<372x128xf32, #tpu.memory_space<vmem>>, vector<324x128xf32>
    %196 = arith.truncf %195 : vector<324x128xf32> to vector<324x128xbf16>
    %c768_219 = arith.constant 768 : index
    %c0_220 = arith.constant 0 : index
    %197 = vector.load %arg7[%c768_219, %c0_220] : memref<1152x128xbf16, #tpu.memory_space<vmem>>, vector<128x128xbf16>
    %cst_221 = arith.constant dense<0.000000e+00> : vector<324x128xf32>
    %198 = tpu.matmul %196, %197, %cst_221 {dimension_numbers = #tpu.dot_dimension_numbers<[1], [0], [0], [1], [0, 0, 1, 1], [], []>} : vector<324x128xbf16>, vector<128x128xbf16>, vector<324x128xf32> -> vector<324x128xf32>
    %c0_222 = arith.constant 0 : index
    %c0_223 = arith.constant 0 : index
    %199 = vector.load %arg15[%c0_222, %c0_223] : memref<324x128xf32, #tpu.memory_space<vmem>>, vector<324x128xf32>
    %200 = arith.addf %199, %198 : vector<324x128xf32>
    %c0_224 = arith.constant 0 : index
    %c0_225 = arith.constant 0 : index
    %201 = vector.load %arg15[%c0_224, %c0_225] : memref<324x128xf32, #tpu.memory_space<vmem>>, vector<324x128xf32>
    tpu.vector_store %arg15[%c0_224, %c0_225], %200 {strides = array<i32>} : memref<324x128xf32, #tpu.memory_space<vmem>>, vector<324x128xf32>,
    %c42_226 = arith.constant 42 : index
    %c0_227 = arith.constant 0 : index
    %202 = vector.load %arg14[%c42_226, %c0_227] : memref<372x128xf32, #tpu.memory_space<vmem>>, vector<324x128xf32>
    %203 = arith.truncf %202 : vector<324x128xf32> to vector<324x128xbf16>
    %c896_228 = arith.constant 896 : index
    %c0_229 = arith.constant 0 : index
    %204 = vector.load %arg7[%c896_228, %c0_229] : memref<1152x128xbf16, #tpu.memory_space<vmem>>, vector<128x128xbf16>
    %cst_230 = arith.constant dense<0.000000e+00> : vector<324x128xf32>
    %205 = tpu.matmul %203, %204, %cst_230 {dimension_numbers = #tpu.dot_dimension_numbers<[1], [0], [0], [1], [0, 0, 1, 1], [], []>} : vector<324x128xbf16>, vector<128x128xbf16>, vector<324x128xf32> -> vector<324x128xf32>
    %c0_231 = arith.constant 0 : index
    %c0_232 = arith.constant 0 : index
    %206 = vector.load %arg15[%c0_231, %c0_232] : memref<324x128xf32, #tpu.memory_space<vmem>>, vector<324x128xf32>
    %207 = arith.addf %206, %205 : vector<324x128xf32>
    %c0_233 = arith.constant 0 : index
    %c0_234 = arith.constant 0 : index
    %208 = vector.load %arg15[%c0_233, %c0_234] : memref<324x128xf32, #tpu.memory_space<vmem>>, vector<324x128xf32>
    tpu.vector_store %arg15[%c0_233, %c0_234], %207 {strides = array<i32>} : memref<324x128xf32, #tpu.memory_space<vmem>>, vector<324x128xf32>,
    %c43_235 = arith.constant 43 : index
    %c0_236 = arith.constant 0 : index
    %209 = vector.load %arg14[%c43_235, %c0_236] : memref<372x128xf32, #tpu.memory_space<vmem>>, vector<324x128xf32>
    %210 = arith.truncf %209 : vector<324x128xf32> to vector<324x128xbf16>
    %c1024_237 = arith.constant 1024 : index
    %c0_238 = arith.constant 0 : index
    %211 = vector.load %arg7[%c1024_237, %c0_238] : memref<1152x128xbf16, #tpu.memory_space<vmem>>, vector<128x128xbf16>
    %cst_239 = arith.constant dense<0.000000e+00> : vector<324x128xf32>
    %212 = tpu.matmul %210, %211, %cst_239 {dimension_numbers = #tpu.dot_dimension_numbers<[1], [0], [0], [1], [0, 0, 1, 1], [], []>} : vector<324x128xbf16>, vector<128x128xbf16>, vector<324x128xf32> -> vector<324x128xf32>
    %c0_240 = arith.constant 0 : index
    %c0_241 = arith.constant 0 : index
    %213 = vector.load %arg15[%c0_240, %c0_241] : memref<324x128xf32, #tpu.memory_space<vmem>>, vector<324x128xf32>
    %214 = arith.addf %213, %212 : vector<324x128xf32>
    %c0_242 = arith.constant 0 : index
    %c0_243 = arith.constant 0 : index
    %215 = vector.load %arg15[%c0_242, %c0_243] : memref<324x128xf32, #tpu.memory_space<vmem>>, vector<324x128xf32>
    tpu.vector_store %arg15[%c0_242, %c0_243], %214 {strides = array<i32>} : memref<324x128xf32, #tpu.memory_space<vmem>>, vector<324x128xf32>,
    %c0_244 = arith.constant 0 : index
    %c0_245 = arith.constant 0 : index
    %216 = vector.load %arg15[%c0_244, %c0_245] : memref<324x128xf32, #tpu.memory_space<vmem>>, vector<324x128xf32>
    %c0_246 = arith.constant 0 : index
    %c0_247 = arith.constant 0 : index
    %217 = vector.load %arg8[%c0_246, %c0_247] : memref<1x128xf32, #tpu.memory_space<vmem>>, vector<1x128xf32>
    %218 = vector.broadcast %217 : vector<1x128xf32> to vector<324x128xf32>
    %219 = arith.addf %216, %218 : vector<324x128xf32>
    %c24_248 = arith.constant 24 : index
    %c0_249 = arith.constant 0 : index
    %220 = vector.load %arg13[%c24_248, %c0_249] : memref<372x128xf32, #tpu.memory_space<vmem>>, vector<324x128xf32>
    %221 = arith.addf %219, %220 : vector<324x128xf32>
    %cst_250 = arith.constant 0.000000e+00 : f32
    %222 = vector.broadcast %cst_250 : f32 to vector<324x128xf32>
    %223 = arith.maximumf %221, %222 : vector<324x128xf32>
    %224 = vector.broadcast %5 : vector<324x1xf32> to vector<324x128xf32>
    %225 = arith.mulf %223, %224 : vector<324x128xf32>
    %cst_251 = arith.constant dense<0.000000e+00> : vector<128xf32>
    %226 = vector.multi_reduction <add>, %225, %cst_251 [0] : vector<324x128xf32> to vector<128xf32>
    %227 = vector.shape_cast %226 : vector<128xf32> to vector<1x128xf32>
    %cst_252 = arith.constant 3.906250e-03 : f32
    %228 = vector.broadcast %cst_252 : f32 to vector<1x128xf32>
    %229 = arith.mulf %227, %228 : vector<1x128xf32>
    %c0_253 = arith.constant 0 : index
    %c0_254 = arith.constant 0 : index
    %c0_255 = arith.constant 0 : index
    %230 = vector.load %arg11[%c0_253, %c0_254, %c0_255] : memref<1x1x128xf32, #tpu.memory_space<vmem>>, vector<1x1x128xf32>
    %231 = vector.shape_cast %230 : vector<1x1x128xf32> to vector<1x128xf32>
    %232 = vector.shape_cast %229 : vector<1x128xf32> to vector<1x1x128xf32>
    tpu.vector_store %arg11[%c0_253, %c0_254, %c0_255], %232 {strides = array<i32>} : memref<1x1x128xf32, #tpu.memory_space<vmem>>, vector<1x1x128xf32>,
    %c0_256 = arith.constant 0 : index
    %c0_257 = arith.constant 0 : index
    %233 = vector.load %arg9[%c0_256, %c0_257] : memref<128x128xf32, #tpu.memory_space<vmem>>, vector<128x128xf32>
    %cst_258 = arith.constant dense<0.000000e+00> : vector<1x128xf32>
    %234 = tpu.matmul %229, %233, %cst_258 {dimension_numbers = #tpu.dot_dimension_numbers<[1], [0], [0], [1], [0, 0, 1, 1], [], []>} : vector<1x128xf32>, vector<128x128xf32>, vector<1x128xf32> -> vector<1x128xf32>
    %c0_259 = arith.constant 0 : index
    %c0_260 = arith.constant 0 : index
    %235 = vector.load %arg10[%c0_259, %c0_260] : memref<1x128xf32, #tpu.memory_space<vmem>>, vector<1x128xf32>
    %236 = arith.addf %234, %235 : vector<1x128xf32>
    %c0_261 = arith.constant 0 : index
    %c0_262 = arith.constant 0 : index
    %c0_263 = arith.constant 0 : index
    %237 = vector.load %arg12[%c0_261, %c0_262, %c0_263] : memref<1x1x128xf32, #tpu.memory_space<vmem>>, vector<1x1x128xf32>
    %238 = vector.shape_cast %237 : vector<1x1x128xf32> to vector<1x128xf32>
    %239 = vector.shape_cast %236 : vector<1x128xf32> to vector<1x1x128xf32>
    tpu.vector_store %arg12[%c0_261, %c0_262, %c0_263], %239 {strides = array<i32>} : memref<1x1x128xf32, #tpu.memory_space<vmem>>, vector<1x1x128xf32>,
    return
  }
  func.func @transform_0(%arg0: i32) -> (i32, i32, i32) {
    %c0_i32 = arith.constant 0 : i32
    %c0_i32_0 = arith.constant 0 : i32
    %c0_i32_1 = arith.constant 0 : i32
    return %arg0, %c0_i32, %c0_i32_0 : i32, i32, i32
  }
  func.func @transform_1(%arg0: i32) -> (i32, i32) {
    %c0_i32 = arith.constant 0 : i32
    %c0_i32_0 = arith.constant 0 : i32
    %c0_i32_1 = arith.constant 0 : i32
    return %c0_i32, %c0_i32_0 : i32, i32
  }
  func.func @transform_2(%arg0: i32) -> (i32, i32) {
    %c0_i32 = arith.constant 0 : i32
    %c0_i32_0 = arith.constant 0 : i32
    %c0_i32_1 = arith.constant 0 : i32
    return %c0_i32, %c0_i32_0 : i32, i32
  }
  func.func @transform_3(%arg0: i32) -> (i32, i32) {
    %c0_i32 = arith.constant 0 : i32
    %c0_i32_0 = arith.constant 0 : i32
    %c0_i32_1 = arith.constant 0 : i32
    return %c0_i32, %c0_i32_0 : i32, i32
  }
  func.func @transform_4(%arg0: i32) -> (i32, i32) {
    %c0_i32 = arith.constant 0 : i32
    %c0_i32_0 = arith.constant 0 : i32
    %c0_i32_1 = arith.constant 0 : i32
    return %c0_i32, %c0_i32_0 : i32, i32
  }
  func.func @transform_5(%arg0: i32) -> (i32, i32) {
    %c0_i32 = arith.constant 0 : i32
    %c0_i32_0 = arith.constant 0 : i32
    %c0_i32_1 = arith.constant 0 : i32
    return %c0_i32, %c0_i32_0 : i32, i32
  }
  func.func @transform_6(%arg0: i32) -> (i32, i32) {
    %c0_i32 = arith.constant 0 : i32
    %c0_i32_0 = arith.constant 0 : i32
    %c0_i32_1 = arith.constant 0 : i32
    return %c0_i32, %c0_i32_0 : i32, i32
  }
  func.func @transform_7(%arg0: i32) -> (i32, i32) {
    %c0_i32 = arith.constant 0 : i32
    %c0_i32_0 = arith.constant 0 : i32
    %c0_i32_1 = arith.constant 0 : i32
    return %c0_i32, %c0_i32_0 : i32, i32
  }
  func.func @transform_8(%arg0: i32) -> (i32, i32) {
    %c0_i32 = arith.constant 0 : i32
    %c0_i32_0 = arith.constant 0 : i32
    %c0_i32_1 = arith.constant 0 : i32
    return %c0_i32, %c0_i32_0 : i32, i32
  }
  func.func @transform_9(%arg0: i32) -> (i32, i32) {
    %c0_i32 = arith.constant 0 : i32
    %c0_i32_0 = arith.constant 0 : i32
    %c0_i32_1 = arith.constant 0 : i32
    return %c0_i32, %c0_i32_0 : i32, i32
  }
  func.func @transform_10(%arg0: i32) -> (i32, i32, i32) {
    %c0_i32 = arith.constant 0 : i32
    %c0_i32_0 = arith.constant 0 : i32
    %c0_i32_1 = arith.constant 0 : i32
    return %arg0, %c0_i32, %c0_i32_0 : i32, i32, i32
  }
  func.func @transform_11(%arg0: i32) -> (i32, i32, i32) {
    %c0_i32 = arith.constant 0 : i32
    %c0_i32_0 = arith.constant 0 : i32
    %c0_i32_1 = arith.constant 0 : i32
    return %arg0, %c0_i32, %c0_i32_0 : i32, i32, i32
  }
}

</mosaic_0001>

<bundles_post_ra>
// kernel: cifar_resnet_ddg_forward.1
= control target key start
LH: loop header
LB: loop body
LE: loop exit
PB: predicated region body
PF: predicated region fallthrough
CT: control target
= control target key end

     0   :  { %s14959_s0 = inlined_call_operand.vmem [shape: f32[2,372,8], index: 0, kind: input, shape index: {}]   ;;  %s14960_s1 = inlined_call_operand.vmem [shape: f32[324,1], index: 1, kind: input, shape index: {}]   ;;  %s14961_s2 = inlined_call_operand.vmem [shape: bf16[72,128], index: 2, kind: input, shape index: {}]   ;;  %s14962_s3 = inlined_call_operand.vmem [shape: f32[1,128], index: 3, kind: input, shape index: {}]   ;;  %s14963_s4 = inlined_call_operand.vmem [shape: bf16[1152,128], index: 4, kind: input, shape index: {}]   ;;  %s14964_s5 = inlined_call_operand.vmem [shape: f32[1,128], index: 5, kind: input, shape index: {}]   ;;  %s14965_s6 = inlined_call_operand.vmem [shape: bf16[1152,128], index: 6, kind: input, shape index: {}]   ;;  %s14966_s7 = inlined_call_operand.vmem [shape: f32[1,128], index: 7, kind: input, shape index: {}]   ;;  %s14967_s8 = inlined_call_operand.vmem [shape: f32[128,128], index: 8, kind: input, shape index: {}]   ;;  %s14968_s9 = inlined_call_operand.vmem [shape: f32[1,128], index: 9, kind: input, shape index: {}]   ;;  %s14969_s10 = inlined_call_operand.hbm [shape: f32[2,1,128], index: 10, kind: output, shape index: {0}]   ;;  %s14970_s11 = inlined_call_operand.hbm [shape: f32[2,1,128], index: 11, kind: output, shape index: {1}]  }
   0x1   :  { %15038 = sst [smem:[#allocation47_spill]] %s14959_s0 }
   0x2   :  { %15039 = sst [smem:[#allocation48_spill]] %s14960_s1 }
   0x3   :  { %15040 = sst [smem:[#allocation49_spill]] %s14961_s2 }
   0x4   :  { %15041 = sst [smem:[#allocation50_spill]] %s14962_s3 }
   0x5   :  { %15042 = sst [smem:[#allocation51_spill]] %s14963_s4 }
   0x6   :  { %17 = vsyncpa [#allocation6], 0 }
   0x7   :  { %19 = vsyncpa [#allocation6 + $0x1], 0 }
   0x8   :  { %20 = vsyncpa [#allocation8], 0 }
   0x9   :  { %22 = vsyncpa [#allocation8 + $0x1], 0  ;;  %s12211_s17 = smov 0   ;;  %s12213_s18 = smov 0  }
   0xa   :  { %s12215_s19 = smov 0   ;;  %s12217_s20 = smov 0  }
   0xb LB: > { %s12232_s21 = sadd.s32 4294967295, %s12147_s20   ;;  %s11078_s22 = sadd.s32 4294967294, %s12147_s20   ;;  %s12147_s20 = sphi %s12217_s20, %s15156_s20   ;;  %s12143_s19 = sphi %s12215_s19, %s15155_s19   ;;  %s12139_s18 = sphi %s12213_s18, %s15154_s18   ;;  %s12135_s17 = sphi %s12211_s17, %s15153_s17  }
   0xc   : > { %s12236_s23 = sadd.s32 1, %s12147_s20   ;;  %s250_s24 = sadd.s32 1, %s12143_s19 }
   0xd   : > { %s247_s25 = ssub.s32 %s12147_s20, %s12236_s23  ;;  %p260_p0 = scmp.ne.s32.totalorder %s12143_s19, %s12139_s18 }
   0xe   : > { %p248_p1 = scmp.eq.s32.totalorder %s247_s25, 0  ;;  %p261_p2 = scmp.eq.s32.totalorder %s12232_s21, 1 }
   0xf   : > { %p266_p3 = scmp.ne.s32.totalorder %s12139_s18, %s12135_s17  ;;  %p267_p4 = scmp.eq.s32.totalorder %s11078_s22, 1 }
  0x10   : > { %s12247_s26 = scalar_select %p248_p1, %s12143_s19, %s250_s24  }
  0x11   : > { %p12249_p5 = por %p261_p2, %p260_p0  ;;  %p12253_p6 = por %p267_p4, %p266_p3 }
  0x12   : > { %p11081_p7 = scmp.ge.s32.totalorder %s12147_s20, 1  ;;  %p346_p8 = scmp.lt.s32.totalorder %s12147_s20, 3 }
  0x14   : > { %p347_p9 = pnand %p11081_p7, %p346_p8 }
  0x16   : > { %350 = sbr.rel (%p347_p9) target bundleno = 2871 (0xb37), region = 60 }
  0x1b   : > { %s15045_s2 = sld [smem:[#allocation49_spill]]  ;;  %vm575_vm0 = vcmask 1043456   ;;  %p389_p10 = scmp.lt.s32.totalorder %s12232_s21, 1  ;;  %vm511_vm1 = vcmask 64512  }
  0x1c   : > { %s15046_s0 = sld [smem:[#allocation47_spill]]  ;;  %s14905_s15 = sand.u32 1, %s12139_s18  }
  0x1d   : > { %s390_s16 = scalar_select %p389_p10, %s12232_s21, 1 }
  0x1e   : > { %s15047_s4 = sld [smem:[#allocation51_spill]]  ;;  %s10966_s13 = scalar_lea.sflag [#allocation6], %s14905_s15 }
  0x1f   : > { %s11997_s25 = smul.u32 376, %s390_s16  ;;  %s15048_s1 = sld [smem:[#allocation48_spill]] }
  0x20   : > { %s15049_s3 = sld [smem:[#allocation50_spill]]  ;;  %s382_s16 = scalar_lea.vmem [#allocation5], %s14905_s15 }
  0x21   : > { %v510_v0 = vld [vmem:[%s15045_s2] sm:$0xf]  ;;  %v795_v2 = vld [vmem:[%s15045_s2 + $0x4] sm:$0xf]  ;;  %v1890_v3 = vld [vmem:[%s15045_s2 + $0x10] sm:$0xf] }
  0x22   : > { %v577_v1 = vsel %vm575_vm0, %v510_v0, 0  ;;  %v860_v4 = vsel %vm575_vm0, %v795_v2, 0  ;;  %v1955_v5 = vsel %vm575_vm0, %v1890_v3, 0  ;;  %v1160_v6 = vld [vmem:[%s15045_s2 + $0x8] sm:$0xf]  ;;  %s12280_s12 = scalar_lea.vmem %s15046_s0, %s11997_s25  ;;  %s10978_s25 = scalar_lea.hbm %s14969_s10, %s12232_s21 }
  0x23   : > { %586 = vmatpush.bf16.msra.mxu0 %v577_v1  ;;  %11994 = vmatpush.bf16.msra.mxu3 %v577_v1  ;;  %v1225_v7 = vsel %vm575_vm0, %v1160_v6, 0  ;;  %v448_v8 = vld [vmem:[%s12280_s12 + $0x5] sm:$0xff]  ;;  %v449_v9 = vld [vmem:[%s12280_s12 + $0xd] sm:$0xff]  ;;  %v450_v20 = vld [vmem:[%s12280_s12 + $0x15] sm:$0xff]  ;;  %s10980_s29 = sshll.u32 %s382_s16, 4  ;;  %s10982_s30 = sshll.u32 %s10978_s25, 4  ;;  %s10981_s29 = int_to_ptr.vmem [resolvable:$true] %s10980_s29  ;;  %s10983_s30 = int_to_ptr.hbm [resolvable:$true] %s10982_s30 }
  0x24   : > { %869 = vmatpush.bf16.msra.mxu1 %v860_v4  ;;  %1234 = vmatpush.bf16.msra.mxu2 %v1225_v7  ;;  %v480_v10 = vld [vmem:[%s12280_s12 + $0x105] sm:$0xff]  ;;  %v489_v11 = vpack.c.bf16 %v449_v9, %v448_v8  ;;  %v481_v12 = vld [vmem:[%s12280_s12 + $0x10d] sm:$0xff]  ;;  %v451_v21 = vld [vmem:[%s12280_s12 + $0x1d] sm:$0xff] }
  0x25   : > { %v733_v13 = vld [vmem:[%s12280_s12 + $0x6] sm:$0xff]  ;;  %v734_v14 = vld [vmem:[%s12280_s12 + $0xe] sm:$0xff]  ;;  %v505_v15 = vpack.c.bf16 %v481_v12, %v480_v10  ;;  %v483_v23 = vld [vmem:[%s12280_s12 + $0x11d] sm:$0xff]  ;;  %v490_v28 = vpack.c.bf16 %v451_v21, %v450_v20 }
  0x26   : > { %v774_v16 = vpack.c.bf16 %v734_v14, %v733_v13  ;;  %v1098_v17 = vld [vmem:[%s12280_s12 + $0x7] sm:$0xff]  ;;  %v1099_v18 = vld [vmem:[%s12280_s12 + $0xf] sm:$0xff]  ;;  %11083 = vmatmul.msk.bf16.vlgmr.msra.gmra.mxu0 %vm511_vm1, %v489_v11  ;;  %v736_v25 = vld [vmem:[%s12280_s12 + $0x1e] sm:$0xff] }
  0x27   : > { %11995 = vmatpush.bf16.msrb.mxu3 %v860_v4  ;;  %1964 = vmatpush.bf16.msrb.mxu0 %v1955_v5  ;;  %v1139_v19 = vpack.c.bf16 %v1099_v18, %v1098_v17  ;;  %v482_v22 = vld [vmem:[%s12280_s12 + $0x115] sm:$0xff]  ;;  %v1101_v27 = vld [vmem:[%s12280_s12 + $0x1f] sm:$0xff]  ;;  %v453_v33 = vld [vmem:[%s12280_s12 + $0x2d] sm:$0xff] }
  0x28   : > { %11099 = vmatmul.msk.bf16.vlgmr.msra.gmra.mxu3 %vm511_vm1, %v505_v15  ;;  %11104 = vmatmul.msk.bf16.vlgmr.msra.gmra.mxu1 %vm511_vm1, %v774_v16  ;;  %v735_v24 = vld [vmem:[%s12280_s12 + $0x16] sm:$0xff]  ;;  %v506_v29 = vpack.c.bf16 %v483_v23, %v482_v22  ;;  %v452_v32 = vld [vmem:[%s12280_s12 + $0x25] sm:$0xff]  ;;  %v485_v35 = vld [vmem:[%s12280_s12 + $0x12d] sm:$0xff] }
  0x29   : > { %11125 = vmatmul.msk.bf16.vlgmr.msra.gmra.mxu2 %vm511_vm1, %v1139_v19  ;;  %v1100_v26 = vld [vmem:[%s12280_s12 + $0x17] sm:$0xff]  ;;  %v775_v30 = vpack.c.bf16 %v736_v25, %v735_v24  ;;  %v484_v34 = vld [vmem:[%s12280_s12 + $0x125] sm:$0xff]  ;;  %v738_v37 = vld [vmem:[%s12280_s12 + $0x2e] sm:$0xff]  ;;  %v491_v40 = vpack.c.bf16 %v453_v33, %v452_v32 }
  0x2a   : > { %v12302_v31 = vpack.c.bf16 %v1101_v27, %v1100_v26  ;;  %v737_v36 = vld [vmem:[%s12280_s12 + $0x26] sm:$0xff]  ;;  %v1103_v39 = vld [vmem:[%s12280_s12 + $0x2f] sm:$0xff]  ;;  %v507_v41 = vpack.c.bf16 %v485_v35, %v484_v34  ;;  %v455_v45 = vld [vmem:[%s12280_s12 + $0x3d] sm:$0xff] }
  0x2b   : > { %11996 = vmatpush.bf16.msra.mxu3 %v1225_v7  ;;  %v1102_v38 = vld [vmem:[%s12280_s12 + $0x27] sm:$0xff]  ;;  %v776_v42 = vpack.c.bf16 %v738_v37, %v737_v36  ;;  %v454_v44 = vld [vmem:[%s12280_s12 + $0x35] sm:$0xff]  ;;  %v487_v47 = vld [vmem:[%s12280_s12 + $0x13d] sm:$0xff] }
  0x2c   : > { %v12317_v43 = vpack.c.bf16 %v1103_v39, %v1102_v38  ;;  %v486_v46 = vld [vmem:[%s12280_s12 + $0x135] sm:$0xff]  ;;  %v740_v49 = vld [vmem:[%s12280_s12 + $0x3e] sm:$0xff]  ;;  %v492_v52 = vpack.c.bf16 %v455_v45, %v454_v44  ;;  %v457_v57 = vld [vmem:[%s12280_s12 + $0x4d] sm:$0xff] }
  0x2d   : > { %v739_v48 = vld [vmem:[%s12280_s12 + $0x36] sm:$0xff]  ;;  %v1105_v51 = vld [vmem:[%s12280_s12 + $0x3f] sm:$0xff]  ;;  %v508_v53 = vpack.c.bf16 %v487_v47, %v486_v46  ;;  %v742_v60 = vld [vmem:[%s12280_s12 + $0x4e] sm:$0xff] }
  0x2e   : > { %v1104_v50 = vld [vmem:[%s12280_s12 + $0x37] sm:$0xff]  ;;  %v777_v54 = vpack.c.bf16 %v740_v49, %v739_v48  ;;  %v456_v56 = vld [vmem:[%s12280_s12 + $0x45] sm:$0xff]  ;;  %v1107_v62 = vld [vmem:[%s12280_s12 + $0x4f] sm:$0xff] }
  0x2f   : > { %v12332_v55 = vpack.c.bf16 %v1105_v51, %v1104_v50  ;;  %v488_v58 = vld [vmem:[%s12280_s12 + $0x145] sm:$0xf]  ;;  %v493_v63 = vpack.c.bf16 %v457_v57, %v456_v56  ;;  %v458_v3 = vld [vmem:[%s12280_s12 + $0x55] sm:$0xff]  ;;  %v459_v4 = vld [vmem:[%s12280_s12 + $0x5d] sm:$0xff] }
  0x30   : > { %v741_v59 = vld [vmem:[%s12280_s12 + $0x46] sm:$0xff]  ;;  %v509_v0 = vpack.c.bf16 %v488_v58, %v488_v58  ;;  %v766_v6 = vld [vmem:[%s12280_s12 + $0x10e] sm:$0xff]  ;;  %v743_v7 = vld [vmem:[%s12280_s12 + $0x56] sm:$0xff]  ;;  %v494_v11 = vpack.c.bf16 %v459_v4, %v458_v3 }
  0x31   : > { %v1106_v61 = vld [vmem:[%s12280_s12 + $0x47] sm:$0xff]  ;;  %v778_v1 = vpack.c.bf16 %v742_v60, %v741_v59  ;;  %v744_v8 = vld [vmem:[%s12280_s12 + $0x5e] sm:$0xff]  ;;  %v767_v17 = vld [vmem:[%s12280_s12 + $0x116] sm:$0xff] }
  0x32   : > { %v12346_v2 = vpack.c.bf16 %v1107_v62, %v1106_v61  ;;  %v765_v5 = vld [vmem:[%s12280_s12 + $0x106] sm:$0xff]  ;;  %v1108_v9 = vld [vmem:[%s12280_s12 + $0x57] sm:$0xff]  ;;  %v779_v13 = vpack.c.bf16 %v744_v8, %v743_v7  ;;  %v746_v20 = vld [vmem:[%s12280_s12 + $0x6e] sm:$0xff] }
  0x33   : > { %v1109_v10 = vld [vmem:[%s12280_s12 + $0x5f] sm:$0xff]  ;;  %v790_v12 = vpack.c.bf16 %v766_v6, %v765_v5  ;;  %v461_v16 = vld [vmem:[%s12280_s12 + $0x6d] sm:$0xff]  ;;  %v462_v27 = vld [vmem:[%s12280_s12 + $0x75] sm:$0xff] }
  0x34   : > { %v12361_v14 = vpack.c.bf16 %v1109_v10, %v1108_v9  ;;  %v460_v15 = vld [vmem:[%s12280_s12 + $0x65] sm:$0xff]  ;;  %v1111_v22 = vld [vmem:[%s12280_s12 + $0x6f] sm:$0xff]  ;;  %v1112_v34 = vld [vmem:[%s12280_s12 + $0x77] sm:$0xff] }
  0x35   : > { %v768_v18 = vld [vmem:[%s12280_s12 + $0x11e] sm:$0xff]  ;;  %v745_v19 = vld [vmem:[%s12280_s12 + $0x66] sm:$0xff]  ;;  %v495_v23 = vpack.c.bf16 %v461_v16, %v460_v15  ;;  %v747_v32 = vld [vmem:[%s12280_s12 + $0x76] sm:$0xff] }
  0x36   : > { %11084 = vmatmul.msk.bf16.gmra.mxu0 %vm511_vm1, %v490_v28  ;;  %v1110_v21 = vld [vmem:[%s12280_s12 + $0x67] sm:$0xff]  ;;  %v791_v24 = vpack.c.bf16 %v768_v18, %v767_v17  ;;  %v780_v25 = vpack.c.bf16 %v746_v20, %v745_v19  ;;  %v463_v28 = vld [vmem:[%s12280_s12 + $0x7d] sm:$0xff]  ;;  %v1115_v50 = vld [vmem:[%s12280_s12 + $0x8f] sm:$0xff] }
  0x37   : > { %v1145_v26 = vpack.c.bf16 %v1111_v22, %v1110_v21  ;;  %v748_v33 = vld [vmem:[%s12280_s12 + $0x7e] sm:$0xff]  ;;  %v496_v36 = vpack.c.bf16 %v463_v28, %v462_v27  ;;  %v465_v44 = vld [vmem:[%s12280_s12 + $0x8d] sm:$0xff]  ;;  %v771_v45 = vld [vmem:[%s12280_s12 + $0x136] sm:$0xff] }
  0x38   : > { %11100 = vmatmul.msk.bf16.gmra.mxu3 %vm511_vm1, %v506_v29  ;;  %11105 = vmatmul.msk.bf16.gmra.mxu1 %vm511_vm1, %v775_v30  ;;  %v769_v29 = vld [vmem:[%s12280_s12 + $0x126] sm:$0xff]  ;;  %v770_v30 = vld [vmem:[%s12280_s12 + $0x12e] sm:$0xff]  ;;  %v781_v38 = vpack.c.bf16 %v748_v33, %v747_v32  ;;  %v772_v46 = vld [vmem:[%s12280_s12 + $0x13e] sm:$0xff] }
  0x39   : > { %11126 = vmatmul.msk.bf16.gmra.mxu2 %vm511_vm1, %v12302_v31  ;;  %v1113_v35 = vld [vmem:[%s12280_s12 + $0x7f] sm:$0xff]  ;;  %v792_v37 = vpack.c.bf16 %v770_v30, %v769_v29  ;;  %v750_v48 = vld [vmem:[%s12280_s12 + $0x8e] sm:$0xff]  ;;  %v751_v6 = vld [vmem:[%s12280_s12 + $0x96] sm:$0xff] }
  0x3a   : > { %v1146_v39 = vpack.c.bf16 %v1113_v35, %v1112_v34  ;;  %v749_v47 = vld [vmem:[%s12280_s12 + $0x86] sm:$0xff]  ;;  %v466_v3 = vld [vmem:[%s12280_s12 + $0x95] sm:$0xff]  ;;  %v467_v4 = vld [vmem:[%s12280_s12 + $0x9d] sm:$0xff] }
  0x3b   : > { %v1114_v49 = vld [vmem:[%s12280_s12 + $0x87] sm:$0xff]  ;;  %v752_v7 = vld [vmem:[%s12280_s12 + $0x9e] sm:$0xff]  ;;  %v1131_v30 = vld [vmem:[%s12280_s12 + $0x10f] sm:$0xff] }
  0x3c   : > { %v1147_v57 = vpack.c.bf16 %v1115_v50, %v1114_v49  ;;  %v1525_v58 = vld [vmem:[%s15045_s2 + $0xc] sm:$0xf]  ;;  %v773_v5 = vld [vmem:[%s12280_s12 + $0x146] sm:$0xf]  ;;  %v1116_v8 = vld [vmem:[%s12280_s12 + $0x97] sm:$0xff]  ;;  %v783_v17 = vpack.c.bf16 %v752_v7, %v751_v6 }
  0x3d   : > { %v1590_v59 = vsel %vm575_vm0, %v1525_v58, 0  ;;  %v1117_v9 = vld [vmem:[%s12280_s12 + $0x9f] sm:$0xff]  ;;  %v794_v15 = vpack.c.bf16 %v773_v5, %v773_v5  ;;  %v469_v28 = vld [vmem:[%s12280_s12 + $0xad] sm:$0xff]  ;;  %v755_v58 = vld [vmem:[%s12280_s12 + $0xb6] sm:$0xff] }
  0x3e   : > { %v1148_v20 = vpack.c.bf16 %v1117_v9, %v1116_v8  ;;  %v468_v27 = vld [vmem:[%s12280_s12 + $0xa5] sm:$0xff]  ;;  %v754_v33 = vld [vmem:[%s12280_s12 + $0xae] sm:$0xff] }
  0x3f   : > { %v1130_v29 = vld [vmem:[%s12280_s12 + $0x107] sm:$0xff]  ;;  %v1119_v35 = vld [vmem:[%s12280_s12 + $0xaf] sm:$0xff] }
  0x40   : > { %v753_v32 = vld [vmem:[%s12280_s12 + $0xa6] sm:$0xff] }
  0x41   : > { %v1118_v34 = vld [vmem:[%s12280_s12 + $0xa7] sm:$0xff] }
  0x46   : > { %11085 = vmatmul.msk.bf16.gmra.mxu0 %vm511_vm1, %v491_v40  ;;  %v2255_v40 = vld [vmem:[%s15045_s2 + $0x14] sm:$0xf] }
  0x48   : > { %11101 = vmatmul.msk.bf16.gmra.mxu3 %vm511_vm1, %v507_v41  ;;  %11106 = vmatmul.msk.bf16.gmra.mxu1 %vm511_vm1, %v776_v42  ;;  %v2320_v41 = vsel %vm575_vm0, %v2255_v40, 0  ;;  %v464_v42 = vld [vmem:[%s12280_s12 + $0x85] sm:$0xff]  ;;  %v1155_v40 = vpack.c.bf16 %v1131_v30, %v1130_v29 }
  0x49   : > { %11127 = vmatmul.msk.bf16.gmra.mxu2 %vm511_vm1, %v12317_v43  ;;  %2329 = vmatpush.bf16.msrb.mxu1 %v2320_v41  ;;  %v497_v51 = vpack.c.bf16 %v465_v44, %v464_v42  ;;  %v784_v42 = vpack.c.bf16 %v754_v33, %v753_v32 }
  0x56   : > { %11086 = vmatmul.msk.bf16.gmra.mxu0 %vm511_vm1, %v492_v52 }
  0x58   : > { %11102 = vmatmul.msk.bf16.gmra.mxu3 %vm511_vm1, %v508_v53  ;;  %11107 = vmatmul.msk.bf16.gmra.mxu1 %vm511_vm1, %v777_v54  ;;  %v793_v53 = vpack.c.bf16 %v772_v46, %v771_v45  ;;  %v782_v54 = vpack.c.bf16 %v750_v48, %v749_v47  ;;  %v1149_v46 = vpack.c.bf16 %v1119_v35, %v1118_v34 }
  0x59   : > { %11128 = vmatmul.msk.bf16.gmra.mxu2 %vm511_vm1, %v12332_v55 }
  0x66   : > { %11087 = vmatmul.msk.bf16.gmra.mxu0 %vm511_vm1, %v493_v63 }
  0x68   : > { %11103 = vmatmul.msk.bf16.gmra.mxu3 %vm511_vm1, %v509_v0  ;;  %11108 = vmatmul.msk.bf16.gmra.mxu1 %vm511_vm1, %v778_v1 }
  0x69   : > { %11129 = vmatmul.msk.bf16.gmra.mxu2 %vm511_vm1, %v12346_v2 }
  0x76   : > { %11088 = vmatmul.msk.bf16.gmra.mxu0 %vm511_vm1, %v494_v11 }
  0x78   : > { %11120 = vmatmul.msk.bf16.vlgmr.msrb.gmra.mxu3 %vm511_vm1, %v790_v12  ;;  %11109 = vmatmul.msk.bf16.gmra.mxu1 %vm511_vm1, %v779_v13  ;;  %v498_v12 = vpack.c.bf16 %v467_v4, %v466_v3 }
  0x79   : > { %11130 = vmatmul.msk.bf16.gmra.mxu2 %vm511_vm1, %v12361_v14  ;;  %1599 = vmatpush.bf16.msrb.mxu3 %v1590_v59  ;;  %v756_v59 = vld [vmem:[%s12280_s12 + $0xbe] sm:$0xff] }
  0x7a   : > { %v785_v6 = vpack.c.bf16 %v756_v59, %v755_v58 }
  0x86   : > { %11089 = vmatmul.msk.bf16.gmra.mxu0 %vm511_vm1, %v495_v23 }
  0x88   : > { %11121 = vmatmul.msk.bf16.gmra.mxu3 %vm511_vm1, %v791_v24  ;;  %11110 = vmatmul.msk.bf16.gmra.mxu1 %vm511_vm1, %v780_v25 }
  0x89   : > { %11131 = vmatmul.msk.bf16.gmra.mxu2 %vm511_vm1, %v1145_v26 }
  0x96   : > { %11090 = vmatmul.msk.bf16.gmra.mxu0 %vm511_vm1, %v496_v36 }
  0x98   : > { %11122 = vmatmul.msk.bf16.gmra.mxu3 %vm511_vm1, %v792_v37  ;;  %11111 = vmatmul.msk.bf16.gmra.mxu1 %vm511_vm1, %v781_v38  ;;  %v499_v38 = vpack.c.bf16 %v469_v28, %v468_v27 }
  0x99   : > { %11132 = vmatmul.msk.bf16.gmra.mxu2 %vm511_vm1, %v1146_v39 }
  0xa3   : > { %v588_v52 = vpop.f32.mrf.mxu0 }
  0xa5   : > { %v871_v56 = vpop.f32.mrf.mxu1 }
  0xa6   : > { %11091 = vmatmul.msk.bf16.gmra.mxu0 %vm511_vm1, %v497_v51  ;;  %v1016_v61 = vadd.f32 %v871_v56, %v588_v52  ;;  %v1132_v56 = vld [vmem:[%s12280_s12 + $0x117] sm:$0xff] }
  0xa8   : > { %11123 = vmatmul.msk.bf16.gmra.mxu3 %vm511_vm1, %v793_v53  ;;  %11112 = vmatmul.msk.bf16.gmra.mxu1 %vm511_vm1, %v782_v54  ;;  %v470_v53 = vld [vmem:[%s12280_s12 + $0xb5] sm:$0xff]  ;;  %v471_v54 = vld [vmem:[%s12280_s12 + $0xbd] sm:$0xff] }
  0xa9   : > { %11133 = vmatmul.msk.bf16.gmra.mxu2 %vm511_vm1, %v1147_v57  ;;  %v1133_v57 = vld [vmem:[%s12280_s12 + $0x11f] sm:$0xff] }
  0xaa   : > { %v1156_v4 = vpack.c.bf16 %v1133_v57, %v1132_v56 }
  0xab   : > { %v12412_v60 = vpop.f32.mrf.mxu3  ;;  %v590_v62 = vpop.f32.mrf.mxu0 }
  0xac   : > { %v1236_v63 = vpop.f32.mrf.mxu2 }
  0xad   : > { %v873_v0 = vpop.f32.mrf.mxu1  ;;  %v1381_v1 = vadd.f32 %v1236_v63, %v1016_v61  ;;  %v1120_v61 = vld [vmem:[%s12280_s12 + $0xb7] sm:$0xff] }
  0xae   : > { %v1017_v11 = vadd.f32 %v873_v0, %v590_v62  ;;  %v1121_v62 = vld [vmem:[%s12280_s12 + $0xbf] sm:$0xff] }
  0xaf   : > { %1422 = vst [vmem:[#allocation4 + $0xb0] sm:$0xff] %v1381_v1  ;;  %v500_v1 = vpack.c.bf16 %v471_v54, %v470_v53  ;;  %v1150_v9 = vpack.c.bf16 %v1121_v62, %v1120_v61  ;;  %v1124_v53 = vld [vmem:[%s12280_s12 + $0xd7] sm:$0xff]  ;;  %v1125_v54 = vld [vmem:[%s12280_s12 + $0xdf] sm:$0xff] }
  0xb3   : > { %v12421_v10 = vpop.f32.mrf.mxu3  ;;  %v593_v13 = vpop.f32.mrf.mxu0 }
  0xb4   : > { %v1238_v16 = vpop.f32.mrf.mxu2 }
  0xb5   : > { %v876_v18 = vpop.f32.mrf.mxu1  ;;  %v1382_v19 = vadd.f32 %v1238_v16, %v1017_v11 }
  0xb6   : > { %11092 = vmatmul.msk.bf16.gmra.mxu0 %vm511_vm1, %v498_v12  ;;  %v1018_v22 = vadd.f32 %v876_v18, %v593_v13  ;;  %v472_v18 = vld [vmem:[%s12280_s12 + $0xc5] sm:$0xff] }
  0xb7   : > { %1423 = vst [vmem:[#allocation4 + $0xd0] sm:$0xff] %v1382_v19  ;;  %v473_v19 = vld [vmem:[%s12280_s12 + $0xcd] sm:$0xff] }
  0xb8   : > { %11124 = vmatmul.msk.bf16.gmra.mxu3 %vm511_vm1, %v794_v15  ;;  %11113 = vmatmul.msk.bf16.gmra.mxu1 %vm511_vm1, %v783_v17  ;;  %v501_v29 = vpack.c.bf16 %v473_v19, %v472_v18  ;;  %v1138_v18 = vld [vmem:[%s12280_s12 + $0x147] sm:$0xf] }
  0xb9   : > { %11134 = vmatmul.msk.bf16.gmra.mxu2 %vm511_vm1, %v1148_v20  ;;  %v1134_v20 = vld [vmem:[%s12280_s12 + $0x127] sm:$0xff] }
  0xba   : > { %v761_v19 = vld [vmem:[%s12280_s12 + $0xe6] sm:$0xff] }
  0xbb   : > { %v12427_v21 = vpop.f32.mrf.mxu3  ;;  %v595_v23 = vpop.f32.mrf.mxu0 }
  0xbc   : > { %v1241_v24 = vpop.f32.mrf.mxu2 }
  0xbd   : > { %v878_v25 = vpop.f32.mrf.mxu1  ;;  %v1383_v26 = vadd.f32 %v1241_v24, %v1018_v22  ;;  %v1135_v22 = vld [vmem:[%s12280_s12 + $0x12f] sm:$0xff] }
  0xbe   : > { %v1019_v37 = vadd.f32 %v878_v25, %v595_v23  ;;  %v757_v23 = vld [vmem:[%s12280_s12 + $0xc6] sm:$0xff]  ;;  %v758_v24 = vld [vmem:[%s12280_s12 + $0xce] sm:$0xff]  ;;  %v1157_v32 = vpack.c.bf16 %v1135_v22, %v1134_v20 }
  0xbf   : > { %1424 = vst [vmem:[#allocation4 + $0x10] sm:$0xff] %v1383_v26  ;;  %v1122_v25 = vld [vmem:[%s12280_s12 + $0xc7] sm:$0xff]  ;;  %v1123_v26 = vld [vmem:[%s12280_s12 + $0xcf] sm:$0xff]  ;;  %v786_v34 = vpack.c.bf16 %v758_v24, %v757_v23 }
  0xc0   : > { %v762_v20 = vld [vmem:[%s12280_s12 + $0xee] sm:$0xff] }
  0xc1   : > { %v1126_v22 = vld [vmem:[%s12280_s12 + $0xe7] sm:$0xff]  ;;  %v1127_v23 = vld [vmem:[%s12280_s12 + $0xef] sm:$0xff] }
  0xc3   : > { %v12437_v36 = vpop.f32.mrf.mxu3  ;;  %v598_v39 = vpop.f32.mrf.mxu0 }
  0xc4   : > { %v1243_v41 = vpop.f32.mrf.mxu2 }
  0xc5   : > { %v881_v44 = vpop.f32.mrf.mxu1  ;;  %v1384_v45 = vadd.f32 %v1243_v41, %v1019_v37 }
  0xc6   : > { %11093 = vmatmul.msk.bf16.gmra.mxu0 %vm511_vm1, %v499_v38  ;;  %v1020_v48 = vadd.f32 %v881_v44, %v598_v39  ;;  %v1151_v38 = vpack.c.bf16 %v1123_v26, %v1122_v25 }
  0xc7   : > { %1425 = vst [vmem:[#allocation4 + $0x48] sm:$0xff] %v1384_v45 }
  0xc8   : > { %11141 = vmatmul.msk.bf16.vlgmr.msra.gmra.mxu3 %vm511_vm1, %v1155_v40  ;;  %11114 = vmatmul.msk.bf16.gmra.mxu1 %vm511_vm1, %v784_v42 }
  0xc9   : > { %11135 = vmatmul.msk.bf16.gmra.mxu2 %vm511_vm1, %v1149_v46  ;;  %v474_v46 = vld [vmem:[%s12280_s12 + $0xd5] sm:$0xff] }
  0xcb   : > { %v12443_v47 = vpop.f32.mrf.mxu3  ;;  %v600_v49 = vpop.f32.mrf.mxu0 }
  0xcc   : > { %v1246_v50 = vpop.f32.mrf.mxu2 }
  0xcd   : > { %v883_v51 = vpop.f32.mrf.mxu1  ;;  %v1385_v52 = vadd.f32 %v1246_v50, %v1020_v48  ;;  %v475_v48 = vld [vmem:[%s12280_s12 + $0xdd] sm:$0xff] }
  0xce   : > { %v1021_v0 = vadd.f32 %v883_v51, %v600_v49  ;;  %v1136_v49 = vld [vmem:[%s12280_s12 + $0x137] sm:$0xff]  ;;  %v1137_v50 = vld [vmem:[%s12280_s12 + $0x13f] sm:$0xff]  ;;  %v502_v58 = vpack.c.bf16 %v475_v48, %v474_v46 }
  0xcf   : > { %1426 = vst [vmem:[#allocation4 + $0x120] sm:$0xff] %v1385_v52  ;;  %v759_v51 = vld [vmem:[%s12280_s12 + $0xd6] sm:$0xff]  ;;  %v760_v52 = vld [vmem:[%s12280_s12 + $0xde] sm:$0xff]  ;;  %v1158_v61 = vpack.c.bf16 %v1137_v50, %v1136_v49 }
  0xd0   : > { %v478_v49 = vld [vmem:[%s12280_s12 + $0xf5] sm:$0xff]  ;;  %v479_v50 = vld [vmem:[%s12280_s12 + $0xfd] sm:$0xff] }
  0xd3   : > { %v12453_v63 = vpop.f32.mrf.mxu3  ;;  %v603_v3 = vpop.f32.mrf.mxu0 }
  0xd4   : > { %v1248_v5 = vpop.f32.mrf.mxu2 }
  0xd5   : > { %v886_v7 = vpop.f32.mrf.mxu1  ;;  %v1386_v8 = vadd.f32 %v1248_v5, %v1021_v0  ;;  %v787_v0 = vpack.c.bf16 %v760_v52, %v759_v51  ;;  %v2985_v5 = vld [vmem:[%s15045_s2 + $0x1c] sm:$0xf] }
  0xd6   : > { %11094 = vmatmul.msk.bf16.gmra.mxu0 %vm511_vm1, %v500_v1  ;;  %v1022_v12 = vadd.f32 %v886_v7, %v603_v3  ;;  %v763_v51 = vld [vmem:[%s12280_s12 + $0xf6] sm:$0xff]  ;;  %v764_v52 = vld [vmem:[%s12280_s12 + $0xfe] sm:$0xff] }
  0xd7   : > { %1427 = vst [vmem:[#allocation4 + $0x38] sm:$0xff] %v1386_v8 }
  0xd8   : > { %11142 = vmatmul.msk.bf16.gmra.mxu3 %vm511_vm1, %v1156_v4  ;;  %11115 = vmatmul.msk.bf16.gmra.mxu1 %vm511_vm1, %v785_v6  ;;  %v1152_v4 = vpack.c.bf16 %v1125_v54, %v1124_v53  ;;  %v3050_v6 = vsel %vm575_vm0, %v2985_v5, 0  ;;  %v1128_v53 = vld [vmem:[%s12280_s12 + $0xf7] sm:$0xff]  ;;  %v1129_v54 = vld [vmem:[%s12280_s12 + $0xff] sm:$0xff] }
  0xd9   : > { %11136 = vmatmul.msk.bf16.gmra.mxu2 %vm511_vm1, %v1150_v9  ;;  %3059 = vmatpush.bf16.msra.mxu3 %v3050_v6 }
  0xdb   : > { %v12459_v11 = vpop.f32.mrf.mxu3  ;;  %v605_v13 = vpop.f32.mrf.mxu0 }
  0xdc   : > { %v1251_v15 = vpop.f32.mrf.mxu2 }
  0xdd   : > { %v888_v16 = vpop.f32.mrf.mxu1  ;;  %v1387_v17 = vadd.f32 %v1251_v15, %v1022_v12 }
  0xde   : > { %v1023_v28 = vadd.f32 %v888_v16, %v605_v13  ;;  %v476_v16 = vld [vmem:[%s12280_s12 + $0xe5] sm:$0xff] }
  0xdf   : > { %1428 = vst [vmem:[#allocation4 + $0xf8] sm:$0xff] %v1387_v17  ;;  %v477_v17 = vld [vmem:[%s12280_s12 + $0xed] sm:$0xff] }
  0xe0   : > { %v503_v26 = vpack.c.bf16 %v477_v17, %v476_v16  ;;  %v2193_v16 = vld [vmem:[%s12280_s12 + $0x19] sm:$0xff]  ;;  %v2194_v17 = vld [vmem:[%s12280_s12 + $0x21] sm:$0xff] }
  0xe3   : > { %v12469_v27 = vpop.f32.mrf.mxu3  ;;  %v608_v30 = vpop.f32.mrf.mxu0 }
  0xe4   : > { %v1253_v33 = vpop.f32.mrf.mxu2 }
  0xe5   : > { %v891_v35 = vpop.f32.mrf.mxu1  ;;  %v1388_v37 = vadd.f32 %v1253_v33, %v1023_v28  ;;  %v2620_v33 = vld [vmem:[%s15045_s2 + $0x18] sm:$0xf] }
  0xe6   : > { %11095 = vmatmul.msk.bf16.gmra.mxu0 %vm511_vm1, %v501_v29  ;;  %v1024_v40 = vadd.f32 %v891_v35, %v608_v30  ;;  %v1159_v29 = vpack.c.bf16 %v1138_v18, %v1138_v18  ;;  %v2558_v18 = vld [vmem:[%s12280_s12 + $0x29] sm:$0xff] }
  0xe7   : > { %1429 = vst [vmem:[#allocation4 + $0x100] sm:$0xff] %v1388_v37  ;;  %v1153_v37 = vpack.c.bf16 %v1127_v23, %v1126_v22 }
  0xe8   : > { %11143 = vmatmul.msk.bf16.gmra.mxu3 %vm511_vm1, %v1157_v32  ;;  %11116 = vmatmul.msk.bf16.gmra.mxu1 %vm511_vm1, %v786_v34  ;;  %v788_v32 = vpack.c.bf16 %v762_v20, %v761_v19  ;;  %v2559_v19 = vld [vmem:[%s12280_s12 + $0x31] sm:$0xff] }
  0xe9   : > { %11137 = vmatmul.msk.bf16.gmra.mxu2 %vm511_vm1, %v1151_v38  ;;  %v2685_v38 = vsel %vm575_vm0, %v2620_v33, 0 }
  0xea   : > { %2694 = vmatpush.bf16.msrb.mxu2 %v2685_v38 }
  0xeb   : > { %v688_v39 = vpop.f32.mrf.mxu3  ;;  %v610_v41 = vpop.f32.mrf.mxu0 }
  0xec   : > { %732 = vst [vmem:[#allocation4 + $0x58] sm:$0xf] %v688_v39  ;;  %v1256_v42 = vpop.f32.mrf.mxu2  ;;  %v3350_v39 = vld [vmem:[%s15045_s2 + $0x20] sm:$0xf]  ;;  %s12073_s2 = scalar_lea.hbm %s14969_s10, 2 }
  0xed   : > { %v893_v44 = vpop.f32.mrf.mxu1  ;;  %v1389_v45 = vadd.f32 %v1256_v42, %v1024_v40  ;;  %v3415_v40 = vsel %vm575_vm0, %v3350_v39, 0  ;;  %v1830_v39 = vld [vmem:[%s12280_s12 + $0x28] sm:$0xff] }
  0xee   : > { %v1025_v57 = vadd.f32 %v893_v44, %v610_v41  ;;  %3424 = vmatpush.bf16.msra.mxu0 %v3415_v40  ;;  %v1831_v40 = vld [vmem:[%s12280_s12 + $0x30] sm:$0xff] }
  0xef   : > { %1430 = vst [vmem:[#allocation4 + $0x80] sm:$0xff] %v1389_v45 }
  0xf3   : > { %v690_v56 = vpop.f32.mrf.mxu3  ;;  %v613_v59 = vpop.f32.mrf.mxu0 }
  0xf4   : > { %v1258_v62 = vpop.f32.mrf.mxu2 }
  0xf5   : > { %v896_v1 = vpop.f32.mrf.mxu1  ;;  %v1390_v3 = vadd.f32 %v1258_v62, %v1025_v57  ;;  %v789_v62 = vpack.c.bf16 %v764_v52, %v763_v51 }
  0xf6   : > { %11096 = vmatmul.msk.bf16.gmra.mxu0 %vm511_vm1, %v502_v58  ;;  %v1026_v8 = vadd.f32 %v896_v1, %v613_v59  ;;  %v504_v58 = vpack.c.bf16 %v479_v50, %v478_v49 }
  0xf7   : > { %1431 = vst [vmem:[#allocation4 + $0x108] sm:$0xff] %v1390_v3  ;;  %v1154_v3 = vpack.c.bf16 %v1129_v54, %v1128_v53  ;;  %v1015_v53 = vld [vmem:[#allocation4 + $0x58] sm:$0xf] }
  0xf8   : > { %11144 = vmatmul.msk.bf16.gmra.mxu3 %vm511_vm1, %v1158_v61  ;;  %11117 = vmatmul.msk.bf16.gmra.mxu1 %vm511_vm1, %v787_v0 }
  0xf9   : > { %11138 = vmatmul.msk.bf16.gmra.mxu2 %vm511_vm1, %v1152_v4 }
  0xfb   : > { %v12491_v7 = vpop.f32.mrf.mxu3  ;;  %v615_v9 = vpop.f32.mrf.mxu0 }
  0xfc   : > { %v1261_v12 = vpop.f32.mrf.mxu2 }
  0xfd   : > { %v898_v13 = vpop.f32.mrf.mxu1  ;;  %v1391_v15 = vadd.f32 %v1261_v12, %v1026_v8 }
  0xfe   : > { %v1027_v25 = vadd.f32 %v898_v13, %v615_v9  ;;  %v1828_v13 = vld [vmem:[%s12280_s12 + $0x18] sm:$0xff] }
  0xff   : > { %1432 = vst [vmem:[#allocation4 + $0x138] sm:$0xff] %v1391_v15  ;;  %v1829_v15 = vld [vmem:[%s12280_s12 + $0x20] sm:$0xff] }
 0x100   : > { %v1869_v22 = vpack.c.bf16 %v1829_v15, %v1828_v13 }
 0x103   : > { %v12500_v24 = vpop.f32.mrf.mxu3  ;;  %v618_v28 = vpop.f32.mrf.mxu0 }
 0x104   : > { %v1263_v30 = vpop.f32.mrf.mxu2 }
 0x105   : > { %v901_v34 = vpop.f32.mrf.mxu1  ;;  %v1392_v35 = vadd.f32 %v1263_v30, %v1027_v25  ;;  %v2599_v30 = vpack.c.bf16 %v2559_v19, %v2558_v18  ;;  %v1048_v18 = vadd.f32 %v12491_v7, %v12412_v60 }
 0x106   : > { %11097 = vmatmul.msk.bf16.gmra.mxu0 %vm511_vm1, %v503_v26  ;;  %v1028_v42 = vadd.f32 %v901_v34, %v618_v28  ;;  %v2234_v26 = vpack.c.bf16 %v2194_v17, %v2193_v16 }
 0x107   : > { %1433 = vst [vmem:[#allocation4 + $0xf0] sm:$0xff] %v1392_v35 }
 0x108   : > { %11145 = vmatmul.msk.bf16.gmra.mxu3 %vm511_vm1, %v1159_v29  ;;  %11118 = vmatmul.msk.bf16.gmra.mxu1 %vm511_vm1, %v788_v32 }
 0x109   : > { %11139 = vmatmul.msk.bf16.gmra.mxu2 %vm511_vm1, %v1153_v37 }
 0x10b   : > { %v12514_v41 = vpop.f32.mrf.mxu3  ;;  %v620_v44 = vpop.f32.mrf.mxu0 }
 0x10c   : > { %v1266_v45 = vpop.f32.mrf.mxu2 }
 0x10d   : > { %v903_v46 = vpop.f32.mrf.mxu1  ;;  %v1393_v48 = vadd.f32 %v1266_v45, %v1028_v42  ;;  %v2560_v42 = vld [vmem:[%s12280_s12 + $0x39] sm:$0xff] }
 0x10e   : > { %v1029_v57 = vadd.f32 %v903_v46, %v620_v44  ;;  %v2561_v44 = vld [vmem:[%s12280_s12 + $0x41] sm:$0xff] }
 0x10f   : > { %1434 = vst [vmem:[#allocation4 + $0x18] sm:$0xff] %v1393_v48  ;;  %v2600_v52 = vpack.c.bf16 %v2561_v44, %v2560_v42 }
 0x113   : > { %v12522_v56 = vpop.f32.mrf.mxu3  ;;  %v623_v59 = vpop.f32.mrf.mxu0 }
 0x114   : > { %v1268_v61 = vpop.f32.mrf.mxu2 }
 0x115   : > { %v906_v0 = vpop.f32.mrf.mxu1  ;;  %v1394_v1 = vadd.f32 %v1268_v61, %v1029_v57 }
 0x116   : > { %11098 = vmatmul.msk.bf16.gmra.mxu0 %vm511_vm1, %v504_v58  ;;  %v1030_v5 = vadd.f32 %v906_v0, %v623_v59 }
 0x117   : > { %1435 = vst [vmem:[#allocation4 + $0xc8] sm:$0xff] %v1394_v1  ;;  %v1832_v1 = vld [vmem:[%s12280_s12 + $0x38] sm:$0xff] }
 0x118   : > { %11146 = vmatmul.msk.bf16.vlgmr.msrb.gmra.mxu3 %vm511_vm1, %v12302_v31  ;;  %11119 = vmatmul.msk.bf16.gmra.mxu1 %vm511_vm1, %v789_v62 }
 0x119   : > { %11140 = vmatmul.msk.bf16.gmra.mxu2 %vm511_vm1, %v1154_v3  ;;  %v1833_v3 = vld [vmem:[%s12280_s12 + $0x40] sm:$0xff] }
 0x11b   : > { %v12529_v4 = vpop.f32.mrf.mxu3  ;;  %v625_v6 = vpop.f32.mrf.mxu0 }
 0x11c   : > { %v1271_v8 = vpop.f32.mrf.mxu2 }
 0x11d   : > { %v908_v9 = vpop.f32.mrf.mxu1  ;;  %v1395_v12 = vadd.f32 %v1271_v8, %v1030_v5  ;;  %v2562_v5 = vld [vmem:[%s12280_s12 + $0x49] sm:$0xff] }
 0x11e   : > { %v1031_v31 = vadd.f32 %v908_v9, %v625_v6  ;;  %v2563_v6 = vld [vmem:[%s12280_s12 + $0x51] sm:$0xff]  ;;  %v1871_v9 = vpack.c.bf16 %v1833_v3, %v1832_v1 }
 0x11f   : > { %1436 = vst [vmem:[#allocation4 + $0x70] sm:$0xff] %v1395_v12  ;;  %v2601_v17 = vpack.c.bf16 %v2563_v6, %v2562_v5 }
 0x123   : > { %v12537_v20 = vpop.f32.mrf.mxu3  ;;  %v628_v23 = vpop.f32.mrf.mxu0 }
 0x124   : > { %v1273_v25 = vpop.f32.mrf.mxu2 }
 0x125   : > { %v911_v28 = vpop.f32.mrf.mxu1  ;;  %v1396_v29 = vadd.f32 %v1273_v25, %v1031_v31 }
 0x126   : > { %11167 = vmatmul.msk.bf16.vlgmr.msrb.gmra.mxu0 %vm511_vm1, %v1869_v22  ;;  %v1032_v33 = vadd.f32 %v911_v28, %v628_v23 }
 0x127   : > { %1437 = vst [vmem:[#allocation4 + $0x20] sm:$0xff] %v1396_v29  ;;  %v1834_v29 = vld [vmem:[%s12280_s12 + $0x48] sm:$0xff] }
 0x128   : > { %11147 = vmatmul.msk.bf16.gmra.mxu3 %vm511_vm1, %v12317_v43  ;;  %11188 = vmatmul.msk.bf16.vlgmr.msrb.gmra.mxu1 %vm511_vm1, %v2234_v26  ;;  %v1870_v43 = vpack.c.bf16 %v1831_v40, %v1830_v39 }
 0x129   : > { %11209 = vmatmul.msk.bf16.vlgmr.msrb.gmra.mxu2 %vm511_vm1, %v2599_v30 }
 0x12b   : > { %v12544_v32 = vpop.f32.mrf.mxu3  ;;  %v630_v34 = vpop.f32.mrf.mxu0 }
 0x12c   : > { %v1276_v35 = vpop.f32.mrf.mxu2 }
 0x12d   : > { %v913_v37 = vpop.f32.mrf.mxu1  ;;  %v1397_v38 = vadd.f32 %v1276_v35, %v1032_v33  ;;  %v2564_v33 = vld [vmem:[%s12280_s12 + $0x59] sm:$0xff] }
 0x12e   : > { %v1033_v46 = vadd.f32 %v913_v37, %v630_v34  ;;  %v2565_v34 = vld [vmem:[%s12280_s12 + $0x61] sm:$0xff] }
 0x12f   : > { %1438 = vst [vmem:[#allocation4 + $0x128] sm:$0xff] %v1397_v38  ;;  %v2602_v44 = vpack.c.bf16 %v2565_v34, %v2564_v33 }
 0x133   : > { %v12550_v45 = vpop.f32.mrf.mxu3  ;;  %v633_v48 = vpop.f32.mrf.mxu0 }
 0x134   : > { %v1278_v49 = vpop.f32.mrf.mxu2 }
 0x135   : > { %v916_v50 = vpop.f32.mrf.mxu1  ;;  %v1398_v51 = vadd.f32 %v1278_v49, %v1033_v46 }
 0x136   : > { %11168 = vmatmul.msk.bf16.gmra.mxu0 %vm511_vm1, %v1870_v43  ;;  %v1034_v57 = vadd.f32 %v916_v50, %v633_v48 }
 0x137   : > { %1439 = vst [vmem:[#allocation4 + $0x110] sm:$0xff] %v1398_v51 }
 0x138   : > { %11148 = vmatmul.msk.bf16.gmra.mxu3 %vm511_vm1, %v12332_v55  ;;  %11189 = vmatmul.msk.bf16.gmra.mxu1 %vm511_vm1, %v2599_v30  ;;  %v1049_v30 = vadd.f32 %v12500_v24, %v12421_v10  ;;  %v1050_v10 = vadd.f32 %v12514_v41, %v12427_v21 }
 0x139   : > { %11210 = vmatmul.msk.bf16.gmra.mxu2 %vm511_vm1, %v2600_v52 }
 0x13b   : > { %v971_v54 = vpop.f32.mrf.mxu3  ;;  %v635_v59 = vpop.f32.mrf.mxu0 }
 0x13c   : > { %v1056_v58 = vadd.f32 %v1015_v53, %v971_v54  ;;  %v1281_v61 = vpop.f32.mrf.mxu2  ;;  %v1473_v53 = vld [vmem:[%s12280_s12 + $0x67] sm:$0xff]  ;;  %v1474_v54 = vld [vmem:[%s12280_s12 + $0x6f] sm:$0xff] }
 0x13d   : > { %v918_v62 = vpop.f32.mrf.mxu1  ;;  %v1399_v0 = vadd.f32 %v1281_v61, %v1034_v57  ;;  %v1051_v57 = vadd.f32 %v12522_v56, %v12437_v36  ;;  %v1509_v1 = vpack.c.bf16 %v1474_v54, %v1473_v53  ;;  %v1052_v36 = vadd.f32 %v12529_v4, %v12443_v47 }
 0x13e   : > { %1097 = vst [vmem:[#allocation4 + $0x58] sm:$0xf] %v1056_v58  ;;  %v1035_v8 = vadd.f32 %v918_v62, %v635_v59  ;;  %v2566_v58 = vld [vmem:[%s12280_s12 + $0x69] sm:$0xff]  ;;  %v2567_v59 = vld [vmem:[%s12280_s12 + $0x71] sm:$0xff] }
 0x13f   : > { %1440 = vst [vmem:[#allocation4 + $0x8] sm:$0xff] %v1399_v0 }
 0x143   : > { %v973_v55 = vpop.f32.mrf.mxu3  ;;  %v638_v12 = vpop.f32.mrf.mxu0 }
 0x144   : > { %v1283_v13 = vpop.f32.mrf.mxu2  ;;  %v2603_v55 = vpack.c.bf16 %v2567_v59, %v2566_v58 }
 0x145   : > { %v921_v15 = vpop.f32.mrf.mxu1  ;;  %v1400_v16 = vadd.f32 %v1283_v13, %v1035_v8 }
 0x146   : > { %11169 = vmatmul.msk.bf16.gmra.mxu0 %vm511_vm1, %v1871_v9  ;;  %v1036_v31 = vadd.f32 %v921_v15, %v638_v12 }
 0x147   : > { %1441 = vst [vmem:[#allocation4 + $0x98] sm:$0xff] %v1400_v16 }
 0x148   : > { %11149 = vmatmul.msk.bf16.gmra.mxu3 %vm511_vm1, %v12346_v2  ;;  %11190 = vmatmul.msk.bf16.gmra.mxu1 %vm511_vm1, %v2600_v52  ;;  %v1835_v2 = vld [vmem:[%s12280_s12 + $0x50] sm:$0xff]  ;;  %v1837_v52 = vld [vmem:[%s12280_s12 + $0x60] sm:$0xff] }
 0x149   : > { %11211 = vmatmul.msk.bf16.gmra.mxu2 %vm511_vm1, %v2601_v17  ;;  %v1872_v38 = vpack.c.bf16 %v1835_v2, %v1834_v29 }
 0x14b   : > { %v1316_v19 = vpop.f32.mrf.mxu3  ;;  %v640_v23 = vpop.f32.mrf.mxu0 }
 0x14c   : > { %v1413_v22 = vadd.f32 %v1316_v19, %v1048_v18  ;;  %v1286_v25 = vpop.f32.mrf.mxu2  ;;  %v1839_v18 = vld [vmem:[%s12280_s12 + $0x70] sm:$0xff] }
 0x14d   : > { %v923_v26 = vpop.f32.mrf.mxu1  ;;  %v1401_v28 = vadd.f32 %v1286_v25, %v1036_v31  ;;  %v1475_v19 = vld [vmem:[%s12280_s12 + $0x77] sm:$0xff]  ;;  %v1476_v31 = vld [vmem:[%s12280_s12 + $0x7f] sm:$0xff] }
 0x14e   : > { %1454 = vst [vmem:[#allocation4] sm:$0xff] %v1413_v22  ;;  %v1037_v37 = vadd.f32 %v923_v26, %v640_v23  ;;  %v1053_v22 = vadd.f32 %v12537_v20, %v12453_v63  ;;  %v2568_v23 = vld [vmem:[%s12280_s12 + $0x79] sm:$0xff]  ;;  %v2569_v25 = vld [vmem:[%s12280_s12 + $0x81] sm:$0xff]  ;;  %v1510_v2 = vpack.c.bf16 %v1476_v31, %v1475_v19  ;;  %v1054_v63 = vadd.f32 %v12544_v32, %v12459_v11 }
 0x14f   : > { %1442 = vst [vmem:[#allocation4 + $0xa8] sm:$0xff] %v1401_v28 }
 0x153   : > { %v1318_v35 = vpop.f32.mrf.mxu3  ;;  %v643_v7 = vpop.f32.mrf.mxu0 }
 0x154   : > { %v1414_v60 = vadd.f32 %v1318_v35, %v1049_v30  ;;  %v1288_v39 = vpop.f32.mrf.mxu2  ;;  %v2604_v35 = vpack.c.bf16 %v2569_v25, %v2568_v23 }
 0x155   : > { %v926_v40 = vpop.f32.mrf.mxu1  ;;  %v1402_v42 = vadd.f32 %v1288_v39, %v1037_v37 }
 0x156   : > { %1455 = vst [vmem:[#allocation4 + $0x40] sm:$0xff] %v1414_v60  ;;  %11170 = vmatmul.msk.bf16.gmra.mxu0 %vm511_vm1, %v1872_v38  ;;  %v1038_v46 = vadd.f32 %v926_v40, %v643_v7 }
 0x157   : > { %1443 = vst [vmem:[#allocation4 + $0x90] sm:$0xff] %v1402_v42  ;;  %v1840_v42 = vld [vmem:[%s12280_s12 + $0x78] sm:$0xff] }
 0x158   : > { %11150 = vmatmul.msk.bf16.gmra.mxu3 %vm511_vm1, %v12361_v14  ;;  %11191 = vmatmul.msk.bf16.gmra.mxu1 %vm511_vm1, %v2601_v17  ;;  %v1836_v14 = vld [vmem:[%s12280_s12 + $0x58] sm:$0xff]  ;;  %v1838_v17 = vld [vmem:[%s12280_s12 + $0x68] sm:$0xff] }
 0x159   : > { %11212 = vmatmul.msk.bf16.gmra.mxu2 %vm511_vm1, %v2602_v44  ;;  %v1873_v61 = vpack.c.bf16 %v1837_v52, %v1836_v14  ;;  %v1874_v26 = vpack.c.bf16 %v1839_v18, %v1838_v17  ;;  %v11857_v18 = vld [vmem:[%s15047_s4 + $0x38] sm:$0xff] }
 0x15a   : > { %4193 = vmatpush.bf16.msra.mxu1 %v11857_v18  ;;  %v1485_v18 = vld [vmem:[%s12280_s12 + $0xc7] sm:$0xff] }
 0x15b   : > { %v1321_v24 = vpop.f32.mrf.mxu3  ;;  %v645_v48 = vpop.f32.mrf.mxu0 }
 0x15c   : > { %v1415_v43 = vadd.f32 %v1321_v24, %v1050_v10  ;;  %v1291_v49 = vpop.f32.mrf.mxu2  ;;  %v1477_v10 = vld [vmem:[%s12280_s12 + $0x87] sm:$0xff]  ;;  %v1478_v24 = vld [vmem:[%s12280_s12 + $0x8f] sm:$0xff] }
 0x15d   : > { %v928_v50 = vpop.f32.mrf.mxu1  ;;  %v1403_v51 = vadd.f32 %v1291_v49, %v1038_v46  ;;  %v1055_v46 = vadd.f32 %v12550_v45, %v12469_v27  ;;  %v1511_v14 = vpack.c.bf16 %v1478_v24, %v1477_v10  ;;  %v1380_v27 = vld [vmem:[#allocation4 + $0x58] sm:$0xf]  ;;  %v1706_v24 = vld [vmem:[#allocation4 + $0xd0] sm:$0xff] }
 0x15e   : > { %1456 = vst [vmem:[#allocation4 + $0x78] sm:$0xff] %v1415_v43  ;;  %v1039_v41 = vadd.f32 %v928_v50, %v645_v48  ;;  %v2570_v43 = vld [vmem:[%s12280_s12 + $0x89] sm:$0xff]  ;;  %v2571_v48 = vld [vmem:[%s12280_s12 + $0x91] sm:$0xff] }
 0x15f   : > { %1444 = vst [vmem:[#allocation4 + $0xe0] sm:$0xff] %v1403_v51 }
 0x163   : > { %v1323_v21 = vpop.f32.mrf.mxu3  ;;  %v648_v0 = vpop.f32.mrf.mxu0 }
 0x164   : > { %v1416_v62 = vadd.f32 %v1323_v21, %v1051_v57  ;;  %v1293_v3 = vpop.f32.mrf.mxu2  ;;  %v2605_v57 = vpack.c.bf16 %v2571_v48, %v2570_v43 }
 0x165   : > { %v931_v5 = vpop.f32.mrf.mxu1  ;;  %v1404_v6 = vadd.f32 %v1293_v3, %v1039_v41  ;;  %v1479_v3 = vld [vmem:[%s12280_s12 + $0x97] sm:$0xff] }
 0x166   : > { %1457 = vst [vmem:[#allocation4 + $0x30] sm:$0xff] %v1416_v62  ;;  %11171 = vmatmul.msk.bf16.gmra.mxu0 %vm511_vm1, %v1873_v61  ;;  %v1040_v8 = vadd.f32 %v931_v5, %v648_v0  ;;  %v1842_v0 = vld [vmem:[%s12280_s12 + $0x88] sm:$0xff]  ;;  %v1480_v5 = vld [vmem:[%s12280_s12 + $0x9f] sm:$0xff] }
 0x167   : > { %1445 = vst [vmem:[#allocation4 + $0x88] sm:$0xff] %v1404_v6  ;;  %v2572_v6 = vld [vmem:[%s12280_s12 + $0x99] sm:$0xff] }
 0x168   : > { %11151 = vmatmul.msk.bf16.gmra.mxu3 %vm511_vm1, %v1509_v1  ;;  %11192 = vmatmul.msk.bf16.gmra.mxu1 %vm511_vm1, %v2602_v44  ;;  %v1841_v44 = vld [vmem:[%s12280_s12 + $0x80] sm:$0xff]  ;;  %v1843_v1 = vld [vmem:[%s12280_s12 + $0x90] sm:$0xff] }
 0x169   : > { %11213 = vmatmul.msk.bf16.gmra.mxu2 %vm511_vm1, %v2603_v55  ;;  %v1875_v49 = vpack.c.bf16 %v1841_v44, %v1840_v42 }
 0x16b   : > { %v1326_v56 = vpop.f32.mrf.mxu3  ;;  %v650_v12 = vpop.f32.mrf.mxu0 }
 0x16c   : > { %v1417_v9 = vadd.f32 %v1326_v56, %v1052_v36  ;;  %v1296_v13 = vpop.f32.mrf.mxu2 }
 0x16d   : > { %v933_v15 = vpop.f32.mrf.mxu1  ;;  %v1405_v16 = vadd.f32 %v1296_v13, %v1040_v8  ;;  %v1876_v8 = vpack.c.bf16 %v1843_v1, %v1842_v0 }
 0x16e   : > { %1458 = vst [vmem:[#allocation4 + $0xb8] sm:$0xff] %v1417_v9  ;;  %v1041_v4 = vadd.f32 %v933_v15, %v650_v12  ;;  %v1512_v12 = vpack.c.bf16 %v1480_v5, %v1479_v3 }
 0x16f   : > { %1446 = vst [vmem:[#allocation4 + $0xc0] sm:$0xff] %v1405_v16 }
 0x173   : > { %v1328_v47 = vpop.f32.mrf.mxu3  ;;  %v653_v29 = vpop.f32.mrf.mxu0 }
 0x174   : > { %v1418_v28 = vadd.f32 %v1328_v47, %v1053_v22  ;;  %v1298_v30 = vpop.f32.mrf.mxu2 }
 0x175   : > { %v936_v33 = vpop.f32.mrf.mxu1  ;;  %v1406_v34 = vadd.f32 %v1298_v30, %v1041_v4  ;;  %v1844_v4 = vld [vmem:[%s12280_s12 + $0x98] sm:$0xff] }
 0x176   : > { %1459 = vst [vmem:[#allocation4 + $0x60] sm:$0xff] %v1418_v28  ;;  %11172 = vmatmul.msk.bf16.gmra.mxu0 %vm511_vm1, %v1874_v26  ;;  %v1042_v37 = vadd.f32 %v936_v33, %v653_v29  ;;  %v1845_v26 = vld [vmem:[%s12280_s12 + $0xa0] sm:$0xff]  ;;  %v1482_v29 = vld [vmem:[%s12280_s12 + $0xaf] sm:$0xff] }
 0x177   : > { %1447 = vst [vmem:[#allocation4 + $0x118] sm:$0xff] %v1406_v34  ;;  %v1481_v28 = vld [vmem:[%s12280_s12 + $0xa7] sm:$0xff]  ;;  %v2575_v30 = vld [vmem:[%s12280_s12 + $0xb1] sm:$0xff] }
 0x178   : > { %11152 = vmatmul.msk.bf16.gmra.mxu3 %vm511_vm1, %v1510_v2  ;;  %11193 = vmatmul.msk.bf16.gmra.mxu1 %vm511_vm1, %v2603_v55  ;;  %v2573_v55 = vld [vmem:[%s12280_s12 + $0xa1] sm:$0xff]  ;;  %v2574_v2 = vld [vmem:[%s12280_s12 + $0xa9] sm:$0xff] }
 0x179   : > { %11214 = vmatmul.msk.bf16.gmra.mxu2 %vm511_vm1, %v2604_v35  ;;  %v2606_v17 = vpack.c.bf16 %v2573_v55, %v2572_v6  ;;  %v1708_v55 = vld [vmem:[#allocation4 + $0x48] sm:$0xff] }
 0x17b   : > { %v1331_v20 = vpop.f32.mrf.mxu3  ;;  %v655_v60 = vpop.f32.mrf.mxu0 }
 0x17c   : > { %v1419_v38 = vadd.f32 %v1331_v20, %v1054_v63  ;;  %v1301_v7 = vpop.f32.mrf.mxu2  ;;  %v1705_v63 = vld [vmem:[#allocation4 + $0xb0] sm:$0xff] }
 0x17d   : > { %v938_v39 = vpop.f32.mrf.mxu1  ;;  %v1407_v40 = vadd.f32 %v1301_v7, %v1042_v37  ;;  %v1513_v37 = vpack.c.bf16 %v1482_v29, %v1481_v28 }
 0x17e   : > { %1460 = vst [vmem:[#allocation4 + $0x28] sm:$0xff] %v1419_v38  ;;  %v1043_v32 = vadd.f32 %v938_v39, %v655_v60 }
 0x17f   : > { %1448 = vst [vmem:[#allocation4 + $0xd8] sm:$0xff] %v1407_v40  ;;  %v2607_v40 = vpack.c.bf16 %v2575_v30, %v2574_v2 }
 0x183   : > { %v1333_v11 = vpop.f32.mrf.mxu3  ;;  %v658_v51 = vpop.f32.mrf.mxu0 }
 0x184   : > { %v1420_v50 = vadd.f32 %v1333_v11, %v1055_v46  ;;  %v1303_v52 = vpop.f32.mrf.mxu2 }
 0x185   : > { %v941_v53 = vpop.f32.mrf.mxu1  ;;  %v1408_v54 = vadd.f32 %v1303_v52, %v1043_v32  ;;  %v1484_v52 = vld [vmem:[%s12280_s12 + $0xbf] sm:$0xff] }
 0x186   : > { %1461 = vst [vmem:[#allocation4 + $0x140] sm:$0xff] %v1420_v50  ;;  %11173 = vmatmul.msk.bf16.gmra.mxu0 %vm511_vm1, %v1875_v49  ;;  %v1044_v58 = vadd.f32 %v941_v53, %v658_v51  ;;  %v1846_v50 = vld [vmem:[%s12280_s12 + $0xa8] sm:$0xff]  ;;  %v1847_v51 = vld [vmem:[%s12280_s12 + $0xb0] sm:$0xff]  ;;  %v2576_v53 = vld [vmem:[%s12280_s12 + $0xb9] sm:$0xff] }
 0x187   : > { %1449 = vst [vmem:[#allocation4 + $0xa0] sm:$0xff] %v1408_v54  ;;  %v2577_v54 = vld [vmem:[%s12280_s12 + $0xc1] sm:$0xff] }
 0x188   : > { %11153 = vmatmul.msk.bf16.gmra.mxu3 %vm511_vm1, %v1511_v14  ;;  %11194 = vmatmul.msk.bf16.gmra.mxu1 %vm511_vm1, %v2604_v35  ;;  %v1877_v35 = vpack.c.bf16 %v1845_v26, %v1844_v4  ;;  %v1483_v14 = vld [vmem:[%s12280_s12 + $0xb7] sm:$0xff]  ;;  %v2608_v1 = vpack.c.bf16 %v2577_v54, %v2576_v53 }
 0x189   : > { %11215 = vmatmul.msk.bf16.gmra.mxu2 %vm511_vm1, %v2605_v57  ;;  %v1709_v4 = vld [vmem:[#allocation4 + $0x120] sm:$0xff] }
 0x18b   : > { %v1336_v45 = vpop.f32.mrf.mxu3  ;;  %v660_v21 = vpop.f32.mrf.mxu0 }
 0x18c   : > { %v1421_v59 = vadd.f32 %v1380_v27, %v1336_v45  ;;  %v1306_v41 = vpop.f32.mrf.mxu2  ;;  %v1878_v45 = vpack.c.bf16 %v1847_v51, %v1846_v50  ;;  %v1711_v50 = vld [vmem:[#allocation4 + $0xf8] sm:$0xff] }
 0x18d   : > { %v943_v61 = vpop.f32.mrf.mxu1  ;;  %v1409_v62 = vadd.f32 %v1306_v41, %v1044_v58  ;;  %v1707_v58 = vld [vmem:[#allocation4 + $0x10] sm:$0xff] }
 0x18e   : > { %1462 = vst [vmem:[#allocation4 + $0x58] sm:$0xf] %v1421_v59  ;;  %v1045_v56 = vadd.f32 %v943_v61, %v660_v21  ;;  %v1514_v21 = vpack.c.bf16 %v1484_v52, %v1483_v14 }
 0x18f   : > { %1450 = vst [vmem:[#allocation4 + $0x68] sm:$0xff] %v1409_v62 }
 0x193   : > { %v1338_v36 = vpop.f32.mrf.mxu3  ;;  %v663_v9 = vpop.f32.mrf.mxu0 }
 0x194   : > { %v1308_v13 = vpop.f32.mrf.mxu2 }
 0x195   : > { %v946_v15 = vpop.f32.mrf.mxu1  ;;  %v1410_v16 = vadd.f32 %v1308_v13, %v1045_v56  ;;  %v11856_v13 = vld [vmem:[%s15047_s4 + $0x30] sm:$0xff] }
 0x196   : > { %11174 = vmatmul.msk.bf16.gmra.mxu0 %vm511_vm1, %v1876_v8  ;;  %v1046_v31 = vadd.f32 %v946_v15, %v663_v9  ;;  %4194 = vmatpush.bf16.msra.mxu1 %v11856_v13 }
 0x197   : > { %1451 = vst [vmem:[#allocation4 + $0x130] sm:$0xff] %v1410_v16  ;;  %v1848_v16 = vld [vmem:[%s12280_s12 + $0xb8] sm:$0xff] }
 0x198   : > { %11154 = vmatmul.msk.bf16.gmra.mxu3 %vm511_vm1, %v1512_v12  ;;  %11195 = vmatmul.msk.bf16.gmra.mxu1 %vm511_vm1, %v2605_v57 }
 0x199   : > { %11216 = vmatmul.msk.bf16.gmra.mxu2 %vm511_vm1, %v2606_v17 }
 0x19b   : > { %v1601_v19 = vpop.f32.mrf.mxu3  ;;  %v665_v22 = vpop.f32.mrf.mxu0 }
 0x19c   : > { %v1311_v23 = vpop.f32.mrf.mxu2  ;;  %v1746_v60 = vadd.f32 %v1705_v63, %v1601_v19  ;;  %v1486_v19 = vld [vmem:[%s12280_s12 + $0xcf] sm:$0xff] }
 0x19d   : > { %v948_v25 = vpop.f32.mrf.mxu1  ;;  %v1411_v47 = vadd.f32 %v1311_v23, %v1046_v31  ;;  %v2578_v31 = vld [vmem:[%s12280_s12 + $0xc9] sm:$0xff]  ;;  %v1515_v28 = vpack.c.bf16 %v1486_v19, %v1485_v18 }
 0x19e   : > { %v1047_v34 = vadd.f32 %v948_v25, %v665_v22  ;;  %v2579_v22 = vld [vmem:[%s12280_s12 + $0xd1] sm:$0xff] }
 0x19f   : > { %1452 = vst [vmem:[#allocation4 + $0x50] sm:$0xff] %v1411_v47 }
 0x1a3   : > { %v1603_v33 = vpop.f32.mrf.mxu3  ;;  %v1966_v20 = vpop.f32.mrf.mxu0 }
 0x1a4   : > { %v1313_v38 = vpop.f32.mrf.mxu2  ;;  %v2111_v42 = vadd.f32 %v1966_v20, %v1746_v60  ;;  %v1747_v48 = vadd.f32 %v1706_v24, %v1603_v33  ;;  %v1487_v24 = vld [vmem:[%s12280_s12 + $0xd7] sm:$0xff] }
 0x1a5   : > { %v1412_v7 = vadd.f32 %v1313_v38, %v1047_v34  ;;  %v2331_v39 = vpop.f32.mrf.mxu1  ;;  %v2609_v34 = vpack.c.bf16 %v2579_v22, %v2578_v31 }
 0x1a6   : > { %11175 = vmatmul.msk.bf16.gmra.mxu0 %vm511_vm1, %v1877_v35  ;;  %v2476_v10 = vadd.f32 %v2331_v39, %v2111_v42 }
 0x1a7   : > { %1453 = vst [vmem:[#allocation4 + $0xe8] sm:$0xff] %v1412_v7 }
 0x1a8   : > { %11155 = vmatmul.msk.bf16.gmra.mxu3 %vm511_vm1, %v1513_v37  ;;  %11196 = vmatmul.msk.bf16.gmra.mxu1 %vm511_vm1, %v2606_v17  ;;  %v1849_v17 = vld [vmem:[%s12280_s12 + $0xc0] sm:$0xff]  ;;  %v1710_v37 = vld [vmem:[#allocation4 + $0x38] sm:$0xff] }
 0x1a9   : > { %11217 = vmatmul.msk.bf16.gmra.mxu2 %vm511_vm1, %v2607_v40  ;;  %v1879_v47 = vpack.c.bf16 %v1849_v17, %v1848_v16 }
 0x1ab   : > { %v1606_v44 = vpop.f32.mrf.mxu3  ;;  %v1968_v46 = vpop.f32.mrf.mxu0 }
 0x1ac   : > { %v2696_v43 = vpop.f32.mrf.mxu2  ;;  %v2112_v49 = vadd.f32 %v1968_v46, %v1747_v48  ;;  %v1748_v61 = vadd.f32 %v1707_v58, %v1606_v44  ;;  %v1850_v44 = vld [vmem:[%s12280_s12 + $0xc8] sm:$0xff]  ;;  %v1488_v46 = vld [vmem:[%s12280_s12 + $0xdf] sm:$0xff] }
 0x1ad   : > { %v2333_v11 = vpop.f32.mrf.mxu1  ;;  %v2841_v32 = vadd.f32 %v2696_v43, %v2476_v10  ;;  %v1851_v10 = vld [vmem:[%s12280_s12 + $0xd0] sm:$0xff]  ;;  %v2580_v43 = vld [vmem:[%s12280_s12 + $0xd9] sm:$0xff]  ;;  %v2581_v48 = vld [vmem:[%s12280_s12 + $0xe1] sm:$0xff]  ;;  %v1516_v14 = vpack.c.bf16 %v1488_v46, %v1487_v24 }
 0x1ae   : > { %v2477_v27 = vadd.f32 %v2333_v11, %v2112_v49  ;;  %v1880_v49 = vpack.c.bf16 %v1851_v10, %v1850_v44  ;;  %v1715_v44 = vld [vmem:[#allocation4 + $0x138] sm:$0xff] }
 0x1af   : > { %2882 = vst [vmem:[#allocation4 + $0xb0] sm:$0xff] %v2841_v32 }
 0x1b3   : > { %v1608_v57 = vpop.f32.mrf.mxu3  ;;  %v1971_v59 = vpop.f32.mrf.mxu0 }
 0x1b4   : > { %v2698_v41 = vpop.f32.mrf.mxu2  ;;  %v2113_v3 = vadd.f32 %v1971_v59, %v1748_v61  ;;  %v1749_v8 = vadd.f32 %v1708_v55, %v1608_v57  ;;  %v1489_v55 = vld [vmem:[%s12280_s12 + $0xe7] sm:$0xff] }
 0x1b5   : > { %v2336_v62 = vpop.f32.mrf.mxu1  ;;  %v2842_v0 = vadd.f32 %v2698_v41, %v2477_v27  ;;  %v2610_v27 = vpack.c.bf16 %v2581_v48, %v2580_v43 }
 0x1b6   : > { %11176 = vmatmul.msk.bf16.gmra.mxu0 %vm511_vm1, %v1878_v45  ;;  %v2478_v6 = vadd.f32 %v2336_v62, %v2113_v3 }
 0x1b7   : > { %2883 = vst [vmem:[#allocation4 + $0xd0] sm:$0xff] %v2842_v0 }
 0x1b8   : > { %11156 = vmatmul.msk.bf16.gmra.mxu3 %vm511_vm1, %v1514_v21  ;;  %11197 = vmatmul.msk.bf16.gmra.mxu1 %vm511_vm1, %v2607_v40  ;;  %v1712_v21 = vld [vmem:[#allocation4 + $0x100] sm:$0xff] }
 0x1b9   : > { %11218 = vmatmul.msk.bf16.gmra.mxu2 %vm511_vm1, %v2608_v1 }
 0x1bb   : > { %v1611_v5 = vpop.f32.mrf.mxu3  ;;  %v1973_v36 = vpop.f32.mrf.mxu0 }
 0x1bc   : > { %v2701_v56 = vpop.f32.mrf.mxu2  ;;  %v2114_v15 = vadd.f32 %v1973_v36, %v1749_v8  ;;  %v1750_v2 = vadd.f32 %v1709_v4, %v1611_v5  ;;  %v1852_v5 = vld [vmem:[%s12280_s12 + $0xd8] sm:$0xff]  ;;  %v1490_v36 = vld [vmem:[%s12280_s12 + $0xef] sm:$0xff] }
 0x1bd   : > { %v2338_v9 = vpop.f32.mrf.mxu1  ;;  %v2843_v12 = vadd.f32 %v2701_v56, %v2478_v6  ;;  %v1853_v6 = vld [vmem:[%s12280_s12 + $0xe0] sm:$0xff]  ;;  %v2582_v56 = vld [vmem:[%s12280_s12 + $0xe9] sm:$0xff]  ;;  %v2583_v8 = vld [vmem:[%s12280_s12 + $0xf1] sm:$0xff]  ;;  %v1517_v17 = vpack.c.bf16 %v1490_v36, %v1489_v55 }
 0x1be   : > { %v2479_v25 = vadd.f32 %v2338_v9, %v2114_v15  ;;  %v1881_v13 = vpack.c.bf16 %v1853_v6, %v1852_v5  ;;  %v1713_v15 = vld [vmem:[#allocation4 + $0x80] sm:$0xff]  ;;  %v12149_v5 = vmov 0   ;;  %v407_v6 = vld [vmem:[%s15048_s1] sm:$0xff]  ;;  %v1717_v55 = vld [vmem:[#allocation4 + $0x18] sm:$0xff] }
 0x1bf   : > { %2884 = vst [vmem:[#allocation4 + $0x10] sm:$0xff] %v2843_v12  ;;  %12044 = vset.pattern.permute.xlu0 %v12149_v5  ;;  %12045 = vset.pattern.permute.xlu1 %v12149_v5 }
 0x1c0   : > { %3782 = vperm.xlu0 %12044, %v407_v6   ;;  %12046 = vset.pattern.permute.xlu2 %v12149_v5  ;;  %v1721_v5 = vld [vmem:[#allocation4 + $0x128] sm:$0xff] }
 0x1c3   : > { %v1613_v23 = vpop.f32.mrf.mxu3  ;;  %v1976_v26 = vpop.f32.mrf.mxu0 }
 0x1c4   : > { %v2703_v29 = vpop.f32.mrf.mxu2  ;;  %v2115_v35 = vadd.f32 %v1976_v26, %v1750_v2  ;;  %v1751_v7 = vadd.f32 %v1710_v37, %v1613_v23  ;;  %v2611_v23 = vpack.c.bf16 %v2583_v8, %v2582_v56  ;;  %v1714_v26 = vld [vmem:[#allocation4 + $0x108] sm:$0xff]  ;;  %v11855_v2 = vld [vmem:[%s15047_s4 + $0x28] sm:$0xff] }
 0x1c5   : > { %v2341_v30 = vpop.f32.mrf.mxu1  ;;  %v2844_v33 = vadd.f32 %v2703_v29, %v2479_v25  ;;  %4195 = vmatpush.bf16.msra.mxu1 %v11855_v2  ;;  %v1491_v37 = vld [vmem:[%s12280_s12 + $0xf7] sm:$0xff] }
 0x1c6   : > { %11177 = vmatmul.msk.bf16.gmra.mxu0 %vm511_vm1, %v1879_v47  ;;  %v2480_v20 = vadd.f32 %v2341_v30, %v2115_v35  ;;  %v1495_v2 = vld [vmem:[%s12280_s12 + $0x117] sm:$0xff] }
 0x1c7   : > { %2885 = vst [vmem:[#allocation4 + $0x48] sm:$0xff] %v2844_v33 }
 0x1c8   : > { %11157 = vmatmul.msk.bf16.gmra.mxu3 %vm511_vm1, %v1515_v28  ;;  %11198 = vmatmul.msk.bf16.gmra.mxu1 %vm511_vm1, %v2608_v1 }
 0x1c9   : > { %11219 = vmatmul.msk.bf16.gmra.mxu2 %vm511_vm1, %v2609_v34 }
 0x1cb   : > { %v1616_v63 = vpop.f32.mrf.mxu3  ;;  %v1978_v38 = vpop.f32.mrf.mxu0 }
 0x1cc   : > { %v2706_v60 = vpop.f32.mrf.mxu2  ;;  %v2116_v42 = vadd.f32 %v1978_v38, %v1751_v7  ;;  %v1752_v53 = vadd.f32 %v1711_v50, %v1616_v63  ;;  %v1854_v63 = vld [vmem:[%s12280_s12 + $0xe8] sm:$0xff]  ;;  %v1492_v38 = vld [vmem:[%s12280_s12 + $0xff] sm:$0xff] }
 0x1cd   : > { %v2343_v39 = vpop.f32.mrf.mxu1  ;;  %v2845_v40 = vadd.f32 %v2706_v60, %v2480_v20  ;;  %v1855_v20 = vld [vmem:[%s12280_s12 + $0xf0] sm:$0xff]  ;;  %v2584_v60 = vld [vmem:[%s12280_s12 + $0xf9] sm:$0xff]  ;;  %v2585_v7 = vld [vmem:[%s12280_s12 + $0x101] sm:$0xff]  ;;  %v1518_v24 = vpack.c.bf16 %v1492_v38, %v1491_v37 }
 0x1ce   : > { %v2481_v32 = vadd.f32 %v2343_v39, %v2116_v42  ;;  %v1882_v42 = vpack.c.bf16 %v1855_v20, %v1854_v63  ;;  %v409_v37 = vld [vmem:[%s15048_s1 + $0x10] sm:$0xff] }
 0x1cf   : > { %2886 = vst [vmem:[#allocation4 + $0x120] sm:$0xff] %v2845_v40  ;;  %v413_v38 = vld [vmem:[%s15048_s1 + $0x30] sm:$0xff]  ;;  %3792 = vperm.xlu1 %12045, %v409_v37   ;;  %v420_v37 = vld [vmem:[%s15048_s1 + $0x68] sm:$0xff] }
 0x1d3   : > { %v1618_v11 = vpop.f32.mrf.mxu3  ;;  %v1981_v51 = vpop.f32.mrf.mxu0 }
 0x1d4   : > { %v2708_v52 = vpop.f32.mrf.mxu2  ;;  %v2117_v45 = vadd.f32 %v1981_v51, %v1752_v53  ;;  %v1753_v62 = vadd.f32 %v1712_v21, %v1618_v11  ;;  %v1493_v21 = vld [vmem:[%s12280_s12 + $0x107] sm:$0xff] }
 0x1d5   : > { %v2346_v54 = vpop.f32.mrf.mxu1  ;;  %v2846_v57 = vadd.f32 %v2708_v52, %v2481_v32  ;;  %v2612_v32 = vpack.c.bf16 %v2585_v7, %v2584_v60  ;;  %v1719_v60 = vld [vmem:[#allocation4 + $0x70] sm:$0xff] }
 0x1d6   : > { %11178 = vmatmul.msk.bf16.gmra.mxu0 %vm511_vm1, %v1880_v49  ;;  %v2482_v59 = vadd.f32 %v2346_v54, %v2117_v45 }
 0x1d7   : > { %2887 = vst [vmem:[#allocation4 + $0x38] sm:$0xff] %v2846_v57 }
 0x1d8   : > { %11158 = vmatmul.msk.bf16.gmra.mxu3 %vm511_vm1, %v1516_v14  ;;  %11199 = vmatmul.msk.bf16.gmra.mxu1 %vm511_vm1, %v2609_v34  ;;  %v1716_v14 = vld [vmem:[#allocation4 + $0xf0] sm:$0xff] }
 0x1d9   : > { %11220 = vmatmul.msk.bf16.gmra.mxu2 %vm511_vm1, %v2610_v27 }
 0x1db   : > { %v1621_v58 = vpop.f32.mrf.mxu3  ;;  %v1983_v41 = vpop.f32.mrf.mxu0 }
 0x1dc   : > { %v2711_v61 = vpop.f32.mrf.mxu2  ;;  %v2118_v3 = vadd.f32 %v1983_v41, %v1753_v62  ;;  %v1754_v19 = vadd.f32 %v1713_v15, %v1621_v58  ;;  %v1856_v58 = vld [vmem:[%s12280_s12 + $0xf8] sm:$0xff]  ;;  %v1494_v41 = vld [vmem:[%s12280_s12 + $0x10f] sm:$0xff] }
 0x1dd   : > { %v2348_v0 = vpop.f32.mrf.mxu1  ;;  %v2847_v1 = vadd.f32 %v2711_v61, %v2482_v59  ;;  %v1857_v59 = vld [vmem:[%s12280_s12 + $0x100] sm:$0xff]  ;;  %v2586_v61 = vld [vmem:[%s12280_s12 + $0x109] sm:$0xff]  ;;  %v2587_v62 = vld [vmem:[%s12280_s12 + $0x111] sm:$0xff]  ;;  %v1519_v56 = vpack.c.bf16 %v1494_v41, %v1493_v21 }
 0x1de   : > { %v2483_v12 = vadd.f32 %v2348_v0, %v2118_v3  ;;  %v1883_v3 = vpack.c.bf16 %v1857_v59, %v1856_v58  ;;  %v2613_v15 = vpack.c.bf16 %v2587_v62, %v2586_v61  ;;  %v1497_v58 = vld [vmem:[%s12280_s12 + $0x127] sm:$0xff]  ;;  %v1498_v59 = vld [vmem:[%s12280_s12 + $0x12f] sm:$0xff] }
 0x1df   : > { %2888 = vst [vmem:[#allocation4 + $0xf8] sm:$0xff] %v2847_v1  ;;  %v2590_v21 = vld [vmem:[%s12280_s12 + $0x129] sm:$0xff]  ;;  %v2591_v41 = vld [vmem:[%s12280_s12 + $0x131] sm:$0xff] }
 0x1e3   : > { %v1623_v9 = vpop.f32.mrf.mxu3  ;;  %v1986_v16 = vpop.f32.mrf.mxu0 }
 0x1e4   : > { %v2713_v18 = vpop.f32.mrf.mxu2  ;;  %v2119_v25 = vadd.f32 %v1986_v16, %v1754_v19  ;;  %v1755_v30 = vadd.f32 %v1714_v26, %v1623_v9  ;;  %v408_v19 = vld [vmem:[%s15048_s1 + $0x8] sm:$0xff] }
 0x1e5   : > { %v2351_v31 = vpop.f32.mrf.mxu1  ;;  %v2848_v22 = vadd.f32 %v2713_v18, %v2483_v12  ;;  %3787 = vperm.xlu0 %12044, %v408_v19   ;;  %v422_v19 = vld [vmem:[%s15048_s1 + $0x78] sm:$0xff] }
 0x1e6   : > { %11179 = vmatmul.msk.bf16.gmra.mxu0 %vm511_vm1, %v1881_v13  ;;  %v2484_v4 = vadd.f32 %v2351_v31, %v2119_v25  ;;  %v1718_v31 = vld [vmem:[#allocation4 + $0xc8] sm:$0xff] }
 0x1e7   : > { %2889 = vst [vmem:[#allocation4 + $0x100] sm:$0xff] %v2848_v22 }
 0x1e8   : > { %11159 = vmatmul.msk.bf16.gmra.mxu3 %vm511_vm1, %v1517_v17  ;;  %11200 = vmatmul.msk.bf16.gmra.mxu1 %vm511_vm1, %v2610_v27 }
 0x1e9   : > { %11221 = vmatmul.msk.bf16.gmra.mxu2 %vm511_vm1, %v2611_v23 }
 0x1eb   : > { %v1626_v47 = vpop.f32.mrf.mxu3  ;;  %v1988_v28 = vpop.f32.mrf.mxu0 }
 0x1ec   : > { %v2716_v29 = vpop.f32.mrf.mxu2  ;;  %v2120_v35 = vadd.f32 %v1988_v28, %v1755_v30  ;;  %v1756_v43 = vadd.f32 %v1715_v44, %v1626_v47  ;;  %v1858_v28 = vld [vmem:[%s12280_s12 + $0x108] sm:$0xff]  ;;  %v1496_v30 = vld [vmem:[%s12280_s12 + $0x11f] sm:$0xff] }
 0x1ed   : > { %v2353_v33 = vpop.f32.mrf.mxu1  ;;  %v2849_v34 = vadd.f32 %v2716_v29, %v2484_v4  ;;  %v1859_v29 = vld [vmem:[%s12280_s12 + $0x110] sm:$0xff]  ;;  %3812 = vperm.xlu0 %12044, %v413_v38  }
 0x1ee   : > { %v2485_v40 = vadd.f32 %v2353_v33, %v2120_v35  ;;  %v2588_v33 = vld [vmem:[%s12280_s12 + $0x119] sm:$0xff]  ;;  %v1884_v20 = vpack.c.bf16 %v1859_v29, %v1858_v28  ;;  %v1862_v28 = vld [vmem:[%s12280_s12 + $0x128] sm:$0xff]  ;;  %v1863_v29 = vld [vmem:[%s12280_s12 + $0x130] sm:$0xff] }
 0x1ef   : > { %2890 = vst [vmem:[#allocation4 + $0x80] sm:$0xff] %v2849_v34  ;;  %v2589_v34 = vld [vmem:[%s12280_s12 + $0x121] sm:$0xff]  ;;  %v425_v38 = vld [vmem:[%s15048_s1 + $0x90] sm:$0xff] }
 0x1f3   : > { %v1628_v39 = vpop.f32.mrf.mxu3  ;;  %v1991_v10 = vpop.f32.mrf.mxu0 }
 0x1f4   : > { %v2718_v46 = vpop.f32.mrf.mxu2  ;;  %v2121_v49 = vadd.f32 %v1991_v10, %v1756_v43  ;;  %v1757_v54 = vadd.f32 %v1716_v14, %v1628_v39  ;;  %v1520_v39 = vpack.c.bf16 %v1496_v30, %v1495_v2  ;;  %v1499_v2 = vld [vmem:[%s12280_s12 + $0x137] sm:$0xff]  ;;  %v1500_v30 = vld [vmem:[%s12280_s12 + $0x13f] sm:$0xff] }
 0x1f5   : > { %v2356_v48 = vpop.f32.mrf.mxu1  ;;  %v2850_v11 = vadd.f32 %v2718_v46, %v2485_v40  ;;  %v11854_v46 = vld [vmem:[%s15047_s4 + $0x20] sm:$0xff] }
 0x1f6   : > { %11180 = vmatmul.msk.bf16.gmra.mxu0 %vm511_vm1, %v1882_v42  ;;  %v2486_v51 = vadd.f32 %v2356_v48, %v2121_v49  ;;  %4196 = vmatpush.bf16.msra.mxu1 %v11854_v46  ;;  %v416_v49 = vld [vmem:[%s15048_s1 + $0x48] sm:$0xff] }
 0x1f7   : > { %2891 = vst [vmem:[#allocation4 + $0x108] sm:$0xff] %v2850_v11  ;;  %3827 = vperm.xlu0 %12044, %v416_v49   ;;  %v1724_v49 = vld [vmem:[#allocation4 + $0x98] sm:$0xff] }
 0x1f8   : > { %11160 = vmatmul.msk.bf16.gmra.mxu3 %vm511_vm1, %v1518_v24  ;;  %11201 = vmatmul.msk.bf16.gmra.mxu1 %vm511_vm1, %v2611_v23  ;;  %v2614_v24 = vpack.c.bf16 %v2589_v34, %v2588_v33  ;;  %v2592_v33 = vld [vmem:[%s12280_s12 + $0x139] sm:$0xff]  ;;  %v2593_v34 = vld [vmem:[%s12280_s12 + $0x141] sm:$0xff] }
 0x1f9   : > { %11222 = vmatmul.msk.bf16.gmra.mxu2 %vm511_vm1, %v2612_v32 }
 0x1fb   : > { %v1631_v50 = vpop.f32.mrf.mxu3  ;;  %v1993_v52 = vpop.f32.mrf.mxu0 }
 0x1fc   : > { %v2721_v53 = vpop.f32.mrf.mxu2  ;;  %v2122_v45 = vadd.f32 %v1993_v52, %v1757_v54  ;;  %v1758_v9 = vadd.f32 %v1717_v55, %v1631_v50  ;;  %v1720_v50 = vld [vmem:[#allocation4 + $0x20] sm:$0xff]  ;;  %v1521_v55 = vpack.c.bf16 %v1498_v59, %v1497_v58  ;;  %v1501_v58 = vld [vmem:[%s12280_s12 + $0x147] sm:$0xff] }
 0x1fd   : > { %v2358_v57 = vpop.f32.mrf.mxu1  ;;  %v2851_v27 = vadd.f32 %v2721_v53, %v2486_v51  ;;  %v1502_v59 = vld [vmem:[%s12280_s12 + $0x14f] sm:$0xff] }
 0x1fe   : > { %v2487_v1 = vadd.f32 %v2358_v57, %v2122_v45  ;;  %v1861_v45 = vld [vmem:[%s12280_s12 + $0x120] sm:$0xff] }
 0x1ff   : > { %2892 = vst [vmem:[#allocation4 + $0x138] sm:$0xff] %v2851_v27  ;;  %v1860_v27 = vld [vmem:[%s12280_s12 + $0x118] sm:$0xff] }
 0x203   : > { %v1633_v0 = vpop.f32.mrf.mxu3  ;;  %v1996_v36 = vpop.f32.mrf.mxu0 }
 0x204   : > { %v2723_v8 = vpop.f32.mrf.mxu2  ;;  %v2123_v16 = vadd.f32 %v1996_v36, %v1758_v9  ;;  %v1759_v25 = vadd.f32 %v1718_v31, %v1633_v0  ;;  %v1885_v0 = vpack.c.bf16 %v1861_v45, %v1860_v27  ;;  %v1722_v31 = vld [vmem:[#allocation4 + $0x110] sm:$0xff]  ;;  %v1864_v27 = vld [vmem:[%s12280_s12 + $0x138] sm:$0xff] }
 0x205   : > { %v2361_v12 = vpop.f32.mrf.mxu1  ;;  %v2852_v13 = vadd.f32 %v2723_v8, %v2487_v1  ;;  %v414_v1 = vld [vmem:[%s15048_s1 + $0x38] sm:$0xff]  ;;  %v1865_v45 = vld [vmem:[%s12280_s12 + $0x140] sm:$0xff] }
 0x206   : > { %11181 = vmatmul.msk.bf16.gmra.mxu0 %vm511_vm1, %v1883_v3  ;;  %v2488_v18 = vadd.f32 %v2361_v12, %v2123_v16  ;;  %v419_v3 = vld [vmem:[%s15048_s1 + $0x60] sm:$0xff]  ;;  %v2615_v12 = vpack.c.bf16 %v2591_v41, %v2590_v21  ;;  %v2594_v21 = vld [vmem:[%s12280_s12 + $0x149] sm:$0xff]  ;;  %v2595_v41 = vld [vmem:[%s12280_s12 + $0x151] sm:$0xff] }
 0x207   : > { %2893 = vst [vmem:[#allocation4 + $0xf0] sm:$0xff] %v2852_v13  ;;  %3842 = vperm.xlu0 %12044, %v419_v3   ;;  %v426_v3 = vld [vmem:[%s15048_s1 + $0x98] sm:$0xff] }
 0x208   : > { %11161 = vmatmul.msk.bf16.gmra.mxu3 %vm511_vm1, %v1519_v56  ;;  %11202 = vmatmul.msk.bf16.gmra.mxu1 %vm511_vm1, %v2612_v32  ;;  %v410_v32 = vld [vmem:[%s15048_s1 + $0x18] sm:$0xff] }
 0x209   : > { %11223 = vmatmul.msk.bf16.gmra.mxu2 %vm511_vm1, %v2613_v15  ;;  %3797 = vperm.xlu1 %12045, %v410_v32   ;;  %v428_v32 = vld [vmem:[%s15048_s1 + $0xa8] sm:$0xff] }
 0x20b   : > { %v1636_v17 = vpop.f32.mrf.mxu3  ;;  %v1998_v22 = vpop.f32.mrf.mxu0 }
 0x20c   : > { %v2726_v23 = vpop.f32.mrf.mxu2  ;;  %v2124_v26 = vadd.f32 %v1998_v22, %v1759_v25  ;;  %v1760_v42 = vadd.f32 %v1719_v60, %v1636_v17  ;;  %v1723_v60 = vld [vmem:[#allocation4 + $0x8] sm:$0xff] }
 0x20d   : > { %v2363_v47 = vpop.f32.mrf.mxu1  ;;  %v2853_v4 = vadd.f32 %v2726_v23, %v2488_v18  ;;  %v417_v18 = vld [vmem:[%s15048_s1 + $0x50] sm:$0xff] }
 0x20e   : > { %v2489_v63 = vadd.f32 %v2363_v47, %v2124_v26 }
 0x20f   : > { %2894 = vst [vmem:[#allocation4 + $0x18] sm:$0xff] %v2853_v4  ;;  %3857 = vperm.xlu0 %12044, %v422_v19   ;;  %v429_v19 = vld [vmem:[%s15048_s1 + $0xb0] sm:$0xff] }
 0x211   : > { %3817 = vperm.xlu1 %12045, %v414_v1   ;;  %v411_v1 = vld [vmem:[%s15048_s1 + $0x20] sm:$0xff] }
 0x212   : > { %3802 = vperm.xlu2 %12046, %v411_v1  }
 0x213   : > { %v1638_v35 = vpop.f32.mrf.mxu3  ;;  %v2001_v7 = vpop.f32.mrf.mxu0 }
 0x214   : > { %v2728_v40 = vpop.f32.mrf.mxu2  ;;  %v2125_v43 = vadd.f32 %v2001_v7, %v1760_v42  ;;  %v1761_v52 = vadd.f32 %v1720_v50, %v1638_v35 }
 0x215   : > { %v2366_v44 = vpop.f32.mrf.mxu1  ;;  %v2854_v10 = vadd.f32 %v2728_v40, %v2489_v63 }
 0x216   : > { %11182 = vmatmul.msk.bf16.gmra.mxu0 %vm511_vm1, %v1884_v20  ;;  %v2490_v11 = vadd.f32 %v2366_v44, %v2125_v43  ;;  %v1886_v20 = vpack.c.bf16 %v1863_v29, %v1862_v28  ;;  %v11864_v28 = vld [vmem:[%s15047_s4 + $0x70] sm:$0xff] }
 0x217   : > { %2895 = vst [vmem:[#allocation4 + $0xc8] sm:$0xff] %v2854_v10  ;;  %3872 = vperm.xlu0 %12044, %v425_v38   ;;  %v415_v38 = vld [vmem:[%s15048_s1 + $0x40] sm:$0xff] }
 0x218   : > { %11162 = vmatmul.msk.bf16.gmra.mxu3 %vm511_vm1, %v1520_v39  ;;  %11203 = vmatmul.msk.bf16.gmra.mxu1 %vm511_vm1, %v2613_v15  ;;  %v11865_v15 = vld [vmem:[%s15047_s4 + $0x78] sm:$0xff]  ;;  %v1522_v39 = vpack.c.bf16 %v1500_v30, %v1499_v2  ;;  %v1866_v2 = vld [vmem:[%s12280_s12 + $0x148] sm:$0xff]  ;;  %v1867_v30 = vld [vmem:[%s12280_s12 + $0x150] sm:$0xff] }
 0x219   : > { %11224 = vmatmul.msk.bf16.gmra.mxu2 %vm511_vm1, %v2614_v24  ;;  %3832 = vperm.xlu1 %12045, %v417_v18   ;;  %v412_v18 = vld [vmem:[%s15048_s1 + $0x28] sm:$0xff] }
 0x21a   : > { %4473 = vmatpush.bf16.msra.mxu2 %v11865_v15  ;;  %3807 = vperm.xlu2 %12046, %v412_v18   ;;  %v11852_v18 = vld [vmem:[%s15047_s4 + $0x10] sm:$0xff] }
 0x21b   : > { %v1641_v48 = vpop.f32.mrf.mxu3  ;;  %v2003_v51 = vpop.f32.mrf.mxu0 }
 0x21c   : > { %v2731_v14 = vpop.f32.mrf.mxu2  ;;  %v2126_v57 = vadd.f32 %v2003_v51, %v1761_v52  ;;  %v1762_v56 = vadd.f32 %v1721_v5, %v1641_v48  ;;  %v431_v5 = vld [vmem:[%s15048_s1 + $0xc0] sm:$0xff] }
 0x21d   : > { %v2368_v53 = vpop.f32.mrf.mxu1  ;;  %v2855_v54 = vadd.f32 %v2731_v14, %v2490_v11  ;;  %v423_v11 = vld [vmem:[%s15048_s1 + $0x80] sm:$0xff] }
 0x21e   : > { %v2491_v62 = vadd.f32 %v2368_v53, %v2126_v57  ;;  %4474 = vmatpush.bf16.msra.mxu2 %v11864_v28 }
 0x21f   : > { %2896 = vst [vmem:[#allocation4 + $0x70] sm:$0xff] %v2855_v54  ;;  %3887 = vperm.xlu0 %12044, %v428_v32   ;;  %v11853_v54 = vld [vmem:[%s15047_s4 + $0x18] sm:$0xff] }
 0x220   : > { %4197 = vmatpush.bf16.msra.mxu1 %v11853_v54 }
 0x221   : > { %3847 = vperm.xlu1 %12045, %v420_v37   ;;  %v1888_v37 = vpack.c.bf16 %v1867_v30, %v1866_v2 }
 0x222   : > { %3822 = vperm.xlu2 %12046, %v415_v38  }
 0x223   : > { %v1643_v61 = vpop.f32.mrf.mxu3  ;;  %v2006_v6 = vpop.f32.mrf.mxu0 }
 0x224   : > { %v2733_v36 = vpop.f32.mrf.mxu2  ;;  %v2127_v13 = vadd.f32 %v2006_v6, %v1762_v56  ;;  %v1763_v25 = vadd.f32 %v1722_v31, %v1643_v61  ;;  %v1725_v6 = vld [vmem:[#allocation4 + $0xa8] sm:$0xff]  ;;  %4198 = vmatpush.bf16.msra.mxu1 %v11852_v18 }
 0x225   : > { %v2371_v8 = vpop.f32.mrf.mxu1  ;;  %v2856_v9 = vadd.f32 %v2733_v36, %v2491_v62  ;;  %v1523_v36 = vpack.c.bf16 %v1502_v59, %v1501_v58  ;;  %v434_v31 = vld [vmem:[%s15048_s1 + $0xd8] sm:$0xff]  ;;  %v2923_v59 = vld [vmem:[%s12280_s12 + $0x2a] sm:$0xff] }
 0x226   : > { %11183 = vmatmul.msk.bf16.gmra.mxu0 %vm511_vm1, %v1885_v0  ;;  %v2492_v17 = vadd.f32 %v2371_v8, %v2127_v13  ;;  %v1887_v0 = vpack.c.bf16 %v1865_v45, %v1864_v27  ;;  %v2617_v13 = vpack.c.bf16 %v2595_v41, %v2594_v21  ;;  %v1868_v58 = vld [vmem:[%s12280_s12 + $0x158] sm:$0xf] }
 0x227   : > { %2897 = vst [vmem:[#allocation4 + $0x20] sm:$0xff] %v2856_v9  ;;  %3902 = vperm.xlu0 %12044, %v431_v5   ;;  %v2924_v21 = vld [vmem:[%s12280_s12 + $0x32] sm:$0xff]  ;;  %v1889_v1 = vpack.c.bf16 %v1868_v58, %v1868_v58  ;;  %v3291_v58 = vld [vmem:[%s12280_s12 + $0x43] sm:$0xff] }
 0x228   : > { %11163 = vmatmul.msk.bf16.gmra.mxu3 %vm511_vm1, %v1521_v55  ;;  %11204 = vmatmul.msk.bf16.gmra.mxu1 %vm511_vm1, %v2614_v24  ;;  %v2616_v24 = vpack.c.bf16 %v2593_v34, %v2592_v33  ;;  %v1503_v33 = vld [vmem:[%s12280_s12 + $0x157] sm:$0xf] }
 0x229   : > { %11225 = vmatmul.msk.bf16.gmra.mxu2 %vm511_vm1, %v2615_v12  ;;  %3862 = vperm.xlu1 %12045, %v423_v11   ;;  %v2596_v34 = vld [vmem:[%s12280_s12 + $0x159] sm:$0xff] }
 0x22a   : > { %v2233_v41 = vld [vmem:[%s12280_s12 + $0x159] sm:$0xf] }
 0x22b   : > { %v1646_v16 = vpop.f32.mrf.mxu3  ;;  %v2008_v22 = vpop.f32.mrf.mxu0  ;;  %v438_v5 = vld [vmem:[%s15048_s1 + $0xf8] sm:$0xff] }
 0x22c   : > { %v2736_v23 = vpop.f32.mrf.mxu2  ;;  %v2128_v26 = vadd.f32 %v2008_v22, %v1763_v25  ;;  %v1764_v42 = vadd.f32 %v1723_v60, %v1646_v16  ;;  %v1726_v22 = vld [vmem:[#allocation4 + $0x90] sm:$0xff]  ;;  %v432_v60 = vld [vmem:[%s15048_s1 + $0xc8] sm:$0xff] }
 0x22d   : > { %v2373_v47 = vpop.f32.mrf.mxu1  ;;  %v2857_v4 = vadd.f32 %v2736_v23, %v2492_v17 }
 0x22e   : > { %v2493_v63 = vadd.f32 %v2373_v47, %v2128_v26 }
 0x22f   : > { %2898 = vst [vmem:[#allocation4 + $0x128] sm:$0xff] %v2857_v4  ;;  %3917 = vperm.xlu0 %12044, %v434_v31  }
 0x231   : > { %3877 = vperm.xlu1 %12045, %v426_v3   ;;  %v421_v3 = vld [vmem:[%s15048_s1 + $0x70] sm:$0xff] }
 0x233   : > { %v1648_v35 = vpop.f32.mrf.mxu3  ;;  %v2011_v7 = vpop.f32.mrf.mxu0 }
 0x234   : > { %v2738_v40 = vpop.f32.mrf.mxu2  ;;  %v2129_v46 = vadd.f32 %v2011_v7, %v1764_v42  ;;  %v1765_v14 = vadd.f32 %v1724_v49, %v1648_v35  ;;  %v2597_v35 = vld [vmem:[%s12280_s12 + $0x161] sm:$0xff]  ;;  %v437_v7 = vld [vmem:[%s15048_s1 + $0xf0] sm:$0xff]  ;;  %v1524_v42 = vpack.c.bf16 %v1503_v33, %v1503_v33  ;;  %v418_v49 = vld [vmem:[%s15048_s1 + $0x58] sm:$0xff] }
 0x235   : > { %v2376_v44 = vpop.f32.mrf.mxu1  ;;  %v2858_v10 = vadd.f32 %v2738_v40, %v2493_v63  ;;  %3837 = vperm.xlu2 %12046, %v418_v49   ;;  %v3288_v33 = vld [vmem:[%s12280_s12 + $0x2b] sm:$0xff]  ;;  %v447_v49 = vld [vmem:[%s15048_s1 + $0x140] sm:$0xf] }
 0x236   : > { %11184 = vmatmul.msk.bf16.gmra.mxu0 %vm511_vm1, %v1886_v20  ;;  %v2494_v48 = vadd.f32 %v2376_v44, %v2129_v46 }
 0x237   : > { %2899 = vst [vmem:[#allocation4 + $0x110] sm:$0xff] %v2858_v10  ;;  %3932 = vperm.xlu0 %12044, %v437_v7   ;;  %v444_v7 = vld [vmem:[%s15048_s1 + $0x128] sm:$0xff] }
 0x238   : > { %11164 = vmatmul.msk.bf16.gmra.mxu3 %vm511_vm1, %v1522_v39  ;;  %11205 = vmatmul.msk.bf16.gmra.mxu1 %vm511_vm1, %v2615_v12  ;;  %v1727_v39 = vld [vmem:[#allocation4 + $0xe0] sm:$0xff] }
 0x239   : > { %11226 = vmatmul.msk.bf16.gmra.mxu2 %vm511_vm1, %v2616_v24  ;;  %3892 = vperm.xlu1 %12045, %v429_v19  }
 0x23b   : > { %v1651_v43 = vpop.f32.mrf.mxu3  ;;  %v2013_v50 = vpop.f32.mrf.mxu0 }
 0x23c   : > { %v2741_v51 = vpop.f32.mrf.mxu2  ;;  %v2130_v57 = vadd.f32 %v2013_v50, %v1765_v14  ;;  %v1766_v8 = vadd.f32 %v1725_v6, %v1651_v43  ;;  %v2618_v43 = vpack.c.bf16 %v2597_v35, %v2596_v34  ;;  %v435_v50 = vld [vmem:[%s15048_s1 + $0xe0] sm:$0xff]  ;;  %v1728_v14 = vld [vmem:[#allocation4 + $0x88] sm:$0xff] }
 0x23d   : > { %v2378_v52 = vpop.f32.mrf.mxu1  ;;  %v2859_v53 = vadd.f32 %v2741_v51, %v2494_v48  ;;  %v440_v51 = vld [vmem:[%s15048_s1 + $0x108] sm:$0xff]  ;;  %v443_v6 = vld [vmem:[%s15048_s1 + $0x120] sm:$0xff]  ;;  %3852 = vperm.xlu2 %12046, %v421_v3   ;;  %v3289_v34 = vld [vmem:[%s12280_s12 + $0x33] sm:$0xff] }
 0x23e   : > { %v2495_v62 = vadd.f32 %v2378_v52, %v2130_v57  ;;  %v2925_v35 = vld [vmem:[%s12280_s12 + $0x3a] sm:$0xff]  ;;  %v3329_v38 = vpack.c.bf16 %v3289_v34, %v3288_v33 }
 0x23f   : > { %2900 = vst [vmem:[#allocation4 + $0x8] sm:$0xff] %v2859_v53  ;;  %3947 = vperm.xlu0 %12044, %v440_v51  }
 0x241   : > { %3907 = vperm.xlu1 %12045, %v432_v60   ;;  %v427_v60 = vld [vmem:[%s15048_s1 + $0xa0] sm:$0xff] }
 0x243   : > { %v1653_v61 = vpop.f32.mrf.mxu3  ;;  %v2016_v55 = vpop.f32.mrf.mxu0 }
 0x244   : > { %v2743_v56 = vpop.f32.mrf.mxu2  ;;  %v2131_v15 = vadd.f32 %v2016_v55, %v1766_v8  ;;  %v1767_v47 = vadd.f32 %v1726_v22, %v1653_v61  ;;  %v2598_v61 = vld [vmem:[%s12280_s12 + $0x169] sm:$0xf]  ;;  %v1729_v55 = vld [vmem:[#allocation4 + $0xc0] sm:$0xff] }
 0x245   : > { %v2381_v9 = vpop.f32.mrf.mxu1  ;;  %v2860_v12 = vadd.f32 %v2743_v56, %v2495_v62  ;;  %v2964_v56 = vpack.c.bf16 %v2924_v21, %v2923_v59  ;;  %v424_v22 = vld [vmem:[%s15048_s1 + $0x88] sm:$0xff]  ;;  %v2928_v21 = vld [vmem:[%s12280_s12 + $0x52] sm:$0xff] }
 0x246   : > { %11185 = vmatmul.msk.bf16.gmra.mxu0 %vm511_vm1, %v1887_v0  ;;  %v2496_v17 = vadd.f32 %v2381_v9, %v2131_v15  ;;  %v2254_v9 = vpack.c.bf16 %v2233_v41, %v2233_v41  ;;  %3867 = vperm.xlu2 %12046, %v424_v22   ;;  %v2927_v59 = vld [vmem:[%s12280_s12 + $0x4a] sm:$0xff] }
 0x247   : > { %2901 = vst [vmem:[#allocation4 + $0x98] sm:$0xff] %v2860_v12  ;;  %3962 = vperm.xlu0 %12044, %v443_v6  }
 0x248   : > { %11165 = vmatmul.msk.bf16.gmra.mxu3 %vm511_vm1, %v1523_v36  ;;  %11206 = vmatmul.msk.bf16.gmra.mxu1 %vm511_vm1, %v2616_v24 }
 0x249   : > { %11227 = vmatmul.msk.bf16.gmra.mxu2 %vm511_vm1, %v2617_v13  ;;  %3922 = vperm.xlu1 %12045, %v435_v50   ;;  %v1732_v50 = vld [vmem:[#allocation4 + $0xa0] sm:$0xff] }
 0x24b   : > { %v1656_v16 = vpop.f32.mrf.mxu3  ;;  %v2018_v23 = vpop.f32.mrf.mxu0 }
 0x24c   : > { %v2746_v25 = vpop.f32.mrf.mxu2  ;;  %v2132_v29 = vadd.f32 %v2018_v23, %v1767_v47  ;;  %v1768_v10 = vadd.f32 %v1727_v39, %v1656_v16  ;;  %v2619_v16 = vpack.c.bf16 %v2598_v61, %v2598_v61  ;;  %v441_v23 = vld [vmem:[%s15048_s1 + $0x110] sm:$0xff]  ;;  %v1730_v47 = vld [vmem:[#allocation4 + $0x118] sm:$0xff] }
 0x24d   : > { %v2383_v4 = vpop.f32.mrf.mxu1  ;;  %v2861_v26 = vadd.f32 %v2746_v25, %v2496_v17  ;;  %v446_v25 = vld [vmem:[%s15048_s1 + $0x138] sm:$0xff]  ;;  %v1731_v39 = vld [vmem:[#allocation4 + $0xd8] sm:$0xff] }
 0x24e   : > { %v2497_v20 = vadd.f32 %v2383_v4, %v2132_v29  ;;  %3882 = vperm.xlu2 %12046, %v427_v60  }
 0x24f   : > { %2902 = vst [vmem:[#allocation4 + $0xa8] sm:$0xff] %v2861_v26  ;;  %3977 = vperm.xlu0 %12044, %v446_v25   ;;  %v3293_v25 = vld [vmem:[%s12280_s12 + $0x53] sm:$0xff] }
 0x251   : > { %3937 = vperm.xlu1 %12045, %v438_v5   ;;  %v2966_v5 = vpack.c.bf16 %v2928_v21, %v2927_v59 }
 0x253   : > { %v1658_v63 = vpop.f32.mrf.mxu3  ;;  %v2021_v40 = vpop.f32.mrf.mxu0 }
 0x254   : > { %v2748_v44 = vpop.f32.mrf.mxu2  ;;  %v2133_v48 = vadd.f32 %v2021_v40, %v1768_v10  ;;  %v1769_v54 = vadd.f32 %v1728_v14, %v1658_v63  ;;  %v2926_v63 = vld [vmem:[%s12280_s12 + $0x42] sm:$0xff] }
 0x255   : > { %v2386_v24 = vpop.f32.mrf.mxu1  ;;  %v2862_v46 = vadd.f32 %v2748_v44, %v2497_v20 }
 0x256   : > { %11186 = vmatmul.msk.bf16.gmra.mxu0 %vm511_vm1, %v1888_v37  ;;  %v2498_v32 = vadd.f32 %v2386_v24, %v2133_v48 }
 0x257   : > { %2903 = vst [vmem:[#allocation4 + $0x90] sm:$0xff] %v2862_v46 }
 0x258   : > { %11166 = vmatmul.msk.bf16.gmra.mxu3 %vm511_vm1, %v1524_v42  ;;  %11207 = vmatmul.msk.bf16.gmra.mxu1 %vm511_vm1, %v2617_v13  ;;  %v2965_v42 = vpack.c.bf16 %v2926_v63, %v2925_v35  ;;  %v11851_v63 = vld [vmem:[%s15047_s4 + $0x8] sm:$0xff] }
 0x259   : > { %11228 = vmatmul.msk.bf16.gmra.mxu2 %vm511_vm1, %v2618_v43  ;;  %3952 = vperm.xlu1 %12045, %v441_v23   ;;  %v3292_v23 = vld [vmem:[%s12280_s12 + $0x4b] sm:$0xff] }
 0x25a   : > { %4199 = vmatpush.bf16.msra.mxu1 %v11851_v63 }
 0x25b   : > { %v1661_v11 = vpop.f32.mrf.mxu3  ;;  %v2023_v52 = vpop.f32.mrf.mxu0 }
 0x25c   : > { %v2751_v53 = vpop.f32.mrf.mxu2  ;;  %v2134_v45 = vadd.f32 %v2023_v52, %v1769_v54  ;;  %v1770_v12 = vadd.f32 %v1729_v55, %v1661_v11  ;;  %v11863_v52 = vld [vmem:[%s15047_s4 + $0x68] sm:$0xff] }
 0x25d   : > { %v2388_v57 = vpop.f32.mrf.mxu1  ;;  %v2863_v27 = vadd.f32 %v2751_v53, %v2498_v32  ;;  %v430_v32 = vld [vmem:[%s15048_s1 + $0xb8] sm:$0xff]  ;;  %4475 = vmatpush.bf16.msra.mxu2 %v11863_v52 }
 0x25e   : > { %v2499_v0 = vadd.f32 %v2388_v57, %v2134_v45  ;;  %3897 = vperm.xlu2 %12046, %v430_v32   ;;  %v3290_v45 = vld [vmem:[%s12280_s12 + $0x3b] sm:$0xff]  ;;  %v3295_v32 = vld [vmem:[%s12280_s12 + $0x63] sm:$0xff] }
 0x25f   : > { %2904 = vst [vmem:[#allocation4 + $0xe0] sm:$0xff] %v2863_v27 }
 0x261   : > { %3967 = vperm.xlu1 %12045, %v444_v7  }
 0x263   : > { %v1663_v62 = vpop.f32.mrf.mxu3  ;;  %v2026_v36 = vpop.f32.mrf.mxu0 }
 0x264   : > { %v2753_v8 = vpop.f32.mrf.mxu2  ;;  %v2135_v17 = vadd.f32 %v2026_v36, %v1770_v12  ;;  %v1771_v28 = vadd.f32 %v1730_v47, %v1663_v62  ;;  %v3330_v62 = vpack.c.bf16 %v3291_v58, %v3290_v45  ;;  %v2929_v47 = vld [vmem:[%s12280_s12 + $0x5a] sm:$0xff] }
 0x265   : > { %v2391_v13 = vpop.f32.mrf.mxu1  ;;  %v2864_v15 = vadd.f32 %v2753_v8, %v2499_v0  ;;  %v433_v0 = vld [vmem:[%s15048_s1 + $0xd0] sm:$0xff] }
 0x266   : > { %11187 = vmatmul.msk.bf16.gmra.mxu0 %vm511_vm1, %v1889_v1  ;;  %v2500_v31 = vadd.f32 %v2391_v13, %v2135_v17  ;;  %v1733_v1 = vld [vmem:[#allocation4 + $0x68] sm:$0xff]  ;;  %3912 = vperm.xlu2 %12046, %v433_v0   ;;  %v436_v13 = vld [vmem:[%s15048_s1 + $0xe8] sm:$0xff] }
 0x267   : > { %2905 = vst [vmem:[#allocation4 + $0x88] sm:$0xff] %v2864_v15  ;;  %v1734_v15 = vld [vmem:[#allocation4 + $0x130] sm:$0xff] }
 0x268   : > { %11230 = vmatmul.msk.bf16.vlgmr.msra.gmra.mxu3 %vm511_vm1, %v2964_v56  ;;  %11208 = vmatmul.msk.bf16.gmra.mxu1 %vm511_vm1, %v2254_v9 }
 0x269   : > { %11229 = vmatmul.msk.bf16.gmra.mxu2 %vm511_vm1, %v2619_v16  ;;  %3982 = vperm.xlu1 %12045, %v447_v49   ;;  %v2931_v49 = vld [vmem:[%s12280_s12 + $0x6a] sm:$0xff] }
 0x26b   : > { %v1666_v19 = vpop.f32.mrf.mxu3  ;;  %v2028_v4 = vpop.f32.mrf.mxu0 }
 0x26c   : > { %v2756_v26 = vpop.f32.mrf.mxu2  ;;  %v2136_v30 = vadd.f32 %v2028_v4, %v1771_v28  ;;  %v1772_v10 = vadd.f32 %v1731_v39, %v1666_v19  ;;  %v2930_v4 = vld [vmem:[%s12280_s12 + $0x62] sm:$0xff] }
 0x26d   : > { %v2393_v29 = vpop.f32.mrf.mxu1  ;;  %v2865_v2 = vadd.f32 %v2756_v26, %v2500_v31  ;;  %v2967_v34 = vpack.c.bf16 %v2930_v4, %v2929_v47 }
 0x26e   : > { %v2501_v37 = vadd.f32 %v2393_v29, %v2136_v30  ;;  %3927 = vperm.xlu2 %12046, %v436_v13   ;;  %v3331_v29 = vpack.c.bf16 %v3293_v25, %v3292_v23  ;;  %v1735_v30 = vld [vmem:[#allocation4 + $0x50] sm:$0xff] }
 0x26f   : > { %2906 = vst [vmem:[#allocation4 + $0xc0] sm:$0xff] %v2865_v2  ;;  %v439_v2 = vld [vmem:[%s15048_s1 + $0x100] sm:$0xff] }
 0x270   : > { %v2934_v13 = vld [vmem:[%s12280_s12 + $0x82] sm:$0xff] }
 0x273   : > { %v1668_v20 = vpop.f32.mrf.mxu3  ;;  %v2031_v40 = vpop.f32.mrf.mxu0 }
 0x274   : > { %v2758_v44 = vpop.f32.mrf.mxu2  ;;  %v2137_v43 = vadd.f32 %v2031_v40, %v1772_v10  ;;  %v1773_v53 = vadd.f32 %v1732_v50, %v1668_v20  ;;  %v442_v40 = vld [vmem:[%s15048_s1 + $0x118] sm:$0xff] }
 0x275   : > { %v2396_v24 = vpop.f32.mrf.mxu1  ;;  %v2866_v46 = vadd.f32 %v2758_v44, %v2501_v37  ;;  %v2932_v50 = vld [vmem:[%s12280_s12 + $0x72] sm:$0xff] }
 0x276   : > { %11251 = vmatmul.msk.bf16.vlgmr.msra.gmra.mxu0 %vm511_vm1, %v3329_v38  ;;  %v2502_v11 = vadd.f32 %v2396_v24, %v2137_v43  ;;  %3942 = vperm.xlu2 %12046, %v439_v2  }
 0x277   : > { %2907 = vst [vmem:[#allocation4 + $0x118] sm:$0xff] %v2866_v46 }
 0x278   : > { %11231 = vmatmul.msk.bf16.gmra.mxu3 %vm511_vm1, %v2965_v42  ;;  %v1736_v42 = vld [vmem:[#allocation4 + $0xe8] sm:$0xff] }
 0x27b   : > { %v1671_v48 = vpop.f32.mrf.mxu3  ;;  %v2033_v51 = vpop.f32.mrf.mxu0 }
 0x27c   : > { %v2761_v14 = vpop.f32.mrf.mxu2  ;;  %v2138_v27 = vadd.f32 %v2033_v51, %v1773_v53  ;;  %v1774_v55 = vadd.f32 %v1733_v1, %v1671_v48  ;;  %v445_v53 = vld [vmem:[%s15048_s1 + $0x130] sm:$0xff] }
 0x27d   : > { %v2398_v54 = vpop.f32.mrf.mxu1  ;;  %v2867_v57 = vadd.f32 %v2761_v14, %v2502_v11  ;;  %v3294_v11 = vld [vmem:[%s12280_s12 + $0x5b] sm:$0xff]  ;;  %v1738_v1 = vld [vmem:[#allocation4 + $0x40] sm:$0xff] }
 0x27e   : > { %v2503_v61 = vadd.f32 %v2398_v54, %v2138_v27  ;;  %3957 = vperm.xlu2 %12046, %v442_v40   ;;  %v3332_v52 = vpack.c.bf16 %v3295_v32, %v3294_v11  ;;  %v1737_v54 = vld [vmem:[#allocation4] sm:$0xff]  ;;  %v2968_v27 = vpack.c.bf16 %v2932_v50, %v2931_v49  ;;  %v11850_v32 = vld [vmem:[%s15047_s4] sm:$0xff] }
 0x27f   : > { %2908 = vst [vmem:[#allocation4 + $0xd8] sm:$0xff] %v2867_v57  ;;  %4200 = vmatpush.bf16.msra.mxu1 %v11850_v32  ;;  %v11860_v50 = vld [vmem:[%s15047_s4 + $0x50] sm:$0xff] }
 0x283   : > { %v1673_v41 = vpop.f32.mrf.mxu3  ;;  %v2036_v3 = vpop.f32.mrf.mxu0 }
 0x284   : > { %v2763_v6 = vpop.f32.mrf.mxu2  ;;  %v2139_v8 = vadd.f32 %v2036_v3, %v1774_v55  ;;  %v1775_v18 = vadd.f32 %v1734_v15, %v1673_v41  ;;  %v11862_v41 = vld [vmem:[%s15047_s4 + $0x60] sm:$0xff] }
 0x285   : > { %v2401_v36 = vpop.f32.mrf.mxu1  ;;  %v2868_v56 = vadd.f32 %v2763_v6, %v2503_v61  ;;  %4476 = vmatpush.bf16.msra.mxu2 %v11862_v41  ;;  %v11873_v41 = vld [vmem:[%s15047_s4 + $0xb8] sm:$0xff] }
 0x286   : > { %11252 = vmatmul.msk.bf16.gmra.mxu0 %vm511_vm1, %v3330_v62  ;;  %v2504_v12 = vadd.f32 %v2401_v36, %v2139_v8  ;;  %3972 = vperm.xlu2 %12046, %v445_v53   ;;  %v3296_v8 = vld [vmem:[%s12280_s12 + $0x6b] sm:$0xff] }
 0x287   : > { %2909 = vst [vmem:[#allocation4 + $0xa0] sm:$0xff] %v2868_v56  ;;  %v1742_v53 = vld [vmem:[#allocation4 + $0x60] sm:$0xff]  ;;  %4835 = vmatpush.bf16.msrb.mxu3 %v11873_v41 }
 0x288   : > { %11232 = vmatmul.msk.bf16.gmra.mxu3 %vm511_vm1, %v2966_v5 }
 0x28b   : > { %v1676_v9 = vpop.f32.mrf.mxu3  ;;  %v2038_v16 = vpop.f32.mrf.mxu0 }
 0x28c   : > { %v2766_v17 = vpop.f32.mrf.mxu2  ;;  %v2140_v22 = vadd.f32 %v2038_v16, %v1775_v18  ;;  %v1776_v20 = vadd.f32 %v1735_v30, %v1676_v9  ;;  %v3297_v9 = vld [vmem:[%s12280_s12 + $0x73] sm:$0xff]  ;;  %v1739_v18 = vld [vmem:[#allocation4 + $0x78] sm:$0xff] }
 0x28d   : > { %v2403_v19 = vpop.f32.mrf.mxu1  ;;  %v2869_v31 = vadd.f32 %v2766_v17, %v2504_v12  ;;  %v2933_v12 = vld [vmem:[%s12280_s12 + $0x7a] sm:$0xff]  ;;  %v3333_v17 = vpack.c.bf16 %v3297_v9, %v3296_v8 }
 0x28e   : > { %v2505_v28 = vadd.f32 %v2403_v19, %v2140_v22 }
 0x28f   : > { %2910 = vst [vmem:[#allocation4 + $0x68] sm:$0xff] %v2869_v31  ;;  %v2969_v31 = vpack.c.bf16 %v2934_v13, %v2933_v12 }
 0x293   : > { %v1678_v26 = vpop.f32.mrf.mxu3  ;;  %v2041_v33 = vpop.f32.mrf.mxu0 }
 0x294   : > { %v2768_v35 = vpop.f32.mrf.mxu2  ;;  %v2141_v60 = vadd.f32 %v2041_v33, %v1776_v20  ;;  %v1777_v24 = vadd.f32 %v1736_v42, %v1678_v26  ;;  %v3298_v20 = vld [vmem:[%s12280_s12 + $0x7b] sm:$0xff]  ;;  %v1741_v42 = vld [vmem:[#allocation4 + $0xb8] sm:$0xff] }
 0x295   : > { %v2406_v37 = vpop.f32.mrf.mxu1  ;;  %v2870_v38 = vadd.f32 %v2768_v35, %v2505_v28 }
 0x296   : > { %11253 = vmatmul.msk.bf16.gmra.mxu0 %vm511_vm1, %v3331_v29  ;;  %v2506_v39 = vadd.f32 %v2406_v37, %v2141_v60  ;;  %v1740_v29 = vld [vmem:[#allocation4 + $0x30] sm:$0xff]  ;;  %v2936_v60 = vld [vmem:[%s12280_s12 + $0x92] sm:$0xff] }
 0x297   : > { %2911 = vst [vmem:[#allocation4 + $0x130] sm:$0xff] %v2870_v38  ;;  %v3299_v37 = vld [vmem:[%s12280_s12 + $0x83] sm:$0xff] }
 0x298   : > { %11233 = vmatmul.msk.bf16.gmra.mxu3 %vm511_vm1, %v2967_v34  ;;  %v2935_v38 = vld [vmem:[%s12280_s12 + $0x8a] sm:$0xff]  ;;  %v3334_v40 = vpack.c.bf16 %v3299_v37, %v3298_v20 }
 0x299   : > { %v3303_v20 = vld [vmem:[%s12280_s12 + $0xa3] sm:$0xff] }
 0x29a   : > { %v2939_v37 = vld [vmem:[%s12280_s12 + $0xaa] sm:$0xff] }
 0x29b   : > { %v1681_v7 = vpop.f32.mrf.mxu3  ;;  %v2043_v44 = vpop.f32.mrf.mxu0 }
 0x29c   : > { %v2771_v10 = vpop.f32.mrf.mxu2  ;;  %v2142_v48 = vadd.f32 %v2043_v44, %v1777_v24  ;;  %v1778_v58 = vadd.f32 %v1737_v54, %v1681_v7 }
 0x29d   : > { %v2408_v46 = vpop.f32.mrf.mxu1  ;;  %v2871_v43 = vadd.f32 %v2771_v10, %v2506_v39  ;;  %v2970_v10 = vpack.c.bf16 %v2936_v60, %v2935_v38  ;;  %v2940_v38 = vld [vmem:[%s12280_s12 + $0xb2] sm:$0xff] }
 0x29e   : > { %v2507_v14 = vadd.f32 %v2408_v46, %v2142_v48  ;;  %v11861_v46 = vld [vmem:[%s15047_s4 + $0x58] sm:$0xff] }
 0x29f   : > { %2912 = vst [vmem:[#allocation4 + $0x50] sm:$0xff] %v2871_v43  ;;  %4477 = vmatpush.bf16.msra.mxu2 %v11861_v46 }
 0x2a3   : > { %v1683_v51 = vpop.f32.mrf.mxu3  ;;  %v2046_v57 = vpop.f32.mrf.mxu0  ;;  %4478 = vmatpush.bf16.msra.mxu2 %v11860_v50 }
 0x2a4   : > { %v2773_v45 = vpop.f32.mrf.mxu2  ;;  %v2143_v61 = vadd.f32 %v2046_v57, %v1778_v58  ;;  %v1779_v6 = vadd.f32 %v1738_v1, %v1683_v51  ;;  %v2937_v1 = vld [vmem:[%s12280_s12 + $0x9a] sm:$0xff] }
 0x2a5   : > { %v2411_v59 = vpop.f32.mrf.mxu1  ;;  %v2872_v21 = vadd.f32 %v2773_v45, %v2507_v14 }
 0x2a6   : > { %11254 = vmatmul.msk.bf16.gmra.mxu0 %vm511_vm1, %v3332_v52  ;;  %v2508_v0 = vadd.f32 %v2411_v59, %v2143_v61  ;;  %v12150_v52 = vmov 0.0   ;;  %v3300_v61 = vld [vmem:[%s12280_s12 + $0x8b] sm:$0xff] }
 0x2a7   : > { %2913 = vst [vmem:[#allocation4 + $0xe8] sm:$0xff] %v2872_v21 }
 0x2a8   : > { %11234 = vmatmul.msk.bf16.gmra.mxu3 %vm511_vm1, %v2968_v27  ;;  %395 = vst [vmem:[#allocation2] sm:$0xff] %v12150_v52  ;;  %v11859_v27 = vld [vmem:[%s15047_s4 + $0x48] sm:$0xff] }
 0x2a9   : > { %396 = vst [vmem:[#allocation2 + $0x8] sm:$0xff] %v12150_v52  ;;  %4479 = vmatpush.bf16.msra.mxu2 %v11859_v27  ;;  %v2942_v27 = vld [vmem:[%s12280_s12 + $0xc2] sm:$0xff] }
 0x2aa   : > { %397 = vst [vmem:[#allocation2 + $0x10] sm:$0xff] %v12150_v52 }
 0x2ab   : > { %v1686_v62 = vpop.f32.mrf.mxu3  ;;  %v2048_v3 = vpop.f32.mrf.mxu0  ;;  %398 = vst [vmem:[#allocation2 + $0x15c] sm:$0xff] %v12150_v52 }
 0x2ac   : > { %v2776_v5 = vpop.f32.mrf.mxu2  ;;  %v2144_v56 = vadd.f32 %v2048_v3, %v1779_v6  ;;  %v1780_v23 = vadd.f32 %v1739_v18, %v1686_v62  ;;  %v3301_v62 = vld [vmem:[%s12280_s12 + $0x93] sm:$0xff]  ;;  %399 = vst [vmem:[#allocation2 + $0x164] sm:$0xff] %v12150_v52  ;;  %v2938_v3 = vld [vmem:[%s12280_s12 + $0xa2] sm:$0xff] }
 0x2ad   : > { %v2413_v55 = vpop.f32.mrf.mxu1  ;;  %v2873_v36 = vadd.f32 %v2776_v5, %v2508_v0  ;;  %v11858_v0 = vld [vmem:[%s15047_s4 + $0x40] sm:$0xff]  ;;  %400 = vst [vmem:[#allocation2 + $0x16c] sm:$0xff] %v12150_v52  ;;  %v2971_v9 = vpack.c.bf16 %v2938_v3, %v2937_v1 }
 0x2ae   : > { %v2509_v16 = vadd.f32 %v2413_v55, %v2144_v56  ;;  %401 = vst [vmem:[#allocation3] sm:$0xff] %v12150_v52  ;;  %v3335_v55 = vpack.c.bf16 %v3301_v62, %v3300_v61  ;;  %4480 = vmatpush.bf16.msra.mxu2 %v11858_v0  ;;  %v1743_v56 = vld [vmem:[#allocation4 + $0x28] sm:$0xff] }
 0x2af   : > { %2914 = vst [vmem:[#allocation4] sm:$0xff] %v2873_v36 }
 0x2b0   : > { %402 = vst [vmem:[#allocation3 + $0x8] sm:$0xff] %v12150_v52  ;;  %v4347_v36 = vld [vmem:[#allocation2 + $0x6] sm:$0xff] }
 0x2b1   : > { %403 = vst [vmem:[#allocation3 + $0x10] sm:$0xff] %v12150_v52  ;;  %v4348_v13 = vld [vmem:[#allocation2 + $0xe] sm:$0xff] }
 0x2b2   : > { %404 = vst [vmem:[#allocation3 + $0x15c] sm:$0xff] %v12150_v52  ;;  %v4388_v18 = vpack.c.bf16 %v4348_v13, %v4347_v36  ;;  %v11872_v36 = vld [vmem:[%s15047_s4 + $0xb0] sm:$0xff] }
 0x2b3   : > { %v1688_v15 = vpop.f32.mrf.mxu3  ;;  %v2051_v19 = vpop.f32.mrf.mxu0  ;;  %405 = vst [vmem:[#allocation3 + $0x164] sm:$0xff] %v12150_v52  ;;  %4836 = vmatpush.bf16.msrb.mxu3 %v11872_v36 }
 0x2b4   : > { %v2778_v22 = vpop.f32.mrf.mxu2  ;;  %v2145_v4 = vadd.f32 %v2051_v19, %v1780_v23  ;;  %v1781_v33 = vadd.f32 %v1740_v29, %v1688_v15  ;;  %4481 = vmatmul.bf16.vlgmr.msra.gmra.mxu2 %v4388_v18  ;;  %406 = vst [vmem:[#allocation3 + $0x16c] sm:$0xff] %v12150_v52  ;;  %v1745_v23 = vld [vmem:[#allocation4 + $0x58] sm:$0xf]  ;;  %v3306_v18 = vld [vmem:[%s12280_s12 + $0xbb] sm:$0xff] }
 0x2b5   : > { %v2416_v25 = vpop.f32.mrf.mxu1  ;;  %v2874_v47 = vadd.f32 %v2778_v22, %v2509_v16  ;;  %v4068_v22 = vld [vmem:[#allocation2 + $0xd] sm:$0xff] }
 0x2b6   : > { %11255 = vmatmul.msk.bf16.gmra.mxu0 %vm511_vm1, %v3333_v17  ;;  %v2510_v28 = vadd.f32 %v2416_v25, %v2145_v4 }
 0x2b7   : > { %2915 = vst [vmem:[#allocation4 + $0x40] sm:$0xff] %v2874_v47 }
 0x2b8   : > { %11235 = vmatmul.msk.bf16.gmra.mxu3 %vm511_vm1, %v2969_v31  ;;  %v4067_v31 = vld [vmem:[#allocation2 + $0x5] sm:$0xff] }
 0x2b9   : > { %v4108_v4 = vpack.c.bf16 %v4068_v22, %v4067_v31  ;;  %v2943_v22 = vld [vmem:[%s12280_s12 + $0xca] sm:$0xff] }
 0x2bb   : > { %v1691_v26 = vpop.f32.mrf.mxu3  ;;  %v2053_v2 = vpop.f32.mrf.mxu0  ;;  %4201 = vmatmul.bf16.vlgmr.msra.gmra.mxu1 %v4108_v4 }
 0x2bc   : > { %v2781_v30 = vpop.f32.mrf.mxu2  ;;  %v2146_v63 = vadd.f32 %v2053_v2, %v1781_v33  ;;  %v1782_v43 = vadd.f32 %v1741_v42, %v1691_v26  ;;  %v1744_v26 = vld [vmem:[#allocation4 + $0x140] sm:$0xff] }
 0x2bd   : > { %v2418_v34 = vpop.f32.mrf.mxu1  ;;  %v2875_v35 = vadd.f32 %v2781_v30, %v2510_v28 }
 0x2be   : > { %v2511_v39 = vadd.f32 %v2418_v34, %v2146_v63  ;;  %v3302_v63 = vld [vmem:[%s12280_s12 + $0x9b] sm:$0xff] }
 0x2bf   : > { %2916 = vst [vmem:[#allocation4 + $0x78] sm:$0xff] %v2875_v35 }
 0x2c3   : > { %v1693_v7 = vpop.f32.mrf.mxu3  ;;  %v2056_v44 = vpop.f32.mrf.mxu0 }
 0x2c4   : > { %v2783_v24 = vpop.f32.mrf.mxu2  ;;  %v2147_v49 = vadd.f32 %v2056_v44, %v1782_v43  ;;  %v1783_v45 = vadd.f32 %v1742_v53, %v1693_v7  ;;  %v2972_v44 = vpack.c.bf16 %v2940_v38, %v2939_v37  ;;  %v3304_v53 = vld [vmem:[%s12280_s12 + $0xab] sm:$0xff]  ;;  %v3168_v37 = vld [vmem:[#allocation4 + $0x48] sm:$0xff] }
 0x2c5   : > { %v2421_v48 = vpop.f32.mrf.mxu1  ;;  %v2876_v11 = vadd.f32 %v2783_v24, %v2511_v39  ;;  %v3336_v39 = vpack.c.bf16 %v3303_v20, %v3302_v63  ;;  %v11880_v20 = vld [vmem:[%s15047_s4 + $0xf0] sm:$0xff] }
 0x2c6   : > { %11256 = vmatmul.msk.bf16.gmra.mxu0 %vm511_vm1, %v3334_v40  ;;  %v2512_v14 = vadd.f32 %v2421_v48, %v2147_v49  ;;  %v11881_v40 = vld [vmem:[%s15047_s4 + $0xf8] sm:$0xff] }
 0x2c7   : > { %2917 = vst [vmem:[#allocation4 + $0x30] sm:$0xff] %v2876_v11  ;;  %5197 = vmatpush.bf16.msrb.mxu0 %v11881_v40  ;;  %v11889_v11 = vld [vmem:[%s15047_s4 + $0x138] sm:$0xff] }
 0x2c8   : > { %11236 = vmatmul.msk.bf16.gmra.mxu3 %vm511_vm1, %v2970_v10  ;;  %5559 = vmatpush.bf16.msrb.mxu1 %v11889_v11  ;;  %v3308_v11 = vld [vmem:[%s12280_s12 + $0xcb] sm:$0xff] }
 0x2cb   : > { %v1696_v51 = vpop.f32.mrf.mxu3  ;;  %v2058_v54 = vpop.f32.mrf.mxu0  ;;  %5198 = vmatpush.bf16.msrb.mxu0 %v11880_v20 }
 0x2cc   : > { %v2786_v57 = vpop.f32.mrf.mxu2  ;;  %v2148_v21 = vadd.f32 %v2058_v54, %v1783_v45  ;;  %v1784_v15 = vadd.f32 %v1743_v56, %v1696_v51  ;;  %v3305_v54 = vld [vmem:[%s12280_s12 + $0xb3] sm:$0xff]  ;;  %v3165_v45 = vld [vmem:[#allocation4 + $0xb0] sm:$0xff] }
 0x2cd   : > { %v2423_v58 = vpop.f32.mrf.mxu1  ;;  %v2877_v59 = vadd.f32 %v2786_v57, %v2512_v14  ;;  %v2941_v57 = vld [vmem:[%s12280_s12 + $0xba] sm:$0xff]  ;;  %v3337_v41 = vpack.c.bf16 %v3305_v54, %v3304_v53  ;;  %v3169_v53 = vld [vmem:[#allocation4 + $0x120] sm:$0xff] }
 0x2ce   : > { %v2513_v6 = vadd.f32 %v2423_v58, %v2148_v21  ;;  %v12994_v21 = vld [vmem:[%s15049_s3] ss:$0 sm:$0xff]  ;;  %v2973_v62 = vpack.c.bf16 %v2942_v27, %v2941_v57 }
 0x2cf   : > { %2918 = vst [vmem:[#allocation4 + $0xb8] sm:$0xff] %v2877_v59  ;;  %v3166_v56 = vld [vmem:[#allocation4 + $0xd0] sm:$0xff] }
 0x2d3   : > { %v1698_v5 = vpop.f32.mrf.mxu3  ;;  %v2061_v8 = vpop.f32.mrf.mxu0 }
 0x2d4   : > { %v2788_v12 = vpop.f32.mrf.mxu2  ;;  %v2149_v19 = vadd.f32 %v2061_v8, %v1784_v15  ;;  %v1785_v30 = vadd.f32 %v1744_v26, %v1698_v5  ;;  %v12998_v5 = vpop.permute.xlu0 %3782 }
 0x2d5   : > { %v2426_v16 = vpop.f32.mrf.mxu1  ;;  %v2878_v17 = vadd.f32 %v2788_v12, %v2513_v6 }
 0x2d6   : > { %11257 = vmatmul.msk.bf16.gmra.mxu0 %vm511_vm1, %v3335_v55  ;;  %v2514_v47 = vadd.f32 %v2426_v16, %v2149_v19  ;;  %v3307_v19 = vld [vmem:[%s12280_s12 + $0xc3] sm:$0xff] }
 0x2d7   : > { %2919 = vst [vmem:[#allocation4 + $0x60] sm:$0xff] %v2878_v17 }
 0x2d8   : > { %11237 = vmatmul.msk.bf16.gmra.mxu3 %vm511_vm1, %v2971_v9 }
 0x2db   : > { %v1701_v25 = vpop.f32.mrf.mxu3  ;;  %v2063_v29 = vpop.f32.mrf.mxu0 }
 0x2dc   : > { %v1786_v28 = vadd.f32 %v1745_v23, %v1701_v25  ;;  %v2791_v2 = vpop.f32.mrf.mxu2  ;;  %v2150_v35 = vadd.f32 %v2063_v29, %v1785_v30  ;;  %v2944_v23 = vld [vmem:[%s12280_s12 + $0xd2] sm:$0xff]  ;;  %v13010_v25 = vpop.permute.xlu0 %3787 }
 0x2dd   : > { %v2428_v33 = vpop.f32.mrf.mxu1  ;;  %v2879_v34 = vadd.f32 %v2791_v2, %v2514_v47  ;;  %v3167_v47 = vld [vmem:[#allocation4 + $0x10] sm:$0xff]  ;;  %v2974_v30 = vpack.c.bf16 %v2944_v23, %v2943_v22  ;;  %v2947_v22 = vld [vmem:[%s12280_s12 + $0xea] sm:$0xff]  ;;  %v2948_v23 = vld [vmem:[%s12280_s12 + $0xf2] sm:$0xff] }
 0x2de   : > { %1827 = vst [vmem:[#allocation4 + $0x58] sm:$0xf] %v1786_v28  ;;  %v2515_v7 = vadd.f32 %v2428_v33, %v2150_v35  ;;  %v3338_v28 = vpack.c.bf16 %v3307_v19, %v3306_v18  ;;  %v13015_v35 = vpop.permute.xlu1 %3792  ;;  %v3310_v18 = vld [vmem:[%s12280_s12 + $0xdb] sm:$0xff]  ;;  %v3311_v19 = vld [vmem:[%s12280_s12 + $0xe3] sm:$0xff] }
 0x2df   : > { %2920 = vst [vmem:[#allocation4 + $0x28] sm:$0xff] %v2879_v34 }
 0x2e3   : > { %v1703_v60 = vpop.f32.mrf.mxu3  ;;  %v2066_v42 = vpop.f32.mrf.mxu0 }
 0x2e4   : > { %v2793_v10 = vpop.f32.mrf.mxu2 }
 0x2e5   : > { %v2110_v24 = vld [vmem:[#allocation4 + $0x58] sm:$0xf]  ;;  %v2431_v46 = vpop.f32.mrf.mxu1  ;;  %v2880_v43 = vadd.f32 %v2793_v10, %v2515_v7 }
 0x2e6   : > { %v2151_v48 = vadd.f32 %v2110_v24, %v2066_v42  ;;  %11258 = vmatmul.msk.bf16.gmra.mxu0 %vm511_vm1, %v3336_v39 }
 0x2e7   : > { %2921 = vst [vmem:[#allocation4 + $0x140] sm:$0xff] %v2880_v43 }
 0x2e8   : > { %2192 = vst [vmem:[#allocation4 + $0x58] sm:$0xf] %v2151_v48  ;;  %11238 = vmatmul.msk.bf16.gmra.mxu3 %vm511_vm1, %v2972_v44 }
 0x2eb   : > { %v3061_v32 = vpop.f32.mrf.mxu3  ;;  %v2068_v49 = vpop.f32.mrf.mxu0 }
 0x2ec   : > { %v2796_v50 = vpop.f32.mrf.mxu2  ;;  %v3206_v58 = vadd.f32 %v3165_v45, %v3061_v32  ;;  %v3309_v32 = vld [vmem:[%s12280_s12 + $0xd3] sm:$0xff] }
 0x2ed   : > { %v2433_v51 = vpop.f32.mrf.mxu1  ;;  %v3339_v27 = vpack.c.bf16 %v3309_v32, %v3308_v11 }
 0x2ee   : > { %v2946_v51 = vld [vmem:[%s12280_s12 + $0xe2] sm:$0xff] }
 0x2ef   : > { %v2475_v14 = vld [vmem:[#allocation4 + $0x58] sm:$0xf] }
 0x2f0   : > { %v2516_v52 = vadd.f32 %v2475_v14, %v2431_v46  ;;  %v11888_v14 = vld [vmem:[%s15047_s4 + $0x130] sm:$0xff] }
 0x2f1   : > { %5560 = vmatpush.bf16.msrb.mxu1 %v11888_v14  ;;  %v2949_v14 = vld [vmem:[%s12280_s12 + $0xfa] sm:$0xff] }
 0x2f2   : > { %2557 = vst [vmem:[#allocation4 + $0x58] sm:$0xf] %v2516_v52  ;;  %v13030_v52 = vpop.permute.xlu1 %3797 }
 0x2f3   : > { %v3063_v59 = vpop.f32.mrf.mxu3  ;;  %v3426_v61 = vpop.f32.mrf.mxu0 }
 0x2f4   : > { %v2798_v0 = vpop.f32.mrf.mxu2  ;;  %v3571_v1 = vadd.f32 %v3426_v61, %v3206_v58  ;;  %v3207_v9 = vadd.f32 %v3166_v56, %v3063_v59 }
 0x2f6   : > { %v3698_v3 = vadd.f32 %v12994_v21, %v3571_v1  ;;  %11259 = vmatmul.msk.bf16.gmra.mxu0 %vm511_vm1, %v3337_v41  ;;  %v3170_v1 = vld [vmem:[#allocation4 + $0x38] sm:$0xff] }
 0x2f8   : > { %11239 = vmatmul.msk.bf16.gmra.mxu3 %vm511_vm1, %v2973_v62  ;;  %v3739_v55 = vmax.f32 %v3698_v3, 0.0  ;;  %v13035_v62 = vpop.permute.xlu2 %3802 }
 0x2f9   : > { %v2840_v6 = vld [vmem:[#allocation4 + $0x58] sm:$0xf] }
 0x2fa   : > { %v2881_v8 = vadd.f32 %v2840_v6, %v2796_v50  ;;  %v3985_v13 = vmul.f32 %v12998_v5, %v3739_v55  ;;  %v2945_v50 = vld [vmem:[%s12280_s12 + $0xda] sm:$0xff] }
 0x2fb   : > { %v3066_v12 = vpop.f32.mrf.mxu3  ;;  %v3428_v15 = vpop.f32.mrf.mxu0  ;;  %v2975_v59 = vpack.c.bf16 %v2946_v51, %v2945_v50  ;;  %v3313_v50 = vld [vmem:[%s12280_s12 + $0xf3] sm:$0xff] }
 0x2fc   : > { %2922 = vst [vmem:[#allocation4 + $0x58] sm:$0xf] %v2881_v8  ;;  %v3572_v16 = vadd.f32 %v3428_v15, %v3207_v9  ;;  %v3208_v4 = vadd.f32 %v3167_v47, %v3066_v12  ;;  %v11871_v47 = vld [vmem:[%s15047_s4 + $0xa8] sm:$0xff] }
 0x2fd   : > { %4026 = vst [vmem:[#allocation2 + $0x18] sm:$0xff] %v3985_v13  ;;  %4837 = vmatpush.bf16.msrb.mxu3 %v11871_v47  ;;  %v3314_v47 = vld [vmem:[%s12280_s12 + $0xfb] sm:$0xff] }
 0x2fe   : > { %v3699_v17 = vadd.f32 %v12994_v21, %v3572_v16 }
 0x300   : > { %v3740_v31 = vmax.f32 %v3699_v17, 0.0 }
 0x302   : > { %v3986_v29 = vmul.f32 %v13010_v25, %v3740_v31 }
 0x303   : > { %v3068_v26 = vpop.f32.mrf.mxu3  ;;  %v3431_v2 = vpop.f32.mrf.mxu0 }
 0x304   : > { %v3573_v33 = vadd.f32 %v3431_v2, %v3208_v4  ;;  %4027 = vst [vmem:[#allocation2 + $0x20] sm:$0xff] %v3986_v29  ;;  %v3209_v38 = vadd.f32 %v3168_v37, %v3068_v26  ;;  %v4069_v7 = vld [vmem:[#allocation2 + $0x15] sm:$0xff]  ;;  %v13047_v4 = vpop.permute.xlu2 %3807  ;;  %v3171_v26 = vld [vmem:[#allocation4 + $0xf8] sm:$0xff]  ;;  %v3340_v2 = vpack.c.bf16 %v3311_v19, %v3310_v18 }
 0x305   : > { %v4349_v44 = vld [vmem:[#allocation2 + $0x16] sm:$0xff]  ;;  %15050 = vst [vmem:[#allocation11_spill] sm:$0xff] %v13047_v4  ;;  %v11887_v18 = vld [vmem:[%s15047_s4 + $0x128] sm:$0xff] }
 0x306   : > { %v3700_v34 = vadd.f32 %v12994_v21, %v3573_v33  ;;  %11260 = vmatmul.msk.bf16.gmra.mxu0 %vm511_vm1, %v3338_v28  ;;  %5561 = vmatpush.bf16.msrb.mxu1 %v11887_v18 }
 0x308   : > { %11240 = vmatmul.msk.bf16.gmra.mxu3 %vm511_vm1, %v2974_v30  ;;  %v3741_v63 = vmax.f32 %v3700_v34, 0.0  ;;  %v2976_v34 = vpack.c.bf16 %v2948_v23, %v2947_v22 }
 0x30a   : > { %v3987_v39 = vmul.f32 %v13015_v35, %v3741_v63 }
 0x30b   : > { %v3071_v60 = vpop.f32.mrf.mxu3  ;;  %v3433_v40 = vpop.f32.mrf.mxu0  ;;  %v4070_v42 = vld [vmem:[#allocation2 + $0x1d] sm:$0xff] }
 0x30c   : > { %v4350_v10 = vld [vmem:[#allocation2 + $0x1e] sm:$0xff]  ;;  %v3574_v24 = vadd.f32 %v3433_v40, %v3209_v38  ;;  %v4109_v46 = vpack.c.bf16 %v4070_v42, %v4069_v7  ;;  %4028 = vst [vmem:[#allocation2 + $0x28] sm:$0xff] %v3987_v39  ;;  %v3210_v54 = vadd.f32 %v3169_v53, %v3071_v60  ;;  %v13053_v38 = vpop.permute.xlu0 %3812  ;;  %v3172_v60 = vld [vmem:[#allocation4 + $0x100] sm:$0xff] }
 0x30d   : > { %v4389_v43 = vpack.c.bf16 %v4350_v10, %v4349_v44  ;;  %15051 = vst [vmem:[#allocation12_spill] sm:$0xff] %v13053_v38  ;;  %v2950_v53 = vld [vmem:[%s12280_s12 + $0x102] sm:$0xff] }
 0x30e   : > { %v3701_v48 = vadd.f32 %v12994_v21, %v3574_v24  ;;  %4206 = vmatmul.bf16.gmra.mxu1 %v4109_v46 }
 0x30f   : > { %4486 = vmatmul.bf16.gmra.mxu2 %v4389_v43 }
 0x310   : > { %v3742_v49 = vmax.f32 %v3701_v48, 0.0 }
 0x312   : > { %v3988_v45 = vmul.f32 %v13030_v52, %v3742_v49  ;;  %v3312_v49 = vld [vmem:[%s12280_s12 + $0xeb] sm:$0xff] }
 0x313   : > { %v3073_v57 = vpop.f32.mrf.mxu3  ;;  %v3436_v58 = vpop.f32.mrf.mxu0  ;;  %v4071_v55 = vld [vmem:[#allocation2 + $0x25] sm:$0xff] }
 0x314   : > { %v3575_v41 = vadd.f32 %v3436_v58, %v3210_v54  ;;  %4029 = vst [vmem:[#allocation2 + $0x30] sm:$0xff] %v3988_v45  ;;  %v3211_v3 = vadd.f32 %v3170_v1, %v3073_v57  ;;  %v4351_v9 = vld [vmem:[#allocation2 + $0x26] sm:$0xff]  ;;  %v13064_v57 = vpop.permute.xlu1 %3817 }
 0x315   : > { %v11879_v54 = vld [vmem:[%s15047_s4 + $0xe8] sm:$0xff]  ;;  %15052 = vst [vmem:[#allocation13_spill] sm:$0xff] %v13064_v57 }
 0x316   : > { %v3702_v61 = vadd.f32 %v12994_v21, %v3575_v41  ;;  %11261 = vmatmul.msk.bf16.gmra.mxu0 %vm511_vm1, %v3339_v27  ;;  %v3173_v27 = vld [vmem:[#allocation4 + $0x80] sm:$0xff] }
 0x317   : > { %5199 = vmatpush.bf16.msrb.mxu0 %v11879_v54 }
 0x318   : > { %11241 = vmatmul.msk.bf16.gmra.mxu3 %vm511_vm1, %v2975_v59  ;;  %v3743_v0 = vmax.f32 %v3702_v61, 0.0  ;;  %v3341_v59 = vpack.c.bf16 %v3313_v50, %v3312_v49 }
 0x31a   : > { %v3989_v36 = vmul.f32 %v13035_v62, %v3743_v0  ;;  %v2977_v0 = vpack.c.bf16 %v2950_v53, %v2949_v14 }
 0x31b   : > { %v3076_v6 = vpop.f32.mrf.mxu3  ;;  %v3438_v56 = vpop.f32.mrf.mxu0  ;;  %v4072_v8 = vld [vmem:[#allocation2 + $0x2d] sm:$0xff] }
 0x31c   : > { %v4352_v12 = vld [vmem:[#allocation2 + $0x2e] sm:$0xff]  ;;  %v3576_v13 = vadd.f32 %v3438_v56, %v3211_v3  ;;  %v4110_v15 = vpack.c.bf16 %v4072_v8, %v4071_v55  ;;  %4030 = vst [vmem:[#allocation2 + $0x38] sm:$0xff] %v3989_v36  ;;  %v3212_v28 = vadd.f32 %v3171_v26, %v3076_v6  ;;  %v13070_v55 = vpop.permute.xlu2 %3822  ;;  %v3174_v36 = vld [vmem:[#allocation4 + $0x108] sm:$0xff]  ;;  %v3315_v26 = vld [vmem:[%s12280_s12 + $0x103] sm:$0xff] }
 0x31d   : > { %v4390_v16 = vpack.c.bf16 %v4352_v12, %v4351_v9  ;;  %15053 = vst [vmem:[#allocation14_spill] sm:$0xff] %v13070_v55 }
 0x31e   : > { %v3703_v17 = vadd.f32 %v12994_v21, %v3576_v13  ;;  %4211 = vmatmul.bf16.gmra.mxu1 %v4110_v15 }
 0x31f   : > { %4491 = vmatmul.bf16.gmra.mxu2 %v4390_v16 }
 0x320   : > { %v3744_v31 = vmax.f32 %v3703_v17, 0.0 }
 0x322   : > { %v3990_v30 = vmul.f32 %v13047_v4, %v3744_v31 }
 0x323   : > { %v3078_v29 = vpop.f32.mrf.mxu3  ;;  %v3441_v33 = vpop.f32.mrf.mxu0  ;;  %v4073_v40 = vld [vmem:[#allocation2 + $0x35] sm:$0xff] }
 0x324   : > { %v3577_v63 = vadd.f32 %v3441_v33, %v3212_v28  ;;  %4031 = vst [vmem:[#allocation2 + $0x40] sm:$0xff] %v3990_v30  ;;  %v3213_v7 = vadd.f32 %v3172_v60, %v3078_v29  ;;  %v4353_v24 = vld [vmem:[#allocation2 + $0x36] sm:$0xff]  ;;  %v2951_v29 = vld [vmem:[%s12280_s12 + $0x10a] sm:$0xff]  ;;  %v13081_v30 = vpop.permute.xlu0 %3827 }
 0x325   : > { %15054 = vst [vmem:[#allocation15_spill] sm:$0xff] %v13081_v30  ;;  %v3175_v33 = vld [vmem:[#allocation4 + $0x138] sm:$0xff] }
 0x326   : > { %v3704_v20 = vadd.f32 %v12994_v21, %v3577_v63  ;;  %11262 = vmatmul.msk.bf16.gmra.mxu0 %vm511_vm1, %v3340_v2  ;;  %v2952_v2 = vld [vmem:[%s12280_s12 + $0x112] sm:$0xff] }
 0x328   : > { %11242 = vmatmul.msk.bf16.gmra.mxu3 %vm511_vm1, %v2976_v34  ;;  %v3745_v37 = vmax.f32 %v3704_v20, 0.0  ;;  %v3342_v20 = vpack.c.bf16 %v3315_v26, %v3314_v47 }
 0x32a   : > { %v3991_v42 = vmul.f32 %v13053_v38, %v3745_v37 }
 0x32b   : > { %v3081_v39 = vpop.f32.mrf.mxu3  ;;  %v3443_v44 = vpop.f32.mrf.mxu0  ;;  %v4074_v10 = vld [vmem:[#allocation2 + $0x3d] sm:$0xff] }
 0x32c   : > { %v4354_v46 = vld [vmem:[#allocation2 + $0x3e] sm:$0xff]  ;;  %v3578_v43 = vadd.f32 %v3443_v44, %v3213_v7  ;;  %v4111_v48 = vpack.c.bf16 %v4074_v10, %v4073_v40  ;;  %4032 = vst [vmem:[#allocation2 + $0x48] sm:$0xff] %v3991_v42  ;;  %v3214_v45 = vadd.f32 %v3173_v27, %v3081_v39  ;;  %v2978_v7 = vpack.c.bf16 %v2952_v2, %v2951_v29  ;;  %v13087_v44 = vpop.permute.xlu1 %3832 }
 0x32d   : > { %v4391_v11 = vpack.c.bf16 %v4354_v46, %v4353_v24  ;;  %15055 = vst [vmem:[#allocation16_spill] sm:$0xff] %v13087_v44  ;;  %v3176_v10 = vld [vmem:[#allocation4 + $0xf0] sm:$0xff] }
 0x32e   : > { %v3705_v32 = vadd.f32 %v12994_v21, %v3578_v43  ;;  %4216 = vmatmul.bf16.gmra.mxu1 %v4111_v48 }
 0x32f   : > { %4496 = vmatmul.bf16.gmra.mxu2 %v4391_v11 }
 0x330   : > { %v3746_v51 = vmax.f32 %v3705_v32, 0.0 }
 0x332   : > { %v3992_v41 = vmul.f32 %v13064_v57, %v3746_v51  ;;  %v11870_v51 = vld [vmem:[%s15047_s4 + $0xa0] sm:$0xff] }
 0x333   : > { %v3083_v58 = vpop.f32.mrf.mxu3  ;;  %v3446_v61 = vpop.f32.mrf.mxu0  ;;  %v4075_v9 = vld [vmem:[#allocation2 + $0x45] sm:$0xff]  ;;  %4838 = vmatpush.bf16.msrb.mxu3 %v11870_v51 }
 0x334   : > { %v3579_v1 = vadd.f32 %v3446_v61, %v3214_v45  ;;  %4033 = vst [vmem:[#allocation2 + $0x50] sm:$0xff] %v3992_v41  ;;  %v3215_v56 = vadd.f32 %v3174_v36, %v3083_v58  ;;  %v4355_v12 = vld [vmem:[#allocation2 + $0x46] sm:$0xff]  ;;  %v3317_v58 = vld [vmem:[%s12280_s12 + $0x113] sm:$0xff] }
 0x335   : > { %v3316_v45 = vld [vmem:[%s12280_s12 + $0x10b] sm:$0xff]  ;;  %v2953_v41 = vld [vmem:[%s12280_s12 + $0x11a] sm:$0xff]  ;;  %v2954_v61 = vld [vmem:[%s12280_s12 + $0x122] sm:$0xff] }
 0x336   : > { %v3706_v3 = vadd.f32 %v12994_v21, %v3579_v1  ;;  %11263 = vmatmul.msk.bf16.gmra.mxu0 %vm511_vm1, %v3341_v59  ;;  %v3177_v1 = vld [vmem:[#allocation4 + $0x18] sm:$0xff]  ;;  %v3343_v36 = vpack.c.bf16 %v3317_v58, %v3316_v45  ;;  %v11886_v58 = vld [vmem:[%s15047_s4 + $0x120] sm:$0xff] }
 0x337   : > { %5562 = vmatpush.bf16.msrb.mxu1 %v11886_v58 }
 0x338   : > { %11243 = vmatmul.msk.bf16.gmra.mxu3 %vm511_vm1, %v2977_v0  ;;  %v3747_v6 = vmax.f32 %v3706_v3, 0.0  ;;  %v13098_v0 = vpop.permute.xlu2 %3837  ;;  %v4202_v18 = vpop.f32.mrf.mxu1 }
 0x339   : > { %15056 = vst [vmem:[#allocation17_spill] sm:$0xff] %v13098_v0 }
 0x33a   : > { %v3993_v13 = vmul.f32 %v13070_v55, %v3747_v6 }
 0x33b   : > { %v3086_v8 = vpop.f32.mrf.mxu3  ;;  %v3448_v15 = vpop.f32.mrf.mxu0  ;;  %v4076_v16 = vld [vmem:[#allocation2 + $0x4d] sm:$0xff] }
 0x33c   : > { %v4356_v17 = vld [vmem:[#allocation2 + $0x4e] sm:$0xff]  ;;  %v3580_v19 = vadd.f32 %v3448_v15, %v3215_v56  ;;  %v4112_v31 = vpack.c.bf16 %v4076_v16, %v4075_v9  ;;  %4034 = vst [vmem:[#allocation2 + $0x58] sm:$0xff] %v3993_v13  ;;  %v3216_v34 = vadd.f32 %v3175_v33, %v3086_v8  ;;  %v2979_v9 = vpack.c.bf16 %v2954_v61, %v2953_v41  ;;  %v13104_v15 = vpop.permute.xlu0 %3842  ;;  %v11878_v33 = vld [vmem:[%s15047_s4 + $0xe0] sm:$0xff] }
 0x33d   : > { %v4392_v22 = vpack.c.bf16 %v4356_v17, %v4355_v12  ;;  %15057 = vst [vmem:[#allocation18_spill] sm:$0xff] %v13104_v15  ;;  %v3178_v17 = vld [vmem:[#allocation4 + $0xc8] sm:$0xff]  ;;  %5200 = vmatpush.bf16.msrb.mxu0 %v11878_v33  ;;  %v3180_v41 = vld [vmem:[#allocation4 + $0x20] sm:$0xff] }
 0x33e   : > { %v3707_v23 = vadd.f32 %v12994_v21, %v3580_v19  ;;  %4221 = vmatmul.bf16.gmra.mxu1 %v4112_v31  ;;  %v4482_v19 = vpop.f32.mrf.mxu2 }
 0x33f   : > { %4501 = vmatmul.bf16.gmra.mxu2 %v4392_v22 }
 0x340   : > { %v3748_v28 = vmax.f32 %v3707_v23, 0.0 }
 0x342   : > { %v3994_v37 = vmul.f32 %v13081_v30, %v3748_v28 }
 0x343   : > { %v3088_v63 = vpop.f32.mrf.mxu3  ;;  %v3451_v60 = vpop.f32.mrf.mxu0  ;;  %v4077_v43 = vld [vmem:[#allocation2 + $0x55] sm:$0xff] }
 0x344   : > { %v3581_v39 = vadd.f32 %v3451_v60, %v3216_v34  ;;  %4035 = vst [vmem:[#allocation2 + $0x60] sm:$0xff] %v3994_v37  ;;  %v3217_v24 = vadd.f32 %v3176_v10, %v3088_v63  ;;  %v4357_v48 = vld [vmem:[#allocation2 + $0x56] sm:$0xff] }
 0x345   : > { %v3318_v60 = vld [vmem:[%s12280_s12 + $0x11b] sm:$0xff]  ;;  %v2956_v10 = vld [vmem:[%s12280_s12 + $0x132] sm:$0xff] }
 0x346   : > { %v3708_v40 = vadd.f32 %v12994_v21, %v3581_v39  ;;  %11264 = vmatmul.msk.bf16.gmra.mxu0 %vm511_vm1, %v3342_v20  ;;  %v13113_v39 = vpop.permute.xlu1 %3847 }
 0x347   : > { %15058 = vst [vmem:[#allocation19_spill] sm:$0xff] %v13113_v39 }
 0x348   : > { %11244 = vmatmul.msk.bf16.gmra.mxu3 %vm511_vm1, %v2978_v7  ;;  %v3749_v42 = vmax.f32 %v3708_v40, 0.0  ;;  %v3319_v7 = vld [vmem:[%s12280_s12 + $0x123] sm:$0xff] }
 0x34a   : > { %v3995_v11 = vmul.f32 %v13087_v44, %v3749_v42  ;;  %v2955_v42 = vld [vmem:[%s12280_s12 + $0x12a] sm:$0xff] }
 0x34b   : > { %v3091_v46 = vpop.f32.mrf.mxu3  ;;  %v3453_v32 = vpop.f32.mrf.mxu0  ;;  %v4078_v49 = vld [vmem:[#allocation2 + $0x5d] sm:$0xff] }
 0x34c   : > { %v4358_v50 = vld [vmem:[#allocation2 + $0x5e] sm:$0xff]  ;;  %v3582_v14 = vadd.f32 %v3453_v32, %v3217_v24  ;;  %v4113_v53 = vpack.c.bf16 %v4078_v49, %v4077_v43  ;;  %4036 = vst [vmem:[#allocation2 + $0x68] sm:$0xff] %v3995_v11  ;;  %v3218_v3 = vadd.f32 %v3177_v1, %v3091_v46  ;;  %v4627_v24 = vadd.f32 %v4482_v19, %v4202_v18  ;;  %v4204_v43 = vpop.f32.mrf.mxu1  ;;  %v3320_v18 = vld [vmem:[%s12280_s12 + $0x12b] sm:$0xff]  ;;  %v3321_v19 = vld [vmem:[%s12280_s12 + $0x133] sm:$0xff] }
 0x34d   : > { %v4393_v54 = vpack.c.bf16 %v4358_v50, %v4357_v48  ;;  %v3179_v46 = vld [vmem:[#allocation4 + $0x70] sm:$0xff]  ;;  %v4484_v48 = vpop.f32.mrf.mxu2  ;;  %v3344_v49 = vpack.c.bf16 %v3319_v7, %v3318_v60  ;;  %v11869_v7 = vld [vmem:[%s15047_s4 + $0x98] sm:$0xff] }
 0x34e   : > { %v3709_v27 = vadd.f32 %v12994_v21, %v3582_v14  ;;  %4226 = vmatmul.bf16.gmra.mxu1 %v4113_v53  ;;  %4668 = vst [vmem:[#allocation4 + $0xb0] sm:$0xff] %v4627_v24  ;;  %v4628_v51 = vadd.f32 %v4484_v48, %v4204_v43  ;;  %v2980_v53 = vpack.c.bf16 %v2956_v10, %v2955_v42  ;;  %v13144_v42 = vpop.permute.xlu1 %3862  ;;  %v3182_v10 = vld [vmem:[#allocation4 + $0x110] sm:$0xff] }
 0x34f   : > { %4506 = vmatmul.bf16.gmra.mxu2 %v4393_v54  ;;  %15061 = vst [vmem:[#allocation22_spill] sm:$0xff] %v13144_v42  ;;  %4839 = vmatpush.bf16.msrb.mxu3 %v11869_v7  ;;  %v11868_v7 = vld [vmem:[%s15047_s4 + $0x90] sm:$0xff] }
 0x350   : > { %v3750_v59 = vmax.f32 %v3709_v27, 0.0  ;;  %4669 = vst [vmem:[#allocation4 + $0xd0] sm:$0xff] %v4628_v51 }
 0x352   : > { %v3996_v56 = vmul.f32 %v13098_v0, %v3750_v59  ;;  %v13124_v59 = vpop.permute.xlu2 %3852 }
 0x353   : > { %v3093_v6 = vpop.f32.mrf.mxu3  ;;  %v3456_v8 = vpop.f32.mrf.mxu0  ;;  %v4079_v23 = vld [vmem:[#allocation2 + $0x65] sm:$0xff]  ;;  %15059 = vst [vmem:[#allocation20_spill] sm:$0xff] %v13124_v59  ;;  %4840 = vmatpush.bf16.msrb.mxu3 %v11868_v7 }
 0x354   : > { %v3583_v12 = vadd.f32 %v3456_v8, %v3218_v3  ;;  %4037 = vst [vmem:[#allocation2 + $0x70] sm:$0xff] %v3996_v56  ;;  %v3219_v31 = vadd.f32 %v3178_v17, %v3093_v6  ;;  %v4359_v47 = vld [vmem:[#allocation2 + $0x66] sm:$0xff] }
 0x356   : > { %v3710_v13 = vadd.f32 %v12994_v21, %v3583_v12  ;;  %11265 = vmatmul.msk.bf16.gmra.mxu0 %vm511_vm1, %v3343_v36 }
 0x358   : > { %11245 = vmatmul.msk.bf16.gmra.mxu3 %vm511_vm1, %v2979_v9  ;;  %v3751_v16 = vmax.f32 %v3710_v13, 0.0 }
 0x35a   : > { %v3997_v26 = vmul.f32 %v13104_v15, %v3751_v16 }
 0x35b   : > { %v3096_v22 = vpop.f32.mrf.mxu3  ;;  %v3458_v28 = vpop.f32.mrf.mxu0  ;;  %v4080_v29 = vld [vmem:[#allocation2 + $0x6d] sm:$0xff] }
 0x35c   : > { %v4360_v2 = vld [vmem:[#allocation2 + $0x6e] sm:$0xff]  ;;  %v3584_v34 = vadd.f32 %v3458_v28, %v3219_v31  ;;  %v4114_v63 = vpack.c.bf16 %v4080_v29, %v4079_v23  ;;  %4038 = vst [vmem:[#allocation2 + $0x78] sm:$0xff] %v3997_v26  ;;  %v3220_v11 = vadd.f32 %v3179_v46, %v3096_v22  ;;  %v2957_v22 = vld [vmem:[%s12280_s12 + $0x13a] sm:$0xff]  ;;  %v2958_v23 = vld [vmem:[%s12280_s12 + $0x142] sm:$0xff] }
 0x35d   : > { %v4394_v20 = vpack.c.bf16 %v4360_v2, %v4359_v47  ;;  %v13132_v47 = vpop.permute.xlu0 %3857  ;;  %v3181_v26 = vld [vmem:[#allocation4 + $0x128] sm:$0xff]  ;;  %v3345_v2 = vpack.c.bf16 %v3321_v19, %v3320_v18 }
 0x35e   : > { %v3711_v37 = vadd.f32 %v12994_v21, %v3584_v34  ;;  %4231 = vmatmul.bf16.gmra.mxu1 %v4114_v63  ;;  %15060 = vst [vmem:[#allocation21_spill] sm:$0xff] %v13132_v47  ;;  %v2981_v63 = vpack.c.bf16 %v2958_v23, %v2957_v22  ;;  %v11877_v18 = vld [vmem:[%s15047_s4 + $0xd8] sm:$0xff] }
 0x35f   : > { %4511 = vmatmul.bf16.gmra.mxu2 %v4394_v20  ;;  %5201 = vmatpush.bf16.msrb.mxu0 %v11877_v18 }
 0x360   : > { %v3752_v40 = vmax.f32 %v3711_v37, 0.0 }
 0x362   : > { %v3998_v50 = vmul.f32 %v13113_v39, %v3752_v40  ;;  %v11897_v40 = vld [vmem:[%s15047_s4 + $0x178] sm:$0xff] }
 0x363   : > { %v3098_v32 = vpop.f32.mrf.mxu3  ;;  %v3461_v14 = vpop.f32.mrf.mxu0  ;;  %v4081_v3 = vld [vmem:[#allocation2 + $0x75] sm:$0xff]  ;;  %5921 = vmatpush.bf16.msrb.mxu2 %v11897_v40 }
 0x364   : > { %v3585_v54 = vadd.f32 %v3461_v14, %v3220_v11  ;;  %4039 = vst [vmem:[#allocation2 + $0x80] sm:$0xff] %v3998_v50  ;;  %v3221_v61 = vadd.f32 %v3180_v41, %v3098_v32  ;;  %v4361_v8 = vld [vmem:[#allocation2 + $0x76] sm:$0xff]  ;;  %v2959_v41 = vld [vmem:[%s12280_s12 + $0x14a] sm:$0xff] }
 0x365   : > { %v13161_v19 = vpop.permute.xlu0 %3872 }
 0x366   : > { %v3712_v27 = vadd.f32 %v12994_v21, %v3585_v54  ;;  %11266 = vmatmul.msk.bf16.gmra.mxu0 %vm511_vm1, %v3344_v49  ;;  %15063 = vst [vmem:[#allocation24_spill] sm:$0xff] %v13161_v19 }
 0x368   : > { %11246 = vmatmul.msk.bf16.gmra.mxu3 %vm511_vm1, %v2980_v53  ;;  %v3753_v45 = vmax.f32 %v3712_v27, 0.0  ;;  %v3322_v27 = vld [vmem:[%s12280_s12 + $0x13b] sm:$0xff] }
 0x36a   : > { %v3999_v6 = vmul.f32 %v13124_v59, %v3753_v45  ;;  %v3323_v45 = vld [vmem:[%s12280_s12 + $0x143] sm:$0xff] }
 0x36b   : > { %v3101_v1 = vpop.f32.mrf.mxu3  ;;  %v3463_v36 = vpop.f32.mrf.mxu0  ;;  %v4082_v56 = vld [vmem:[#allocation2 + $0x7d] sm:$0xff] }
 0x36c   : > { %v4362_v9 = vld [vmem:[#allocation2 + $0x7e] sm:$0xff]  ;;  %v3586_v12 = vadd.f32 %v3463_v36, %v3221_v61  ;;  %v4115_v13 = vpack.c.bf16 %v4082_v56, %v4081_v3  ;;  %4040 = vst [vmem:[#allocation2 + $0x88] sm:$0xff] %v3999_v6  ;;  %v3222_v28 = vadd.f32 %v3181_v26, %v3101_v1  ;;  %v2960_v61 = vld [vmem:[%s12280_s12 + $0x152] sm:$0xff]  ;;  %v13152_v1 = vpop.permute.xlu2 %3867  ;;  %v3346_v56 = vpack.c.bf16 %v3323_v45, %v3322_v27 }
 0x36d   : > { %v4395_v16 = vpack.c.bf16 %v4362_v9, %v4361_v8  ;;  %15062 = vst [vmem:[#allocation23_spill] sm:$0xff] %v13152_v1  ;;  %v3183_v3 = vld [vmem:[#allocation4 + $0x8] sm:$0xff] }
 0x36e   : > { %v3713_v17 = vadd.f32 %v12994_v21, %v3586_v12  ;;  %4236 = vmatmul.bf16.gmra.mxu1 %v4115_v13  ;;  %v2982_v12 = vpack.c.bf16 %v2960_v61, %v2959_v41 }
 0x36f   : > { %4516 = vmatmul.bf16.gmra.mxu2 %v4395_v16 }
 0x370   : > { %v3754_v31 = vmax.f32 %v3713_v17, 0.0 }
 0x372   : > { %v4000_v33 = vmul.f32 %v13132_v47, %v3754_v31  ;;  %v3184_v31 = vld [vmem:[#allocation4 + $0x98] sm:$0xff] }
 0x373   : > { %v3103_v29 = vpop.f32.mrf.mxu3  ;;  %v3466_v34 = vpop.f32.mrf.mxu0  ;;  %v4083_v43 = vld [vmem:[#allocation2 + $0x85] sm:$0xff] }
 0x374   : > { %v3587_v20 = vadd.f32 %v3466_v34, %v3222_v28  ;;  %4041 = vst [vmem:[#allocation2 + $0x90] sm:$0xff] %v4000_v33  ;;  %v3223_v24 = vadd.f32 %v3182_v10, %v3103_v29  ;;  %v4363_v49 = vld [vmem:[#allocation2 + $0x86] sm:$0xff]  ;;  %v2961_v10 = vld [vmem:[%s12280_s12 + $0x15a] sm:$0xff] }
 0x376   : > { %v3714_v37 = vadd.f32 %v12994_v21, %v3587_v20  ;;  %11267 = vmatmul.msk.bf16.gmra.mxu0 %vm511_vm1, %v3345_v2 }
 0x378   : > { %11247 = vmatmul.msk.bf16.gmra.mxu3 %vm511_vm1, %v2981_v63  ;;  %v3755_v60 = vmax.f32 %v3714_v37, 0.0 }
 0x37a   : > { %v4001_v48 = vmul.f32 %v13144_v42, %v3755_v60 }
 0x37b   : > { %v3106_v46 = vpop.f32.mrf.mxu3  ;;  %v3468_v11 = vpop.f32.mrf.mxu0  ;;  %v4084_v32 = vld [vmem:[#allocation2 + $0x8d] sm:$0xff] }
 0x37c   : > { %v4364_v50 = vld [vmem:[#allocation2 + $0x8e] sm:$0xff]  ;;  %v3588_v51 = vadd.f32 %v3468_v11, %v3223_v24  ;;  %v4116_v14 = vpack.c.bf16 %v4084_v32, %v4083_v43  ;;  %4042 = vst [vmem:[#allocation2 + $0x98] sm:$0xff] %v4001_v48  ;;  %v3224_v6 = vadd.f32 %v3183_v3, %v3106_v46  ;;  %v2962_v48 = vld [vmem:[%s12280_s12 + $0x162] sm:$0xff]  ;;  %v11885_v11 = vld [vmem:[%s15047_s4 + $0x118] sm:$0xff] }
 0x37d   : > { %v4396_v53 = vpack.c.bf16 %v4364_v50, %v4363_v49  ;;  %v3324_v24 = vld [vmem:[%s12280_s12 + $0x14b] sm:$0xff]  ;;  %v3325_v46 = vld [vmem:[%s12280_s12 + $0x153] sm:$0xff]  ;;  %v13178_v49 = vpop.permute.xlu1 %3877  ;;  %5563 = vmatpush.bf16.msrb.mxu1 %v11885_v11  ;;  %v2983_v41 = vpack.c.bf16 %v2962_v48, %v2961_v10 }
 0x37e   : > { %v3715_v54 = vadd.f32 %v12994_v21, %v3588_v51  ;;  %4241 = vmatmul.bf16.gmra.mxu1 %v4116_v14  ;;  %v11867_v32 = vld [vmem:[%s15047_s4 + $0x88] sm:$0xff]  ;;  %15064 = vst [vmem:[#allocation25_spill] sm:$0xff] %v13178_v49  ;;  %v3185_v50 = vld [vmem:[#allocation4 + $0xa8] sm:$0xff] }
 0x37f   : > { %4521 = vmatmul.bf16.gmra.mxu2 %v4396_v53  ;;  %4841 = vmatpush.bf16.msrb.mxu3 %v11867_v32  ;;  %v11875_v10 = vld [vmem:[%s15047_s4 + $0xc8] sm:$0xff] }
 0x380   : > { %v3756_v58 = vmax.f32 %v3715_v54, 0.0  ;;  %v3347_v54 = vpack.c.bf16 %v3325_v46, %v3324_v24  ;;  %v11896_v24 = vld [vmem:[%s15047_s4 + $0x170] sm:$0xff]  ;;  %v13203_v46 = vpop.permute.xlu0 %3887 }
 0x381   : > { %15066 = vst [vmem:[#allocation27_spill] sm:$0xff] %v13203_v46  ;;  %5922 = vmatpush.bf16.msrb.mxu2 %v11896_v24 }
 0x382   : > { %v4002_v8 = vmul.f32 %v13152_v1, %v3756_v58 }
 0x383   : > { %v3108_v36 = vpop.f32.mrf.mxu3  ;;  %v3471_v9 = vpop.f32.mrf.mxu0  ;;  %v4085_v26 = vld [vmem:[#allocation2 + $0x95] sm:$0xff] }
 0x384   : > { %v3589_v13 = vadd.f32 %v3471_v9, %v3224_v6  ;;  %4043 = vst [vmem:[#allocation2 + $0xa0] sm:$0xff] %v4002_v8  ;;  %v3225_v22 = vadd.f32 %v3184_v31, %v3108_v36  ;;  %v4365_v34 = vld [vmem:[#allocation2 + $0x96] sm:$0xff]  ;;  %v11866_v6 = vld [vmem:[%s15047_s4 + $0x80] sm:$0xff]  ;;  %v13187_v8 = vpop.permute.xlu2 %3882 }
 0x385   : > { %4842 = vmatpush.bf16.msrb.mxu3 %v11866_v6  ;;  %15065 = vst [vmem:[#allocation26_spill] sm:$0xff] %v13187_v8  ;;  %v3186_v9 = vld [vmem:[#allocation4 + $0x90] sm:$0xff]  ;;  %v3188_v6 = vld [vmem:[#allocation4 + $0x88] sm:$0xff] }
 0x386   : > { %v3716_v16 = vadd.f32 %v12994_v21, %v3589_v13  ;;  %11268 = vmatmul.msk.bf16.gmra.mxu0 %vm511_vm1, %v3346_v56 }
 0x388   : > { %11248 = vmatmul.msk.bf16.gmra.mxu3 %vm511_vm1, %v2982_v12  ;;  %v3757_v17 = vmax.f32 %v3716_v16, 0.0 }
 0x38a   : > { %v4003_v28 = vmul.f32 %v13161_v19, %v3757_v17 }
 0x38b   : > { %v3111_v23 = vpop.f32.mrf.mxu3  ;;  %v3473_v29 = vpop.f32.mrf.mxu0  ;;  %v4086_v33 = vld [vmem:[#allocation2 + $0x9d] sm:$0xff] }
 0x38c   : > { %v4207_v2 = vpop.f32.mrf.mxu1  ;;  %v4366_v63 = vld [vmem:[#allocation2 + $0x9e] sm:$0xff]  ;;  %v3590_v20 = vadd.f32 %v3473_v29, %v3225_v22  ;;  %v4117_v37 = vpack.c.bf16 %v4086_v33, %v4085_v26  ;;  %4044 = vst [vmem:[#allocation2 + $0xa8] sm:$0xff] %v4003_v28  ;;  %v3226_v14 = vadd.f32 %v3185_v50, %v3111_v23 }
 0x38d   : > { %v4397_v60 = vpack.c.bf16 %v4366_v63, %v4365_v34  ;;  %v11876_v63 = vld [vmem:[%s15047_s4 + $0xd0] sm:$0xff] }
 0x38e   : > { %v3717_v40 = vadd.f32 %v12994_v21, %v3590_v20  ;;  %4246 = vmatmul.bf16.gmra.mxu1 %v4117_v37  ;;  %v3326_v37 = vld [vmem:[%s12280_s12 + $0x15b] sm:$0xff]  ;;  %5202 = vmatpush.bf16.msrb.mxu0 %v11876_v63  ;;  %v4709_v63 = vld [vmem:[#allocation2 + $0x7] sm:$0xff] }
 0x38f   : > { %4526 = vmatmul.bf16.gmra.mxu2 %v4397_v60  ;;  %v3327_v60 = vld [vmem:[%s12280_s12 + $0x163] sm:$0xff] }
 0x390   : > { %v3758_v43 = vmax.f32 %v3717_v40, 0.0  ;;  %v2963_v40 = vld [vmem:[%s12280_s12 + $0x16a] sm:$0xf]  ;;  %v3348_v50 = vpack.c.bf16 %v3327_v60, %v3326_v37  ;;  %v13217_v37 = vpop.permute.xlu2 %3897  ;;  %v3189_v60 = vld [vmem:[#allocation4 + $0xc0] sm:$0xff] }
 0x391   : > { %15068 = vst [vmem:[#allocation29_spill] sm:$0xff] %v13217_v37 }
 0x392   : > { %v4487_v51 = vpop.f32.mrf.mxu2  ;;  %v4004_v45 = vmul.f32 %v13178_v49, %v3758_v43  ;;  %v3187_v43 = vld [vmem:[#allocation4 + $0xe0] sm:$0xff]  ;;  %5203 = vmatpush.bf16.msrb.mxu0 %v11875_v10 }
 0x393   : > { %v3113_v53 = vpop.f32.mrf.mxu3  ;;  %v4629_v27 = vadd.f32 %v4487_v51, %v4207_v2  ;;  %v3476_v58 = vpop.f32.mrf.mxu0  ;;  %v4087_v23 = vld [vmem:[#allocation2 + $0xa5] sm:$0xff] }
 0x394   : > { %v4209_v61 = vpop.f32.mrf.mxu1  ;;  %v3591_v3 = vadd.f32 %v3476_v58, %v3226_v14  ;;  %4045 = vst [vmem:[#allocation2 + $0xb0] sm:$0xff] %v4004_v45  ;;  %v3227_v13 = vadd.f32 %v3186_v9, %v3113_v53  ;;  %v4367_v29 = vld [vmem:[#allocation2 + $0xa6] sm:$0xff] }
 0x395   : > { %4670 = vst [vmem:[#allocation4 + $0x10] sm:$0xff] %v4629_v27  ;;  %v11874_v58 = vld [vmem:[%s15047_s4 + $0xc0] sm:$0xff] }
 0x396   : > { %v3718_v36 = vadd.f32 %v12994_v21, %v3591_v3  ;;  %11269 = vmatmul.msk.bf16.gmra.mxu0 %vm511_vm1, %v3347_v54  ;;  %v2984_v54 = vpack.c.bf16 %v2963_v40, %v2963_v40  ;;  %v13212_v3 = vpop.permute.xlu1 %3892 }
 0x397   : > { %5204 = vmatpush.bf16.msrb.mxu0 %v11874_v58  ;;  %15067 = vst [vmem:[#allocation28_spill] sm:$0xff] %v13212_v3 }
 0x398   : > { %11249 = vmatmul.msk.bf16.gmra.mxu3 %vm511_vm1, %v2983_v41  ;;  %v3759_v56 = vmax.f32 %v3718_v36, 0.0 }
 0x39a   : > { %v4489_v12 = vpop.f32.mrf.mxu2  ;;  %v4005_v18 = vmul.f32 %v13187_v8, %v3759_v56 }
 0x39b   : > { %v3116_v16 = vpop.f32.mrf.mxu3  ;;  %v4630_v17 = vadd.f32 %v4489_v12, %v4209_v61  ;;  %v3478_v31 = vpop.f32.mrf.mxu0  ;;  %v4088_v28 = vld [vmem:[#allocation2 + $0xad] sm:$0xff] }
 0x39c   : > { %v4212_v22 = vpop.f32.mrf.mxu1  ;;  %v3592_v26 = vadd.f32 %v3478_v31, %v3227_v13  ;;  %v4368_v2 = vld [vmem:[#allocation2 + $0xae] sm:$0xff]  ;;  %v4118_v33 = vpack.c.bf16 %v4088_v28, %v4087_v23  ;;  %4046 = vst [vmem:[#allocation2 + $0xb8] sm:$0xff] %v4005_v18  ;;  %v3228_v11 = vadd.f32 %v3187_v43, %v3116_v16 }
 0x39d   : > { %4671 = vst [vmem:[#allocation4 + $0x48] sm:$0xff] %v4630_v17  ;;  %v4398_v34 = vpack.c.bf16 %v4368_v2, %v4367_v29  ;;  %v6173_v39 = vld [vmem:[#allocation2 + $0xa9] sm:$0xff] }
 0x39e   : > { %v3719_v20 = vadd.f32 %v12994_v21, %v3592_v26  ;;  %4251 = vmatmul.bf16.gmra.mxu1 %v4118_v33  ;;  %v3328_v33 = vld [vmem:[%s12280_s12 + $0x16b] sm:$0xf]  ;;  %s12067_s12 = sshra.s32 %s10983_s30, 4  ;;  %s12068_s12 = int_to_ptr.hbm [resolvable:$true] %s12067_s12 }
 0x39f   : > { %4531 = vmatmul.bf16.gmra.mxu2 %v4398_v34  ;;  %v3349_v24 = vpack.c.bf16 %v3328_v33, %v3328_v33  ;;  %s12069_s14 = scalar_lea.hbm %s12068_s12, 1  ;;  %p12074_p0 = scmp.lt.s32.totalorder %s12068_s12, %s14969_s10 }
 0x3a0   : > { %v3760_v7 = vmax.f32 %v3719_v20, 0.0  ;;  %v4710_v20 = vld [vmem:[#allocation2 + $0xf] sm:$0xff]  ;;  %p12070_p11 = scmp.ne.s32.totalorder %s12068_s12, %s12069_s14  ;;  %p12075_p1 = scmp.lt.s32.totalorder %s12073_s2, %s12069_s14 }
 0x3a2   : > { %v4492_v48 = vpop.f32.mrf.mxu2  ;;  %v4006_v14 = vmul.f32 %v13203_v46, %v3760_v7  ;;  %p12071_p12 = pnand %p12070_p11, %p12249_p5  ;;  %p12076_p2 = por %p12075_p1, %p12074_p0 }
 0x3a3   : > { %v3118_v32 = vpop.f32.mrf.mxu3  ;;  %v4631_v51 = vadd.f32 %v4492_v48, %v4212_v22  ;;  %v3481_v53 = vpop.f32.mrf.mxu0  ;;  %v4089_v18 = vld [vmem:[#allocation2 + $0xb5] sm:$0xff] }
 0x3a4   : > { %v4214_v27 = vpop.f32.mrf.mxu1  ;;  %v3593_v45 = vadd.f32 %v3481_v53, %v3228_v11  ;;  %4047 = vst [vmem:[#allocation2 + $0xc0] sm:$0xff] %v4006_v14  ;;  %v3229_v56 = vadd.f32 %v3188_v6, %v3118_v32  ;;  %v4369_v23 = vld [vmem:[#allocation2 + $0xb6] sm:$0xff]  ;;  %v4750_v32 = vpack.c.bf16 %v4710_v20, %v4709_v63  ;;  %p12072_p13 = pneg %p12071_p12 }
 0x3a5   : > { %4672 = vst [vmem:[#allocation4 + $0x120] sm:$0xff] %v4631_v51 }
 0x3a6   : > { %v3720_v41 = vadd.f32 %v12994_v21, %v3593_v45  ;;  %11270 = vmatmul.msk.bf16.gmra.mxu0 %vm511_vm1, %v3348_v50  ;;  %v3190_v45 = vld [vmem:[#allocation4 + $0x118] sm:$0xff]  ;;  %p12077_p3 = pnand %p12076_p2, %p12072_p13 }
 0x3a8   : > { %11250 = vmatmul.msk.bf16.gmra.mxu3 %vm511_vm1, %v2984_v54  ;;  %v3761_v61 = vmax.f32 %v3720_v41, 0.0  ;;  %v11884_v54 = vld [vmem:[%s15047_s4 + $0x110] sm:$0xff] }
 0x3a9   : > { %5564 = vmatpush.bf16.msrb.mxu1 %v11884_v54 }
 0x3aa   : > { %v4494_v36 = vpop.f32.mrf.mxu2  ;;  %v4007_v13 = vmul.f32 %v13212_v3, %v3761_v61 }
 0x3ab   : > { %v3121_v9 = vpop.f32.mrf.mxu3  ;;  %v4632_v12 = vadd.f32 %v4494_v36, %v4214_v27  ;;  %v3483_v16 = vpop.f32.mrf.mxu0  ;;  %v4090_v22 = vld [vmem:[#allocation2 + $0xbd] sm:$0xff] }
 0x3ac   : > { %v4217_v17 = vpop.f32.mrf.mxu1  ;;  %v3594_v31 = vadd.f32 %v3483_v16, %v3229_v56  ;;  %v4370_v26 = vld [vmem:[#allocation2 + $0xbe] sm:$0xff]  ;;  %v4119_v28 = vpack.c.bf16 %v4090_v22, %v4089_v18  ;;  %4048 = vst [vmem:[#allocation2 + $0xc8] sm:$0xff] %v4007_v13  ;;  %v3230_v40 = vadd.f32 %v3189_v60, %v3121_v9  ;;  %v13225_v27 = vpop.permute.xlu0 %3902 }
 0x3ad   : > { %4673 = vst [vmem:[#allocation4 + $0x38] sm:$0xff] %v4632_v12  ;;  %v4399_v29 = vpack.c.bf16 %v4370_v26, %v4369_v23  ;;  %v13231_v22 = vld [vmem:[%s15049_s3] ss:$0 sm:$0xff] }
 0x3ae   : > { %v3721_v2 = vadd.f32 %v12994_v21, %v3594_v31  ;;  %4256 = vmatmul.bf16.gmra.mxu1 %v4119_v28  ;;  %15069 = vst [vmem:[#allocation30_spill] sm:$0xff] %v13225_v27  ;;  %v13234_v28 = vpop.permute.xlu1 %3907 }
 0x3af   : > { %4536 = vmatmul.bf16.gmra.mxu2 %v4399_v29  ;;  %15070 = vst [vmem:[#allocation31_spill] sm:$0xff] %v13234_v28  ;;  %v3191_v29 = vld [vmem:[#allocation4 + $0xd8] sm:$0xff] }
 0x3b0   : > { %v3762_v34 = vmax.f32 %v3721_v2, 0.0  ;;  %v4712_v2 = vld [vmem:[#allocation2 + $0x1f] sm:$0xff] }
 0x3b2   : > { %v4497_v7 = vpop.f32.mrf.mxu2  ;;  %v4008_v48 = vmul.f32 %v13217_v37, %v3762_v34 }
 0x3b3   : > { %v3123_v10 = vpop.f32.mrf.mxu3  ;;  %v4633_v43 = vadd.f32 %v4497_v7, %v4217_v17  ;;  %v3486_v11 = vpop.f32.mrf.mxu0  ;;  %v4091_v9 = vld [vmem:[#allocation2 + $0xc5] sm:$0xff] }
 0x3b4   : > { %v4219_v50 = vpop.f32.mrf.mxu1  ;;  %v3595_v51 = vadd.f32 %v3486_v11, %v3230_v40  ;;  %4049 = vst [vmem:[#allocation2 + $0xd0] sm:$0xff] %v4008_v48  ;;  %v3231_v41 = vadd.f32 %v3190_v45, %v3123_v10  ;;  %v4371_v16 = vld [vmem:[#allocation2 + $0xc6] sm:$0xff]  ;;  %v4711_v40 = vld [vmem:[#allocation2 + $0x17] sm:$0xff] }
 0x3b5   : > { %4674 = vst [vmem:[#allocation4 + $0xf8] sm:$0xff] %v4633_v43  ;;  %v4751_v43 = vpack.c.bf16 %v4712_v2, %v4711_v40 }
 0x3b6   : > { %v3722_v14 = vadd.f32 %v12994_v21, %v3595_v51  ;;  %11271 = vmatmul.msk.bf16.gmra.mxu0 %vm511_vm1, %v3349_v24 }
 0x3b8   : > { %4843 = vmatmul.bf16.vlgmr.msrb.gmra.mxu3 %v4750_v32  ;;  %v3763_v53 = vmax.f32 %v3722_v14, 0.0  ;;  %v13238_v32 = vpop.permute.xlu2 %3912 }
 0x3b9   : > { %15071 = vst [vmem:[#allocation32_spill] sm:$0xff] %v13238_v32 }
 0x3ba   : > { %v4499_v58 = vpop.f32.mrf.mxu2  ;;  %v4009_v36 = vmul.f32 %v13225_v27, %v3763_v53 }
 0x3bb   : > { %v3126_v61 = vpop.f32.mrf.mxu3  ;;  %v4634_v6 = vadd.f32 %v4499_v58, %v4219_v50  ;;  %v3488_v56 = vpop.f32.mrf.mxu0  ;;  %v4092_v13 = vld [vmem:[#allocation2 + $0xcd] sm:$0xff] }
 0x3bc   : > { %v4222_v21 = vpop.f32.mrf.mxu1  ;;  %v3596_v12 = vadd.f32 %v3488_v56, %v3231_v41  ;;  %v4372_v17 = vld [vmem:[#allocation2 + $0xce] sm:$0xff]  ;;  %v4120_v18 = vpack.c.bf16 %v4092_v13, %v4091_v9  ;;  %4050 = vst [vmem:[#allocation2 + $0xd8] sm:$0xff] %v4009_v36  ;;  %v3232_v34 = vadd.f32 %v3191_v29, %v3126_v61 }
 0x3bd   : > { %4675 = vst [vmem:[#allocation4 + $0x100] sm:$0xff] %v4634_v6  ;;  %v4400_v31 = vpack.c.bf16 %v4372_v17, %v4371_v16  ;;  %v3192_v50 = vld [vmem:[#allocation4 + $0xa0] sm:$0xff]  ;;  %v11895_v6 = vld [vmem:[%s15047_s4 + $0x168] sm:$0xff] }
 0x3be   : > { %v3723_v23 = vadd.f32 %v13231_v22, %v3596_v12  ;;  %4261 = vmatmul.bf16.gmra.mxu1 %v4120_v18  ;;  %5923 = vmatpush.bf16.msrb.mxu2 %v11895_v6  ;;  %v13245_v18 = vpop.permute.xlu0 %3917 }
 0x3bf   : > { %4541 = vmatmul.bf16.gmra.mxu2 %v4400_v31  ;;  %15072 = vst [vmem:[#allocation33_spill] sm:$0xff] %v13245_v18  ;;  %v3193_v31 = vld [vmem:[#allocation4 + $0x68] sm:$0xff] }
 0x3c0   : > { %v3764_v26 = vmax.f32 %v3723_v23, 0.0  ;;  %v4714_v23 = vld [vmem:[#allocation2 + $0x2f] sm:$0xff] }
 0x3c2   : > { %v4502_v33 = vpop.f32.mrf.mxu2  ;;  %v4010_v60 = vmul.f32 %v13234_v28, %v3764_v26 }
 0x3c3   : > { %v3128_v63 = vpop.f32.mrf.mxu3  ;;  %v4635_v20 = vadd.f32 %v4502_v33, %v4222_v21  ;;  %v3491_v7 = vpop.f32.mrf.mxu0  ;;  %v4093_v61 = vld [vmem:[#allocation2 + $0xd5] sm:$0xff] }
 0x3c4   : > { %v4224_v10 = vpop.f32.mrf.mxu1  ;;  %v3597_v24 = vadd.f32 %v3491_v7, %v3232_v34  ;;  %4051 = vst [vmem:[#allocation2 + $0xe0] sm:$0xff] %v4010_v60  ;;  %v3233_v14 = vadd.f32 %v3192_v50, %v3128_v63  ;;  %v4373_v21 = vld [vmem:[#allocation2 + $0xd6] sm:$0xff] }
 0x3c5   : > { %4676 = vst [vmem:[#allocation4 + $0x80] sm:$0xff] %v4635_v20  ;;  %v4713_v20 = vld [vmem:[#allocation2 + $0x27] sm:$0xff] }
 0x3c6   : > { %v3724_v48 = vadd.f32 %v13231_v22, %v3597_v24  ;;  %5205 = vmatmul.bf16.vlgmr.msrb.gmra.mxu0 %v4751_v43  ;;  %v4752_v40 = vpack.c.bf16 %v4714_v23, %v4713_v20  ;;  %v11883_v20 = vld [vmem:[%s15047_s4 + $0x108] sm:$0xff] }
 0x3c7   : > { %5565 = vmatpush.bf16.msrb.mxu1 %v11883_v20 }
 0x3c8   : > { %4848 = vmatmul.bf16.gmra.mxu3 %v4751_v43  ;;  %v3765_v11 = vmax.f32 %v3724_v48, 0.0  ;;  %v13249_v43 = vpop.permute.xlu1 %3922  ;;  %v3194_v48 = vld [vmem:[#allocation4 + $0x130] sm:$0xff] }
 0x3c9   : > { %15073 = vst [vmem:[#allocation34_spill] sm:$0xff] %v13249_v43 }
 0x3ca   : > { %v4504_v51 = vpop.f32.mrf.mxu2  ;;  %v4011_v45 = vmul.f32 %v13238_v32, %v3765_v11 }
 0x3cb   : > { %v3131_v53 = vpop.f32.mrf.mxu3  ;;  %v4636_v54 = vadd.f32 %v4504_v51, %v4224_v10  ;;  %v3493_v58 = vpop.f32.mrf.mxu0  ;;  %v4094_v56 = vld [vmem:[#allocation2 + $0xdd] sm:$0xff] }
 0x3cc   : > { %v4227_v41 = vpop.f32.mrf.mxu1  ;;  %v3598_v36 = vadd.f32 %v3493_v58, %v3233_v14  ;;  %v4374_v9 = vld [vmem:[#allocation2 + $0xde] sm:$0xff]  ;;  %v4121_v12 = vpack.c.bf16 %v4094_v56, %v4093_v61  ;;  %4052 = vst [vmem:[#allocation2 + $0xe8] sm:$0xff] %v4011_v45  ;;  %v3234_v29 = vadd.f32 %v3193_v31, %v3131_v53 }
 0x3cd   : > { %4677 = vst [vmem:[#allocation4 + $0x108] sm:$0xff] %v4636_v54  ;;  %v4401_v13 = vpack.c.bf16 %v4374_v9, %v4373_v21 }
 0x3ce   : > { %v3725_v16 = vadd.f32 %v13231_v22, %v3598_v36  ;;  %4266 = vmatmul.bf16.gmra.mxu1 %v4121_v12 }
 0x3cf   : > { %4546 = vmatmul.bf16.gmra.mxu2 %v4401_v13  ;;  %v13253_v13 = vpop.permute.xlu2 %3927 }
 0x3d0   : > { %v3766_v17 = vmax.f32 %v3725_v16, 0.0  ;;  %15074 = vst [vmem:[#allocation35_spill] sm:$0xff] %v13253_v13  ;;  %v3195_v16 = vld [vmem:[#allocation4 + $0x50] sm:$0xff] }
 0x3d2   : > { %v4507_v26 = vpop.f32.mrf.mxu2  ;;  %v4012_v34 = vmul.f32 %v13245_v18, %v3766_v17  ;;  %v4716_v17 = vld [vmem:[#allocation2 + $0x3f] sm:$0xff] }
 0x3d3   : > { %v3133_v2 = vpop.f32.mrf.mxu3  ;;  %v4637_v33 = vadd.f32 %v4507_v26, %v4227_v41  ;;  %v3496_v63 = vpop.f32.mrf.mxu0  ;;  %v4095_v58 = vld [vmem:[#allocation2 + $0xe5] sm:$0xff] }
 0x3d4   : > { %v4229_v60 = vpop.f32.mrf.mxu1  ;;  %v3599_v7 = vadd.f32 %v3496_v63, %v3234_v29  ;;  %4053 = vst [vmem:[#allocation2 + $0xf0] sm:$0xff] %v4012_v34  ;;  %v3235_v50 = vadd.f32 %v3194_v48, %v3133_v2  ;;  %v4375_v6 = vld [vmem:[#allocation2 + $0xe6] sm:$0xff]  ;;  %v4715_v34 = vld [vmem:[#allocation2 + $0x37] sm:$0xff] }
 0x3d5   : > { %4678 = vst [vmem:[#allocation4 + $0x138] sm:$0xff] %v4637_v33  ;;  %v3196_v48 = vld [vmem:[#allocation4 + $0xe8] sm:$0xff] }
 0x3d6   : > { %v3726_v10 = vadd.f32 %v13231_v22, %v3599_v7  ;;  %5210 = vmatmul.bf16.gmra.mxu0 %v4752_v40  ;;  %v4753_v7 = vpack.c.bf16 %v4716_v17, %v4715_v34  ;;  %v3197_v17 = vld [vmem:[#allocation4] sm:$0xff] }
 0x3d8   : > { %4853 = vmatmul.bf16.gmra.mxu3 %v4752_v40  ;;  %v3767_v24 = vmax.f32 %v3726_v10, 0.0 }
 0x3da   : > { %v4509_v11 = vpop.f32.mrf.mxu2  ;;  %v4013_v53 = vmul.f32 %v13249_v43, %v3767_v24  ;;  %v13260_v24 = vpop.permute.xlu0 %3932 }
 0x3db   : > { %v3136_v51 = vpop.f32.mrf.mxu3  ;;  %v4638_v14 = vadd.f32 %v4509_v11, %v4229_v60  ;;  %v3498_v54 = vpop.f32.mrf.mxu0  ;;  %v4096_v61 = vld [vmem:[#allocation2 + $0xed] sm:$0xff]  ;;  %15075 = vst [vmem:[#allocation36_spill] sm:$0xff] %v13260_v24 }
 0x3dc   : > { %v4232_v45 = vpop.f32.mrf.mxu1  ;;  %v3600_v41 = vadd.f32 %v3498_v54, %v3235_v50  ;;  %v4376_v36 = vld [vmem:[#allocation2 + $0xee] sm:$0xff]  ;;  %v4122_v56 = vpack.c.bf16 %v4096_v61, %v4095_v58  ;;  %4054 = vst [vmem:[#allocation2 + $0xf8] sm:$0xff] %v4013_v53  ;;  %v3236_v23 = vadd.f32 %v3195_v16, %v3136_v51  ;;  %v13264_v16 = vpop.permute.xlu1 %3937 }
 0x3dd   : > { %4679 = vst [vmem:[#allocation4 + $0xf0] sm:$0xff] %v4638_v14  ;;  %v4402_v21 = vpack.c.bf16 %v4376_v36, %v4375_v6 }
 0x3de   : > { %v3727_v9 = vadd.f32 %v13231_v22, %v3600_v41  ;;  %4271 = vmatmul.bf16.gmra.mxu1 %v4122_v56  ;;  %15076 = vst [vmem:[#allocation37_spill] sm:$0xff] %v13264_v16 }
 0x3df   : > { %4551 = vmatmul.bf16.gmra.mxu2 %v4402_v21 }
 0x3e0   : > { %v3768_v12 = vmax.f32 %v3727_v9, 0.0 }
 0x3e2   : > { %v4512_v31 = vpop.f32.mrf.mxu2  ;;  %v4014_v2 = vmul.f32 %v13253_v13, %v3768_v12 }
 0x3e3   : > { %v3138_v26 = vpop.f32.mrf.mxu3  ;;  %v4639_v29 = vadd.f32 %v4512_v31, %v4232_v45  ;;  %v3501_v33 = vpop.f32.mrf.mxu0  ;;  %v4097_v58 = vld [vmem:[#allocation2 + $0xf5] sm:$0xff] }
 0x3e4   : > { %v4234_v63 = vpop.f32.mrf.mxu1  ;;  %v3601_v60 = vadd.f32 %v3501_v33, %v3236_v23  ;;  %4055 = vst [vmem:[#allocation2 + $0x100] sm:$0xff] %v4014_v2  ;;  %v3237_v50 = vadd.f32 %v3196_v48, %v3138_v26  ;;  %v4377_v6 = vld [vmem:[#allocation2 + $0xf6] sm:$0xff]  ;;  %v11894_v48 = vld [vmem:[%s15047_s4 + $0x160] sm:$0xff] }
 0x3e5   : > { %4680 = vst [vmem:[#allocation4 + $0x18] sm:$0xff] %v4639_v29  ;;  %v4718_v31 = vld [vmem:[#allocation2 + $0x4f] sm:$0xff]  ;;  %5924 = vmatpush.bf16.msrb.mxu2 %v11894_v48 }
 0x3e6   : > { %v3728_v40 = vadd.f32 %v13231_v22, %v3601_v60  ;;  %5215 = vmatmul.bf16.gmra.mxu0 %v4753_v7  ;;  %v5822_v27 = vld [vmem:[#allocation2 + $0xf1] sm:$0xff] }
 0x3e8   : > { %4858 = vmatmul.bf16.gmra.mxu3 %v4753_v7  ;;  %v3769_v10 = vmax.f32 %v3728_v40, 0.0 }
 0x3ea   : > { %v4514_v11 = vpop.f32.mrf.mxu2  ;;  %v4015_v53 = vmul.f32 %v13260_v24, %v3769_v10 }
 0x3eb   : > { %v3141_v51 = vpop.f32.mrf.mxu3  ;;  %v4640_v14 = vadd.f32 %v4514_v11, %v4234_v63  ;;  %v3503_v54 = vpop.f32.mrf.mxu0  ;;  %v4098_v61 = vld [vmem:[#allocation2 + $0xfd] sm:$0xff]  ;;  %v4717_v63 = vld [vmem:[#allocation2 + $0x47] sm:$0xff] }
 0x3ec   : > { %v4237_v45 = vpop.f32.mrf.mxu1  ;;  %v3602_v41 = vadd.f32 %v3503_v54, %v3237_v50  ;;  %v4378_v36 = vld [vmem:[#allocation2 + $0xfe] sm:$0xff]  ;;  %v4123_v56 = vpack.c.bf16 %v4098_v61, %v4097_v58  ;;  %4056 = vst [vmem:[#allocation2 + $0x108] sm:$0xff] %v4015_v53  ;;  %v3238_v26 = vadd.f32 %v3197_v17, %v3141_v51  ;;  %v4754_v7 = vpack.c.bf16 %v4718_v31, %v4717_v63  ;;  %v13271_v11 = vpop.permute.xlu2 %3942  ;;  %v3198_v50 = vld [vmem:[#allocation4 + $0x40] sm:$0xff] }
 0x3ed   : > { %4681 = vst [vmem:[#allocation4 + $0xc8] sm:$0xff] %v4640_v14  ;;  %v4403_v21 = vpack.c.bf16 %v4378_v36, %v4377_v6 }
 0x3ee   : > { %v3729_v9 = vadd.f32 %v13231_v22, %v3602_v41  ;;  %4276 = vmatmul.bf16.gmra.mxu1 %v4123_v56  ;;  %15077 = vst [vmem:[#allocation38_spill] sm:$0xff] %v13271_v11 }
 0x3ef   : > { %4556 = vmatmul.bf16.gmra.mxu2 %v4403_v21 }
 0x3f0   : > { %v3770_v12 = vmax.f32 %v3729_v9, 0.0 }
 0x3f2   : > { %v4517_v23 = vpop.f32.mrf.mxu2  ;;  %v4016_v33 = vmul.f32 %v13264_v16, %v3770_v12 }
 0x3f3   : > { %v3143_v29 = vpop.f32.mrf.mxu3  ;;  %v4641_v2 = vadd.f32 %v4517_v23, %v4237_v45  ;;  %v3506_v34 = vpop.f32.mrf.mxu0  ;;  %v4099_v61 = vld [vmem:[#allocation2 + $0x105] sm:$0xff] }
 0x3f4   : > { %v4239_v20 = vpop.f32.mrf.mxu1  ;;  %v3603_v60 = vadd.f32 %v3506_v34, %v3238_v26  ;;  %4057 = vst [vmem:[#allocation2 + $0x110] sm:$0xff] %v4016_v33  ;;  %v3239_v14 = vadd.f32 %v3198_v50, %v3143_v29  ;;  %v4379_v56 = vld [vmem:[#allocation2 + $0x106] sm:$0xff]  ;;  %v13275_v23 = vpop.permute.xlu0 %3947 }
 0x3f5   : > { %4682 = vst [vmem:[#allocation4 + $0x70] sm:$0xff] %v4641_v2  ;;  %v3199_v26 = vld [vmem:[#allocation4 + $0x78] sm:$0xff]  ;;  %v4720_v29 = vld [vmem:[#allocation2 + $0x5f] sm:$0xff] }
 0x3f6   : > { %v3730_v40 = vadd.f32 %v13231_v22, %v3603_v60  ;;  %5220 = vmatmul.bf16.gmra.mxu0 %v4754_v7  ;;  %15078 = vst [vmem:[#allocation39_spill] sm:$0xff] %v13275_v23 }
 0x3f8   : > { %4863 = vmatmul.bf16.gmra.mxu3 %v4754_v7  ;;  %v3771_v10 = vmax.f32 %v3730_v40, 0.0  ;;  %v4719_v7 = vld [vmem:[#allocation2 + $0x57] sm:$0xff] }
 0x3f9   : > { %v4755_v48 = vpack.c.bf16 %v4720_v29, %v4719_v7 }
 0x3fa   : > { %v4519_v51 = vpop.f32.mrf.mxu2  ;;  %v4017_v45 = vmul.f32 %v13271_v11, %v3771_v10 }
 0x3fb   : > { %v3146_v53 = vpop.f32.mrf.mxu3  ;;  %v4642_v54 = vadd.f32 %v4519_v51, %v4239_v20  ;;  %v3508_v58 = vpop.f32.mrf.mxu0  ;;  %v4100_v36 = vld [vmem:[#allocation2 + $0x10d] sm:$0xff] }
 0x3fc   : > { %v4242_v41 = vpop.f32.mrf.mxu1  ;;  %v3604_v6 = vadd.f32 %v3508_v58, %v3239_v14  ;;  %v4380_v21 = vld [vmem:[#allocation2 + $0x10e] sm:$0xff]  ;;  %v4124_v9 = vpack.c.bf16 %v4100_v36, %v4099_v61  ;;  %4058 = vst [vmem:[#allocation2 + $0x118] sm:$0xff] %v4017_v45  ;;  %v3240_v33 = vadd.f32 %v3199_v26, %v3146_v53  ;;  %v13279_v14 = vpop.permute.xlu1 %3952 }
 0x3fd   : > { %4683 = vst [vmem:[#allocation4 + $0x20] sm:$0xff] %v4642_v54  ;;  %v4404_v12 = vpack.c.bf16 %v4380_v21, %v4379_v56  ;;  %v3200_v54 = vld [vmem:[#allocation4 + $0x30] sm:$0xff] }
 0x3fe   : > { %v3731_v17 = vadd.f32 %v13231_v22, %v3604_v6  ;;  %4281 = vmatmul.bf16.gmra.mxu1 %v4124_v9  ;;  %15079 = vst [vmem:[#allocation40_spill] sm:$0xff] %v13279_v14 }
 0x3ff   : > { %4561 = vmatmul.bf16.gmra.mxu2 %v4404_v12 }
 0x400   : > { %v3772_v31 = vmax.f32 %v3731_v17, 0.0 }
 0x402   : > { %v4522_v2 = vpop.f32.mrf.mxu2  ;;  %v4018_v20 = vmul.f32 %v13275_v23, %v3772_v31 }
 0x403   : > { %v3148_v34 = vpop.f32.mrf.mxu3  ;;  %v4643_v63 = vadd.f32 %v4522_v2, %v4242_v41  ;;  %v3511_v60 = vpop.f32.mrf.mxu0  ;;  %v4101_v56 = vld [vmem:[#allocation2 + $0x115] sm:$0xff] }
 0x404   : > { %v4244_v40 = vpop.f32.mrf.mxu1  ;;  %v3605_v10 = vadd.f32 %v3511_v60, %v3240_v33  ;;  %4059 = vst [vmem:[#allocation2 + $0x120] sm:$0xff] %v4018_v20  ;;  %v3241_v45 = vadd.f32 %v3200_v54, %v3148_v34  ;;  %v4381_v12 = vld [vmem:[#allocation2 + $0x116] sm:$0xff]  ;;  %v13283_v33 = vpop.permute.xlu2 %3957  ;;  %v3201_v34 = vld [vmem:[#allocation4 + $0xb8] sm:$0xff] }
 0x405   : > { %4684 = vst [vmem:[#allocation4 + $0x128] sm:$0xff] %v4643_v63  ;;  %v4722_v63 = vld [vmem:[#allocation2 + $0x6f] sm:$0xff]  ;;  %v4743_v43 = vld [vmem:[#allocation2 + $0x117] sm:$0xff] }
 0x406   : > { %v3732_v50 = vadd.f32 %v13231_v22, %v3605_v10  ;;  %5225 = vmatmul.bf16.gmra.mxu0 %v4755_v48  ;;  %15080 = vst [vmem:[#allocation41_spill] sm:$0xff] %v13283_v33 }
 0x408   : > { %4868 = vmatmul.bf16.gmra.mxu3 %v4755_v48  ;;  %v3773_v51 = vmax.f32 %v3732_v50, 0.0  ;;  %v4721_v50 = vld [vmem:[#allocation2 + $0x67] sm:$0xff] }
 0x40a   : > { %v4524_v53 = vpop.f32.mrf.mxu2  ;;  %v4019_v61 = vmul.f32 %v13279_v14, %v3773_v51 }
 0x40b   : > { %v3151_v58 = vpop.f32.mrf.mxu3  ;;  %v4644_v41 = vadd.f32 %v4524_v53, %v4244_v40  ;;  %v3513_v6 = vpop.f32.mrf.mxu0  ;;  %v4102_v9 = vld [vmem:[#allocation2 + $0x11d] sm:$0xff]  ;;  %v4756_v53 = vpack.c.bf16 %v4722_v63, %v4721_v50 }
 0x40c   : > { %v4247_v36 = vpop.f32.mrf.mxu1  ;;  %v3606_v21 = vadd.f32 %v3513_v6, %v3241_v45  ;;  %v4382_v17 = vld [vmem:[#allocation2 + $0x11e] sm:$0xff]  ;;  %v4125_v31 = vpack.c.bf16 %v4102_v9, %v4101_v56  ;;  %4060 = vst [vmem:[#allocation2 + $0x128] sm:$0xff] %v4019_v61  ;;  %v3242_v60 = vadd.f32 %v3201_v34, %v3151_v58  ;;  %v13290_v61 = vpop.permute.xlu0 %3962  ;;  %v3202_v6 = vld [vmem:[#allocation4 + $0x60] sm:$0xff] }
 0x40d   : > { %4685 = vst [vmem:[#allocation4 + $0x110] sm:$0xff] %v4644_v41  ;;  %v4405_v26 = vpack.c.bf16 %v4382_v17, %v4381_v12  ;;  %v11882_v45 = vld [vmem:[%s15047_s4 + $0x100] sm:$0xff]  ;;  %v13300_v50 = vpop.permute.xlu1 %3967 }
 0x40e   : > { %v3733_v29 = vadd.f32 %v13231_v22, %v3606_v21  ;;  %4286 = vmatmul.bf16.gmra.mxu1 %v4125_v31  ;;  %15081 = vst [vmem:[#allocation42_spill] sm:$0xff] %v13290_v61  ;;  %v5827_v8 = vld [vmem:[#allocation2 + $0x119] sm:$0xff] }
 0x40f   : > { %4566 = vmatmul.bf16.gmra.mxu2 %v4405_v26  ;;  %5566 = vmatpush.bf16.msrb.mxu1 %v11882_v45  ;;  %15082 = vst [vmem:[#allocation43_spill] sm:$0xff] %v13300_v50 }
 0x410   : > { %v3774_v2 = vmax.f32 %v3733_v29, 0.0 }
 0x412   : > { %v4527_v20 = vpop.f32.mrf.mxu2  ;;  %v4020_v10 = vmul.f32 %v13283_v33, %v3774_v2 }
 0x413   : > { %v3153_v7 = vpop.f32.mrf.mxu3  ;;  %v4645_v40 = vadd.f32 %v4527_v20, %v4247_v36  ;;  %v3516_v48 = vpop.f32.mrf.mxu0  ;;  %v4103_v31 = vld [vmem:[#allocation2 + $0x125] sm:$0xff] }
 0x414   : > { %v4249_v51 = vpop.f32.mrf.mxu1  ;;  %v3607_v54 = vadd.f32 %v3516_v48, %v3242_v60  ;;  %4061 = vst [vmem:[#allocation2 + $0x130] sm:$0xff] %v4020_v10  ;;  %v3243_v56 = vadd.f32 %v3202_v6, %v3153_v7  ;;  %v4383_v34 = vld [vmem:[#allocation2 + $0x126] sm:$0xff]  ;;  %v11905_v7 = vld [vmem:[%s15047_s4 + $0x1b8] sm:$0xff] }
 0x415   : > { %4686 = vst [vmem:[#allocation4 + $0x8] sm:$0xff] %v4645_v40  ;;  %v11893_v10 = vld [vmem:[%s15047_s4 + $0x158] sm:$0xff]  ;;  %6283 = vmatpush.bf16.msra.mxu3 %v11905_v7 }
 0x416   : > { %v3734_v41 = vadd.f32 %v13231_v22, %v3607_v54  ;;  %5230 = vmatmul.bf16.gmra.mxu0 %v4756_v53  ;;  %5925 = vmatpush.bf16.msrb.mxu2 %v11893_v10  ;;  %v4724_v54 = vld [vmem:[#allocation2 + $0x7f] sm:$0xff] }
 0x418   : > { %4873 = vmatmul.bf16.gmra.mxu3 %v4756_v53  ;;  %v3775_v58 = vmax.f32 %v3734_v41, 0.0 }
 0x41a   : > { %v4529_v36 = vpop.f32.mrf.mxu2  ;;  %v4021_v12 = vmul.f32 %v13290_v61, %v3775_v58  ;;  %v5439_v61 = vld [vmem:[#allocation2 + $0x48] sm:$0xff] }
 0x41b   : > { %v3156_v21 = vpop.f32.mrf.mxu3  ;;  %v4646_v9 = vadd.f32 %v4529_v36, %v4249_v51  ;;  %v3518_v17 = vpop.f32.mrf.mxu0  ;;  %v4104_v2 = vld [vmem:[#allocation2 + $0x12d] sm:$0xff]  ;;  %v3203_v51 = vld [vmem:[#allocation4 + $0x28] sm:$0xff] }
 0x41c   : > { %v3608_v26 = vadd.f32 %v3518_v17, %v3243_v56  ;;  %v4252_v29 = vpop.f32.mrf.mxu1  ;;  %v4384_v63 = vld [vmem:[#allocation2 + $0x12e] sm:$0xff]  ;;  %v4126_v20 = vpack.c.bf16 %v4104_v2, %v4103_v31  ;;  %4062 = vst [vmem:[#allocation2 + $0x138] sm:$0xff] %v4021_v12  ;;  %v3244_v53 = vadd.f32 %v3203_v51, %v3156_v21  ;;  %v4723_v36 = vld [vmem:[#allocation2 + $0x77] sm:$0xff]  ;;  %v13307_v2 = vpop.permute.xlu2 %3972 }
 0x41d   : > { %4687 = vst [vmem:[#allocation4 + $0x98] sm:$0xff] %v4646_v9  ;;  %v4406_v60 = vpack.c.bf16 %v4384_v63, %v4383_v34  ;;  %v4757_v12 = vpack.c.bf16 %v4724_v54, %v4723_v36  ;;  %v11892_v31 = vld [vmem:[%s15047_s4 + $0x150] sm:$0xff]  ;;  %v3205_v63 = vld [vmem:[#allocation4 + $0x58] sm:$0xf] }
 0x41e   : > { %v3735_v40 = vadd.f32 %v13231_v22, %v3608_v26  ;;  %4291 = vmatmul.bf16.gmra.mxu1 %v4126_v20  ;;  %5926 = vmatpush.bf16.msrb.mxu2 %v11892_v31  ;;  %15083 = vst [vmem:[#allocation44_spill] sm:$0xff] %v13307_v2  ;;  %v3204_v34 = vld [vmem:[#allocation4 + $0x140] sm:$0xff] }
 0x41f   : > { %4571 = vmatmul.bf16.gmra.mxu2 %v4406_v60 }
 0x420   : > { %v3776_v48 = vmax.f32 %v3735_v40, 0.0 }
 0x422   : > { %v4532_v41 = vpop.f32.mrf.mxu2  ;;  %v4022_v58 = vmul.f32 %v13300_v50, %v3776_v48 }
 0x423   : > { %v3158_v45 = vpop.f32.mrf.mxu3  ;;  %v3521_v6 = vpop.f32.mrf.mxu0  ;;  %v4647_v56 = vadd.f32 %v4532_v41, %v4252_v29  ;;  %v11891_v29 = vld [vmem:[%s15047_s4 + $0x148] sm:$0xff]  ;;  %v4105_v7 = vld [vmem:[#allocation2 + $0x135] sm:$0xff] }
 0x424   : > { %v3609_v9 = vadd.f32 %v3521_v6, %v3244_v53  ;;  %v4254_v17 = vpop.f32.mrf.mxu1  ;;  %4063 = vst [vmem:[#allocation2 + $0x140] sm:$0xff] %v4022_v58  ;;  %v3245_v20 = vadd.f32 %v3204_v34, %v3158_v45  ;;  %v4385_v41 = vld [vmem:[#allocation2 + $0x136] sm:$0xff]  ;;  %5927 = vmatpush.bf16.msrb.mxu2 %v11891_v29 }
 0x425   : > { %4688 = vst [vmem:[#allocation4 + $0xa8] sm:$0xff] %v4647_v56  ;;  %v11913_v45 = vld [vmem:[%s15047_s4 + $0x1f8] sm:$0xff] }
 0x426   : > { %v3736_v26 = vadd.f32 %v13231_v22, %v3609_v9  ;;  %5235 = vmatmul.bf16.gmra.mxu0 %v4757_v12 }
 0x427   : > { %6645 = vmatpush.bf16.msra.mxu0 %v11913_v45 }
 0x428   : > { %4878 = vmatmul.bf16.gmra.mxu3 %v4757_v12  ;;  %v3777_v21 = vmax.f32 %v3736_v26, 0.0  ;;  %v11890_v12 = vld [vmem:[%s15047_s4 + $0x140] sm:$0xff]  ;;  %v13320_v26 = vpop.permute.xlu0 %3977 }
 0x429   : > { %5928 = vmatpush.bf16.msrb.mxu2 %v11890_v12  ;;  %15084 = vst [vmem:[#allocation45_spill] sm:$0xff] %v13320_v26 }
 0x42a   : > { %v4534_v40 = vpop.f32.mrf.mxu2  ;;  %v4023_v10 = vmul.f32 %v13307_v2, %v3777_v21  ;;  %v4726_v21 = vld [vmem:[#allocation2 + $0x8f] sm:$0xff]  ;;  %v5437_v2 = vld [vmem:[#allocation2 + $0x38] sm:$0xff] }
 0x42b   : > { %v3161_v60 = vpop.f32.mrf.mxu3  ;;  %v3523_v51 = vpop.f32.mrf.mxu0  ;;  %v4648_v54 = vadd.f32 %v4534_v40, %v4254_v17  ;;  %v4106_v53 = vld [vmem:[#allocation2 + $0x13d] sm:$0xff] }
 0x42c   : > { %v3246_v48 = vadd.f32 %v3205_v63, %v3161_v60  ;;  %v4386_v58 = vld [vmem:[#allocation2 + $0x13e] sm:$0xff]  ;;  %v3610_v6 = vadd.f32 %v3523_v51, %v3245_v20  ;;  %v4257_v36 = vpop.f32.mrf.mxu1  ;;  %v4127_v56 = vpack.c.bf16 %v4106_v53, %v4105_v7  ;;  %4064 = vst [vmem:[#allocation2 + $0x148] sm:$0xff] %v4023_v10  ;;  %v4725_v60 = vld [vmem:[#allocation2 + $0x87] sm:$0xff] }
 0x42d   : > { %v4407_v9 = vpack.c.bf16 %v4386_v58, %v4385_v41  ;;  %4689 = vst [vmem:[#allocation4 + $0x90] sm:$0xff] %v4648_v54  ;;  %v4758_v10 = vpack.c.bf16 %v4726_v21, %v4725_v60  ;;  %v11921_v54 = vld [vmem:[%s15047_s4 + $0x238] sm:$0xff]  ;;  %v13327_v21 = vpop.permute.xlu1 %3982 }
 0x42e   : > { %3287 = vst [vmem:[#allocation4 + $0x58] sm:$0xf] %v3246_v48  ;;  %v3737_v17 = vadd.f32 %v13231_v22, %v3610_v6  ;;  %4296 = vmatmul.bf16.gmra.mxu1 %v4127_v56 }
 0x42f   : > { %4576 = vmatmul.bf16.gmra.mxu2 %v4407_v9  ;;  %7007 = vmatpush.bf16.msra.mxu1 %v11921_v54  ;;  %15085 = vst [vmem:[#allocation46_spill] sm:$0xff] %v13327_v21 }
 0x430   : > { %v3778_v31 = vmax.f32 %v3737_v17, 0.0 }
 0x432   : > { %v4537_v29 = vpop.f32.mrf.mxu2  ;;  %v4024_v63 = vmul.f32 %v13320_v26, %v3778_v31 }
 0x433   : > { %v3163_v34 = vpop.f32.mrf.mxu3  ;;  %v3526_v20 = vpop.f32.mrf.mxu0  ;;  %v4649_v40 = vadd.f32 %v4537_v29, %v4257_v36  ;;  %v4107_v58 = vld [vmem:[#allocation2 + $0x145] sm:$0xf] }
 0x434   : > { %v4259_v48 = vpop.f32.mrf.mxu1  ;;  %4065 = vst [vmem:[#allocation2 + $0x150] sm:$0xff] %v4024_v63  ;;  %v4387_v6 = vld [vmem:[#allocation2 + $0x146] sm:$0xf]  ;;  %v4128_v45 = vpack.c.bf16 %v4107_v58, %v4107_v58 }
 0x435   : > { %v3570_v7 = vld [vmem:[#allocation4 + $0x58] sm:$0xf]  ;;  %4690 = vst [vmem:[#allocation4 + $0xe0] sm:$0xff] %v4649_v40  ;;  %v4408_v12 = vpack.c.bf16 %v4387_v6, %v4387_v6  ;;  %v4948_v34 = vld [vmem:[#allocation4 + $0xb0] sm:$0xff] }
 0x436   : > { %v3611_v51 = vadd.f32 %v3570_v7, %v3526_v20  ;;  %5240 = vmatmul.bf16.gmra.mxu0 %v4758_v10  ;;  %v4728_v29 = vld [vmem:[#allocation2 + $0x9f] sm:$0xff] }
 0x438   : > { %3652 = vst [vmem:[#allocation4 + $0x58] sm:$0xf] %v3611_v51  ;;  %4883 = vmatmul.bf16.gmra.mxu3 %v4758_v10  ;;  %v4727_v10 = vld [vmem:[#allocation2 + $0x97] sm:$0xff] }
 0x43a   : > { %v4539_v41 = vpop.f32.mrf.mxu2 }
 0x43b   : > { %v4844_v53 = vpop.f32.mrf.mxu3  ;;  %v3528_v56 = vpop.f32.mrf.mxu0  ;;  %v4650_v36 = vadd.f32 %v4539_v41, %v4259_v48  ;;  %v4759_v41 = vpack.c.bf16 %v4728_v29, %v4727_v10  ;;  %v5433_v29 = vld [vmem:[#allocation2 + $0x18] sm:$0xff]  ;;  %v4730_v10 = vld [vmem:[#allocation2 + $0xaf] sm:$0xff] }
 0x43c   : > { %v4262_v9 = vpop.f32.mrf.mxu1  ;;  %v4989_v20 = vadd.f32 %v4948_v34, %v4844_v53  ;;  %v4949_v53 = vld [vmem:[#allocation4 + $0xd0] sm:$0xff]  ;;  %v5472_v59 = vld [vmem:[#allocation2 + $0x150] sm:$0xff] }
 0x43d   : > { %4691 = vst [vmem:[#allocation4 + $0x88] sm:$0xff] %v4650_v36 }
 0x43e   : > { %4301 = vmatmul.bf16.gmra.mxu1 %v4128_v45  ;;  %v5796_v45 = vld [vmem:[#allocation2 + $0x21] sm:$0xff] }
 0x43f   : > { %v3693_v17 = vld [vmem:[#allocation4 + $0x58] sm:$0xf]  ;;  %4581 = vmatmul.bf16.gmra.mxu2 %v4408_v12 }
 0x440   : > { %v3738_v31 = vadd.f32 %v13231_v22, %v3693_v17  ;;  %v11904_v22 = vld [vmem:[%s15047_s4 + $0x1b0] sm:$0xff] }
 0x441   : > { %6284 = vmatpush.bf16.msra.mxu3 %v11904_v22  ;;  %v4729_v22 = vld [vmem:[#allocation2 + $0xa7] sm:$0xff] }
 0x442   : > { %v3779_v63 = vmax.f32 %v3738_v31, 0.0  ;;  %v4542_v40 = vpop.f32.mrf.mxu2 }
 0x443   : > { %v4846_v60 = vpop.f32.mrf.mxu3  ;;  %v5206_v7 = vpop.f32.mrf.mxu0  ;;  %v4651_v48 = vadd.f32 %v4542_v40, %v4262_v9  ;;  %v5434_v9 = vld [vmem:[#allocation2 + $0x20] sm:$0xff] }
 0x444   : > { %v4025_v51 = vmul.f32 %v13327_v21, %v3779_v63  ;;  %v13330_v54 = vadd.f32 %v5206_v7, %v4989_v20  ;;  %v4264_v58 = vpop.f32.mrf.mxu1  ;;  %v4990_v6 = vadd.f32 %v4949_v53, %v4846_v60  ;;  %v5795_v63 = vld [vmem:[#allocation2 + $0x19] sm:$0xff]  ;;  %v5474_v20 = vpack.c.bf16 %v5434_v9, %v5433_v29  ;;  %v5798_v29 = vld [vmem:[#allocation2 + $0x31] sm:$0xff] }
 0x445   : > { %4692 = vst [vmem:[#allocation4 + $0xc0] sm:$0xff] %v4651_v48  ;;  %v5836_v40 = vpack.c.bf16 %v5796_v45, %v5795_v63  ;;  %v4950_v7 = vld [vmem:[#allocation4 + $0x10] sm:$0xff]  ;;  %v4951_v9 = vld [vmem:[#allocation4 + $0x48] sm:$0xff] }
 0x446   : > { %5245 = vmatmul.bf16.gmra.mxu0 %v4759_v41  ;;  %4066 = vst [vmem:[#allocation2 + $0x158] sm:$0xf] %v4025_v51 }
 0x448   : > { %4888 = vmatmul.bf16.gmra.mxu3 %v4759_v41 }
 0x44a   : > { %v4544_v36 = vpop.f32.mrf.mxu2 }
 0x44b   : > { %v4849_v56 = vpop.f32.mrf.mxu3  ;;  %v5208_v12 = vpop.f32.mrf.mxu0  ;;  %v4652_v17 = vadd.f32 %v4544_v36, %v4264_v58  ;;  %v4760_v58 = vpack.c.bf16 %v4730_v10, %v4729_v22  ;;  %v11912_v36 = vld [vmem:[%s15047_s4 + $0x1f0] sm:$0xff]  ;;  %v4732_v22 = vld [vmem:[#allocation2 + $0xbf] sm:$0xff] }
 0x44c   : > { %v13335_v31 = vadd.f32 %v5208_v12, %v4990_v6  ;;  %v4267_v34 = vpop.f32.mrf.mxu1  ;;  %v4991_v48 = vadd.f32 %v4950_v7, %v4849_v56  ;;  %6646 = vmatpush.bf16.msra.mxu0 %v11912_v36  ;;  %v5435_v7 = vld [vmem:[#allocation2 + $0x28] sm:$0xff] }
 0x44d   : > { %4693 = vst [vmem:[#allocation4 + $0x118] sm:$0xff] %v4652_v17  ;;  %v5436_v17 = vld [vmem:[#allocation2 + $0x30] sm:$0xff] }
 0x44e   : > { %5567 = vmatmul.bf16.vlgmr.msrb.gmra.mxu1 %v5474_v20  ;;  %v5797_v10 = vld [vmem:[#allocation2 + $0x29] sm:$0xff] }
 0x44f   : > { %5929 = vmatmul.bf16.vlgmr.msrb.gmra.mxu2 %v5836_v40 }
 0x452   : > { %v4547_v51 = vpop.f32.mrf.mxu2 }
 0x453   : > { %v4851_v60 = vpop.f32.mrf.mxu3  ;;  %v5211_v41 = vpop.f32.mrf.mxu0  ;;  %v4653_v53 = vadd.f32 %v4547_v51, %v4267_v34  ;;  %v5475_v51 = vpack.c.bf16 %v5436_v17, %v5435_v7  ;;  %v4953_v17 = vld [vmem:[#allocation4 + $0x38] sm:$0xff] }
 0x454   : > { %v13337_v21 = vadd.f32 %v5211_v41, %v4991_v48  ;;  %v4269_v6 = vpop.f32.mrf.mxu1  ;;  %v4992_v45 = vadd.f32 %v4951_v9, %v4851_v60  ;;  %v11920_v48 = vld [vmem:[%s15047_s4 + $0x230] sm:$0xff]  ;;  %v5837_v41 = vpack.c.bf16 %v5798_v29, %v5797_v10  ;;  %v5438_v10 = vld [vmem:[#allocation2 + $0x40] sm:$0xff] }
 0x455   : > { %4694 = vst [vmem:[#allocation4 + $0xd8] sm:$0xff] %v4653_v53  ;;  %7008 = vmatpush.bf16.msra.mxu1 %v11920_v48  ;;  %v4952_v60 = vld [vmem:[#allocation4 + $0x120] sm:$0xff]  ;;  %v5800_v48 = vld [vmem:[#allocation2 + $0x41] sm:$0xff] }
 0x456   : > { %5250 = vmatmul.bf16.gmra.mxu0 %v4760_v58  ;;  %v4731_v9 = vld [vmem:[#allocation2 + $0xb7] sm:$0xff] }
 0x458   : > { %4893 = vmatmul.bf16.gmra.mxu3 %v4760_v58 }
 0x45a   : > { %v4549_v12 = vpop.f32.mrf.mxu2 }
 0x45b   : > { %v4854_v56 = vpop.f32.mrf.mxu3  ;;  %v5213_v63 = vpop.f32.mrf.mxu0  ;;  %v4654_v34 = vadd.f32 %v4549_v12, %v4269_v6 }
 0x45c   : > { %v13342_v20 = vadd.f32 %v5213_v63, %v4992_v45  ;;  %v4272_v40 = vpop.f32.mrf.mxu1  ;;  %v4993_v53 = vadd.f32 %v4952_v60, %v4854_v56  ;;  %v4761_v63 = vpack.c.bf16 %v4732_v22, %v4731_v9  ;;  %v11903_v22 = vld [vmem:[%s15047_s4 + $0x1a8] sm:$0xff] }
 0x45d   : > { %4695 = vst [vmem:[#allocation4 + $0xa0] sm:$0xff] %v4654_v34  ;;  %6285 = vmatpush.bf16.msra.mxu3 %v11903_v22  ;;  %v5802_v22 = vld [vmem:[#allocation2 + $0x51] sm:$0xff] }
 0x45e   : > { %5572 = vmatmul.bf16.gmra.mxu1 %v5475_v51 }
 0x45f   : > { %5934 = vmatmul.bf16.gmra.mxu2 %v5837_v41 }
 0x462   : > { %v4552_v6 = vpop.f32.mrf.mxu2 }
 0x463   : > { %v4856_v58 = vpop.f32.mrf.mxu3  ;;  %v5216_v36 = vpop.f32.mrf.mxu0  ;;  %v4655_v45 = vadd.f32 %v4552_v6, %v4272_v40  ;;  %v5799_v40 = vld [vmem:[#allocation2 + $0x39] sm:$0xff] }
 0x464   : > { %v13347_v12 = vadd.f32 %v5216_v36, %v4993_v53  ;;  %v4274_v26 = vpop.f32.mrf.mxu1  ;;  %v4994_v29 = vadd.f32 %v4953_v17, %v4856_v58  ;;  %v5476_v53 = vpack.c.bf16 %v5438_v10, %v5437_v2  ;;  %v5838_v6 = vpack.c.bf16 %v5800_v48, %v5799_v40  ;;  %v4954_v58 = vld [vmem:[#allocation4 + $0xf8] sm:$0xff]  ;;  %v4955_v2 = vld [vmem:[#allocation4 + $0x100] sm:$0xff] }
 0x465   : > { %4696 = vst [vmem:[#allocation4 + $0x68] sm:$0xff] %v4655_v45  ;;  %v4734_v36 = vld [vmem:[#allocation2 + $0xcf] sm:$0xff]  ;;  %v4733_v17 = vld [vmem:[#allocation2 + $0xc7] sm:$0xff] }
 0x466   : > { %5255 = vmatmul.bf16.gmra.mxu0 %v4761_v63  ;;  %v5440_v40 = vld [vmem:[#allocation2 + $0x50] sm:$0xff] }
 0x468   : > { %4898 = vmatmul.bf16.gmra.mxu3 %v4761_v63 }
 0x46a   : > { %v4554_v7 = vpop.f32.mrf.mxu2 }
 0x46b   : > { %v4859_v34 = vpop.f32.mrf.mxu3  ;;  %v5218_v51 = vpop.f32.mrf.mxu0  ;;  %v4656_v56 = vadd.f32 %v4554_v7, %v4274_v26 }
 0x46c   : > { %v13349_v41 = vadd.f32 %v5218_v51, %v4994_v29  ;;  %v4277_v60 = vpop.f32.mrf.mxu1  ;;  %v4995_v9 = vadd.f32 %v4954_v58, %v4859_v34  ;;  %v4762_v51 = vpack.c.bf16 %v4734_v36, %v4733_v17  ;;  %v11911_v36 = vld [vmem:[%s15047_s4 + $0x1e8] sm:$0xff] }
 0x46d   : > { %4697 = vst [vmem:[#allocation4 + $0x130] sm:$0xff] %v4656_v56  ;;  %6647 = vmatpush.bf16.msra.mxu0 %v11911_v36  ;;  %v5804_v36 = vld [vmem:[#allocation2 + $0x61] sm:$0xff] }
 0x46e   : > { %5577 = vmatmul.bf16.gmra.mxu1 %v5476_v53 }
 0x46f   : > { %5939 = vmatmul.bf16.gmra.mxu2 %v5838_v6 }
 0x472   : > { %v4557_v26 = vpop.f32.mrf.mxu2 }
 0x473   : > { %v4861_v45 = vpop.f32.mrf.mxu3  ;;  %v5221_v63 = vpop.f32.mrf.mxu0  ;;  %v4657_v29 = vadd.f32 %v4557_v26, %v4277_v60  ;;  %v5801_v60 = vld [vmem:[#allocation2 + $0x49] sm:$0xff] }
 0x474   : > { %v13354_v7 = vadd.f32 %v5221_v63, %v4995_v9  ;;  %v4279_v50 = vpop.f32.mrf.mxu1  ;;  %v4996_v10 = vadd.f32 %v4955_v2, %v4861_v45  ;;  %v5477_v9 = vpack.c.bf16 %v5440_v40, %v5439_v61  ;;  %v5839_v26 = vpack.c.bf16 %v5802_v22, %v5801_v60  ;;  %v4956_v45 = vld [vmem:[#allocation4 + $0x80] sm:$0xff]  ;;  %v4736_v63 = vld [vmem:[#allocation2 + $0xdf] sm:$0xff] }
 0x475   : > { %4698 = vst [vmem:[#allocation4 + $0x50] sm:$0xff] %v4657_v29  ;;  %v4735_v2 = vld [vmem:[#allocation2 + $0xd7] sm:$0xff]  ;;  %v5442_v60 = vld [vmem:[#allocation2 + $0x60] sm:$0xff] }
 0x476   : > { %5260 = vmatmul.bf16.gmra.mxu0 %v4762_v51  ;;  %v4957_v61 = vld [vmem:[#allocation4 + $0x108] sm:$0xff] }
 0x478   : > { %4903 = vmatmul.bf16.gmra.mxu3 %v4762_v51 }
 0x47a   : > { %v4559_v56 = vpop.f32.mrf.mxu2 }
 0x47b   : > { %v4864_v48 = vpop.f32.mrf.mxu3  ;;  %v5223_v53 = vpop.f32.mrf.mxu0  ;;  %v4658_v34 = vadd.f32 %v4559_v56, %v4279_v50 }
 0x47c   : > { %v13356_v6 = vadd.f32 %v5223_v53, %v4996_v10  ;;  %v4282_v58 = vpop.f32.mrf.mxu1  ;;  %v4997_v17 = vadd.f32 %v4956_v45, %v4864_v48  ;;  %v4763_v53 = vpack.c.bf16 %v4736_v63, %v4735_v2  ;;  %v5441_v63 = vld [vmem:[#allocation2 + $0x58] sm:$0xff]  ;;  %v4738_v2 = vld [vmem:[#allocation2 + $0xef] sm:$0xff] }
 0x47d   : > { %4699 = vst [vmem:[#allocation4 + $0xe8] sm:$0xff] %v4658_v34 }
 0x47e   : > { %5582 = vmatmul.bf16.gmra.mxu1 %v5477_v9 }
 0x47f   : > { %5944 = vmatmul.bf16.gmra.mxu2 %v5839_v26  ;;  %v11919_v26 = vld [vmem:[%s15047_s4 + $0x228] sm:$0xff] }
 0x480   : > { %7009 = vmatpush.bf16.msra.mxu1 %v11919_v26 }
 0x482   : > { %v4562_v50 = vpop.f32.mrf.mxu2 }
 0x483   : > { %v4866_v29 = vpop.f32.mrf.mxu3  ;;  %v5226_v51 = vpop.f32.mrf.mxu0  ;;  %v4659_v10 = vadd.f32 %v4562_v50, %v4282_v58  ;;  %v5478_v50 = vpack.c.bf16 %v5442_v60, %v5441_v63  ;;  %v4959_v60 = vld [vmem:[#allocation4 + $0xf0] sm:$0xff]  ;;  %v5444_v63 = vld [vmem:[#allocation2 + $0x70] sm:$0xff] }
 0x484   : > { %v13361_v56 = vadd.f32 %v5226_v51, %v4997_v17  ;;  %v4284_v33 = vpop.f32.mrf.mxu1  ;;  %v4998_v40 = vadd.f32 %v4957_v61, %v4866_v29  ;;  %v5803_v17 = vld [vmem:[#allocation2 + $0x59] sm:$0xff]  ;;  %v4958_v29 = vld [vmem:[#allocation4 + $0x138] sm:$0xff] }
 0x485   : > { %4700 = vst [vmem:[#allocation4] sm:$0xff] %v4659_v10  ;;  %v5840_v51 = vpack.c.bf16 %v5804_v36, %v5803_v17  ;;  %v5806_v17 = vld [vmem:[#allocation2 + $0x71] sm:$0xff] }
 0x486   : > { %5265 = vmatmul.bf16.gmra.mxu0 %v4763_v53 }
 0x488   : > { %4908 = vmatmul.bf16.gmra.mxu3 %v4763_v53 }
 0x48a   : > { %v4564_v34 = vpop.f32.mrf.mxu2 }
 0x48b   : > { %v4869_v22 = vpop.f32.mrf.mxu3  ;;  %v5228_v9 = vpop.f32.mrf.mxu0  ;;  %v4660_v48 = vadd.f32 %v4564_v34, %v4284_v33  ;;  %v4737_v34 = vld [vmem:[#allocation2 + $0xe7] sm:$0xff] }
 0x48c   : > { %v13366_v58 = vadd.f32 %v5228_v9, %v4998_v40  ;;  %v4287_v45 = vpop.f32.mrf.mxu1  ;;  %v4999_v10 = vadd.f32 %v4958_v29, %v4869_v22  ;;  %v4764_v40 = vpack.c.bf16 %v4738_v2, %v4737_v34  ;;  %v5443_v2 = vld [vmem:[#allocation2 + $0x68] sm:$0xff] }
 0x48d   : > { %4701 = vst [vmem:[#allocation4 + $0x40] sm:$0xff] %v4660_v48 }
 0x48e   : > { %5587 = vmatmul.bf16.gmra.mxu1 %v5478_v50 }
 0x48f   : > { %5949 = vmatmul.bf16.gmra.mxu2 %v5840_v51  ;;  %v11902_v51 = vld [vmem:[%s15047_s4 + $0x1a0] sm:$0xff] }
 0x490   : > { %6286 = vmatpush.bf16.msra.mxu3 %v11902_v51 }
 0x492   : > { %v4567_v33 = vpop.f32.mrf.mxu2 }
 0x493   : > { %v4871_v53 = vpop.f32.mrf.mxu3  ;;  %v5231_v61 = vpop.f32.mrf.mxu0  ;;  %v4661_v14 = vadd.f32 %v4567_v33, %v4287_v45 }
 0x494   : > { %v13368_v23 = vadd.f32 %v5231_v61, %v4999_v10  ;;  %v4289_v9 = vpop.f32.mrf.mxu1  ;;  %v5000_v36 = vadd.f32 %v4959_v60, %v4871_v53  ;;  %v5805_v10 = vld [vmem:[#allocation2 + $0x69] sm:$0xff]  ;;  %v4740_v61 = vld [vmem:[#allocation2 + $0xff] sm:$0xff] }
 0x495   : > { %4702 = vst [vmem:[#allocation4 + $0x78] sm:$0xff] %v4661_v14  ;;  %v5479_v14 = vpack.c.bf16 %v5444_v63, %v5443_v2  ;;  %v5841_v33 = vpack.c.bf16 %v5806_v17, %v5805_v10  ;;  %v4960_v53 = vld [vmem:[#allocation4 + $0x18] sm:$0xff]  ;;  %v4961_v63 = vld [vmem:[#allocation4 + $0xc8] sm:$0xff]  ;;  %v5446_v2 = vld [vmem:[#allocation2 + $0x80] sm:$0xff] }
 0x496   : > { %5270 = vmatmul.bf16.gmra.mxu0 %v4764_v40  ;;  %v5808_v10 = vld [vmem:[#allocation2 + $0x81] sm:$0xff] }
 0x498   : > { %4913 = vmatmul.bf16.gmra.mxu3 %v4764_v40 }
 0x49a   : > { %v4569_v26 = vpop.f32.mrf.mxu2 }
 0x49b   : > { %v4874_v48 = vpop.f32.mrf.mxu3  ;;  %v5233_v50 = vpop.f32.mrf.mxu0  ;;  %v4662_v22 = vadd.f32 %v4569_v26, %v4289_v9  ;;  %v4739_v26 = vld [vmem:[#allocation2 + $0xf7] sm:$0xff] }
 0x49c   : > { %v13373_v45 = vadd.f32 %v5233_v50, %v5000_v36  ;;  %v4292_v29 = vpop.f32.mrf.mxu1  ;;  %v5001_v34 = vadd.f32 %v4960_v53, %v4874_v48  ;;  %v4765_v36 = vpack.c.bf16 %v4740_v61, %v4739_v26  ;;  %v5445_v61 = vld [vmem:[#allocation2 + $0x78] sm:$0xff] }
 0x49d   : > { %4703 = vst [vmem:[#allocation4 + $0x30] sm:$0xff] %v4662_v22 }
 0x49e   : > { %5592 = vmatmul.bf16.gmra.mxu1 %v5479_v14 }
 0x49f   : > { %5954 = vmatmul.bf16.gmra.mxu2 %v5841_v33  ;;  %v11910_v33 = vld [vmem:[%s15047_s4 + $0x1e0] sm:$0xff] }
 0x4a0   : > { %6648 = vmatpush.bf16.msra.mxu0 %v11910_v33 }
 0x4a2   : > { %v4572_v9 = vpop.f32.mrf.mxu2 }
 0x4a3   : > { %v4876_v40 = vpop.f32.mrf.mxu3  ;;  %v5236_v60 = vpop.f32.mrf.mxu0  ;;  %v4663_v11 = vadd.f32 %v4572_v9, %v4292_v29 }
 0x4a4   : > { %v13375_v16 = vadd.f32 %v5236_v60, %v5001_v34  ;;  %v4294_v50 = vpop.f32.mrf.mxu1  ;;  %v5002_v17 = vadd.f32 %v4961_v63, %v4876_v40  ;;  %v5807_v34 = vld [vmem:[#allocation2 + $0x79] sm:$0xff]  ;;  %v4742_v60 = vld [vmem:[#allocation2 + $0x10f] sm:$0xff] }
 0x4a5   : > { %4704 = vst [vmem:[#allocation4 + $0xb8] sm:$0xff] %v4663_v11  ;;  %v5480_v11 = vpack.c.bf16 %v5446_v2, %v5445_v61  ;;  %v5842_v9 = vpack.c.bf16 %v5808_v10, %v5807_v34  ;;  %v4962_v40 = vld [vmem:[#allocation4 + $0x70] sm:$0xff]  ;;  %v4963_v10 = vld [vmem:[#allocation4 + $0x20] sm:$0xff] }
 0x4a6   : > { %5275 = vmatmul.bf16.gmra.mxu0 %v4765_v36  ;;  %v11918_v2 = vld [vmem:[%s15047_s4 + $0x220] sm:$0xff]  ;;  %v5448_v61 = vld [vmem:[#allocation2 + $0x90] sm:$0xff] }
 0x4a7   : > { %7010 = vmatpush.bf16.msra.mxu1 %v11918_v2  ;;  %v5810_v34 = vld [vmem:[#allocation2 + $0x91] sm:$0xff] }
 0x4a8   : > { %4918 = vmatmul.bf16.gmra.mxu3 %v4765_v36 }
 0x4aa   : > { %v4574_v51 = vpop.f32.mrf.mxu2 }
 0x4ab   : > { %v4879_v22 = vpop.f32.mrf.mxu3  ;;  %v5238_v14 = vpop.f32.mrf.mxu0  ;;  %v4664_v48 = vadd.f32 %v4574_v51, %v4294_v50  ;;  %v4741_v51 = vld [vmem:[#allocation2 + $0x107] sm:$0xff] }
 0x4ac   : > { %v13380_v29 = vadd.f32 %v5238_v14, %v5002_v17  ;;  %v4297_v53 = vpop.f32.mrf.mxu1  ;;  %v5003_v26 = vadd.f32 %v4962_v40, %v4879_v22  ;;  %v4766_v17 = vpack.c.bf16 %v4742_v60, %v4741_v51  ;;  %v5447_v60 = vld [vmem:[#allocation2 + $0x88] sm:$0xff]  ;;  %v4744_v51 = vld [vmem:[#allocation2 + $0x11f] sm:$0xff] }
 0x4ad   : > { %4705 = vst [vmem:[#allocation4 + $0x60] sm:$0xff] %v4664_v48 }
 0x4ae   : > { %5597 = vmatmul.bf16.gmra.mxu1 %v5480_v11 }
 0x4af   : > { %5959 = vmatmul.bf16.gmra.mxu2 %v5842_v9 }
 0x4b2   : > { %v4577_v50 = vpop.f32.mrf.mxu2 }
 0x4b3   : > { %v4881_v36 = vpop.f32.mrf.mxu3  ;;  %v5241_v63 = vpop.f32.mrf.mxu0  ;;  %v4665_v24 = vadd.f32 %v4577_v50, %v4297_v53  ;;  %v5481_v50 = vpack.c.bf16 %v5448_v61, %v5447_v60  ;;  %v5450_v60 = vld [vmem:[#allocation2 + $0xa0] sm:$0xff] }
 0x4b4   : > { %v13382_v13 = vadd.f32 %v5241_v63, %v5003_v26  ;;  %v4299_v14 = vpop.f32.mrf.mxu1  ;;  %v5004_v48 = vadd.f32 %v4963_v10, %v4881_v36  ;;  %v5809_v26 = vld [vmem:[#allocation2 + $0x89] sm:$0xff] }
 0x4b5   : > { %4706 = vst [vmem:[#allocation4 + $0x28] sm:$0xff] %v4665_v24  ;;  %v5843_v63 = vpack.c.bf16 %v5810_v34, %v5809_v26  ;;  %v4964_v24 = vld [vmem:[#allocation4 + $0x128] sm:$0xff]  ;;  %v5812_v26 = vld [vmem:[#allocation2 + $0xa1] sm:$0xff] }
 0x4b6   : > { %5280 = vmatmul.bf16.gmra.mxu0 %v4766_v17 }
 0x4b8   : > { %4923 = vmatmul.bf16.gmra.mxu3 %v4766_v17 }
 0x4ba   : > { %v4579_v33 = vpop.f32.mrf.mxu2 }
 0x4bb   : > { %v4884_v22 = vpop.f32.mrf.mxu3  ;;  %v5243_v11 = vpop.f32.mrf.mxu0  ;;  %v4666_v53 = vadd.f32 %v4579_v33, %v4299_v14  ;;  %v4767_v14 = vpack.c.bf16 %v4744_v51, %v4743_v43  ;;  %v11901_v33 = vld [vmem:[%s15047_s4 + $0x198] sm:$0xff] }
 0x4bc   : > { %v13387_v9 = vadd.f32 %v5243_v11, %v5004_v48  ;;  %v4302_v40 = vpop.f32.mrf.mxu1  ;;  %v5005_v36 = vadd.f32 %v4964_v24, %v4884_v22  ;;  %6287 = vmatpush.bf16.msra.mxu3 %v11901_v33  ;;  %v11929_v22 = vld [vmem:[%s14965_s6 + $0x38] sm:$0xff]  ;;  %v4965_v11 = vld [vmem:[#allocation4 + $0x110] sm:$0xff]  ;;  %v4746_v33 = vld [vmem:[#allocation2 + $0x12f] sm:$0xff] }
 0x4bd   : > { %4707 = vst [vmem:[#allocation4 + $0x140] sm:$0xff] %v4666_v53  ;;  %7578 = vmatpush.bf16.msra.mxu2 %v11929_v22  ;;  %v5449_v51 = vld [vmem:[#allocation2 + $0x98] sm:$0xff] }
 0x4be   : > { %4346 = vst [vmem:[#allocation4 + $0x58] sm:$0xf] %v4302_v40  ;;  %5602 = vmatmul.bf16.gmra.mxu1 %v5481_v50 }
 0x4bf   : > { %5964 = vmatmul.bf16.gmra.mxu2 %v5843_v63 }
 0x4c2   : > { %v4582_v2 = vpop.f32.mrf.mxu2 }
 0x4c3   : > { %v4886_v17 = vpop.f32.mrf.mxu3  ;;  %v5246_v10 = vpop.f32.mrf.mxu0 }
 0x4c4   : > { %v13389_v18 = vadd.f32 %v5246_v10, %v5005_v36  ;;  %v4304_v48 = vpop.f32.mrf.mxu1  ;;  %v5006_v53 = vadd.f32 %v4965_v11, %v4886_v17  ;;  %v5811_v36 = vld [vmem:[#allocation2 + $0x99] sm:$0xff]  ;;  %v4745_v11 = vld [vmem:[#allocation2 + $0x127] sm:$0xff] }
 0x4c5   : > { %v4626_v61 = vld [vmem:[#allocation4 + $0x58] sm:$0xf]  ;;  %v5844_v10 = vpack.c.bf16 %v5812_v26, %v5811_v36  ;;  %v5452_v36 = vld [vmem:[#allocation2 + $0xb0] sm:$0xff] }
 0x4c6   : > { %5285 = vmatmul.bf16.gmra.mxu0 %v4767_v14  ;;  %v4667_v34 = vadd.f32 %v4626_v61, %v4582_v2  ;;  %v5482_v2 = vpack.c.bf16 %v5450_v60, %v5449_v51  ;;  %v11909_v60 = vld [vmem:[%s15047_s4 + $0x1d8] sm:$0xff] }
 0x4c7   : > { %6649 = vmatpush.bf16.msra.mxu0 %v11909_v60  ;;  %v4748_v60 = vld [vmem:[#allocation2 + $0x13f] sm:$0xff] }
 0x4c8   : > { %4928 = vmatmul.bf16.gmra.mxu3 %v4767_v14  ;;  %4708 = vst [vmem:[#allocation4 + $0x58] sm:$0xf] %v4667_v34  ;;  %v4966_v14 = vld [vmem:[#allocation4 + $0x8] sm:$0xff] }
 0x4ca   : > { %v4584_v43 = vpop.f32.mrf.mxu2 }
 0x4cb   : > { %v4889_v40 = vpop.f32.mrf.mxu3  ;;  %v5248_v50 = vpop.f32.mrf.mxu0 }
 0x4cc   : > { %v13397_v63 = vadd.f32 %v5248_v50, %v5006_v53  ;;  %v5568_v24 = vpop.f32.mrf.mxu1  ;;  %v5007_v61 = vadd.f32 %v4966_v14, %v4889_v40  ;;  %v4768_v53 = vpack.c.bf16 %v4746_v33, %v4745_v11 }
 0x4cd   : > { %v5713_v48 = vadd.f32 %v5568_v24, %v13330_v54  ;;  %v4967_v54 = vld [vmem:[#allocation4 + $0x98] sm:$0xff] }
 0x4ce   : > { %5607 = vmatmul.bf16.gmra.mxu1 %v5482_v2  ;;  %v5814_v2 = vld [vmem:[#allocation2 + $0xb1] sm:$0xff] }
 0x4cf   : > { %5969 = vmatmul.bf16.gmra.mxu2 %v5844_v10 }
 0x4d2   : > { %v5930_v34 = vpop.f32.mrf.mxu2 }
 0x4d3   : > { %v4891_v17 = vpop.f32.mrf.mxu3  ;;  %v5251_v22 = vpop.f32.mrf.mxu0  ;;  %v6075_v43 = vadd.f32 %v5930_v34, %v5713_v48  ;;  %v5451_v48 = vld [vmem:[#allocation2 + $0xa8] sm:$0xff] }
 0x4d4   : > { %v13400_v32 = vadd.f32 %v5251_v22, %v5007_v61  ;;  %v5570_v50 = vpop.f32.mrf.mxu1  ;;  %v5008_v26 = vadd.f32 %v4967_v54, %v4891_v17  ;;  %v5813_v34 = vld [vmem:[#allocation2 + $0xa9] sm:$0xff]  ;;  %v5483_v17 = vpack.c.bf16 %v5452_v36, %v5451_v48 }
 0x4d5   : > { %6116 = vst [vmem:[#allocation4 + $0xb0] sm:$0xff] %v6075_v43  ;;  %v5714_v40 = vadd.f32 %v5570_v50, %v13335_v31  ;;  %v11900_v22 = vld [vmem:[%s15047_s4 + $0x190] sm:$0xff]  ;;  %v11917_v31 = vld [vmem:[%s15047_s4 + $0x218] sm:$0xff]  ;;  %v5845_v11 = vpack.c.bf16 %v5814_v2, %v5813_v34  ;;  %v11899_v43 = vld [vmem:[%s15047_s4 + $0x188] sm:$0xff] }
 0x4d6   : > { %5290 = vmatmul.bf16.gmra.mxu0 %v4768_v53  ;;  %6288 = vmatpush.bf16.msra.mxu3 %v11900_v22  ;;  %v11898_v34 = vld [vmem:[%s15047_s4 + $0x180] sm:$0xff] }
 0x4d7   : > { %7011 = vmatpush.bf16.msra.mxu1 %v11917_v31 }
 0x4d8   : > { %4933 = vmatmul.bf16.gmra.mxu3 %v4768_v53  ;;  %v4968_v53 = vld [vmem:[#allocation4 + $0xa8] sm:$0xff] }
 0x4da   : > { %v5932_v51 = vpop.f32.mrf.mxu2  ;;  %6289 = vmatpush.bf16.msra.mxu3 %v11899_v43 }
 0x4db   : > { %v4894_v24 = vpop.f32.mrf.mxu3  ;;  %v5253_v10 = vpop.f32.mrf.mxu0  ;;  %v6076_v14 = vadd.f32 %v5932_v51, %v5714_v40 }
 0x4dc   : > { %v13406_v33 = vadd.f32 %v5253_v10, %v5008_v26  ;;  %v5573_v61 = vpop.f32.mrf.mxu1  ;;  %v5009_v54 = vadd.f32 %v4968_v53, %v4894_v24  ;;  %v4747_v10 = vld [vmem:[#allocation2 + $0x137] sm:$0xff] }
 0x4dd   : > { %6117 = vst [vmem:[#allocation4 + $0xd0] sm:$0xff] %v6076_v14  ;;  %v5715_v50 = vadd.f32 %v5573_v61, %v13337_v21  ;;  %v4769_v14 = vpack.c.bf16 %v4748_v60, %v4747_v10  ;;  %v4969_v21 = vld [vmem:[#allocation4 + $0x90] sm:$0xff] }
 0x4de   : > { %5612 = vmatmul.bf16.gmra.mxu1 %v5483_v17  ;;  %6290 = vmatpush.bf16.msra.mxu3 %v11898_v34  ;;  %v5454_v17 = vld [vmem:[#allocation2 + $0xc0] sm:$0xff]  ;;  %v5110_v34 = vld [vmem:[#allocation2 + $0x14f] sm:$0xff] }
 0x4df   : > { %5974 = vmatmul.bf16.gmra.mxu2 %v5845_v11  ;;  %v5816_v11 = vld [vmem:[#allocation2 + $0xc1] sm:$0xff] }
 0x4e2   : > { %v5935_v26 = vpop.f32.mrf.mxu2 }
 0x4e3   : > { %v4896_v40 = vpop.f32.mrf.mxu3  ;;  %v5256_v51 = vpop.f32.mrf.mxu0  ;;  %v6077_v36 = vadd.f32 %v5935_v26, %v5715_v50  ;;  %v5453_v50 = vld [vmem:[#allocation2 + $0xb8] sm:$0xff] }
 0x4e4   : > { %v13418_v2 = vadd.f32 %v5256_v51, %v5009_v54  ;;  %v5575_v48 = vpop.f32.mrf.mxu1  ;;  %v5010_v61 = vadd.f32 %v4969_v21, %v4896_v40  ;;  %v5815_v26 = vld [vmem:[#allocation2 + $0xb9] sm:$0xff]  ;;  %v11908_v51 = vld [vmem:[%s15047_s4 + $0x1d0] sm:$0xff]  ;;  %v5484_v40 = vpack.c.bf16 %v5454_v17, %v5453_v50  ;;  %v5109_v17 = vld [vmem:[#allocation2 + $0x147] sm:$0xff] }
 0x4e5   : > { %6118 = vst [vmem:[#allocation4 + $0x10] sm:$0xff] %v6077_v36  ;;  %v5716_v24 = vadd.f32 %v5575_v48, %v13342_v20  ;;  %v11928_v20 = vld [vmem:[%s14965_s6 + $0x30] sm:$0xff]  ;;  %v5846_v10 = vpack.c.bf16 %v5816_v11, %v5815_v26  ;;  %6650 = vmatpush.bf16.msra.mxu0 %v11908_v51  ;;  %v11907_v36 = vld [vmem:[%s15047_s4 + $0x1c8] sm:$0xff]  ;;  %v5131_v50 = vpack.c.bf16 %v5110_v34, %v5109_v17  ;;  %v11906_v51 = vld [vmem:[%s15047_s4 + $0x1c0] sm:$0xff] }
 0x4e6   : > { %5295 = vmatmul.bf16.gmra.mxu0 %v4769_v14  ;;  %7579 = vmatpush.bf16.msra.mxu2 %v11928_v20  ;;  %v5817_v17 = vld [vmem:[#allocation2 + $0xc9] sm:$0xff] }
 0x4e8   : > { %4938 = vmatmul.bf16.gmra.mxu3 %v4769_v14  ;;  %v4970_v14 = vld [vmem:[#allocation4 + $0xe0] sm:$0xff] }
 0x4e9   : > { %6651 = vmatpush.bf16.msra.mxu0 %v11907_v36  ;;  %v5456_v36 = vld [vmem:[#allocation2 + $0xd0] sm:$0xff] }
 0x4ea   : > { %v5937_v31 = vpop.f32.mrf.mxu2 }
 0x4eb   : > { %v4899_v22 = vpop.f32.mrf.mxu3  ;;  %v5258_v43 = vpop.f32.mrf.mxu0  ;;  %v6078_v53 = vadd.f32 %v5937_v31, %v5716_v24 }
 0x4ec   : > { %v13424_v60 = vadd.f32 %v5258_v43, %v5010_v61  ;;  %v5578_v54 = vpop.f32.mrf.mxu1  ;;  %v5011_v21 = vadd.f32 %v4970_v14, %v4899_v22  ;;  %v4749_v61 = vld [vmem:[#allocation2 + $0x147] sm:$0xf]  ;;  %v5818_v14 = vld [vmem:[#allocation2 + $0xd1] sm:$0xff] }
 0x4ed   : > { %6119 = vst [vmem:[#allocation4 + $0x48] sm:$0xff] %v6078_v53  ;;  %v5717_v48 = vadd.f32 %v5578_v54, %v13347_v12  ;;  %v4770_v20 = vpack.c.bf16 %v4749_v61, %v4749_v61  ;;  %6652 = vmatpush.bf16.msra.mxu0 %v11906_v51  ;;  %v4971_v12 = vld [vmem:[#allocation4 + $0x88] sm:$0xff] }
 0x4ee   : > { %5617 = vmatmul.bf16.gmra.mxu1 %v5484_v40 }
 0x4ef   : > { %5979 = vmatmul.bf16.gmra.mxu2 %v5846_v10 }
 0x4f2   : > { %v5940_v31 = vpop.f32.mrf.mxu2 }
 0x4f3   : > { %v4901_v24 = vpop.f32.mrf.mxu3  ;;  %v5261_v43 = vpop.f32.mrf.mxu0  ;;  %v6079_v11 = vadd.f32 %v5940_v31, %v5717_v48 }
 0x4f4   : > { %v13436_v53 = vadd.f32 %v5261_v43, %v5011_v21  ;;  %v5580_v26 = vpop.f32.mrf.mxu1  ;;  %v5012_v54 = vadd.f32 %v4971_v12, %v4901_v24  ;;  %v5455_v43 = vld [vmem:[#allocation2 + $0xc8] sm:$0xff] }
 0x4f5   : > { %6120 = vst [vmem:[#allocation4 + $0x120] sm:$0xff] %v6079_v11  ;;  %v5718_v22 = vadd.f32 %v5580_v26, %v13349_v41  ;;  %v5485_v61 = vpack.c.bf16 %v5456_v36, %v5455_v43  ;;  %v13444_v11 = vpack.c.bf16 %v5818_v14, %v5817_v17  ;;  %v4972_v41 = vld [vmem:[#allocation4 + $0xc0] sm:$0xff] }
 0x4f6   : > { %5300 = vmatmul.bf16.gmra.mxu0 %v5131_v50  ;;  %v5111_v50 = vld [vmem:[#allocation2 + $0x157] sm:$0xf] }
 0x4f8   : > { %4943 = vmatmul.bf16.gmra.mxu3 %v4770_v20  ;;  %v6158_v20 = vld [vmem:[#allocation2 + $0x31] sm:$0xff] }
 0x4fa   : > { %v5942_v10 = vpop.f32.mrf.mxu2 }
 0x4fb   : > { %v4904_v40 = vpop.f32.mrf.mxu3  ;;  %v5263_v48 = vpop.f32.mrf.mxu0  ;;  %v6080_v34 = vadd.f32 %v5942_v10, %v5718_v22 }
 0x4fc   : > { %v13442_v21 = vadd.f32 %v5263_v48, %v5012_v54  ;;  %v5583_v31 = vpop.f32.mrf.mxu1  ;;  %v5013_v26 = vadd.f32 %v4972_v41, %v4904_v40  ;;  %v5132_v48 = vpack.c.bf16 %v5111_v50, %v5111_v50  ;;  %v5458_v41 = vld [vmem:[#allocation2 + $0xe0] sm:$0xff] }
 0x4fd   : > { %6121 = vst [vmem:[#allocation4 + $0x38] sm:$0xff] %v6080_v34  ;;  %v5719_v24 = vadd.f32 %v5583_v31, %v13354_v7  ;;  %v6157_v34 = vld [vmem:[#allocation2 + $0x29] sm:$0xff] }
 0x4fe   : > { %5622 = vmatmul.bf16.gmra.mxu1 %v5485_v61  ;;  %v6198_v14 = vpack.c.bf16 %v6158_v20, %v6157_v34  ;;  %v11916_v7 = vld [vmem:[%s15047_s4 + $0x210] sm:$0xff]  ;;  %v4973_v31 = vld [vmem:[#allocation4 + $0x118] sm:$0xff] }
 0x4ff   : > { %5984 = vmatmul.bf16.gmra.mxu2 %v13444_v11  ;;  %7012 = vmatpush.bf16.msra.mxu1 %v11916_v7 }
 0x502   : > { %v5945_v12 = vpop.f32.mrf.mxu2 }
 0x503   : > { %v4906_v51 = vpop.f32.mrf.mxu3  ;;  %v5266_v22 = vpop.f32.mrf.mxu0  ;;  %v6081_v54 = vadd.f32 %v5945_v12, %v5719_v24  ;;  %v5820_v24 = vld [vmem:[#allocation2 + $0xe1] sm:$0xff] }
 0x504   : > { %v13448_v10 = vadd.f32 %v5266_v22, %v5013_v26  ;;  %v5585_v36 = vpop.f32.mrf.mxu1  ;;  %v5014_v43 = vadd.f32 %v4973_v31, %v4906_v51  ;;  %v5457_v22 = vld [vmem:[#allocation2 + $0xd8] sm:$0xff]  ;;  %v6160_v31 = vld [vmem:[#allocation2 + $0x41] sm:$0xff] }
 0x505   : > { %6122 = vst [vmem:[#allocation4 + $0xf8] sm:$0xff] %v6081_v54  ;;  %v5720_v40 = vadd.f32 %v5585_v36, %v13356_v6  ;;  %v5819_v54 = vld [vmem:[#allocation2 + $0xd9] sm:$0xff]  ;;  %v4974_v6 = vld [vmem:[#allocation4 + $0xd8] sm:$0xff] }
 0x506   : > { %5305 = vmatmul.bf16.gmra.mxu0 %v5132_v48  ;;  %v5486_v48 = vpack.c.bf16 %v5458_v41, %v5457_v22  ;;  %v13456_v34 = vpack.c.bf16 %v5820_v24, %v5819_v54  ;;  %v6520_v36 = vld [vmem:[#allocation2 + $0x32] sm:$0xff] }
 0x507   : > { %v4975_v54 = vld [vmem:[#allocation4 + $0xa0] sm:$0xff] }
 0x508   : > { %6291 = vmatmul.bf16.vlgmr.msra.gmra.mxu3 %v6198_v14 }
 0x50a   : > { %v5947_v61 = vpop.f32.mrf.mxu2 }
 0x50b   : > { %v4909_v17 = vpop.f32.mrf.mxu3  ;;  %v5268_v50 = vpop.f32.mrf.mxu0  ;;  %v6082_v26 = vadd.f32 %v5947_v61, %v5720_v40  ;;  %v6519_v61 = vld [vmem:[#allocation2 + $0x2a] sm:$0xff] }
 0x50c   : > { %v13454_v12 = vadd.f32 %v5268_v50, %v5014_v43  ;;  %v5588_v20 = vpop.f32.mrf.mxu1  ;;  %v5015_v14 = vadd.f32 %v4974_v6, %v4909_v17  ;;  %v6560_v41 = vpack.c.bf16 %v6520_v36, %v6519_v61  ;;  %v5460_v6 = vld [vmem:[#allocation2 + $0xf0] sm:$0xff] }
 0x50d   : > { %6123 = vst [vmem:[#allocation4 + $0x100] sm:$0xff] %v6082_v26  ;;  %v5721_v51 = vadd.f32 %v5588_v20, %v13361_v56  ;;  %v6159_v26 = vld [vmem:[#allocation2 + $0x39] sm:$0xff] }
 0x50e   : > { %5627 = vmatmul.bf16.gmra.mxu1 %v5486_v48  ;;  %v6199_v22 = vpack.c.bf16 %v6160_v31, %v6159_v26  ;;  %v5459_v31 = vld [vmem:[#allocation2 + $0xe8] sm:$0xff] }
 0x50f   : > { %5989 = vmatmul.bf16.gmra.mxu2 %v13456_v34 }
 0x512   : > { %v5950_v40 = vpop.f32.mrf.mxu2 }
 0x513   : > { %v4911_v7 = vpop.f32.mrf.mxu3  ;;  %v5271_v43 = vpop.f32.mrf.mxu0  ;;  %v6083_v50 = vadd.f32 %v5950_v40, %v5721_v51  ;;  %v11927_v51 = vld [vmem:[%s14965_s6 + $0x28] sm:$0xff] }
 0x514   : > { %v13460_v28 = vadd.f32 %v5271_v43, %v5015_v14  ;;  %v5590_v24 = vpop.f32.mrf.mxu1  ;;  %v5016_v20 = vadd.f32 %v4975_v54, %v4911_v7  ;;  %v5821_v40 = vld [vmem:[#allocation2 + $0xe9] sm:$0xff]  ;;  %v5487_v43 = vpack.c.bf16 %v5460_v6, %v5459_v31  ;;  %7580 = vmatpush.bf16.msra.mxu2 %v11927_v51  ;;  %v6521_v54 = vld [vmem:[#allocation2 + $0x3a] sm:$0xff] }
 0x515   : > { %6124 = vst [vmem:[#allocation4 + $0x80] sm:$0xff] %v6083_v50  ;;  %v5722_v56 = vadd.f32 %v5590_v24, %v13366_v58  ;;  %v13468_v61 = vpack.c.bf16 %v5822_v27, %v5821_v40  ;;  %v4976_v58 = vld [vmem:[#allocation4 + $0x68] sm:$0xff]  ;;  %v6522_v50 = vld [vmem:[#allocation2 + $0x42] sm:$0xff] }
 0x516   : > { %6653 = vmatmul.bf16.vlgmr.msra.gmra.mxu0 %v6560_v41  ;;  %v6162_v24 = vld [vmem:[#allocation2 + $0x51] sm:$0xff]  ;;  %v6561_v27 = vpack.c.bf16 %v6522_v50, %v6521_v54  ;;  %v4977_v51 = vld [vmem:[#allocation4 + $0x130] sm:$0xff] }
 0x517   : > { %v5462_v40 = vld [vmem:[#allocation2 + $0x100] sm:$0xff]  ;;  %v6524_v54 = vld [vmem:[#allocation2 + $0x52] sm:$0xff] }
 0x518   : > { %6296 = vmatmul.bf16.gmra.mxu3 %v6199_v22  ;;  %v5823_v50 = vld [vmem:[#allocation2 + $0xf9] sm:$0xff] }
 0x51a   : > { %v5952_v48 = vpop.f32.mrf.mxu2 }
 0x51b   : > { %v4914_v17 = vpop.f32.mrf.mxu3  ;;  %v5273_v37 = vpop.f32.mrf.mxu0  ;;  %v6084_v3 = vadd.f32 %v5952_v48, %v5722_v56 }
 0x51c   : > { %v13466_v36 = vadd.f32 %v5273_v37, %v5016_v20  ;;  %v5593_v14 = vpop.f32.mrf.mxu1  ;;  %v5017_v26 = vadd.f32 %v4976_v58, %v4914_v17 }
 0x51d   : > { %6125 = vst [vmem:[#allocation4 + $0x108] sm:$0xff] %v6084_v3  ;;  %v5723_v7 = vadd.f32 %v5593_v14, %v13368_v23  ;;  %v6161_v3 = vld [vmem:[#allocation2 + $0x49] sm:$0xff] }
 0x51e   : > { %5632 = vmatmul.bf16.gmra.mxu1 %v5487_v43  ;;  %v6200_v6 = vpack.c.bf16 %v6162_v24, %v6161_v3  ;;  %v5824_v43 = vld [vmem:[#allocation2 + $0x101] sm:$0xff] }
 0x51f   : > { %5994 = vmatmul.bf16.gmra.mxu2 %v13468_v61 }
 0x522   : > { %v5955_v37 = vpop.f32.mrf.mxu2 }
 0x523   : > { %v4916_v41 = vpop.f32.mrf.mxu3  ;;  %v5276_v22 = vpop.f32.mrf.mxu0  ;;  %v6085_v56 = vadd.f32 %v5955_v37, %v5723_v7  ;;  %v5461_v37 = vld [vmem:[#allocation2 + $0xf8] sm:$0xff] }
 0x524   : > { %v13472_v20 = vadd.f32 %v5276_v22, %v5017_v26  ;;  %v5595_v48 = vpop.f32.mrf.mxu1  ;;  %v5018_v14 = vadd.f32 %v4977_v51, %v4916_v41  ;;  %v5488_v24 = vpack.c.bf16 %v5462_v40, %v5461_v37  ;;  %v13477_v22 = vpack.c.bf16 %v5824_v43, %v5823_v50  ;;  %v6523_v51 = vld [vmem:[#allocation2 + $0x4a] sm:$0xff] }
 0x525   : > { %6126 = vst [vmem:[#allocation4 + $0x138] sm:$0xff] %v6085_v56  ;;  %v5724_v23 = vadd.f32 %v5595_v48, %v13373_v45  ;;  %v4978_v45 = vld [vmem:[#allocation4 + $0x50] sm:$0xff]  ;;  %v6562_v40 = vpack.c.bf16 %v6524_v54, %v6523_v51  ;;  %v5463_v54 = vld [vmem:[#allocation2 + $0x108] sm:$0xff] }
 0x526   : > { %6658 = vmatmul.bf16.gmra.mxu0 %v6561_v27  ;;  %v6164_v27 = vld [vmem:[#allocation2 + $0x61] sm:$0xff]  ;;  %v5825_v51 = vld [vmem:[#allocation2 + $0x109] sm:$0xff] }
 0x528   : > { %6301 = vmatmul.bf16.gmra.mxu3 %v6200_v6 }
 0x52a   : > { %v5957_v31 = vpop.f32.mrf.mxu2 }
 0x52b   : > { %v4919_v17 = vpop.f32.mrf.mxu3  ;;  %v5278_v58 = vpop.f32.mrf.mxu0  ;;  %v6086_v46 = vadd.f32 %v5957_v31, %v5724_v23  ;;  %v6163_v31 = vld [vmem:[#allocation2 + $0x59] sm:$0xff] }
 0x52c   : > { %v13475_v7 = vadd.f32 %v5278_v58, %v5018_v14  ;;  %v5598_v26 = vpop.f32.mrf.mxu1  ;;  %v5019_v56 = vadd.f32 %v4978_v45, %v4919_v17  ;;  %v6201_v58 = vpack.c.bf16 %v6164_v27, %v6163_v31  ;;  %v5826_v45 = vld [vmem:[#allocation2 + $0x111] sm:$0xff] }
 0x52d   : > { %6127 = vst [vmem:[#allocation4 + $0xf0] sm:$0xff] %v6086_v46  ;;  %v5725_v41 = vadd.f32 %v5598_v26, %v13375_v16  ;;  %v11915_v46 = vld [vmem:[%s15047_s4 + $0x208] sm:$0xff]  ;;  %v4979_v16 = vld [vmem:[#allocation4 + $0xe8] sm:$0xff] }
 0x52e   : > { %5637 = vmatmul.bf16.gmra.mxu1 %v5488_v24  ;;  %v5464_v24 = vld [vmem:[#allocation2 + $0x110] sm:$0xff] }
 0x52f   : > { %5999 = vmatmul.bf16.gmra.mxu2 %v13477_v22  ;;  %7013 = vmatpush.bf16.msra.mxu1 %v11915_v46  ;;  %v5489_v27 = vpack.c.bf16 %v5464_v24, %v5463_v54  ;;  %v6526_v46 = vld [vmem:[#allocation2 + $0x62] sm:$0xff] }
 0x532   : > { %v5960_v48 = vpop.f32.mrf.mxu2 }
 0x533   : > { %v4921_v3 = vpop.f32.mrf.mxu3  ;;  %v5281_v6 = vpop.f32.mrf.mxu0  ;;  %v6087_v23 = vadd.f32 %v5960_v48, %v5725_v41 }
 0x534   : > { %v13484_v14 = vadd.f32 %v5281_v6, %v5019_v56  ;;  %v5600_v43 = vpop.f32.mrf.mxu1  ;;  %v5020_v26 = vadd.f32 %v4979_v16, %v4921_v3 }
 0x535   : > { %6128 = vst [vmem:[#allocation4 + $0x18] sm:$0xff] %v6087_v23  ;;  %v5726_v17 = vadd.f32 %v5600_v43, %v13380_v29  ;;  %v13489_v23 = vpack.c.bf16 %v5826_v45, %v5825_v51  ;;  %v4980_v29 = vld [vmem:[#allocation4] sm:$0xff] }
 0x536   : > { %6663 = vmatmul.bf16.gmra.mxu0 %v6562_v40  ;;  %v6166_v43 = vld [vmem:[#allocation2 + $0x71] sm:$0xff] }
 0x538   : > { %6306 = vmatmul.bf16.gmra.mxu3 %v6201_v58 }
 0x53a   : > { %v5962_v50 = vpop.f32.mrf.mxu2 }
 0x53b   : > { %v4924_v37 = vpop.f32.mrf.mxu3  ;;  %v5283_v41 = vpop.f32.mrf.mxu0  ;;  %v6088_v48 = vadd.f32 %v5962_v50, %v5726_v17  ;;  %v6525_v17 = vld [vmem:[#allocation2 + $0x5a] sm:$0xff] }
 0x53c   : > { %v13487_v56 = vadd.f32 %v5283_v41, %v5020_v26  ;;  %v5603_v6 = vpop.f32.mrf.mxu1  ;;  %v5021_v31 = vadd.f32 %v4980_v29, %v4924_v37  ;;  %v6165_v41 = vld [vmem:[#allocation2 + $0x69] sm:$0xff]  ;;  %v6563_v24 = vpack.c.bf16 %v6526_v46, %v6525_v17  ;;  %v5466_v29 = vld [vmem:[#allocation2 + $0x120] sm:$0xff]  ;;  %v5465_v17 = vld [vmem:[#allocation2 + $0x118] sm:$0xff] }
 0x53d   : > { %6129 = vst [vmem:[#allocation4 + $0xc8] sm:$0xff] %v6088_v48  ;;  %v5727_v3 = vadd.f32 %v5603_v6, %v13382_v13  ;;  %v11926_v48 = vld [vmem:[%s14965_s6 + $0x20] sm:$0xff]  ;;  %v6202_v54 = vpack.c.bf16 %v6166_v43, %v6165_v41  ;;  %v4981_v13 = vld [vmem:[#allocation4 + $0x40] sm:$0xff] }
 0x53e   : > { %5642 = vmatmul.bf16.gmra.mxu1 %v5489_v27  ;;  %7581 = vmatpush.bf16.msra.mxu2 %v11926_v48  ;;  %v6168_v48 = vld [vmem:[#allocation2 + $0x81] sm:$0xff] }
 0x53f   : > { %6004 = vmatmul.bf16.gmra.mxu2 %v13489_v23 }
 0x542   : > { %v5965_v58 = vpop.f32.mrf.mxu2 }
 0x543   : > { %v4926_v40 = vpop.f32.mrf.mxu3  ;;  %v5286_v16 = vpop.f32.mrf.mxu0  ;;  %v6089_v26 = vadd.f32 %v5965_v58, %v5727_v3  ;;  %v5828_v3 = vld [vmem:[#allocation2 + $0x121] sm:$0xff] }
 0x544   : > { %v13493_v50 = vadd.f32 %v5286_v16, %v5021_v31  ;;  %v5605_v45 = vpop.f32.mrf.mxu1  ;;  %v5022_v6 = vadd.f32 %v4981_v13, %v4926_v40  ;;  %v13502_v41 = vpack.c.bf16 %v5828_v3, %v5827_v8  ;;  %v6528_v40 = vld [vmem:[#allocation2 + $0x72] sm:$0xff]  ;;  %v4983_v3 = vld [vmem:[#allocation4 + $0x30] sm:$0xff] }
 0x545   : > { %6130 = vst [vmem:[#allocation4 + $0x70] sm:$0xff] %v6089_v26  ;;  %v5728_v37 = vadd.f32 %v5605_v45, %v13387_v9  ;;  %v5490_v26 = vpack.c.bf16 %v5466_v29, %v5465_v17  ;;  %v4982_v9 = vld [vmem:[#allocation4 + $0x78] sm:$0xff] }
 0x546   : > { %6668 = vmatmul.bf16.gmra.mxu0 %v6563_v24 }
 0x548   : > { %6311 = vmatmul.bf16.gmra.mxu3 %v6202_v54 }
 0x54a   : > { %v5967_v27 = vpop.f32.mrf.mxu2 }
 0x54b   : > { %v4929_v51 = vpop.f32.mrf.mxu3  ;;  %v5288_v31 = vpop.f32.mrf.mxu0  ;;  %v6090_v46 = vadd.f32 %v5967_v27, %v5728_v37  ;;  %v6527_v37 = vld [vmem:[#allocation2 + $0x6a] sm:$0xff] }
 0x54c   : > { %v13499_v58 = vadd.f32 %v5288_v31, %v5022_v6  ;;  %v5608_v16 = vpop.f32.mrf.mxu1  ;;  %v5023_v24 = vadd.f32 %v4982_v9, %v4929_v51  ;;  %v6167_v31 = vld [vmem:[#allocation2 + $0x79] sm:$0xff]  ;;  %v5830_v9 = vld [vmem:[#allocation2 + $0x131] sm:$0xff] }
 0x54d   : > { %6131 = vst [vmem:[#allocation4 + $0x20] sm:$0xff] %v6090_v46  ;;  %v5729_v43 = vadd.f32 %v5608_v16, %v13389_v18  ;;  %v6564_v18 = vpack.c.bf16 %v6528_v40, %v6527_v37  ;;  %v6203_v8 = vpack.c.bf16 %v6168_v48, %v6167_v31 }
 0x54e   : > { %5647 = vmatmul.bf16.gmra.mxu1 %v5490_v26  ;;  %v5468_v26 = vld [vmem:[#allocation2 + $0x130] sm:$0xff] }
 0x54f   : > { %6009 = vmatmul.bf16.gmra.mxu2 %v13502_v41 }
 0x552   : > { %v5970_v54 = vpop.f32.mrf.mxu2 }
 0x553   : > { %v4931_v45 = vpop.f32.mrf.mxu3  ;;  %v5291_v13 = vpop.f32.mrf.mxu0  ;;  %v13505_v6 = vadd.f32 %v5970_v54, %v5729_v43  ;;  %v5467_v54 = vld [vmem:[#allocation2 + $0x128] sm:$0xff] }
 0x554   : > { %v13507_v27 = vadd.f32 %v5291_v13, %v5023_v24  ;;  %v5610_v29 = vpop.f32.mrf.mxu1  ;;  %v5024_v16 = vadd.f32 %v4983_v3, %v4931_v45  ;;  %v5829_v13 = vld [vmem:[#allocation2 + $0x129] sm:$0xff]  ;;  %v5491_v48 = vpack.c.bf16 %v5468_v26, %v5467_v54  ;;  %v6529_v3 = vld [vmem:[#allocation2 + $0x7a] sm:$0xff] }
 0x555   : > { %v5730_v46 = vadd.f32 %v5610_v29, %v13397_v63  ;;  %v13513_v37 = vpack.c.bf16 %v5830_v9, %v5829_v13  ;;  %v11914_v63 = vld [vmem:[%s15047_s4 + $0x200] sm:$0xff]  ;;  %v4984_v45 = vld [vmem:[#allocation4 + $0xb8] sm:$0xff]  ;;  %v6170_v29 = vld [vmem:[#allocation2 + $0x91] sm:$0xff] }
 0x556   : > { %6673 = vmatmul.bf16.gmra.mxu0 %v6564_v18  ;;  %7014 = vmatpush.bf16.msra.mxu1 %v11914_v63  ;;  %v4985_v54 = vld [vmem:[#allocation4 + $0x60] sm:$0xff]  ;;  %v5470_v63 = vld [vmem:[#allocation2 + $0x140] sm:$0xff] }
 0x558   : > { %6316 = vmatmul.bf16.gmra.mxu3 %v6203_v8 }
 0x55a   : > { %v5972_v17 = vpop.f32.mrf.mxu2 }
 0x55b   : > { %v4934_v51 = vpop.f32.mrf.mxu3  ;;  %v5293_v49 = vpop.f32.mrf.mxu0  ;;  %v6092_v19 = vadd.f32 %v5972_v17, %v5730_v46 }
 0x55c   : > { %v13510_v43 = vadd.f32 %v5293_v49, %v5024_v16  ;;  %v5613_v24 = vpop.f32.mrf.mxu1  ;;  %v6530_v49 = vld [vmem:[#allocation2 + $0x82] sm:$0xff]  ;;  %v5025_v31 = vadd.f32 %v4984_v45, %v4934_v51 }
 0x55d   : > { %6133 = vst [vmem:[#allocation4 + $0x110] sm:$0xff] %v6092_v19  ;;  %v5731_v40 = vadd.f32 %v5613_v24, %v13400_v32  ;;  %v6169_v16 = vld [vmem:[#allocation2 + $0x89] sm:$0xff]  ;;  %v6565_v17 = vpack.c.bf16 %v6530_v49, %v6529_v3  ;;  %v5832_v45 = vld [vmem:[#allocation2 + $0x141] sm:$0xff] }
 0x55e   : > { %5652 = vmatmul.bf16.gmra.mxu1 %v5491_v48  ;;  %v6204_v9 = vpack.c.bf16 %v6170_v29, %v6169_v16 }
 0x55f   : > { %6014 = vmatmul.bf16.gmra.mxu2 %v13513_v37 }
 0x562   : > { %v5975_v8 = vpop.f32.mrf.mxu2 }
 0x563   : > { %v4936_v18 = vpop.f32.mrf.mxu3  ;;  %v5296_v19 = vpop.f32.mrf.mxu0  ;;  %v13519_v32 = vadd.f32 %v5975_v8, %v5731_v40  ;;  %v5469_v8 = vld [vmem:[#allocation2 + $0x138] sm:$0xff] }
 0x564   : > { %v13521_v46 = vadd.f32 %v5296_v19, %v5025_v31  ;;  %v5615_v26 = vpop.f32.mrf.mxu1  ;;  %v5026_v51 = vadd.f32 %v4985_v54, %v4936_v18  ;;  %v11925_v31 = vld [vmem:[%s14965_s6 + $0x18] sm:$0xff]  ;;  %v5492_v3 = vpack.c.bf16 %v5470_v63, %v5469_v8  ;;  %v6172_v54 = vld [vmem:[#allocation2 + $0xa1] sm:$0xff]  ;;  %v4987_v8 = vld [vmem:[#allocation4 + $0x140] sm:$0xff] }
 0x565   : > { %v13524_v24 = vadd.f32 %v5615_v26, %v13406_v33  ;;  %v5831_v33 = vld [vmem:[#allocation2 + $0x139] sm:$0xff]  ;;  %7582 = vmatpush.bf16.msra.mxu2 %v11925_v31 }
 0x566   : > { %6678 = vmatmul.bf16.gmra.mxu0 %v6565_v17  ;;  %v13534_v16 = vpack.c.bf16 %v5832_v45, %v5831_v33  ;;  %v4986_v18 = vld [vmem:[#allocation4 + $0x28] sm:$0xff] }
 0x567   : > { %v6532_v17 = vld [vmem:[#allocation2 + $0x92] sm:$0xff] }
 0x568   : > { %6321 = vmatmul.bf16.gmra.mxu3 %v6204_v9 }
 0x56a   : > { %v13526_v48 = vpop.f32.mrf.mxu2 }
 0x56b   : > { %v4939_v13 = vpop.f32.mrf.mxu3  ;;  %v5298_v40 = vpop.f32.mrf.mxu0 }
 0x56c   : > { %v13531_v49 = vadd.f32 %v5298_v40, %v5026_v51  ;;  %v5618_v29 = vpop.f32.mrf.mxu1  ;;  %v5027_v26 = vadd.f32 %v4986_v18, %v4939_v13  ;;  %v6531_v40 = vld [vmem:[#allocation2 + $0x8a] sm:$0xff] }
 0x56d   : > { %v5733_v19 = vadd.f32 %v5618_v29, %v13418_v2  ;;  %v6171_v2 = vld [vmem:[#allocation2 + $0x99] sm:$0xff]  ;;  %v6566_v63 = vpack.c.bf16 %v6532_v17, %v6531_v40  ;;  %v5471_v40 = vld [vmem:[#allocation2 + $0x148] sm:$0xff] }
 0x56e   : > { %5657 = vmatmul.bf16.gmra.mxu1 %v5492_v3  ;;  %v6205_v29 = vpack.c.bf16 %v6172_v54, %v6171_v2  ;;  %v4988_v3 = vld [vmem:[#allocation4 + $0x58] sm:$0xf] }
 0x56f   : > { %6019 = vmatmul.bf16.gmra.mxu2 %v13534_v16  ;;  %v5833_v54 = vld [vmem:[#allocation2 + $0x149] sm:$0xff] }
 0x572   : > { %v5980_v1 = vpop.f32.mrf.mxu2 }
 0x573   : > { %v4941_v9 = vpop.f32.mrf.mxu3  ;;  %v5301_v51 = vpop.f32.mrf.mxu0  ;;  %v13537_v42 = vadd.f32 %v5980_v1, %v5733_v19  ;;  %v5834_v1 = vld [vmem:[#allocation2 + $0x151] sm:$0xff] }
 0x574   : > { %v13539_v47 = vadd.f32 %v5301_v51, %v5027_v26  ;;  %v5620_v45 = vpop.f32.mrf.mxu1  ;;  %v5028_v13 = vadd.f32 %v4987_v8, %v4941_v9  ;;  %v13548_v2 = vpack.c.bf16 %v5834_v1, %v5833_v54  ;;  %v5835_v54 = vld [vmem:[#allocation2 + $0x159] sm:$0xf] }
 0x575   : > { %v13542_v31 = vadd.f32 %v5620_v45, %v13424_v60  ;;  %v5493_v60 = vpack.c.bf16 %v5472_v59, %v5471_v40  ;;  %v5473_v40 = vld [vmem:[#allocation2 + $0x158] sm:$0xf] }
 0x576   : > { %6683 = vmatmul.bf16.gmra.mxu0 %v6566_v63  ;;  %v6534_v63 = vld [vmem:[#allocation2 + $0xa2] sm:$0xff] }
 0x578   : > { %6326 = vmatmul.bf16.gmra.mxu3 %v6205_v29  ;;  %v6174_v29 = vld [vmem:[#allocation2 + $0xb1] sm:$0xff] }
 0x579   : > { %v6206_v59 = vpack.c.bf16 %v6174_v29, %v6173_v39 }
 0x57a   : > { %v13544_v18 = vpop.f32.mrf.mxu2 }
 0x57b   : > { %v4944_v33 = vpop.f32.mrf.mxu3  ;;  %v5303_v26 = vpop.f32.mrf.mxu0 }
 0x57c   : > { %v5029_v19 = vadd.f32 %v4988_v3, %v4944_v33  ;;  %v13546_v51 = vadd.f32 %v5303_v26, %v5028_v13  ;;  %v5623_v17 = vpop.f32.mrf.mxu1  ;;  %v6533_v3 = vld [vmem:[#allocation2 + $0x9a] sm:$0xff] }
 0x57d   : > { %v5735_v9 = vadd.f32 %v5623_v17, %v13436_v53  ;;  %v6567_v15 = vpack.c.bf16 %v6534_v63, %v6533_v3  ;;  %v6396_v63 = vld [vmem:[#allocation4 + $0xb0] sm:$0xff] }
 0x57e   : > { %5070 = vst [vmem:[#allocation4 + $0x58] sm:$0xf] %v5029_v19  ;;  %5662 = vmatmul.bf16.gmra.mxu1 %v5493_v60  ;;  %v6176_v3 = vld [vmem:[#allocation2 + $0xc1] sm:$0xff] }
 0x57f   : > { %6024 = vmatmul.bf16.gmra.mxu2 %v13548_v2 }
 0x582   : > { %v5985_v8 = vpop.f32.mrf.mxu2 }
 0x583   : > { %v4946_v45 = vpop.f32.mrf.mxu3  ;;  %v5306_v33 = vpop.f32.mrf.mxu0  ;;  %v6097_v13 = vadd.f32 %v5985_v8, %v5735_v9  ;;  %v5494_v9 = vpack.c.bf16 %v5473_v40, %v5473_v40  ;;  %v5856_v8 = vpack.c.bf16 %v5835_v54, %v5835_v54 }
 0x584   : > { %v5625_v0 = vpop.f32.mrf.mxu1 }
 0x585   : > { %v5350_v26 = vld [vmem:[#allocation4 + $0x58] sm:$0xf]  ;;  %6138 = vst [vmem:[#allocation4 + $0xe0] sm:$0xff] %v6097_v13  ;;  %v5736_v1 = vadd.f32 %v5625_v0, %v13442_v21 }
 0x586   : > { %v5391_v19 = vadd.f32 %v5350_v26, %v5306_v33  ;;  %6688 = vmatmul.bf16.gmra.mxu0 %v6567_v15  ;;  %v6536_v15 = vld [vmem:[#allocation2 + $0xb2] sm:$0xff]  ;;  %v6535_v13 = vld [vmem:[#allocation2 + $0xaa] sm:$0xff] }
 0x588   : > { %5432 = vst [vmem:[#allocation4 + $0x58] sm:$0xf] %v5391_v19  ;;  %6331 = vmatmul.bf16.gmra.mxu3 %v6206_v59  ;;  %v6175_v59 = vld [vmem:[#allocation2 + $0xb9] sm:$0xff] }
 0x589   : > { %v6207_v40 = vpack.c.bf16 %v6176_v3, %v6175_v59 }
 0x58a   : > { %v5987_v17 = vpop.f32.mrf.mxu2 }
 0x58b   : > { %v6292_v53 = vpop.f32.mrf.mxu3  ;;  %v5308_v60 = vpop.f32.mrf.mxu0  ;;  %v6098_v45 = vadd.f32 %v5987_v17, %v5736_v1  ;;  %v6568_v1 = vpack.c.bf16 %v6536_v15, %v6535_v13  ;;  %v6538_v13 = vld [vmem:[#allocation2 + $0xc2] sm:$0xff] }
 0x58c   : > { %v5628_v44 = vpop.f32.mrf.mxu1  ;;  %v6437_v29 = vadd.f32 %v6396_v63, %v6292_v53 }
 0x58d   : > { %6139 = vst [vmem:[#allocation4 + $0x88] sm:$0xff] %v6098_v45  ;;  %v5737_v39 = vadd.f32 %v5628_v44, %v13448_v10  ;;  %v11924_v44 = vld [vmem:[%s14965_s6 + $0x10] sm:$0xff]  ;;  %v6397_v10 = vld [vmem:[#allocation4 + $0xd0] sm:$0xff] }
 0x58e   : > { %5667 = vmatmul.bf16.gmra.mxu1 %v5494_v9  ;;  %7583 = vmatpush.bf16.msra.mxu2 %v11924_v44  ;;  %v6882_v9 = vld [vmem:[#allocation2 + $0x33] sm:$0xff] }
 0x58f   : > { %6029 = vmatmul.bf16.gmra.mxu2 %v5856_v8 }
 0x592   : > { %v5990_v0 = vpop.f32.mrf.mxu2 }
 0x593   : > { %v6294_v33 = vpop.f32.mrf.mxu3  ;;  %v6654_v21 = vpop.f32.mrf.mxu0  ;;  %v6099_v26 = vadd.f32 %v5990_v0, %v5737_v39  ;;  %v6398_v0 = vld [vmem:[#allocation4 + $0x10] sm:$0xff] }
 0x594   : > { %v13554_v19 = vadd.f32 %v6654_v21, %v6437_v29  ;;  %v5630_v17 = vpop.f32.mrf.mxu1  ;;  %v6438_v54 = vadd.f32 %v6397_v10, %v6294_v33  ;;  %v6881_v29 = vld [vmem:[#allocation2 + $0x2b] sm:$0xff] }
 0x595   : > { %6140 = vst [vmem:[#allocation4 + $0xc0] sm:$0xff] %v6099_v26  ;;  %v5738_v53 = vadd.f32 %v5630_v17, %v13454_v12  ;;  %v6922_v3 = vpack.c.bf16 %v6882_v9, %v6881_v29 }
 0x596   : > { %6693 = vmatmul.bf16.gmra.mxu0 %v6568_v1  ;;  %v6537_v1 = vld [vmem:[#allocation2 + $0xba] sm:$0xff] }
 0x597   : > { %v6569_v44 = vpack.c.bf16 %v6538_v13, %v6537_v1 }
 0x598   : > { %6336 = vmatmul.bf16.gmra.mxu3 %v6207_v40 }
 0x59a   : > { %v5992_v45 = vpop.f32.mrf.mxu2 }
 0x59b   : > { %v6297_v60 = vpop.f32.mrf.mxu3  ;;  %v6656_v8 = vpop.f32.mrf.mxu0  ;;  %v6100_v63 = vadd.f32 %v5992_v45, %v5738_v53  ;;  %v6399_v53 = vld [vmem:[#allocation4 + $0x48] sm:$0xff] }
 0x59c   : > { %v13560_v39 = vadd.f32 %v6656_v8, %v6438_v54  ;;  %v5633_v15 = vpop.f32.mrf.mxu1  ;;  %v6439_v26 = vadd.f32 %v6398_v0, %v6297_v60  ;;  %v6884_v60 = vld [vmem:[#allocation2 + $0x43] sm:$0xff] }
 0x59d   : > { %6141 = vst [vmem:[#allocation4 + $0x118] sm:$0xff] %v6100_v63  ;;  %v5739_v21 = vadd.f32 %v5633_v15, %v13460_v28 }
 0x59e   : > { %7015 = vmatmul.bf16.vlgmr.msra.gmra.mxu1 %v6922_v3  ;;  %v6883_v3 = vld [vmem:[#allocation2 + $0x3b] sm:$0xff] }
 0x59f   : > { %v6923_v0 = vpack.c.bf16 %v6884_v60, %v6883_v3  ;;  %v6885_v3 = vld [vmem:[#allocation2 + $0x4b] sm:$0xff] }
 0x5a2   : > { %v5995_v59 = vpop.f32.mrf.mxu2 }
 0x5a3   : > { %v6299_v12 = vpop.f32.mrf.mxu3  ;;  %v6659_v33 = vpop.f32.mrf.mxu0  ;;  %v6101_v17 = vadd.f32 %v5995_v59, %v5739_v21  ;;  %v6400_v21 = vld [vmem:[#allocation4 + $0x120] sm:$0xff] }
 0x5a4   : > { %v13563_v40 = vadd.f32 %v6659_v33, %v6439_v26  ;;  %v5635_v10 = vpop.f32.mrf.mxu1  ;;  %v6440_v45 = vadd.f32 %v6399_v53, %v6299_v12  ;;  %v6539_v33 = vld [vmem:[#allocation2 + $0xca] sm:$0xff] }
 0x5a5   : > { %6142 = vst [vmem:[#allocation4 + $0xd8] sm:$0xff] %v6101_v17  ;;  %v5740_v54 = vadd.f32 %v5635_v10, %v13466_v36  ;;  %v6401_v53 = vld [vmem:[#allocation4 + $0x38] sm:$0xff] }
 0x5a6   : > { %6698 = vmatmul.bf16.gmra.mxu0 %v6569_v44 }
 0x5a8   : > { %6341 = vmatmul.bf16.gmra.mxu3 %v13444_v11  ;;  %v6540_v11 = vld [vmem:[#allocation2 + $0xd2] sm:$0xff] }
 0x5a9   : > { %v6570_v44 = vpack.c.bf16 %v6540_v11, %v6539_v33  ;;  %v11923_v33 = vld [vmem:[%s14965_s6 + $0x8] sm:$0xff] }
 0x5aa   : > { %v5997_v9 = vpop.f32.mrf.mxu2  ;;  %7584 = vmatpush.bf16.msra.mxu2 %v11923_v33 }
 0x5ab   : > { %v6302_v28 = vpop.f32.mrf.mxu3  ;;  %v6661_v8 = vpop.f32.mrf.mxu0  ;;  %v6102_v63 = vadd.f32 %v5997_v9, %v5740_v54 }
 0x5ac   : > { %v13567_v15 = vadd.f32 %v6661_v8, %v6440_v45  ;;  %v5638_v29 = vpop.f32.mrf.mxu1  ;;  %v6441_v26 = vadd.f32 %v6400_v21, %v6302_v28  ;;  %v6886_v28 = vld [vmem:[#allocation2 + $0x53] sm:$0xff]  ;;  %v6402_v21 = vld [vmem:[#allocation4 + $0xf8] sm:$0xff] }
 0x5ad   : > { %6143 = vst [vmem:[#allocation4 + $0xa0] sm:$0xff] %v6102_v63  ;;  %v5741_v13 = vadd.f32 %v5638_v29, %v13472_v20 }
 0x5ae   : > { %7020 = vmatmul.bf16.gmra.mxu1 %v6923_v0  ;;  %v6924_v0 = vpack.c.bf16 %v6886_v28, %v6885_v3  ;;  %v6887_v3 = vld [vmem:[#allocation2 + $0x5b] sm:$0xff] }
 0x5b2   : > { %v6000_v36 = vpop.f32.mrf.mxu2 }
 0x5b3   : > { %v6304_v59 = vpop.f32.mrf.mxu3  ;;  %v6664_v12 = vpop.f32.mrf.mxu0  ;;  %v6103_v1 = vadd.f32 %v6000_v36, %v5741_v13  ;;  %v6541_v36 = vld [vmem:[#allocation2 + $0xda] sm:$0xff] }
 0x5b4   : > { %v13570_v17 = vadd.f32 %v6664_v12, %v6441_v26  ;;  %v5640_v10 = vpop.f32.mrf.mxu1  ;;  %v6442_v45 = vadd.f32 %v6401_v53, %v6304_v59 }
 0x5b5   : > { %6144 = vst [vmem:[#allocation4 + $0x68] sm:$0xff] %v6103_v1  ;;  %v5742_v54 = vadd.f32 %v5640_v10, %v13475_v7 }
 0x5b6   : > { %6703 = vmatmul.bf16.gmra.mxu0 %v6570_v44 }
 0x5b8   : > { %6346 = vmatmul.bf16.gmra.mxu3 %v13456_v34  ;;  %v6542_v34 = vld [vmem:[#allocation2 + $0xe2] sm:$0xff] }
 0x5b9   : > { %v6571_v44 = vpack.c.bf16 %v6542_v34, %v6541_v36 }
 0x5ba   : > { %v6002_v9 = vpop.f32.mrf.mxu2 }
 0x5bb   : > { %v6307_v20 = vpop.f32.mrf.mxu3  ;;  %v6666_v60 = vpop.f32.mrf.mxu0  ;;  %v6104_v8 = vadd.f32 %v6002_v9, %v5742_v54  ;;  %v6888_v9 = vld [vmem:[#allocation2 + $0x63] sm:$0xff] }
 0x5bc   : > { %v13574_v63 = vadd.f32 %v6666_v60, %v6442_v45  ;;  %v5643_v29 = vpop.f32.mrf.mxu1  ;;  %v6443_v11 = vadd.f32 %v6402_v21, %v6307_v20  ;;  %v6404_v21 = vld [vmem:[#allocation4 + $0x80] sm:$0xff] }
 0x5bd   : > { %6145 = vst [vmem:[#allocation4 + $0x130] sm:$0xff] %v6104_v8  ;;  %v5743_v13 = vadd.f32 %v5643_v29, %v13484_v14  ;;  %v6403_v14 = vld [vmem:[#allocation4 + $0x100] sm:$0xff] }
 0x5be   : > { %7025 = vmatmul.bf16.gmra.mxu1 %v6924_v0  ;;  %v6925_v0 = vpack.c.bf16 %v6888_v9, %v6887_v3  ;;  %v6406_v3 = vld [vmem:[#allocation4 + $0x138] sm:$0xff] }
 0x5c2   : > { %v6005_v7 = vpop.f32.mrf.mxu2 }
 0x5c3   : > { %v6309_v26 = vpop.f32.mrf.mxu3  ;;  %v6669_v59 = vpop.f32.mrf.mxu0  ;;  %v6105_v12 = vadd.f32 %v6005_v7, %v5743_v13  ;;  %v6543_v7 = vld [vmem:[#allocation2 + $0xea] sm:$0xff] }
 0x5c4   : > { %v13580_v1 = vadd.f32 %v6669_v59, %v6443_v11  ;;  %v5645_v10 = vpop.f32.mrf.mxu1  ;;  %v6444_v54 = vadd.f32 %v6403_v14, %v6309_v26 }
 0x5c5   : > { %6146 = vst [vmem:[#allocation4 + $0x50] sm:$0xff] %v6105_v12  ;;  %v5744_v53 = vadd.f32 %v5645_v10, %v13487_v56 }
 0x5c6   : > { %6708 = vmatmul.bf16.gmra.mxu0 %v6571_v44  ;;  %v6405_v44 = vld [vmem:[#allocation4 + $0x108] sm:$0xff] }
 0x5c8   : > { %6351 = vmatmul.bf16.gmra.mxu3 %v13468_v61  ;;  %v6544_v61 = vld [vmem:[#allocation2 + $0xf2] sm:$0xff] }
 0x5c9   : > { %v6572_v12 = vpack.c.bf16 %v6544_v61, %v6543_v7 }
 0x5ca   : > { %v6007_v20 = vpop.f32.mrf.mxu2 }
 0x5cb   : > { %v6312_v45 = vpop.f32.mrf.mxu3  ;;  %v6671_v28 = vpop.f32.mrf.mxu0  ;;  %v6106_v60 = vadd.f32 %v6007_v20, %v5744_v53 }
 0x5cc   : > { %v13584_v8 = vadd.f32 %v6671_v28, %v6444_v54  ;;  %v5648_v29 = vpop.f32.mrf.mxu1  ;;  %v6445_v34 = vadd.f32 %v6404_v21, %v6312_v45  ;;  %v6890_v54 = vld [vmem:[#allocation2 + $0x73] sm:$0xff] }
 0x5cd   : > { %6147 = vst [vmem:[#allocation4 + $0xe8] sm:$0xff] %v6106_v60  ;;  %v5745_v13 = vadd.f32 %v5648_v29, %v13493_v50  ;;  %v6889_v60 = vld [vmem:[#allocation2 + $0x6b] sm:$0xff] }
 0x5ce   : > { %7030 = vmatmul.bf16.gmra.mxu1 %v6925_v0  ;;  %v6926_v29 = vpack.c.bf16 %v6890_v54, %v6889_v60  ;;  %v6548_v60 = vld [vmem:[#allocation2 + $0x112] sm:$0xff] }
 0x5d2   : > { %v6010_v56 = vpop.f32.mrf.mxu2 }
 0x5d3   : > { %v6314_v11 = vpop.f32.mrf.mxu3  ;;  %v6674_v26 = vpop.f32.mrf.mxu0  ;;  %v6107_v59 = vadd.f32 %v6010_v56, %v5745_v13 }
 0x5d4   : > { %v13587_v36 = vadd.f32 %v6674_v26, %v6445_v34  ;;  %v5650_v33 = vpop.f32.mrf.mxu1  ;;  %v6446_v14 = vadd.f32 %v6405_v44, %v6314_v11  ;;  %v6545_v34 = vld [vmem:[#allocation2 + $0xfa] sm:$0xff] }
 0x5d5   : > { %6148 = vst [vmem:[#allocation4] sm:$0xff] %v6107_v59  ;;  %v5746_v10 = vadd.f32 %v5650_v33, %v13499_v58  ;;  %v6407_v59 = vld [vmem:[#allocation4 + $0xf0] sm:$0xff] }
 0x5d6   : > { %6713 = vmatmul.bf16.gmra.mxu0 %v6572_v12 }
 0x5d8   : > { %6356 = vmatmul.bf16.gmra.mxu3 %v13477_v22  ;;  %v6546_v22 = vld [vmem:[#allocation2 + $0x102] sm:$0xff] }
 0x5d9   : > { %v6573_v26 = vpack.c.bf16 %v6546_v22, %v6545_v34 }
 0x5da   : > { %v6012_v53 = vpop.f32.mrf.mxu2 }
 0x5db   : > { %v6317_v50 = vpop.f32.mrf.mxu3  ;;  %v6676_v45 = vpop.f32.mrf.mxu0  ;;  %v6108_v20 = vadd.f32 %v6012_v53, %v5746_v10  ;;  %v6892_v10 = vld [vmem:[#allocation2 + $0x83] sm:$0xff] }
 0x5dc   : > { %v13591_v9 = vadd.f32 %v6676_v45, %v6446_v14  ;;  %v5653_v28 = vpop.f32.mrf.mxu1  ;;  %v6447_v21 = vadd.f32 %v6406_v3, %v6317_v50  ;;  %v6891_v45 = vld [vmem:[#allocation2 + $0x7b] sm:$0xff] }
 0x5dd   : > { %6149 = vst [vmem:[#allocation4 + $0x40] sm:$0xff] %v6108_v20  ;;  %v5747_v0 = vadd.f32 %v5653_v28, %v13507_v27  ;;  %v6927_v20 = vpack.c.bf16 %v6892_v10, %v6891_v45  ;;  %v11922_v28 = vld [vmem:[%s14965_s6] sm:$0xff] }
 0x5de   : > { %7035 = vmatmul.bf16.gmra.mxu1 %v6926_v29  ;;  %7585 = vmatpush.bf16.msra.mxu2 %v11922_v28  ;;  %v7453_v45 = vld [vmem:[#allocation3 + $0xd] sm:$0xff] }
 0x5df   : > { %v6410_v28 = vld [vmem:[#allocation4 + $0x70] sm:$0xff] }
 0x5e2   : > { %v6015_v58 = vpop.f32.mrf.mxu2 }
 0x5e3   : > { %v6319_v13 = vpop.f32.mrf.mxu3  ;;  %v6679_v61 = vpop.f32.mrf.mxu0  ;;  %v6109_v11 = vadd.f32 %v6015_v58, %v5747_v0 }
 0x5e4   : > { %v13594_v56 = vadd.f32 %v6679_v61, %v6447_v21  ;;  %v5655_v7 = vpop.f32.mrf.mxu1  ;;  %v6448_v33 = vadd.f32 %v6407_v59, %v6319_v13  ;;  %v6547_v21 = vld [vmem:[#allocation2 + $0x10a] sm:$0xff] }
 0x5e5   : > { %6150 = vst [vmem:[#allocation4 + $0x78] sm:$0xff] %v6109_v11  ;;  %v5748_v12 = vadd.f32 %v5655_v7, %v13510_v43  ;;  %v6574_v61 = vpack.c.bf16 %v6548_v60, %v6547_v21  ;;  %v11937_v11 = vld [vmem:[%s14965_s6 + $0x78] sm:$0xff] }
 0x5e6   : > { %6718 = vmatmul.bf16.gmra.mxu0 %v6573_v26  ;;  %7858 = vmatpush.bf16.msrb.mxu3 %v11937_v11 }
 0x5e8   : > { %6361 = vmatmul.bf16.gmra.mxu3 %v13489_v23  ;;  %v6408_v23 = vld [vmem:[#allocation4 + $0x18] sm:$0xff] }
 0x5ea   : > { %v6017_v44 = vpop.f32.mrf.mxu2 }
 0x5eb   : > { %v6322_v27 = vpop.f32.mrf.mxu3  ;;  %v6681_v14 = vpop.f32.mrf.mxu0  ;;  %v6110_v50 = vadd.f32 %v6017_v44, %v5748_v12 }
 0x5ec   : > { %v13598_v53 = vadd.f32 %v6681_v14, %v6448_v33  ;;  %v5658_v54 = vpop.f32.mrf.mxu1  ;;  %v6449_v29 = vadd.f32 %v6408_v23, %v6322_v27  ;;  %v6894_v33 = vld [vmem:[#allocation2 + $0x93] sm:$0xff]  ;;  %v6550_v23 = vld [vmem:[#allocation2 + $0x122] sm:$0xff] }
 0x5ed   : > { %6151 = vst [vmem:[#allocation4 + $0x30] sm:$0xff] %v6110_v50  ;;  %v5749_v43 = vadd.f32 %v5658_v54, %v13521_v46  ;;  %v6409_v46 = vld [vmem:[#allocation4 + $0xc8] sm:$0xff]  ;;  %v6893_v50 = vld [vmem:[#allocation2 + $0x8b] sm:$0xff] }
 0x5ee   : > { %7040 = vmatmul.bf16.gmra.mxu1 %v6927_v20  ;;  %v7452_v54 = vld [vmem:[#allocation3 + $0x5] sm:$0xff] }
 0x5ef   : > { %v7493_v20 = vpack.c.bf16 %v7453_v45, %v7452_v54 }
 0x5f1   : > { %7586 = vmatmul.bf16.vlgmr.msra.gmra.mxu2 %v7493_v20 }
 0x5f2   : > { %v6020_v0 = vpop.f32.mrf.mxu2 }
 0x5f3   : > { %v6324_v3 = vpop.f32.mrf.mxu3  ;;  %v6684_v22 = vpop.f32.mrf.mxu0  ;;  %v6111_v13 = vadd.f32 %v6020_v0, %v5749_v43  ;;  %v6549_v0 = vld [vmem:[#allocation2 + $0x11a] sm:$0xff] }
 0x5f4   : > { %v13604_v58 = vadd.f32 %v6684_v22, %v6449_v29  ;;  %v5660_v34 = vpop.f32.mrf.mxu1  ;;  %v6450_v7 = vadd.f32 %v6409_v46, %v6324_v3 }
 0x5f5   : > { %6152 = vst [vmem:[#allocation4 + $0xb8] sm:$0xff] %v6111_v13  ;;  %v5750_v26 = vadd.f32 %v5660_v34, %v13531_v49  ;;  %v6575_v13 = vpack.c.bf16 %v6550_v23, %v6549_v0  ;;  %v6411_v34 = vld [vmem:[#allocation4 + $0x20] sm:$0xff]  ;;  %v11961_v0 = vld [vmem:[%s14965_s6 + $0x138] sm:$0xff] }
 0x5f6   : > { %6723 = vmatmul.bf16.gmra.mxu0 %v6574_v61  ;;  %8944 = vmatpush.bf16.msrb.mxu2 %v11961_v0  ;;  %v6900_v0 = vld [vmem:[#allocation2 + $0xc3] sm:$0xff] }
 0x5f8   : > { %6366 = vmatmul.bf16.gmra.mxu3 %v13502_v41  ;;  %v6928_v41 = vpack.c.bf16 %v6894_v33, %v6893_v50  ;;  %v5712_v50 = vld [vmem:[#allocation4 + $0x58] sm:$0xf] }
 0x5fa   : > { %v6022_v12 = vpop.f32.mrf.mxu2 }
 0x5fb   : > { %v6327_v59 = vpop.f32.mrf.mxu3  ;;  %v6686_v27 = vpop.f32.mrf.mxu0  ;;  %v6112_v44 = vadd.f32 %v6022_v12, %v5750_v26 }
 0x5fc   : > { %v13611_v10 = vadd.f32 %v6686_v27, %v6450_v7  ;;  %v5663_v14 = vpop.f32.mrf.mxu1  ;;  %v6451_v43 = vadd.f32 %v6410_v28, %v6327_v59  ;;  %v6896_v59 = vld [vmem:[#allocation2 + $0xa3] sm:$0xff] }
 0x5fd   : > { %6153 = vst [vmem:[#allocation4 + $0x60] sm:$0xff] %v6112_v44  ;;  %v5751_v49 = vadd.f32 %v5663_v14, %v13539_v47  ;;  %v11945_v47 = vld [vmem:[%s14965_s6 + $0xb8] sm:$0xff] }
 0x5fe   : > { %7045 = vmatmul.bf16.gmra.mxu1 %v6928_v41  ;;  %8220 = vmatpush.bf16.msrb.mxu0 %v11945_v47 }
 0x602   : > { %v6025_v29 = vpop.f32.mrf.mxu2 }
 0x603   : > { %v6329_v60 = vpop.f32.mrf.mxu3  ;;  %v6689_v3 = vpop.f32.mrf.mxu0  ;;  %v6113_v22 = vadd.f32 %v6025_v29, %v5751_v49  ;;  %v6551_v49 = vld [vmem:[#allocation2 + $0x12a] sm:$0xff] }
 0x604   : > { %v13614_v21 = vadd.f32 %v6689_v3, %v6451_v43  ;;  %v5665_v61 = vpop.f32.mrf.mxu1  ;;  %v6452_v46 = vadd.f32 %v6411_v34, %v6329_v60  ;;  %v6898_v34 = vld [vmem:[#allocation2 + $0xb3] sm:$0xff] }
 0x605   : > { %6154 = vst [vmem:[#allocation4 + $0x28] sm:$0xff] %v6113_v22  ;;  %v5752_v11 = vadd.f32 %v5665_v61, %v13546_v51  ;;  %v6552_v51 = vld [vmem:[#allocation2 + $0x132] sm:$0xff]  ;;  %v6413_v22 = vld [vmem:[#allocation4 + $0x110] sm:$0xff] }
 0x606   : > { %6728 = vmatmul.bf16.gmra.mxu0 %v6575_v13  ;;  %v6576_v43 = vpack.c.bf16 %v6552_v51, %v6551_v49 }
 0x608   : > { %6371 = vmatmul.bf16.gmra.mxu3 %v13513_v37  ;;  %v6895_v37 = vld [vmem:[#allocation2 + $0x9b] sm:$0xff] }
 0x609   : > { %v6929_v54 = vpack.c.bf16 %v6896_v59, %v6895_v37 }
 0x60a   : > { %v6027_v7 = vpop.f32.mrf.mxu2 }
 0x60b   : > { %v6332_v26 = vpop.f32.mrf.mxu3  ;;  %v6691_v33 = vpop.f32.mrf.mxu0  ;;  %v6114_v27 = vadd.f32 %v6027_v7, %v5752_v11  ;;  %v6897_v7 = vld [vmem:[#allocation2 + $0xab] sm:$0xff] }
 0x60c   : > { %v6453_v12 = vadd.f32 %v6332_v26, %v13505_v6  ;;  %v6814_v44 = vadd.f32 %v6691_v33, %v6452_v46  ;;  %v5668_v14 = vpop.f32.mrf.mxu1  ;;  %v11953_v6 = vld [vmem:[%s14965_s6 + $0xf8] sm:$0xff]  ;;  %v13634_v46 = vld [vmem:[%s14964_s5] ss:$0 sm:$0xff]  ;;  %v11936_v33 = vld [vmem:[%s14965_s6 + $0x70] sm:$0xff] }
 0x60d   : > { %6155 = vst [vmem:[#allocation4 + $0x140] sm:$0xff] %v6114_v27  ;;  %v5753_v41 = vadd.f32 %v5712_v50, %v5668_v14  ;;  %8582 = vmatpush.bf16.msrb.mxu1 %v11953_v6  ;;  %7859 = vmatpush.bf16.msrb.mxu3 %v11936_v33  ;;  %v6554_v50 = vld [vmem:[#allocation2 + $0x142] sm:$0xff] }
 0x60e   : > { %6855 = vst [vmem:[#allocation4 + $0x20] sm:$0xff] %v6814_v44  ;;  %7050 = vmatmul.bf16.gmra.mxu1 %v6929_v54  ;;  %v11935_v44 = vld [vmem:[%s14965_s6 + $0x68] sm:$0xff]  ;;  %v6553_v54 = vld [vmem:[#allocation2 + $0x13a] sm:$0xff] }
 0x60f   : > { %5794 = vst [vmem:[#allocation4 + $0x58] sm:$0xf] %v5753_v41  ;;  %v11934_v6 = vld [vmem:[%s14965_s6 + $0x60] sm:$0xff] }
 0x611   : > { %7860 = vmatpush.bf16.msrb.mxu3 %v11935_v44  ;;  %v6196_v44 = vld [vmem:[#allocation2 + $0x161] sm:$0xff] }
 0x612   : > { %v6030_v20 = vpop.f32.mrf.mxu2 }
 0x613   : > { %v6334_v45 = vpop.f32.mrf.mxu3  ;;  %v6694_v28 = vpop.f32.mrf.mxu0 }
 0x614   : > { %v13625_v23 = vadd.f32 %v6694_v28, %v6453_v12  ;;  %v5670_v60 = vpop.f32.mrf.mxu1  ;;  %v6454_v13 = vadd.f32 %v6413_v22, %v6334_v45  ;;  %v6930_v12 = vpack.c.bf16 %v6898_v34, %v6897_v7 }
 0x615   : > { %7861 = vmatpush.bf16.msrb.mxu3 %v11934_v6  ;;  %v11933_v60 = vld [vmem:[%s14965_s6 + $0x58] sm:$0xff] }
 0x616   : > { %6733 = vmatmul.bf16.gmra.mxu0 %v6576_v43  ;;  %v6074_v29 = vld [vmem:[#allocation4 + $0x58] sm:$0xf]  ;;  %v6094_v43 = vadd.f32 %v13526_v48, %v13524_v24  ;;  %v11932_v24 = vld [vmem:[%s14965_s6 + $0x50] sm:$0xff] }
 0x617   : > { %v6115_v3 = vadd.f32 %v6074_v29, %v6030_v20  ;;  %v6577_v20 = vpack.c.bf16 %v6554_v50, %v6553_v54  ;;  %v11944_v48 = vld [vmem:[%s14965_s6 + $0xb0] sm:$0xff] }
 0x618   : > { %6376 = vmatmul.bf16.gmra.mxu3 %v13534_v16  ;;  %8221 = vmatpush.bf16.msrb.mxu0 %v11944_v48  ;;  %v6555_v50 = vld [vmem:[#allocation2 + $0x14a] sm:$0xff] }
 0x619   : > { %6156 = vst [vmem:[#allocation4 + $0x58] sm:$0xf] %v6115_v3  ;;  %7862 = vmatpush.bf16.msrb.mxu3 %v11933_v60  ;;  %v11941_v60 = vld [vmem:[%s14965_s6 + $0x98] sm:$0xff]  ;;  %v6197_v48 = vld [vmem:[#allocation2 + $0x169] sm:$0xf] }
 0x61a   : > { %v6032_v47 = vpop.f32.mrf.mxu2 }
 0x61b   : > { %v6337_v61 = vpop.f32.mrf.mxu3  ;;  %v6696_v11 = vpop.f32.mrf.mxu0 }
 0x61c   : > { %v6816_v26 = vadd.f32 %v6696_v11, %v6454_v13  ;;  %v7016_v16 = vpop.f32.mrf.mxu1  ;;  %v6455_v37 = vadd.f32 %v6337_v61, %v13519_v32 }
 0x61d   : > { %v7161_v59 = vadd.f32 %v7016_v16, %v13554_v19  ;;  %v11943_v16 = vld [vmem:[%s14965_s6 + $0xa8] sm:$0xff]  ;;  %7863 = vmatpush.bf16.msrb.mxu3 %v11932_v24 }
 0x61e   : > { %6857 = vst [vmem:[#allocation4 + $0x110] sm:$0xff] %v6816_v26  ;;  %7055 = vmatmul.bf16.gmra.mxu1 %v6930_v12  ;;  %8222 = vmatpush.bf16.msrb.mxu0 %v11943_v16  ;;  %v6418_v16 = vld [vmem:[#allocation4 + $0xe0] sm:$0xff] }
 0x61f   : > { %v7288_v27 = vadd.f32 %v13634_v46, %v7161_v59  ;;  %v6556_v59 = vld [vmem:[#allocation2 + $0x152] sm:$0xff] }
 0x620   : > { %v6578_v54 = vpack.c.bf16 %v6556_v59, %v6555_v50 }
 0x621   : > { %v7329_v14 = vmax.f32 %v7288_v27, 0.0  ;;  %v6195_v27 = vld [vmem:[#allocation2 + $0x159] sm:$0xff] }
 0x623   : > { %v6339_v41 = vpop.f32.mrf.mxu3  ;;  %v6699_v19 = vpop.f32.mrf.mxu0  ;;  %v7370_v51 = vmul.f32 %v7329_v14, %v12998_v5 }
 0x624   : > { %v6817_v45 = vadd.f32 %v6699_v19, %v6455_v37  ;;  %v7018_v28 = vpop.f32.mrf.mxu1  ;;  %v6456_v29 = vadd.f32 %v6339_v41, %v6094_v43  ;;  %v6096_v43 = vadd.f32 %v13544_v18, %v13542_v31  ;;  %v11940_v31 = vld [vmem:[%s14965_s6 + $0x90] sm:$0xff] }
 0x625   : > { %v7162_v49 = vadd.f32 %v7018_v28, %v13560_v39  ;;  %7411 = vst [vmem:[#allocation3 + $0x18] sm:$0xff] %v7370_v51  ;;  %v6217_v28 = vpack.c.bf16 %v6196_v44, %v6195_v27  ;;  %v11952_v18 = vld [vmem:[%s14965_s6 + $0xf0] sm:$0xff]  ;;  %v6218_v27 = vpack.c.bf16 %v6197_v48, %v6197_v48 }
 0x626   : > { %6858 = vst [vmem:[#allocation4 + $0x8] sm:$0xff] %v6817_v45  ;;  %6738 = vmatmul.bf16.gmra.mxu0 %v6577_v20  ;;  %v11930_v20 = vld [vmem:[%s14965_s6 + $0x40] sm:$0xff]  ;;  %8583 = vmatpush.bf16.msrb.mxu1 %v11952_v18 }
 0x627   : > { %v7289_v32 = vadd.f32 %v13634_v46, %v7162_v49 }
 0x628   : > { %6381 = vmatmul.bf16.gmra.mxu3 %v13548_v2  ;;  %v6899_v2 = vld [vmem:[#allocation2 + $0xbb] sm:$0xff] }
 0x629   : > { %v7330_v39 = vmax.f32 %v7289_v32, 0.0  ;;  %v6931_v11 = vpack.c.bf16 %v6900_v0, %v6899_v2 }
 0x62b   : > { %v6342_v3 = vpop.f32.mrf.mxu3  ;;  %v6701_v22 = vpop.f32.mrf.mxu0  ;;  %v7371_v13 = vmul.f32 %v7330_v39, %v13010_v25 }
 0x62c   : > { %v6818_v61 = vadd.f32 %v6701_v22, %v6456_v29  ;;  %v7021_v47 = vpop.f32.mrf.mxu1  ;;  %v6457_v12 = vadd.f32 %v6342_v3, %v13537_v42  ;;  %v7454_v37 = vld [vmem:[#allocation3 + $0x15] sm:$0xff]  ;;  %v11942_v42 = vld [vmem:[%s14965_s6 + $0xa0] sm:$0xff] }
 0x62d   : > { %v7163_v34 = vadd.f32 %v7021_v47, %v13563_v40  ;;  %7412 = vst [vmem:[#allocation3 + $0x20] sm:$0xff] %v7371_v13  ;;  %v11931_v40 = vld [vmem:[%s14965_s6 + $0x48] sm:$0xff]  ;;  %8223 = vmatpush.bf16.msrb.mxu0 %v11942_v42  ;;  %v6902_v3 = vld [vmem:[#allocation2 + $0xd3] sm:$0xff] }
 0x62e   : > { %6859 = vst [vmem:[#allocation4 + $0x98] sm:$0xff] %v6818_v61  ;;  %7060 = vmatmul.bf16.gmra.mxu1 %v6931_v11  ;;  %7864 = vmatpush.bf16.msrb.mxu3 %v11931_v40  ;;  %v6901_v47 = vld [vmem:[#allocation2 + $0xcb] sm:$0xff]  ;;  %v6557_v40 = vld [vmem:[#allocation2 + $0x15a] sm:$0xff] }
 0x62f   : > { %v7290_v26 = vadd.f32 %v13634_v46, %v7163_v34  ;;  %v6932_v34 = vpack.c.bf16 %v6902_v3, %v6901_v47  ;;  %v11960_v11 = vld [vmem:[%s14965_s6 + $0x130] sm:$0xff]  ;;  %v6419_v42 = vld [vmem:[#allocation4 + $0x88] sm:$0xff] }
 0x630   : > { %8945 = vmatpush.bf16.msrb.mxu2 %v11960_v11  ;;  %v6420_v47 = vld [vmem:[#allocation4 + $0xc0] sm:$0xff] }
 0x631   : > { %v7331_v7 = vmax.f32 %v7290_v26, 0.0  ;;  %8224 = vmatpush.bf16.msrb.mxu0 %v11941_v60  ;;  %v11939_v26 = vld [vmem:[%s14965_s6 + $0x88] sm:$0xff] }
 0x632   : > { %7865 = vmatpush.bf16.msrb.mxu3 %v11930_v20 }
 0x633   : > { %v6344_v33 = vpop.f32.mrf.mxu3  ;;  %v6704_v14 = vpop.f32.mrf.mxu0  ;;  %v7372_v41 = vmul.f32 %v7331_v7, %v13015_v35  ;;  %v6558_v7 = vld [vmem:[#allocation2 + $0x162] sm:$0xff] }
 0x634   : > { %v6819_v19 = vadd.f32 %v6704_v14, %v6457_v12  ;;  %v7023_v51 = vpop.f32.mrf.mxu1  ;;  %v7455_v45 = vld [vmem:[#allocation3 + $0x1d] sm:$0xff]  ;;  %v6458_v29 = vadd.f32 %v6344_v33, %v6096_v43  ;;  %v6579_v50 = vpack.c.bf16 %v6558_v7, %v6557_v40 }
 0x635   : > { %v7164_v49 = vadd.f32 %v7023_v51, %v13567_v15  ;;  %v7494_v6 = vpack.c.bf16 %v7455_v45, %v7454_v37  ;;  %7413 = vst [vmem:[#allocation3 + $0x28] sm:$0xff] %v7372_v41  ;;  %8225 = vmatpush.bf16.msrb.mxu0 %v11940_v31 }
 0x636   : > { %6860 = vst [vmem:[#allocation4 + $0xa8] sm:$0xff] %v6819_v19  ;;  %6743 = vmatmul.bf16.gmra.mxu0 %v6578_v54  ;;  %v11938_v54 = vld [vmem:[%s14965_s6 + $0x80] sm:$0xff] }
 0x637   : > { %v7291_v32 = vadd.f32 %v13634_v46, %v7164_v49  ;;  %7591 = vmatmul.bf16.gmra.mxu2 %v7494_v6 }
 0x638   : > { %6386 = vmatmul.bf16.gmra.mxu3 %v6217_v28 }
 0x639   : > { %v7332_v39 = vmax.f32 %v7291_v32, 0.0  ;;  %8226 = vmatpush.bf16.msrb.mxu0 %v11939_v26  ;;  %v6904_v32 = vld [vmem:[#allocation2 + $0xe3] sm:$0xff] }
 0x63b   : > { %v6347_v15 = vpop.f32.mrf.mxu3  ;;  %v6706_v0 = vpop.f32.mrf.mxu0  ;;  %v7373_v22 = vmul.f32 %v7332_v39, %v13030_v52 }
 0x63c   : > { %v6820_v13 = vadd.f32 %v6706_v0, %v6458_v29  ;;  %v7026_v61 = vpop.f32.mrf.mxu1  ;;  %v6459_v59 = vadd.f32 %v6418_v16, %v6347_v15  ;;  %v7456_v41 = vld [vmem:[#allocation3 + $0x25] sm:$0xff] }
 0x63d   : > { %v7165_v2 = vadd.f32 %v7026_v61, %v13570_v17  ;;  %7414 = vst [vmem:[#allocation3 + $0x30] sm:$0xff] %v7373_v22  ;;  %8227 = vmatpush.bf16.msrb.mxu0 %v11938_v54  ;;  %v6559_v22 = vld [vmem:[#allocation2 + $0x16a] sm:$0xf] }
 0x63e   : > { %6861 = vst [vmem:[#allocation4 + $0x90] sm:$0xff] %v6820_v13  ;;  %7065 = vmatmul.bf16.gmra.mxu1 %v6932_v34  ;;  %v7732_v13 = vld [vmem:[#allocation3 + $0x6] sm:$0xff]  ;;  %v7733_v61 = vld [vmem:[#allocation3 + $0xe] sm:$0xff]  ;;  %v6580_v34 = vpack.c.bf16 %v6559_v22, %v6559_v22 }
 0x63f   : > { %v7292_v24 = vadd.f32 %v13634_v46, %v7165_v2  ;;  %v6905_v54 = vld [vmem:[#allocation2 + $0xeb] sm:$0xff] }
 0x641   : > { %v7333_v17 = vmax.f32 %v7292_v24, 0.0  ;;  %v7773_v24 = vpack.c.bf16 %v7733_v61, %v7732_v13 }
 0x643   : > { %v6349_v12 = vpop.f32.mrf.mxu3  ;;  %v6709_v33 = vpop.f32.mrf.mxu0  ;;  %v7374_v44 = vmul.f32 %v7333_v17, %v13035_v62 }
 0x644   : > { %v6821_v14 = vadd.f32 %v6709_v33, %v6459_v59  ;;  %v7028_v37 = vpop.f32.mrf.mxu1  ;;  %v7457_v19 = vld [vmem:[#allocation3 + $0x2d] sm:$0xff]  ;;  %v6460_v49 = vadd.f32 %v6419_v42, %v6349_v12 }
 0x645   : > { %v7166_v51 = vadd.f32 %v7028_v37, %v13574_v63  ;;  %v7495_v45 = vpack.c.bf16 %v7457_v19, %v7456_v41  ;;  %7415 = vst [vmem:[#allocation3 + $0x38] sm:$0xff] %v7374_v44  ;;  %v6903_v63 = vld [vmem:[#allocation2 + $0xdb] sm:$0xff]  ;;  %v6421_v12 = vld [vmem:[#allocation4 + $0x118] sm:$0xff] }
 0x646   : > { %6862 = vst [vmem:[#allocation4 + $0xe0] sm:$0xff] %v6821_v14  ;;  %6748 = vmatmul.bf16.gmra.mxu0 %v6579_v50  ;;  %v6933_v3 = vpack.c.bf16 %v6904_v32, %v6903_v63  ;;  %v6906_v14 = vld [vmem:[#allocation2 + $0xf3] sm:$0xff]  ;;  %v8095_v42 = vld [vmem:[#allocation3 + $0xf] sm:$0xff] }
 0x647   : > { %v7293_v20 = vadd.f32 %v13634_v46, %v7166_v51  ;;  %7596 = vmatmul.bf16.gmra.mxu2 %v7495_v45  ;;  %v6934_v51 = vpack.c.bf16 %v6906_v14, %v6905_v54  ;;  %v8096_v54 = vld [vmem:[#allocation3 + $0x17] sm:$0xff] }
 0x648   : > { %6391 = vmatmul.bf16.gmra.mxu3 %v6218_v27 }
 0x649   : > { %v7334_v28 = vmax.f32 %v7293_v20, 0.0  ;;  %v8094_v20 = vld [vmem:[#allocation3 + $0x7] sm:$0xff] }
 0x64b   : > { %v6352_v6 = vpop.f32.mrf.mxu3  ;;  %v6711_v43 = vpop.f32.mrf.mxu0  ;;  %v7375_v60 = vmul.f32 %v7334_v28, %v13047_v4  ;;  %v6422_v28 = vld [vmem:[#allocation4 + $0xd8] sm:$0xff] }
 0x64c   : > { %v6822_v39 = vadd.f32 %v6711_v43, %v6460_v49  ;;  %v7031_v29 = vpop.f32.mrf.mxu1  ;;  %v6461_v18 = vadd.f32 %v6420_v47, %v6352_v6  ;;  %v7458_v16 = vld [vmem:[#allocation3 + $0x35] sm:$0xff]  ;;  %v7735_v43 = vld [vmem:[#allocation3 + $0x1e] sm:$0xff] }
 0x64d   : > { %v7167_v15 = vadd.f32 %v7031_v29, %v13580_v1  ;;  %7416 = vst [vmem:[#allocation3 + $0x40] sm:$0xff] %v7375_v60  ;;  %v8135_v60 = vpack.c.bf16 %v8095_v42, %v8094_v20  ;;  %v7736_v20 = vld [vmem:[#allocation3 + $0x26] sm:$0xff] }
 0x64e   : > { %6863 = vst [vmem:[#allocation4 + $0x88] sm:$0xff] %v6822_v39  ;;  %7070 = vmatmul.bf16.gmra.mxu1 %v6933_v3 }
 0x64f   : > { %v7294_v0 = vadd.f32 %v13634_v46, %v7167_v15  ;;  %v7734_v15 = vld [vmem:[#allocation3 + $0x16] sm:$0xff] }
 0x650   : > { %v7774_v22 = vpack.c.bf16 %v7735_v43, %v7734_v15 }
 0x651   : > { %v7335_v31 = vmax.f32 %v7294_v0, 0.0 }
 0x653   : > { %v6354_v2 = vpop.f32.mrf.mxu3  ;;  %v6714_v11 = vpop.f32.mrf.mxu0  ;;  %v7376_v48 = vmul.f32 %v7335_v31, %v13053_v38  ;;  %v11951_v31 = vld [vmem:[%s14965_s6 + $0xe8] sm:$0xff] }
 0x654   : > { %v13712_v26 = vadd.f32 %v6714_v11, %v6461_v18  ;;  %v7033_v1 = vpop.f32.mrf.mxu1  ;;  %v7459_v17 = vld [vmem:[#allocation3 + $0x3d] sm:$0xff]  ;;  %v6462_v27 = vadd.f32 %v6421_v12, %v6354_v2  ;;  %8584 = vmatpush.bf16.msrb.mxu1 %v11951_v31 }
 0x655   : > { %v7168_v40 = vadd.f32 %v7033_v1, %v13584_v8  ;;  %v7496_v7 = vpack.c.bf16 %v7459_v17, %v7458_v16  ;;  %7417 = vst [vmem:[#allocation3 + $0x48] sm:$0xff] %v7376_v48  ;;  %v6423_v18 = vld [vmem:[#allocation4 + $0xa0] sm:$0xff]  ;;  %v11959_v1 = vld [vmem:[%s14965_s6 + $0x128] sm:$0xff] }
 0x656   : > { %6753 = vmatmul.bf16.gmra.mxu0 %v6580_v34  ;;  %8946 = vmatpush.bf16.msrb.mxu2 %v11959_v1  ;;  %v7739_v1 = vld [vmem:[#allocation3 + $0x3e] sm:$0xff] }
 0x657   : > { %v7295_v59 = vadd.f32 %v13634_v46, %v7168_v40  ;;  %7601 = vmatmul.bf16.gmra.mxu2 %v7496_v7  ;;  %v6907_v40 = vld [vmem:[#allocation2 + $0xfb] sm:$0xff] }
 0x658   : > { %7866 = vmatmul.bf16.vlgmr.msrb.gmra.mxu3 %v7773_v24  ;;  %v6908_v24 = vld [vmem:[#allocation2 + $0x103] sm:$0xff] }
 0x659   : > { %v7336_v33 = vmax.f32 %v7295_v59, 0.0  ;;  %v6935_v59 = vpack.c.bf16 %v6908_v24, %v6907_v40  ;;  %v8099_v24 = vld [vmem:[#allocation3 + $0x2f] sm:$0xff]  ;;  %v8098_v40 = vld [vmem:[#allocation3 + $0x27] sm:$0xff] }
 0x65b   : > { %v6357_v44 = vpop.f32.mrf.mxu3  ;;  %v6716_v50 = vpop.f32.mrf.mxu0  ;;  %v7377_v37 = vmul.f32 %v7336_v33, %v13064_v57  ;;  %v6424_v33 = vld [vmem:[#allocation4 + $0x68] sm:$0xff] }
 0x65c   : > { %v13717_v41 = vadd.f32 %v6716_v50, %v6462_v27  ;;  %v7036_v19 = vpop.f32.mrf.mxu1  ;;  %v6463_v6 = vadd.f32 %v6422_v28, %v6357_v44  ;;  %v7460_v3 = vld [vmem:[#allocation3 + $0x45] sm:$0xff] }
 0x65d   : > { %v7169_v8 = vadd.f32 %v7036_v19, %v13587_v36  ;;  %7418 = vst [vmem:[#allocation3 + $0x50] sm:$0xff] %v7377_v37  ;;  %v8097_v44 = vld [vmem:[#allocation3 + $0x1f] sm:$0xff]  ;;  %v7737_v37 = vld [vmem:[#allocation3 + $0x2e] sm:$0xff] }
 0x65e   : > { %7075 = vmatmul.bf16.gmra.mxu1 %v6934_v51 }
 0x65f   : > { %v7296_v45 = vadd.f32 %v13634_v46, %v7169_v8  ;;  %v15086_v8 = vld [vmem:[#allocation16_spill] sm:$0xff] }
 0x661   : > { %v7337_v49 = vmax.f32 %v7296_v45, 0.0 }
 0x663   : > { %v6359_v32 = vpop.f32.mrf.mxu3  ;;  %v6719_v39 = vpop.f32.mrf.mxu0  ;;  %v7378_v29 = vmul.f32 %v7337_v49, %v13070_v55 }
 0x664   : > { %v13722_v63 = vadd.f32 %v6719_v39, %v6463_v6  ;;  %v7038_v36 = vpop.f32.mrf.mxu1  ;;  %v7461_v0 = vld [vmem:[#allocation3 + $0x4d] sm:$0xff]  ;;  %v6464_v34 = vadd.f32 %v6423_v18, %v6359_v32  ;;  %v7775_v6 = vpack.c.bf16 %v7737_v37, %v7736_v20 }
 0x665   : > { %v7170_v13 = vadd.f32 %v7038_v36, %v13591_v9  ;;  %v7497_v61 = vpack.c.bf16 %v7461_v0, %v7460_v3  ;;  %7419 = vst [vmem:[#allocation3 + $0x58] sm:$0xff] %v7378_v29  ;;  %v6425_v39 = vld [vmem:[#allocation4 + $0x130] sm:$0xff]  ;;  %v6910_v3 = vld [vmem:[#allocation2 + $0x113] sm:$0xff] }
 0x666   : > { %8228 = vmatmul.bf16.vlgmr.msrb.gmra.mxu0 %v8135_v60 }
 0x667   : > { %v7297_v47 = vadd.f32 %v13634_v46, %v7170_v13  ;;  %7606 = vmatmul.bf16.gmra.mxu2 %v7497_v61 }
 0x668   : > { %7871 = vmatmul.bf16.gmra.mxu3 %v7774_v22  ;;  %v15087_v22 = vld [vmem:[#allocation17_spill] sm:$0xff] }
 0x669   : > { %v7338_v2 = vmax.f32 %v7297_v47, 0.0 }
 0x66b   : > { %v6362_v11 = vpop.f32.mrf.mxu3  ;;  %v6721_v48 = vpop.f32.mrf.mxu0  ;;  %v7379_v9 = vmul.f32 %v7338_v2, %v13081_v30 }
 0x66c   : > { %v13733_v16 = vadd.f32 %v6721_v48, %v6464_v34  ;;  %v7041_v17 = vpop.f32.mrf.mxu1  ;;  %v6465_v14 = vadd.f32 %v6424_v33, %v6362_v11  ;;  %v7462_v28 = vld [vmem:[#allocation3 + $0x55] sm:$0xff]  ;;  %v6426_v34 = vld [vmem:[#allocation4 + $0x50] sm:$0xff] }
 0x66d   : > { %v7171_v7 = vadd.f32 %v7041_v17, %v13594_v56  ;;  %7420 = vst [vmem:[#allocation3 + $0x60] sm:$0xff] %v7379_v9  ;;  %v13740_v56 = vpack.c.bf16 %v8097_v44, %v8096_v54  ;;  %v7738_v33 = vld [vmem:[#allocation3 + $0x36] sm:$0xff] }
 0x66e   : > { %7080 = vmatmul.bf16.gmra.mxu1 %v6935_v59 }
 0x66f   : > { %v7298_v12 = vadd.f32 %v13634_v46, %v7171_v7  ;;  %v15088_v7 = vld [vmem:[#allocation18_spill] sm:$0xff] }
 0x671   : > { %v7339_v27 = vmax.f32 %v7298_v12, 0.0 }
 0x673   : > { %v6364_v50 = vpop.f32.mrf.mxu3  ;;  %v6724_v19 = vpop.f32.mrf.mxu0  ;;  %v7380_v51 = vmul.f32 %v7339_v27, %v15086_v8  ;;  %v13753_v27 = vpack.c.bf16 %v8099_v24, %v8098_v40  ;;  %v7135_v24 = vld [vmem:[#allocation4 + $0x20] sm:$0xff] }
 0x674   : > { %v13738_v45 = vadd.f32 %v6724_v19, %v6465_v14  ;;  %v7043_v42 = vpop.f32.mrf.mxu1  ;;  %v7463_v49 = vld [vmem:[#allocation3 + $0x5d] sm:$0xff]  ;;  %v6466_v15 = vadd.f32 %v6425_v39, %v6364_v50  ;;  %v7776_v50 = vpack.c.bf16 %v7739_v1, %v7738_v33  ;;  %v11958_v33 = vld [vmem:[%s14965_s6 + $0x120] sm:$0xff] }
 0x675   : > { %v7172_v32 = vadd.f32 %v7043_v42, %v13598_v53  ;;  %v7498_v43 = vpack.c.bf16 %v7463_v49, %v7462_v28  ;;  %7421 = vst [vmem:[#allocation3 + $0x68] sm:$0xff] %v7380_v51  ;;  %v6909_v53 = vld [vmem:[#allocation2 + $0x10b] sm:$0xff]  ;;  %v6427_v51 = vld [vmem:[#allocation4 + $0xe8] sm:$0xff]  ;;  %v6912_v49 = vld [vmem:[#allocation2 + $0x123] sm:$0xff]  ;;  %8947 = vmatpush.bf16.msrb.mxu2 %v11958_v33 }
 0x676   : > { %8233 = vmatmul.bf16.gmra.mxu0 %v13740_v56  ;;  %v6936_v18 = vpack.c.bf16 %v6910_v3, %v6909_v53 }
 0x677   : > { %v7299_v60 = vadd.f32 %v13634_v46, %v7172_v32  ;;  %7611 = vmatmul.bf16.gmra.mxu2 %v7498_v43  ;;  %v15089_v32 = vld [vmem:[#allocation19_spill] sm:$0xff] }
 0x678   : > { %7876 = vmatmul.bf16.gmra.mxu3 %v7775_v6 }
 0x679   : > { %v7340_v29 = vmax.f32 %v7299_v60, 0.0 }
 0x67b   : > { %v6367_v36 = vpop.f32.mrf.mxu3  ;;  %v6726_v0 = vpop.f32.mrf.mxu0  ;;  %v7381_v13 = vmul.f32 %v7340_v29, %v15087_v22  ;;  %v11950_v29 = vld [vmem:[%s14965_s6 + $0xe0] sm:$0xff] }
 0x67c   : > { %v13746_v61 = vadd.f32 %v6726_v0, %v6466_v15  ;;  %v7046_v47 = vpop.f32.mrf.mxu1  ;;  %v6467_v48 = vadd.f32 %v6426_v34, %v6367_v36  ;;  %v7464_v44 = vld [vmem:[#allocation3 + $0x65] sm:$0xff]  ;;  %8585 = vmatpush.bf16.msrb.mxu1 %v11950_v29  ;;  %v6428_v0 = vld [vmem:[#allocation4] sm:$0xff] }
 0x67d   : > { %v7173_v31 = vadd.f32 %v7046_v47, %v13604_v58  ;;  %7422 = vst [vmem:[#allocation3 + $0x70] sm:$0xff] %v7381_v13  ;;  %v8101_v47 = vld [vmem:[#allocation3 + $0x3f] sm:$0xff] }
 0x67e   : > { %7085 = vmatmul.bf16.gmra.mxu1 %v6936_v18  ;;  %v7741_v18 = vld [vmem:[#allocation3 + $0x4e] sm:$0xff]  ;;  %v7740_v34 = vld [vmem:[#allocation3 + $0x46] sm:$0xff] }
 0x67f   : > { %v7300_v2 = vadd.f32 %v13634_v46, %v7173_v31 }
 0x681   : > { %v7341_v11 = vmax.f32 %v7300_v2, 0.0 }
 0x683   : > { %v6369_v9 = vpop.f32.mrf.mxu3  ;;  %v6729_v17 = vpop.f32.mrf.mxu0  ;;  %v7382_v59 = vmul.f32 %v7341_v11, %v15088_v7  ;;  %v8100_v11 = vld [vmem:[#allocation3 + $0x37] sm:$0xff] }
 0x684   : > { %v13751_v12 = vadd.f32 %v6729_v17, %v6467_v48  ;;  %v7048_v58 = vpop.f32.mrf.mxu1  ;;  %v7465_v14 = vld [vmem:[#allocation3 + $0x6d] sm:$0xff]  ;;  %v6468_v42 = vadd.f32 %v6427_v51, %v6369_v9 }
 0x685   : > { %v7174_v37 = vadd.f32 %v7048_v58, %v13611_v10  ;;  %v7499_v19 = vpack.c.bf16 %v7465_v14, %v7464_v44  ;;  %7423 = vst [vmem:[#allocation3 + $0x78] sm:$0xff] %v7382_v59  ;;  %v6911_v10 = vld [vmem:[#allocation2 + $0x11b] sm:$0xff]  ;;  %v15090_v48 = vld [vmem:[#allocation20_spill] sm:$0xff]  ;;  %v7777_v58 = vpack.c.bf16 %v7741_v18, %v7740_v34 }
 0x686   : > { %8238 = vmatmul.bf16.gmra.mxu0 %v13753_v27  ;;  %v6937_v36 = vpack.c.bf16 %v6912_v49, %v6911_v10  ;;  %v8102_v18 = vld [vmem:[#allocation3 + $0x47] sm:$0xff]  ;;  %v15092_v34 = vld [vmem:[#allocation22_spill] sm:$0xff] }
 0x687   : > { %v7301_v54 = vadd.f32 %v13634_v46, %v7174_v37  ;;  %7616 = vmatmul.bf16.gmra.mxu2 %v7499_v19  ;;  %v6429_v37 = vld [vmem:[#allocation4 + $0x40] sm:$0xff] }
 0x688   : > { %7881 = vmatmul.bf16.gmra.mxu3 %v7776_v50 }
 0x689   : > { %v7342_v20 = vmax.f32 %v7301_v54, 0.0 }
 0x68b   : > { %v6372_v28 = vpop.f32.mrf.mxu3  ;;  %v6731_v6 = vpop.f32.mrf.mxu0  ;;  %v7383_v43 = vmul.f32 %v7342_v20, %v15089_v32  ;;  %v6914_v20 = vld [vmem:[#allocation2 + $0x133] sm:$0xff] }
 0x68c   : > { %v13759_v60 = vadd.f32 %v6731_v6, %v6468_v42  ;;  %v7051_v39 = vpop.f32.mrf.mxu1  ;;  %v6469_v53 = vadd.f32 %v6428_v0, %v6372_v28  ;;  %v7466_v40 = vld [vmem:[#allocation3 + $0x75] sm:$0xff] }
 0x68d   : > { %v7175_v15 = vadd.f32 %v7051_v39, %v13614_v21  ;;  %7424 = vst [vmem:[#allocation3 + $0x80] sm:$0xff] %v7383_v43  ;;  %v13769_v21 = vpack.c.bf16 %v8101_v47, %v8100_v11  ;;  %v15091_v28 = vld [vmem:[#allocation21_spill] sm:$0xff] }
 0x68e   : > { %7090 = vmatmul.bf16.gmra.mxu1 %v6937_v36  ;;  %v6913_v39 = vld [vmem:[#allocation2 + $0x12b] sm:$0xff] }
 0x68f   : > { %v7302_v3 = vadd.f32 %v13634_v46, %v7175_v15  ;;  %v6938_v29 = vpack.c.bf16 %v6914_v20, %v6913_v39  ;;  %v6430_v36 = vld [vmem:[#allocation4 + $0x78] sm:$0xff] }
 0x690   : > { %v8103_v0 = vld [vmem:[#allocation3 + $0x4f] sm:$0xff] }
 0x691   : > { %v7343_v13 = vmax.f32 %v7302_v3, 0.0  ;;  %v6916_v20 = vld [vmem:[#allocation2 + $0x143] sm:$0xff] }
 0x693   : > { %v6374_v31 = vpop.f32.mrf.mxu3  ;;  %v6734_v2 = vpop.f32.mrf.mxu0  ;;  %v7384_v9 = vmul.f32 %v7343_v13, %v15090_v48 }
 0x694   : > { %v13767_v1 = vadd.f32 %v6734_v2, %v6469_v53  ;;  %v7053_v17 = vpop.f32.mrf.mxu1  ;;  %v7467_v59 = vld [vmem:[#allocation3 + $0x7d] sm:$0xff]  ;;  %v6470_v54 = vadd.f32 %v6429_v37, %v6374_v31  ;;  %v7137_v2 = vld [vmem:[#allocation4 + $0x110] sm:$0xff] }
 0x695   : > { %v7176_v44 = vadd.f32 %v7135_v24, %v7053_v17  ;;  %v7500_v14 = vpack.c.bf16 %v7467_v59, %v7466_v40  ;;  %7425 = vst [vmem:[#allocation3 + $0x88] sm:$0xff] %v7384_v9  ;;  %v7743_v53 = vld [vmem:[#allocation3 + $0x5e] sm:$0xff]  ;;  %v7742_v9 = vld [vmem:[#allocation3 + $0x56] sm:$0xff]  ;;  %v6431_v37 = vld [vmem:[#allocation4 + $0x30] sm:$0xff] }
 0x696   : > { %8243 = vmatmul.bf16.gmra.mxu0 %v13769_v21  ;;  %v7778_v33 = vpack.c.bf16 %v7743_v53, %v7742_v9 }
 0x697   : > { %v7303_v50 = vadd.f32 %v13634_v46, %v7176_v44  ;;  %7621 = vmatmul.bf16.gmra.mxu2 %v7500_v14 }
 0x698   : > { %7886 = vmatmul.bf16.gmra.mxu3 %v7777_v58 }
 0x699   : > { %v7344_v19 = vmax.f32 %v7303_v50, 0.0  ;;  %v13788_v50 = vpop.f32.mrf.mxu2 }
 0x69b   : > { %v6377_v51 = vpop.f32.mrf.mxu3  ;;  %v6736_v42 = vpop.f32.mrf.mxu0  ;;  %v7385_v49 = vmul.f32 %v7344_v19, %v15091_v28 }
 0x69c   : > { %v13777_v6 = vadd.f32 %v6736_v42, %v6470_v54  ;;  %v7056_v43 = vpop.f32.mrf.mxu1  ;;  %v6471_v13 = vadd.f32 %v6430_v36, %v6377_v51  ;;  %v7468_v40 = vld [vmem:[#allocation3 + $0x85] sm:$0xff] }
 0x69d   : > { %v7177_v10 = vadd.f32 %v7056_v43, %v13625_v23  ;;  %7426 = vst [vmem:[#allocation3 + $0x90] sm:$0xff] %v7385_v49  ;;  %v13784_v23 = vpack.c.bf16 %v8103_v0, %v8102_v18  ;;  %v15093_v49 = vld [vmem:[#allocation23_spill] sm:$0xff] }
 0x69e   : > { %7095 = vmatmul.bf16.gmra.mxu1 %v6938_v29  ;;  %v7138_v29 = vld [vmem:[#allocation4 + $0x8] sm:$0xff] }
 0x69f   : > { %v7304_v15 = vadd.f32 %v13634_v46, %v7177_v10 }
 0x6a1   : > { %v7345_v3 = vmax.f32 %v7304_v15, 0.0  ;;  %v6915_v15 = vld [vmem:[#allocation2 + $0x13b] sm:$0xff] }
 0x6a3   : > { %v6379_v47 = vpop.f32.mrf.mxu3  ;;  %v6739_v31 = vpop.f32.mrf.mxu0  ;;  %v7386_v11 = vmul.f32 %v7345_v3, %v15092_v34  ;;  %v6939_v3 = vpack.c.bf16 %v6916_v20, %v6915_v15 }
 0x6a4   : > { %v13782_v24 = vadd.f32 %v6739_v31, %v6471_v13  ;;  %v7058_v17 = vpop.f32.mrf.mxu1  ;;  %v7469_v59 = vld [vmem:[#allocation3 + $0x8d] sm:$0xff]  ;;  %v6472_v54 = vadd.f32 %v6431_v37, %v6379_v47  ;;  %v8105_v31 = vld [vmem:[#allocation3 + $0x5f] sm:$0xff] }
 0x6a5   : > { %v7178_v58 = vadd.f32 %v7137_v2, %v7058_v17  ;;  %v7501_v44 = vpack.c.bf16 %v7469_v59, %v7468_v40  ;;  %7427 = vst [vmem:[#allocation3 + $0x98] sm:$0xff] %v7386_v11  ;;  %v6432_v13 = vld [vmem:[#allocation4 + $0xb8] sm:$0xff]  ;;  %v13794_v11 = vpop.f32.mrf.mxu2 }
 0x6a6   : > { %8248 = vmatmul.bf16.gmra.mxu0 %v13784_v23  ;;  %v7745_v2 = vld [vmem:[#allocation3 + $0x6e] sm:$0xff]  ;;  %v8104_v17 = vld [vmem:[#allocation3 + $0x57] sm:$0xff] }
 0x6a7   : > { %v7305_v14 = vadd.f32 %v13634_v46, %v7178_v58  ;;  %7626 = vmatmul.bf16.gmra.mxu2 %v7501_v44  ;;  %v7139_v40 = vld [vmem:[#allocation4 + $0x98] sm:$0xff]  ;;  %v7744_v44 = vld [vmem:[#allocation3 + $0x66] sm:$0xff] }
 0x6a8   : > { %7891 = vmatmul.bf16.gmra.mxu3 %v7778_v33  ;;  %v15094_v59 = vld [vmem:[#allocation24_spill] sm:$0xff]  ;;  %v7779_v20 = vpack.c.bf16 %v7745_v2, %v7744_v44  ;;  %v11957_v2 = vld [vmem:[%s14965_s6 + $0x118] sm:$0xff] }
 0x6a9   : > { %v7346_v19 = vmax.f32 %v7305_v14, 0.0  ;;  %v13799_v14 = vpack.c.bf16 %v8105_v31, %v8104_v17  ;;  %8948 = vmatpush.bf16.msrb.mxu2 %v11957_v2 }
 0x6ab   : > { %v6382_v51 = vpop.f32.mrf.mxu3  ;;  %v6741_v42 = vpop.f32.mrf.mxu0  ;;  %v7387_v43 = vmul.f32 %v7346_v19, %v15093_v49 }
 0x6ac   : > { %v13791_v39 = vadd.f32 %v6741_v42, %v6472_v54  ;;  %v7061_v10 = vpop.f32.mrf.mxu1  ;;  %v6473_v47 = vadd.f32 %v6432_v13, %v6382_v51  ;;  %v7470_v19 = vld [vmem:[#allocation3 + $0x95] sm:$0xff] }
 0x6ad   : > { %v7179_v36 = vadd.f32 %v7138_v29, %v7061_v10  ;;  %7428 = vst [vmem:[#allocation3 + $0xa0] sm:$0xff] %v7387_v43  ;;  %v6433_v10 = vld [vmem:[#allocation4 + $0x60] sm:$0xff] }
 0x6ae   : > { %7100 = vmatmul.bf16.gmra.mxu1 %v6939_v3  ;;  %v6918_v3 = vld [vmem:[#allocation2 + $0x153] sm:$0xff] }
 0x6af   : > { %v7306_v0 = vadd.f32 %v13634_v46, %v7179_v36 }
 0x6b1   : > { %v7347_v53 = vmax.f32 %v7306_v0, 0.0 }
 0x6b3   : > { %v6384_v18 = vpop.f32.mrf.mxu3  ;;  %v6744_v9 = vpop.f32.mrf.mxu0  ;;  %v7388_v33 = vmul.f32 %v7347_v53, %v15094_v59  ;;  %v15095_v53 = vld [vmem:[#allocation25_spill] sm:$0xff] }
 0x6b4   : > { %v13797_v58 = vadd.f32 %v6744_v9, %v6473_v47  ;;  %v7063_v37 = vpop.f32.mrf.mxu1  ;;  %v7471_v54 = vld [vmem:[#allocation3 + $0x9d] sm:$0xff]  ;;  %v6474_v15 = vadd.f32 %v6433_v10, %v6384_v18  ;;  %v6917_v18 = vld [vmem:[#allocation2 + $0x14b] sm:$0xff] }
 0x6b5   : > { %v7180_v42 = vadd.f32 %v7139_v40, %v7063_v37  ;;  %v7502_v51 = vpack.c.bf16 %v7471_v54, %v7470_v19  ;;  %7429 = vst [vmem:[#allocation3 + $0xa8] sm:$0xff] %v7388_v33  ;;  %v11949_v47 = vld [vmem:[%s14965_s6 + $0xd8] sm:$0xff]  ;;  %v6940_v44 = vpack.c.bf16 %v6918_v3, %v6917_v18 }
 0x6b6   : > { %8253 = vmatmul.bf16.gmra.mxu0 %v13799_v14  ;;  %v7140_v40 = vld [vmem:[#allocation4 + $0xa8] sm:$0xff]  ;;  %8586 = vmatpush.bf16.msrb.mxu1 %v11949_v47 }
 0x6b7   : > { %v7307_v43 = vadd.f32 %v13634_v46, %v7180_v42  ;;  %7631 = vmatmul.bf16.gmra.mxu2 %v7502_v51  ;;  %v6434_v19 = vld [vmem:[#allocation4 + $0x28] sm:$0xff] }
 0x6b8   : > { %7896 = vmatmul.bf16.gmra.mxu3 %v7779_v20  ;;  %v8107_v20 = vld [vmem:[#allocation3 + $0x6f] sm:$0xff] }
 0x6b9   : > { %v7348_v29 = vmax.f32 %v7307_v43, 0.0  ;;  %v7747_v43 = vld [vmem:[#allocation3 + $0x7e] sm:$0xff] }
 0x6ba   : > { %v13803_v0 = vpop.f32.mrf.mxu2 }
 0x6bb   : > { %v6387_v36 = vpop.f32.mrf.mxu3  ;;  %v6746_v13 = vpop.f32.mrf.mxu0  ;;  %v7389_v31 = vmul.f32 %v7348_v29, %v15095_v53  ;;  %v15096_v53 = vld [vmem:[#allocation26_spill] sm:$0xff] }
 0x6bc   : > { %v13812_v9 = vadd.f32 %v6746_v13, %v6474_v15  ;;  %v7066_v17 = vpop.f32.mrf.mxu1  ;;  %v6475_v42 = vadd.f32 %v6434_v19, %v6387_v36  ;;  %v8106_v15 = vld [vmem:[#allocation3 + $0x67] sm:$0xff] }
 0x6bd   : > { %v7181_v33 = vadd.f32 %v7140_v40, %v7066_v17  ;;  %7430 = vst [vmem:[#allocation3 + $0xb0] sm:$0xff] %v7389_v31  ;;  %v7141_v13 = vld [vmem:[#allocation4 + $0x90] sm:$0xff]  ;;  %v7746_v31 = vld [vmem:[#allocation3 + $0x76] sm:$0xff]  ;;  %v13820_v47 = vpack.c.bf16 %v8107_v20, %v8106_v15  ;;  %v6436_v15 = vld [vmem:[#allocation4 + $0x58] sm:$0xf] }
 0x6be   : > { %7105 = vmatmul.bf16.gmra.mxu1 %v6940_v44  ;;  %v7472_v40 = vld [vmem:[#allocation3 + $0xa5] sm:$0xff] }
 0x6bf   : > { %v7308_v37 = vadd.f32 %v13634_v46, %v7181_v33  ;;  %v7780_v33 = vpack.c.bf16 %v7747_v43, %v7746_v31 }
 0x6c1   : > { %v7349_v54 = vmax.f32 %v7308_v37, 0.0  ;;  %v11948_v37 = vld [vmem:[%s14965_s6 + $0xd0] sm:$0xff] }
 0x6c2   : > { %v13815_v10 = vpop.f32.mrf.mxu2  ;;  %8587 = vmatpush.bf16.msrb.mxu1 %v11948_v37  ;;  %v7142_v37 = vld [vmem:[#allocation4 + $0xe0] sm:$0xff] }
 0x6c3   : > { %v6389_v51 = vpop.f32.mrf.mxu3  ;;  %v6749_v29 = vpop.f32.mrf.mxu0  ;;  %v7390_v17 = vmul.f32 %v7349_v54, %v15096_v53  ;;  %v6435_v54 = vld [vmem:[#allocation4 + $0x140] sm:$0xff] }
 0x6c4   : > { %v13818_v3 = vadd.f32 %v6749_v29, %v6475_v42  ;;  %v7068_v2 = vpop.f32.mrf.mxu1  ;;  %v7473_v18 = vld [vmem:[#allocation3 + $0xad] sm:$0xff]  ;;  %v6476_v43 = vadd.f32 %v6435_v54, %v6389_v51 }
 0x6c5   : > { %v7182_v44 = vadd.f32 %v7141_v13, %v7068_v2  ;;  %v7503_v36 = vpack.c.bf16 %v7473_v18, %v7472_v40  ;;  %7431 = vst [vmem:[#allocation3 + $0xb8] sm:$0xff] %v7390_v17  ;;  %v11947_v42 = vld [vmem:[%s14965_s6 + $0xc8] sm:$0xff]  ;;  %v6919_v13 = vld [vmem:[#allocation2 + $0x15b] sm:$0xff] }
 0x6c6   : > { %8258 = vmatmul.bf16.gmra.mxu0 %v13820_v47  ;;  %v6920_v17 = vld [vmem:[#allocation2 + $0x163] sm:$0xff]  ;;  %8588 = vmatpush.bf16.msrb.mxu1 %v11947_v42  ;;  %v8108_v42 = vld [vmem:[#allocation3 + $0x77] sm:$0xff] }
 0x6c7   : > { %v7309_v19 = vadd.f32 %v13634_v46, %v7182_v44  ;;  %7636 = vmatmul.bf16.gmra.mxu2 %v7503_v36  ;;  %v15097_v18 = vld [vmem:[#allocation27_spill] sm:$0xff]  ;;  %v6941_v53 = vpack.c.bf16 %v6920_v17, %v6919_v13 }
 0x6c8   : > { %7901 = vmatmul.bf16.gmra.mxu3 %v7780_v33  ;;  %v11946_v51 = vld [vmem:[%s14965_s6 + $0xc0] sm:$0xff] }
 0x6c9   : > { %v7350_v20 = vmax.f32 %v7309_v19, 0.0  ;;  %v7748_v17 = vld [vmem:[#allocation3 + $0x86] sm:$0xff] }
 0x6ca   : > { %v13830_v31 = vpop.f32.mrf.mxu2  ;;  %8589 = vmatpush.bf16.msrb.mxu1 %v11946_v51 }
 0x6cb   : > { %v6392_v29 = vpop.f32.mrf.mxu3  ;;  %v6751_v40 = vpop.f32.mrf.mxu0  ;;  %v7391_v33 = vmul.f32 %v7350_v20, %v15097_v18 }
 0x6cc   : > { %v6477_v2 = vadd.f32 %v6436_v15, %v6392_v29  ;;  %v13833_v44 = vadd.f32 %v6751_v40, %v6476_v43  ;;  %v7071_v36 = vpop.f32.mrf.mxu1  ;;  %v8109_v15 = vld [vmem:[#allocation3 + $0x7f] sm:$0xff]  ;;  %v7749_v43 = vld [vmem:[#allocation3 + $0x8e] sm:$0xff] }
 0x6cd   : > { %v7183_v19 = vadd.f32 %v7142_v37, %v7071_v36  ;;  %7432 = vst [vmem:[#allocation3 + $0xc0] sm:$0xff] %v7391_v33  ;;  %v13842_v37 = vpack.c.bf16 %v8109_v15, %v8108_v42  ;;  %v7143_v33 = vld [vmem:[#allocation4 + $0x88] sm:$0xff]  ;;  %v7474_v51 = vld [vmem:[#allocation3 + $0xb5] sm:$0xff] }
 0x6ce   : > { %6518 = vst [vmem:[#allocation4 + $0x58] sm:$0xf] %v6477_v2  ;;  %7110 = vmatmul.bf16.gmra.mxu1 %v6941_v53  ;;  %v15098_v2 = vld [vmem:[#allocation28_spill] sm:$0xff] }
 0x6cf   : > { %v7310_v54 = vadd.f32 %v13634_v46, %v7183_v19  ;;  %v7781_v19 = vpack.c.bf16 %v7749_v43, %v7748_v17  ;;  %v15099_v43 = vld [vmem:[#allocation29_spill] sm:$0xff] }
 0x6d0   : > { %v8111_v17 = vld [vmem:[#allocation3 + $0x8f] sm:$0xff] }
 0x6d1   : > { %v7351_v29 = vmax.f32 %v7310_v54, 0.0 }
 0x6d2   : > { %v13839_v40 = vpop.f32.mrf.mxu2 }
 0x6d3   : > { %v6394_v20 = vpop.f32.mrf.mxu3  ;;  %v6754_v18 = vpop.f32.mrf.mxu0  ;;  %v7392_v36 = vmul.f32 %v7351_v29, %v15098_v2  ;;  %v6921_v29 = vld [vmem:[#allocation2 + $0x16b] sm:$0xf] }
 0x6d4   : > { %v7073_v59 = vpop.f32.mrf.mxu1  ;;  %v7475_v54 = vld [vmem:[#allocation3 + $0xbd] sm:$0xff] }
 0x6d5   : > { %v6798_v13 = vld [vmem:[#allocation4 + $0x58] sm:$0xf]  ;;  %v7184_v53 = vadd.f32 %v7143_v33, %v7073_v59  ;;  %7433 = vst [vmem:[#allocation3 + $0xc8] sm:$0xff] %v7392_v36  ;;  %v7504_v20 = vpack.c.bf16 %v7475_v54, %v7474_v51  ;;  %v8110_v51 = vld [vmem:[#allocation3 + $0x87] sm:$0xff]  ;;  %v15100_v54 = vld [vmem:[#allocation30_spill] sm:$0xff] }
 0x6d6   : > { %v6839_v49 = vadd.f32 %v6798_v13, %v6754_v18  ;;  %8263 = vmatmul.bf16.gmra.mxu0 %v13842_v37  ;;  %v6942_v18 = vpack.c.bf16 %v6921_v29, %v6921_v29 }
 0x6d7   : > { %v7311_v34 = vadd.f32 %v13634_v46, %v7184_v53  ;;  %7641 = vmatmul.bf16.gmra.mxu2 %v7504_v20 }
 0x6d8   : > { %6880 = vst [vmem:[#allocation4 + $0x58] sm:$0xf] %v6839_v49  ;;  %7906 = vmatmul.bf16.gmra.mxu3 %v7781_v19  ;;  %v13853_v49 = vld [vmem:[%s14964_s5] ss:$0 sm:$0xff]  ;;  %v7751_v19 = vld [vmem:[#allocation3 + $0x9e] sm:$0xff] }
 0x6d9   : > { %v7352_v2 = vmax.f32 %v7311_v34, 0.0 }
 0x6da   : > { %v13846_v42 = vpop.f32.mrf.mxu2 }
 0x6db   : > { %v7867_v15 = vpop.f32.mrf.mxu3  ;;  %v6756_v28 = vpop.f32.mrf.mxu0  ;;  %v7393_v59 = vmul.f32 %v7352_v2, %v15099_v43 }
 0x6dc   : > { %v7076_v13 = vpop.f32.mrf.mxu1  ;;  %v8012_v33 = vadd.f32 %v7867_v15, %v13788_v50 }
 0x6dd   : > { %v7185_v36 = vadd.f32 %v7076_v13, %v13712_v26  ;;  %7434 = vst [vmem:[#allocation3 + $0xd0] sm:$0xff] %v7393_v59  ;;  %v7750_v59 = vld [vmem:[#allocation3 + $0x96] sm:$0xff]  ;;  %v13863_v13 = vpack.c.bf16 %v8111_v17, %v8110_v51 }
 0x6de   : > { %7115 = vmatmul.bf16.gmra.mxu1 %v6942_v18  ;;  %v7782_v43 = vpack.c.bf16 %v7751_v19, %v7750_v59 }
 0x6df   : > { %v7312_v46 = vadd.f32 %v13853_v49, %v7185_v36  ;;  %v7476_v36 = vld [vmem:[#allocation3 + $0xc5] sm:$0xff] }
 0x6e1   : > { %v7353_v34 = vmax.f32 %v7312_v46, 0.0 }
 0x6e2   : > { %v13857_v53 = vpop.f32.mrf.mxu2 }
 0x6e3   : > { %v7869_v28 = vpop.f32.mrf.mxu3  ;;  %v8229_v26 = vpop.f32.mrf.mxu0  ;;  %v7394_v20 = vmul.f32 %v7353_v34, %v15100_v54  ;;  %v11956_v34 = vld [vmem:[%s14965_s6 + $0x110] sm:$0xff] }
 0x6e4   : > { %v8013_v2 = vadd.f32 %v7869_v28, %v13794_v11  ;;  %v13861_v29 = vadd.f32 %v8229_v26, %v8012_v33  ;;  %v7078_v18 = vpop.f32.mrf.mxu1  ;;  %v7477_v46 = vld [vmem:[#allocation3 + $0xcd] sm:$0xff]  ;;  %8949 = vmatpush.bf16.msrb.mxu2 %v11956_v34  ;;  %v15101_v26 = vld [vmem:[#allocation31_spill] sm:$0xff] }
 0x6e5   : > { %v7186_v50 = vadd.f32 %v7078_v18, %v13717_v41  ;;  %v7505_v15 = vpack.c.bf16 %v7477_v46, %v7476_v36  ;;  %7435 = vst [vmem:[#allocation3 + $0xd8] sm:$0xff] %v7394_v20  ;;  %v8113_v46 = vld [vmem:[#allocation3 + $0x9f] sm:$0xff] }
 0x6e6   : > { %8268 = vmatmul.bf16.gmra.mxu0 %v13863_v13 }
 0x6e7   : > { %v7313_v11 = vadd.f32 %v13853_v49, %v7186_v50  ;;  %7646 = vmatmul.bf16.gmra.mxu2 %v7505_v15  ;;  %v7753_v15 = vld [vmem:[#allocation3 + $0xae] sm:$0xff] }
 0x6e8   : > { %7911 = vmatmul.bf16.gmra.mxu3 %v7782_v43 }
 0x6e9   : > { %v7354_v17 = vmax.f32 %v7313_v11, 0.0 }
 0x6ea   : > { %v13871_v28 = vpop.f32.mrf.mxu2 }
 0x6eb   : > { %v7872_v33 = vpop.f32.mrf.mxu3  ;;  %v8231_v41 = vpop.f32.mrf.mxu0  ;;  %v7395_v51 = vmul.f32 %v7354_v17, %v15101_v26  ;;  %v8112_v17 = vld [vmem:[#allocation3 + $0x97] sm:$0xff] }
 0x6ec   : > { %v8014_v19 = vadd.f32 %v7872_v33, %v13803_v0  ;;  %v13875_v20 = vadd.f32 %v8231_v41, %v8013_v2  ;;  %v7081_v43 = vpop.f32.mrf.mxu1  ;;  %v15102_v2 = vld [vmem:[#allocation32_spill] sm:$0xff] }
 0x6ed   : > { %v7187_v59 = vadd.f32 %v7081_v43, %v13722_v63  ;;  %7436 = vst [vmem:[#allocation3 + $0xe0] sm:$0xff] %v7395_v51  ;;  %v7752_v63 = vld [vmem:[#allocation3 + $0xa6] sm:$0xff]  ;;  %v13886_v51 = vpack.c.bf16 %v8113_v46, %v8112_v17  ;;  %v15103_v17 = vld [vmem:[#allocation33_spill] sm:$0xff] }
 0x6ee   : > { %8590 = vmatmul.bf16.vlgmr.msrb.gmra.mxu1 %v13740_v56 }
 0x6ef   : > { %v7314_v18 = vadd.f32 %v13853_v49, %v7187_v59  ;;  %v7478_v59 = vld [vmem:[#allocation3 + $0xd5] sm:$0xff] }
 0x6f1   : > { %v7355_v36 = vmax.f32 %v7314_v18, 0.0  ;;  %v7783_v18 = vpack.c.bf16 %v7753_v15, %v7752_v63 }
 0x6f2   : > { %v13880_v11 = vpop.f32.mrf.mxu2 }
 0x6f3   : > { %v7874_v50 = vpop.f32.mrf.mxu3  ;;  %v8234_v34 = vpop.f32.mrf.mxu0  ;;  %v7396_v33 = vmul.f32 %v7355_v36, %v15102_v2 }
 0x6f4   : > { %v8015_v0 = vadd.f32 %v7874_v50, %v13815_v10  ;;  %v13884_v41 = vadd.f32 %v8234_v34, %v8014_v19  ;;  %v7083_v43 = vpop.f32.mrf.mxu1  ;;  %v7479_v56 = vld [vmem:[#allocation3 + $0xdd] sm:$0xff] }
 0x6f5   : > { %v7188_v26 = vadd.f32 %v7083_v43, %v13733_v16  ;;  %v7506_v54 = vpack.c.bf16 %v7479_v56, %v7478_v59  ;;  %7437 = vst [vmem:[#allocation3 + $0xe8] sm:$0xff] %v7396_v33  ;;  %v7755_v59 = vld [vmem:[#allocation3 + $0xbe] sm:$0xff] }
 0x6f6   : > { %8273 = vmatmul.bf16.gmra.mxu0 %v13886_v51 }
 0x6f7   : > { %v7315_v10 = vadd.f32 %v13853_v49, %v7188_v26  ;;  %7651 = vmatmul.bf16.gmra.mxu2 %v7506_v54  ;;  %v8115_v26 = vld [vmem:[#allocation3 + $0xaf] sm:$0xff] }
 0x6f8   : > { %7916 = vmatmul.bf16.gmra.mxu3 %v7783_v18 }
 0x6f9   : > { %v7356_v36 = vmax.f32 %v7315_v10, 0.0  ;;  %v8114_v10 = vld [vmem:[#allocation3 + $0xa7] sm:$0xff] }
 0x6fa   : > { %v13891_v50 = vpop.f32.mrf.mxu2 }
 0x6fb   : > { %v7877_v19 = vpop.f32.mrf.mxu3  ;;  %v8236_v34 = vpop.f32.mrf.mxu0  ;;  %v7397_v2 = vmul.f32 %v7356_v36, %v15103_v17 }
 0x6fc   : > { %v8016_v46 = vadd.f32 %v7877_v19, %v13830_v31  ;;  %v13895_v15 = vadd.f32 %v8236_v34, %v8015_v0  ;;  %v7086_v16 = vpop.f32.mrf.mxu1  ;;  %v15104_v0 = vld [vmem:[#allocation34_spill] sm:$0xff] }
 0x6fd   : > { %v7189_v33 = vadd.f32 %v7086_v16, %v13738_v45  ;;  %7438 = vst [vmem:[#allocation3 + $0xf0] sm:$0xff] %v7397_v2  ;;  %v7754_v45 = vld [vmem:[#allocation3 + $0xb6] sm:$0xff]  ;;  %v13906_v2 = vpack.c.bf16 %v8115_v26, %v8114_v10  ;;  %v7480_v16 = vld [vmem:[#allocation3 + $0xe5] sm:$0xff] }
 0x6fe   : > { %8595 = vmatmul.bf16.gmra.mxu1 %v13753_v27  ;;  %v15105_v10 = vld [vmem:[#allocation35_spill] sm:$0xff] }
 0x6ff   : > { %v7316_v63 = vadd.f32 %v13853_v49, %v7189_v33  ;;  %v7784_v33 = vpack.c.bf16 %v7755_v59, %v7754_v45 }
 0x701   : > { %v7357_v54 = vmax.f32 %v7316_v63, 0.0 }
 0x702   : > { %v13900_v56 = vpop.f32.mrf.mxu2 }
 0x703   : > { %v7879_v43 = vpop.f32.mrf.mxu3  ;;  %v8239_v18 = vpop.f32.mrf.mxu0  ;;  %v7398_v36 = vmul.f32 %v7357_v54, %v15104_v0 }
 0x704   : > { %v8017_v31 = vadd.f32 %v7879_v43, %v13839_v40  ;;  %v13904_v19 = vadd.f32 %v8239_v18, %v8016_v46  ;;  %v7088_v34 = vpop.f32.mrf.mxu1  ;;  %v7481_v27 = vld [vmem:[#allocation3 + $0xed] sm:$0xff] }
 0x705   : > { %v7190_v63 = vadd.f32 %v7088_v34, %v13746_v61  ;;  %v7507_v17 = vpack.c.bf16 %v7481_v27, %v7480_v16  ;;  %7439 = vst [vmem:[#allocation3 + $0xf8] sm:$0xff] %v7398_v36  ;;  %v8117_v34 = vld [vmem:[#allocation3 + $0xbf] sm:$0xff]  ;;  %v7757_v27 = vld [vmem:[#allocation3 + $0xce] sm:$0xff] }
 0x706   : > { %8278 = vmatmul.bf16.gmra.mxu0 %v13906_v2 }
 0x707   : > { %v7317_v40 = vadd.f32 %v13853_v49, %v7190_v63  ;;  %7656 = vmatmul.bf16.gmra.mxu2 %v7507_v17 }
 0x708   : > { %7921 = vmatmul.bf16.gmra.mxu3 %v7784_v33 }
 0x709   : > { %v7358_v54 = vmax.f32 %v7317_v40, 0.0  ;;  %v8116_v40 = vld [vmem:[#allocation3 + $0xb7] sm:$0xff] }
 0x70a   : > { %v13911_v43 = vpop.f32.mrf.mxu2 }
 0x70b   : > { %v7882_v46 = vpop.f32.mrf.mxu3  ;;  %v8241_v18 = vpop.f32.mrf.mxu0  ;;  %v7399_v0 = vmul.f32 %v7358_v54, %v15105_v10 }
 0x70c   : > { %v8018_v26 = vadd.f32 %v7882_v46, %v13846_v42  ;;  %v13915_v59 = vadd.f32 %v8241_v18, %v8017_v31  ;;  %v7091_v61 = vpop.f32.mrf.mxu1  ;;  %v11955_v31 = vld [vmem:[%s14965_s6 + $0x108] sm:$0xff]  ;;  %v7756_v46 = vld [vmem:[#allocation3 + $0xc6] sm:$0xff] }
 0x70d   : > { %v7191_v36 = vadd.f32 %v7091_v61, %v13751_v12  ;;  %7440 = vst [vmem:[#allocation3 + $0x100] sm:$0xff] %v7399_v0  ;;  %v15106_v12 = vld [vmem:[#allocation36_spill] sm:$0xff]  ;;  %v7482_v61 = vld [vmem:[#allocation3 + $0xf5] sm:$0xff]  ;;  %8950 = vmatpush.bf16.msrb.mxu2 %v11955_v31 }
 0x70e   : > { %8600 = vmatmul.bf16.gmra.mxu1 %v13769_v21  ;;  %v13929_v21 = vpack.c.bf16 %v8117_v34, %v8116_v40 }
 0x70f   : > { %v7318_v45 = vadd.f32 %v13853_v49, %v7191_v36 }
 0x711   : > { %v7359_v17 = vmax.f32 %v7318_v45, 0.0  ;;  %v7785_v45 = vpack.c.bf16 %v7757_v27, %v7756_v46 }
 0x712   : > { %v13920_v33 = vpop.f32.mrf.mxu2 }
 0x713   : > { %v7884_v16 = vpop.f32.mrf.mxu3  ;;  %v8244_v63 = vpop.f32.mrf.mxu0  ;;  %v7400_v0 = vmul.f32 %v7359_v17, %v15106_v12  ;;  %v15107_v12 = vld [vmem:[#allocation37_spill] sm:$0xff] }
 0x714   : > { %v8019_v42 = vadd.f32 %v7884_v16, %v13857_v53  ;;  %v13927_v54 = vadd.f32 %v8244_v63, %v8018_v26  ;;  %v7093_v18 = vpop.f32.mrf.mxu1  ;;  %v7483_v36 = vld [vmem:[#allocation3 + $0xfd] sm:$0xff] }
 0x715   : > { %v7192_v10 = vadd.f32 %v7093_v18, %v13759_v60  ;;  %v7508_v53 = vpack.c.bf16 %v7483_v36, %v7482_v61  ;;  %7441 = vst [vmem:[#allocation3 + $0x108] sm:$0xff] %v7400_v0  ;;  %v8119_v18 = vld [vmem:[#allocation3 + $0xcf] sm:$0xff]  ;;  %v7759_v36 = vld [vmem:[#allocation3 + $0xde] sm:$0xff] }
 0x716   : > { %8283 = vmatmul.bf16.gmra.mxu0 %v13929_v21 }
 0x717   : > { %v7319_v16 = vadd.f32 %v13853_v49, %v7192_v10  ;;  %7661 = vmatmul.bf16.gmra.mxu2 %v7508_v53 }
 0x718   : > { %7926 = vmatmul.bf16.gmra.mxu3 %v7785_v45 }
 0x719   : > { %v7360_v26 = vmax.f32 %v7319_v16, 0.0  ;;  %v8118_v16 = vld [vmem:[#allocation3 + $0xc7] sm:$0xff] }
 0x71a   : > { %v13934_v63 = vpop.f32.mrf.mxu2 }
 0x71b   : > { %v7887_v17 = vpop.f32.mrf.mxu3  ;;  %v8246_v40 = vpop.f32.mrf.mxu0  ;;  %v7401_v27 = vmul.f32 %v7360_v26, %v15107_v12 }
 0x71c   : > { %v8020_v34 = vadd.f32 %v7887_v17, %v13871_v28  ;;  %v13938_v46 = vadd.f32 %v8246_v40, %v8019_v42  ;;  %v7096_v60 = vpop.f32.mrf.mxu1  ;;  %v15108_v42 = vld [vmem:[#allocation38_spill] sm:$0xff]  ;;  %v13949_v40 = vpack.c.bf16 %v8119_v18, %v8118_v16  ;;  %v15109_v16 = vld [vmem:[#allocation39_spill] sm:$0xff] }
 0x71d   : > { %v7193_v31 = vadd.f32 %v7096_v60, %v13767_v1  ;;  %7442 = vst [vmem:[#allocation3 + $0x110] sm:$0xff] %v7401_v27  ;;  %v7758_v1 = vld [vmem:[#allocation3 + $0xd6] sm:$0xff]  ;;  %v7484_v60 = vld [vmem:[#allocation3 + $0x105] sm:$0xff] }
 0x71e   : > { %8605 = vmatmul.bf16.gmra.mxu1 %v13784_v23 }
 0x71f   : > { %v7320_v0 = vadd.f32 %v13853_v49, %v7193_v31  ;;  %v7786_v31 = vpack.c.bf16 %v7759_v36, %v7758_v1 }
 0x721   : > { %v7361_v10 = vmax.f32 %v7320_v0, 0.0 }
 0x722   : > { %v13943_v45 = vpop.f32.mrf.mxu2 }
 0x723   : > { %v7889_v61 = vpop.f32.mrf.mxu3  ;;  %v8249_v53 = vpop.f32.mrf.mxu0  ;;  %v7402_v26 = vmul.f32 %v7361_v10, %v15108_v42 }
 0x724   : > { %v8021_v28 = vadd.f32 %v7889_v61, %v13880_v11  ;;  %v13947_v17 = vadd.f32 %v8249_v53, %v8020_v34  ;;  %v7098_v27 = vpop.f32.mrf.mxu1  ;;  %v7485_v23 = vld [vmem:[#allocation3 + $0x10d] sm:$0xff] }
 0x725   : > { %v7194_v0 = vadd.f32 %v7098_v27, %v13777_v6  ;;  %v7509_v12 = vpack.c.bf16 %v7485_v23, %v7484_v60  ;;  %7443 = vst [vmem:[#allocation3 + $0x118] sm:$0xff] %v7402_v26  ;;  %v8121_v27 = vld [vmem:[#allocation3 + $0xdf] sm:$0xff]  ;;  %v7761_v23 = vld [vmem:[#allocation3 + $0xee] sm:$0xff] }
 0x726   : > { %8288 = vmatmul.bf16.gmra.mxu0 %v13949_v40 }
 0x727   : > { %v7321_v11 = vadd.f32 %v13853_v49, %v7194_v0  ;;  %7666 = vmatmul.bf16.gmra.mxu2 %v7509_v12 }
 0x728   : > { %7931 = vmatmul.bf16.gmra.mxu3 %v7786_v31 }
 0x729   : > { %v7362_v10 = vmax.f32 %v7321_v11, 0.0  ;;  %v8120_v11 = vld [vmem:[#allocation3 + $0xd7] sm:$0xff] }
 0x72a   : > { %v13954_v61 = vpop.f32.mrf.mxu2 }
 0x72b   : > { %v7892_v34 = vpop.f32.mrf.mxu3  ;;  %v8251_v53 = vpop.f32.mrf.mxu0  ;;  %v7403_v42 = vmul.f32 %v7362_v10, %v15109_v16 }
 0x72c   : > { %v8022_v18 = vadd.f32 %v7892_v34, %v13891_v50  ;;  %v13958_v36 = vadd.f32 %v8251_v53, %v8021_v28  ;;  %v7101_v6 = vpop.f32.mrf.mxu1  ;;  %v15110_v28 = vld [vmem:[#allocation40_spill] sm:$0xff] }
 0x72d   : > { %v7195_v26 = vadd.f32 %v7101_v6, %v13782_v24  ;;  %7444 = vst [vmem:[#allocation3 + $0x120] sm:$0xff] %v7403_v42  ;;  %v7760_v24 = vld [vmem:[#allocation3 + $0xe6] sm:$0xff]  ;;  %v13969_v42 = vpack.c.bf16 %v8121_v27, %v8120_v11  ;;  %v7486_v6 = vld [vmem:[#allocation3 + $0x115] sm:$0xff] }
 0x72e   : > { %8610 = vmatmul.bf16.gmra.mxu1 %v13799_v14  ;;  %v15111_v11 = vld [vmem:[#allocation41_spill] sm:$0xff] }
 0x72f   : > { %v7322_v1 = vadd.f32 %v13853_v49, %v7195_v26  ;;  %v7787_v26 = vpack.c.bf16 %v7761_v23, %v7760_v24 }
 0x731   : > { %v7363_v12 = vmax.f32 %v7322_v1, 0.0 }
 0x732   : > { %v13963_v31 = vpop.f32.mrf.mxu2 }
 0x733   : > { %v7894_v60 = vpop.f32.mrf.mxu3  ;;  %v8254_v0 = vpop.f32.mrf.mxu0  ;;  %v7404_v10 = vmul.f32 %v7363_v12, %v15110_v28 }
 0x734   : > { %v8023_v50 = vadd.f32 %v7894_v60, %v13900_v56  ;;  %v13967_v34 = vadd.f32 %v8254_v0, %v8022_v18  ;;  %v7103_v53 = vpop.f32.mrf.mxu1  ;;  %v7487_v14 = vld [vmem:[#allocation3 + $0x11d] sm:$0xff] }
 0x735   : > { %v7196_v1 = vadd.f32 %v7103_v53, %v13791_v39  ;;  %v7510_v16 = vpack.c.bf16 %v7487_v14, %v7486_v6  ;;  %7445 = vst [vmem:[#allocation3 + $0x128] sm:$0xff] %v7404_v10  ;;  %v11954_v10 = vld [vmem:[%s14965_s6 + $0x100] sm:$0xff]  ;;  %v7763_v14 = vld [vmem:[#allocation3 + $0xfe] sm:$0xff] }
 0x736   : > { %8293 = vmatmul.bf16.gmra.mxu0 %v13969_v42  ;;  %8951 = vmatpush.bf16.msrb.mxu2 %v11954_v10 }
 0x737   : > { %v7323_v56 = vadd.f32 %v13853_v49, %v7196_v1  ;;  %7671 = vmatmul.bf16.gmra.mxu2 %v7510_v16 }
 0x738   : > { %7936 = vmatmul.bf16.gmra.mxu3 %v7787_v26 }
 0x739   : > { %v7364_v12 = vmax.f32 %v7323_v56, 0.0  ;;  %v8122_v56 = vld [vmem:[#allocation3 + $0xe7] sm:$0xff] }
 0x73a   : > { %v13974_v60 = vpop.f32.mrf.mxu2 }
 0x73b   : > { %v7897_v18 = vpop.f32.mrf.mxu3  ;;  %v8256_v0 = vpop.f32.mrf.mxu0  ;;  %v7405_v28 = vmul.f32 %v7364_v12, %v15111_v11  ;;  %v15112_v12 = vld [vmem:[#allocation42_spill] sm:$0xff] }
 0x73c   : > { %v8024_v27 = vadd.f32 %v7897_v18, %v13911_v43  ;;  %v13978_v23 = vadd.f32 %v8256_v0, %v8023_v50  ;;  %v7106_v39 = vpop.f32.mrf.mxu1  ;;  %v8123_v43 = vld [vmem:[#allocation3 + $0xef] sm:$0xff]  ;;  %v7488_v10 = vld [vmem:[#allocation3 + $0x125] sm:$0xff] }
 0x73d   : > { %v7197_v24 = vadd.f32 %v7106_v39, %v13797_v58  ;;  %7446 = vst [vmem:[#allocation3 + $0x130] sm:$0xff] %v7405_v28  ;;  %v7762_v58 = vld [vmem:[#allocation3 + $0xf6] sm:$0xff]  ;;  %v13992_v28 = vpack.c.bf16 %v8123_v43, %v8122_v56 }
 0x73e   : > { %8615 = vmatmul.bf16.gmra.mxu1 %v13820_v47 }
 0x73f   : > { %v7324_v16 = vadd.f32 %v13853_v49, %v7197_v24  ;;  %v7788_v24 = vpack.c.bf16 %v7763_v14, %v7762_v58 }
 0x741   : > { %v7365_v53 = vmax.f32 %v7324_v16, 0.0 }
 0x742   : > { %v13986_v26 = vpop.f32.mrf.mxu2 }
 0x743   : > { %v7899_v6 = vpop.f32.mrf.mxu3  ;;  %v8259_v1 = vpop.f32.mrf.mxu0  ;;  %v7406_v18 = vmul.f32 %v7365_v53, %v15112_v12 }
 0x744   : > { %v8025_v50 = vadd.f32 %v7899_v6, %v13920_v33  ;;  %v13990_v0 = vadd.f32 %v8259_v1, %v8024_v27  ;;  %v7108_v39 = vpop.f32.mrf.mxu1  ;;  %v7489_v47 = vld [vmem:[#allocation3 + $0x12d] sm:$0xff]  ;;  %v11969_v27 = vld [vmem:[%s14965_s6 + $0x178] sm:$0xff] }
 0x745   : > { %v7198_v16 = vadd.f32 %v7108_v39, %v13812_v9  ;;  %v7511_v11 = vpack.c.bf16 %v7489_v47, %v7488_v10  ;;  %7447 = vst [vmem:[#allocation3 + $0x138] sm:$0xff] %v7406_v18  ;;  %9306 = vmatpush.bf16.msra.mxu3 %v11969_v27  ;;  %v15113_v1 = vld [vmem:[#allocation43_spill] sm:$0xff] }
 0x746   : > { %8298 = vmatmul.bf16.gmra.mxu0 %v13992_v28  ;;  %v8125_v47 = vld [vmem:[#allocation3 + $0xff] sm:$0xff] }
 0x747   : > { %v7325_v33 = vadd.f32 %v13853_v49, %v7198_v16  ;;  %7676 = vmatmul.bf16.gmra.mxu2 %v7511_v11  ;;  %v7765_v16 = vld [vmem:[#allocation3 + $0x10e] sm:$0xff] }
 0x748   : > { %7941 = vmatmul.bf16.gmra.mxu3 %v7788_v24 }
 0x749   : > { %v7366_v53 = vmax.f32 %v7325_v33, 0.0 }
 0x74a   : > { %v14000_v6 = vpop.f32.mrf.mxu2 }
 0x74b   : > { %v7902_v43 = vpop.f32.mrf.mxu3  ;;  %v8261_v9 = vpop.f32.mrf.mxu0  ;;  %v7407_v56 = vmul.f32 %v7366_v53, %v15113_v1  ;;  %v8124_v53 = vld [vmem:[#allocation3 + $0xf7] sm:$0xff] }
 0x74c   : > { %v8026_v14 = vadd.f32 %v7902_v43, %v13934_v63  ;;  %v14004_v18 = vadd.f32 %v8261_v9, %v8025_v50  ;;  %v7111_v58 = vpop.f32.mrf.mxu1  ;;  %v15114_v50 = vld [vmem:[#allocation44_spill] sm:$0xff] }
 0x74d   : > { %v7199_v39 = vadd.f32 %v7111_v58, %v13818_v3  ;;  %7448 = vst [vmem:[#allocation3 + $0x140] sm:$0xff] %v7407_v56  ;;  %v7764_v3 = vld [vmem:[#allocation3 + $0x106] sm:$0xff]  ;;  %v14015_v56 = vpack.c.bf16 %v8125_v47, %v8124_v53 }
 0x74e   : > { %8620 = vmatmul.bf16.gmra.mxu1 %v13842_v37 }
 0x74f   : > { %v7326_v10 = vadd.f32 %v13853_v49, %v7199_v39  ;;  %v7490_v39 = vld [vmem:[#allocation3 + $0x135] sm:$0xff] }
 0x751   : > { %v7367_v11 = vmax.f32 %v7326_v10, 0.0  ;;  %v7789_v10 = vpack.c.bf16 %v7765_v16, %v7764_v3 }
 0x752   : > { %v14009_v33 = vpop.f32.mrf.mxu2 }
 0x753   : > { %v7904_v24 = vpop.f32.mrf.mxu3  ;;  %v8264_v27 = vpop.f32.mrf.mxu0  ;;  %v7408_v43 = vmul.f32 %v7367_v11, %v15114_v50 }
 0x754   : > { %v8027_v63 = vadd.f32 %v7904_v24, %v13943_v45  ;;  %v14013_v9 = vadd.f32 %v8264_v27, %v8026_v14  ;;  %v7113_v58 = vpop.f32.mrf.mxu1  ;;  %v7491_v37 = vld [vmem:[#allocation3 + $0x13d] sm:$0xff] }
 0x755   : > { %v7200_v1 = vadd.f32 %v7113_v58, %v13833_v44  ;;  %v7512_v12 = vpack.c.bf16 %v7491_v37, %v7490_v39  ;;  %7449 = vst [vmem:[#allocation3 + $0x148] sm:$0xff] %v7408_v43  ;;  %v11977_v45 = vld [vmem:[%s14965_s6 + $0x1b8] sm:$0xff]  ;;  %v15115_v44 = vld [vmem:[#allocation45_spill] sm:$0xff]  ;;  %v7160_v58 = vld [vmem:[#allocation4 + $0x58] sm:$0xf] }
 0x756   : > { %8303 = vmatmul.bf16.gmra.mxu0 %v14015_v56  ;;  %v7767_v37 = vld [vmem:[#allocation3 + $0x11e] sm:$0xff] }
 0x757   : > { %v7327_v14 = vadd.f32 %v13853_v49, %v7200_v1  ;;  %7681 = vmatmul.bf16.gmra.mxu2 %v7512_v12  ;;  %9668 = vmatpush.bf16.msra.mxu0 %v11977_v45  ;;  %v8127_v12 = vld [vmem:[#allocation3 + $0x10f] sm:$0xff]  ;;  %v8126_v45 = vld [vmem:[#allocation3 + $0x107] sm:$0xff] }
 0x758   : > { %7946 = vmatmul.bf16.gmra.mxu3 %v7789_v10 }
 0x759   : > { %v7368_v11 = vmax.f32 %v7327_v14, 0.0 }
 0x75a   : > { %v14024_v27 = vpop.f32.mrf.mxu2 }
 0x75b   : > { %v7907_v47 = vpop.f32.mrf.mxu3  ;;  %v8266_v16 = vpop.f32.mrf.mxu0  ;;  %v7409_v53 = vmul.f32 %v7368_v11, %v15115_v44 }
 0x75c   : > { %v8028_v24 = vadd.f32 %v7907_v47, %v13954_v61  ;;  %v14027_v43 = vadd.f32 %v8266_v16, %v8027_v63  ;;  %v7116_v3 = vpop.f32.mrf.mxu1  ;;  %v7492_v47 = vld [vmem:[#allocation3 + $0x145] sm:$0xf]  ;;  %v7766_v16 = vld [vmem:[#allocation3 + $0x116] sm:$0xff] }
 0x75d   : > { %v7201_v39 = vadd.f32 %v7160_v58, %v7116_v3  ;;  %7450 = vst [vmem:[#allocation3 + $0x150] sm:$0xff] %v7409_v53  ;;  %v11985_v63 = vld [vmem:[%s14965_s6 + $0x1f8] sm:$0xff]  ;;  %v14038_v53 = vpack.c.bf16 %v8127_v12, %v8126_v45  ;;  %v7790_v3 = vpack.c.bf16 %v7767_v37, %v7766_v16 }
 0x75e   : > { %8625 = vmatmul.bf16.gmra.mxu1 %v13863_v13 }
 0x75f   : > { %7242 = vst [vmem:[#allocation4 + $0x58] sm:$0xf] %v7201_v39  ;;  %10030 = vmatpush.bf16.msra.mxu1 %v11985_v63  ;;  %v11993_v39 = vld [vmem:[%s14965_s6 + $0x238] sm:$0xff] }
 0x760   : > { %10392 = vmatpush.bf16.msra.mxu2 %v11993_v39  ;;  %v15116_v63 = vld [vmem:[#allocation46_spill] sm:$0xff] }
 0x762   : > { %v14031_v14 = vpop.f32.mrf.mxu2 }
 0x763   : > { %v7909_v1 = vpop.f32.mrf.mxu3  ;;  %v8269_v61 = vpop.f32.mrf.mxu0 }
 0x764   : > { %v8029_v10 = vadd.f32 %v7909_v1, %v13963_v31  ;;  %v14036_v11 = vadd.f32 %v8269_v61, %v8028_v24  ;;  %v7118_v13 = vpop.f32.mrf.mxu1  ;;  %v7513_v31 = vpack.c.bf16 %v7492_v47, %v7492_v47 }
 0x766   : > { %8308 = vmatmul.bf16.gmra.mxu0 %v14038_v53  ;;  %v7283_v58 = vld [vmem:[#allocation4 + $0x58] sm:$0xf] }
 0x767   : > { %v7328_v1 = vadd.f32 %v13853_v49, %v7283_v58  ;;  %7686 = vmatmul.bf16.gmra.mxu2 %v7513_v31  ;;  %v8129_v31 = vld [vmem:[#allocation3 + $0x11f] sm:$0xff] }
 0x768   : > { %7951 = vmatmul.bf16.gmra.mxu3 %v7790_v3  ;;  %v11968_v3 = vld [vmem:[%s14965_s6 + $0x170] sm:$0xff] }
 0x769   : > { %v7369_v24 = vmax.f32 %v7328_v1, 0.0  ;;  %9307 = vmatpush.bf16.msra.mxu3 %v11968_v3 }
 0x76a   : > { %v14046_v37 = vpop.f32.mrf.mxu2 }
 0x76b   : > { %v7912_v61 = vpop.f32.mrf.mxu3  ;;  %v8271_v45 = vpop.f32.mrf.mxu0  ;;  %v7410_v16 = vmul.f32 %v7369_v24, %v15116_v63  ;;  %v8128_v24 = vld [vmem:[#allocation3 + $0x117] sm:$0xff] }
 0x76c   : > { %v8030_v12 = vadd.f32 %v7912_v61, %v13974_v60  ;;  %v14049_v47 = vadd.f32 %v8271_v45, %v8029_v10  ;;  %v8591_v13 = vpop.f32.mrf.mxu1  ;;  %v11967_v60 = vld [vmem:[%s14965_s6 + $0x168] sm:$0xff] }
 0x76d   : > { %v8736_v49 = vadd.f32 %v8591_v13, %v13861_v29  ;;  %7451 = vst [vmem:[#allocation3 + $0x158] sm:$0xf] %v7410_v16  ;;  %v7769_v10 = vld [vmem:[#allocation3 + $0x12e] sm:$0xff]  ;;  %9308 = vmatpush.bf16.msra.mxu3 %v11967_v60  ;;  %v8819_v29 = vld [vmem:[#allocation3 + $0x20] sm:$0xff]  ;;  %v14064_v13 = vpack.c.bf16 %v8129_v31, %v8128_v24 }
 0x76e   : > { %8630 = vmatmul.bf16.gmra.mxu1 %v13886_v51  ;;  %v7768_v16 = vld [vmem:[#allocation3 + $0x126] sm:$0xff] }
 0x76f   : > { %8777 = vst [vmem:[#allocation4 + $0xb0] sm:$0xff] %v8736_v49  ;;  %v11966_v51 = vld [vmem:[%s14965_s6 + $0x160] sm:$0xff]  ;;  %v7791_v49 = vpack.c.bf16 %v7769_v10, %v7768_v16 }
 0x771   : > { %9309 = vmatpush.bf16.msra.mxu3 %v11966_v51 }
 0x772   : > { %v14060_v61 = vpop.f32.mrf.mxu2 }
 0x773   : > { %v7914_v58 = vpop.f32.mrf.mxu3  ;;  %v8274_v1 = vpop.f32.mrf.mxu0 }
 0x774   : > { %v8031_v39 = vadd.f32 %v7914_v58, %v13986_v26  ;;  %v14062_v45 = vadd.f32 %v8274_v1, %v8030_v12  ;;  %v8593_v3 = vpop.f32.mrf.mxu1  ;;  %v8818_v26 = vld [vmem:[#allocation3 + $0x18] sm:$0xff]  ;;  %v11965_v12 = vld [vmem:[%s14965_s6 + $0x158] sm:$0xff] }
 0x775   : > { %v14070_v60 = vadd.f32 %v8593_v3, %v13875_v20  ;;  %v8859_v58 = vpack.c.bf16 %v8819_v29, %v8818_v26  ;;  %9310 = vmatpush.bf16.msra.mxu3 %v11965_v12  ;;  %v11964_v29 = vld [vmem:[%s14965_s6 + $0x150] sm:$0xff] }
 0x776   : > { %8313 = vmatmul.bf16.gmra.mxu0 %v14064_v13  ;;  %v11976_v3 = vld [vmem:[%s14965_s6 + $0x1b0] sm:$0xff] }
 0x777   : > { %8952 = vmatmul.bf16.vlgmr.msrb.gmra.mxu2 %v8859_v58  ;;  %9669 = vmatpush.bf16.msra.mxu0 %v11976_v3  ;;  %v7771_v58 = vld [vmem:[#allocation3 + $0x13e] sm:$0xff]  ;;  %v7770_v3 = vld [vmem:[#allocation3 + $0x136] sm:$0xff] }
 0x778   : > { %7956 = vmatmul.bf16.gmra.mxu3 %v7791_v49  ;;  %v8131_v49 = vld [vmem:[#allocation3 + $0x12f] sm:$0xff] }
 0x779   : > { %9311 = vmatpush.bf16.msra.mxu3 %v11964_v29 }
 0x77a   : > { %v14077_v10 = vpop.f32.mrf.mxu2 }
 0x77b   : > { %v7917_v31 = vpop.f32.mrf.mxu3  ;;  %v8276_v24 = vpop.f32.mrf.mxu0 }
 0x77c   : > { %v8032_v1 = vadd.f32 %v7917_v31, %v14000_v6  ;;  %v14079_v20 = vadd.f32 %v8276_v24, %v8031_v39  ;;  %v8596_v16 = vpop.f32.mrf.mxu1  ;;  %v11963_v6 = vld [vmem:[%s14965_s6 + $0x148] sm:$0xff]  ;;  %v8130_v31 = vld [vmem:[#allocation3 + $0x127] sm:$0xff] }
 0x77d   : > { %v14088_v51 = vadd.f32 %v8596_v16, %v13884_v41  ;;  %v11975_v39 = vld [vmem:[%s14965_s6 + $0x1a8] sm:$0xff]  ;;  %9312 = vmatpush.bf16.msra.mxu3 %v11963_v6  ;;  %v14102_v63 = vpack.c.bf16 %v8131_v49, %v8130_v31  ;;  %v11974_v6 = vld [vmem:[%s14965_s6 + $0x1a0] sm:$0xff]  ;;  %v11973_v49 = vld [vmem:[%s14965_s6 + $0x198] sm:$0xff] }
 0x77e   : > { %8635 = vmatmul.bf16.gmra.mxu1 %v13906_v2  ;;  %9670 = vmatpush.bf16.msra.mxu0 %v11975_v39  ;;  %v8821_v16 = vld [vmem:[#allocation3 + $0x30] sm:$0xff]  ;;  %v11962_v2 = vld [vmem:[%s14965_s6 + $0x140] sm:$0xff] }
 0x781   : > { %9313 = vmatpush.bf16.msra.mxu3 %v11962_v2 }
 0x782   : > { %v14098_v24 = vpop.f32.mrf.mxu2  ;;  %9671 = vmatpush.bf16.msra.mxu0 %v11974_v6 }
 0x783   : > { %v7919_v26 = vpop.f32.mrf.mxu3  ;;  %v8279_v12 = vpop.f32.mrf.mxu0 }
 0x784   : > { %v8033_v41 = vadd.f32 %v7919_v26, %v14009_v33  ;;  %v14100_v29 = vadd.f32 %v8279_v12, %v8032_v1  ;;  %v8598_v44 = vpop.f32.mrf.mxu1  ;;  %v7792_v33 = vpack.c.bf16 %v7771_v58, %v7770_v3  ;;  %v8820_v26 = vld [vmem:[#allocation3 + $0x28] sm:$0xff]  ;;  %v11984_v3 = vld [vmem:[%s14965_s6 + $0x1f0] sm:$0xff] }
 0x785   : > { %v14111_v39 = vadd.f32 %v8598_v44, %v13895_v15  ;;  %v8860_v1 = vpack.c.bf16 %v8821_v16, %v8820_v26  ;;  %v11972_v16 = vld [vmem:[%s14965_s6 + $0x190] sm:$0xff]  ;;  %10031 = vmatpush.bf16.msra.mxu1 %v11984_v3  ;;  %v11970_v3 = vld [vmem:[%s14965_s6 + $0x180] sm:$0xff] }
 0x786   : > { %8318 = vmatmul.bf16.gmra.mxu0 %v14102_v63 }
 0x787   : > { %8957 = vmatmul.bf16.gmra.mxu2 %v8860_v1  ;;  %9672 = vmatpush.bf16.msra.mxu0 %v11973_v49  ;;  %v8132_v1 = vld [vmem:[#allocation3 + $0x137] sm:$0xff] }
 0x788   : > { %7961 = vmatmul.bf16.gmra.mxu3 %v7792_v33  ;;  %v7772_v33 = vld [vmem:[#allocation3 + $0x146] sm:$0xf] }
 0x78a   : > { %v14118_v58 = vpop.f32.mrf.mxu2 }
 0x78b   : > { %v7922_v12 = vpop.f32.mrf.mxu3  ;;  %v8281_v50 = vpop.f32.mrf.mxu0  ;;  %9673 = vmatpush.bf16.msra.mxu0 %v11972_v16 }
 0x78c   : > { %v8034_v31 = vadd.f32 %v7922_v12, %v14024_v27  ;;  %v14120_v15 = vadd.f32 %v8281_v50, %v8033_v41  ;;  %v8601_v44 = vpop.f32.mrf.mxu1  ;;  %v11992_v27 = vld [vmem:[%s14965_s6 + $0x230] sm:$0xff]  ;;  %v11971_v50 = vld [vmem:[%s14965_s6 + $0x188] sm:$0xff]  ;;  %v8823_v12 = vld [vmem:[#allocation3 + $0x40] sm:$0xff] }
 0x78d   : > { %v14129_v2 = vadd.f32 %v8601_v44, %v13904_v19  ;;  %10393 = vmatpush.bf16.msra.mxu2 %v11992_v27  ;;  %v8133_v41 = vld [vmem:[#allocation3 + $0x13f] sm:$0xff]  ;;  %v7793_v27 = vpack.c.bf16 %v7772_v33, %v7772_v33 }
 0x78e   : > { %8640 = vmatmul.bf16.gmra.mxu1 %v13929_v21  ;;  %v14143_v21 = vpack.c.bf16 %v8133_v41, %v8132_v1 }
 0x78f   : > { %9674 = vmatpush.bf16.msra.mxu0 %v11971_v50 }
 0x792   : > { %v14139_v49 = vpop.f32.mrf.mxu2 }
 0x793   : > { %v7924_v6 = vpop.f32.mrf.mxu3  ;;  %v8284_v19 = vpop.f32.mrf.mxu0  ;;  %9675 = vmatpush.bf16.msra.mxu0 %v11970_v3 }
 0x794   : > { %v8035_v26 = vadd.f32 %v7924_v6, %v14031_v14  ;;  %v14141_v44 = vadd.f32 %v8284_v19, %v8034_v31  ;;  %v8603_v16 = vpop.f32.mrf.mxu1  ;;  %v8822_v14 = vld [vmem:[#allocation3 + $0x38] sm:$0xff] }
 0x795   : > { %v14149_v48 = vadd.f32 %v8603_v16, %v13915_v59  ;;  %v8861_v6 = vpack.c.bf16 %v8823_v12, %v8822_v14  ;;  %v8134_v59 = vld [vmem:[#allocation3 + $0x147] sm:$0xf] }
 0x796   : > { %8323 = vmatmul.bf16.gmra.mxu0 %v14143_v21  ;;  %v9181_v12 = vld [vmem:[#allocation3 + $0x21] sm:$0xff] }
 0x797   : > { %8962 = vmatmul.bf16.gmra.mxu2 %v8861_v6 }
 0x798   : > { %7966 = vmatmul.bf16.gmra.mxu3 %v7793_v27 }
 0x79a   : > { %v14153_v19 = vpop.f32.mrf.mxu2 }
 0x79b   : > { %v7927_v31 = vpop.f32.mrf.mxu3  ;;  %v8286_v41 = vpop.f32.mrf.mxu0 }
 0x79c   : > { %v8036_v50 = vadd.f32 %v7927_v31, %v14046_v37  ;;  %v14155_v1 = vadd.f32 %v8286_v41, %v8035_v26  ;;  %v8606_v32 = vpop.f32.mrf.mxu1  ;;  %v8825_v37 = vld [vmem:[#allocation3 + $0x50] sm:$0xff]  ;;  %v8155_v31 = vpack.c.bf16 %v8134_v59, %v8134_v59  ;;  %v9180_v26 = vld [vmem:[#allocation3 + $0x19] sm:$0xff] }
 0x79d   : > { %v14158_v33 = vadd.f32 %v8606_v32, %v13927_v54  ;;  %v9221_v7 = vpack.c.bf16 %v9181_v12, %v9180_v26  ;;  %v8824_v54 = vld [vmem:[#allocation3 + $0x48] sm:$0xff] }
 0x79e   : > { %8645 = vmatmul.bf16.gmra.mxu1 %v13949_v40  ;;  %v8862_v40 = vpack.c.bf16 %v8825_v37, %v8824_v54 }
 0x7a2   : > { %v14162_v14 = vpop.f32.mrf.mxu2 }
 0x7a3   : > { %v7929_v16 = vpop.f32.mrf.mxu3  ;;  %v8289_v27 = vpop.f32.mrf.mxu0 }
 0x7a4   : > { %v8037_v3 = vadd.f32 %v7929_v16, %v14060_v61  ;;  %v14164_v6 = vadd.f32 %v8289_v27, %v8036_v50  ;;  %v8608_v41 = vpop.f32.mrf.mxu1 }
 0x7a5   : > { %v14167_v32 = vadd.f32 %v8608_v41, %v13938_v46  ;;  %v9183_v46 = vld [vmem:[#allocation3 + $0x31] sm:$0xff] }
 0x7a6   : > { %8328 = vmatmul.bf16.gmra.mxu0 %v8155_v31  ;;  %v9182_v31 = vld [vmem:[#allocation3 + $0x29] sm:$0xff] }
 0x7a7   : > { %8967 = vmatmul.bf16.gmra.mxu2 %v8862_v40  ;;  %v9222_v41 = vpack.c.bf16 %v9183_v46, %v9182_v31  ;;  %v9185_v31 = vld [vmem:[#allocation3 + $0x41] sm:$0xff] }
 0x7a8   : > { %9314 = vmatmul.bf16.vlgmr.msra.gmra.mxu3 %v9221_v7 }
 0x7aa   : > { %v14170_v8 = vpop.f32.mrf.mxu2 }
 0x7ab   : > { %v7932_v22 = vpop.f32.mrf.mxu3  ;;  %v8291_v16 = vpop.f32.mrf.mxu0 }
 0x7ac   : > { %v8038_v61 = vadd.f32 %v7932_v22, %v14077_v10  ;;  %v14172_v50 = vadd.f32 %v8291_v16, %v8037_v3  ;;  %v8611_v59 = vpop.f32.mrf.mxu1  ;;  %v8827_v22 = vld [vmem:[#allocation3 + $0x60] sm:$0xff] }
 0x7ad   : > { %v14175_v27 = vadd.f32 %v8611_v59, %v13947_v17  ;;  %v8826_v17 = vld [vmem:[#allocation3 + $0x58] sm:$0xff] }
 0x7ae   : > { %8650 = vmatmul.bf16.gmra.mxu1 %v13969_v42  ;;  %v8863_v40 = vpack.c.bf16 %v8827_v22, %v8826_v17  ;;  %v11983_v42 = vld [vmem:[%s14965_s6 + $0x1e8] sm:$0xff] }
 0x7af   : > { %10032 = vmatpush.bf16.msra.mxu1 %v11983_v42 }
 0x7b2   : > { %v14179_v26 = vpop.f32.mrf.mxu2 }
 0x7b3   : > { %v7934_v12 = vpop.f32.mrf.mxu3  ;;  %v8294_v7 = vpop.f32.mrf.mxu0 }
 0x7b4   : > { %v8039_v37 = vadd.f32 %v7934_v12, %v14098_v24  ;;  %v14181_v10 = vadd.f32 %v8294_v7, %v8038_v61  ;;  %v8613_v3 = vpop.f32.mrf.mxu1 }
 0x7b5   : > { %v14184_v54 = vadd.f32 %v8613_v3, %v13958_v36  ;;  %v11991_v36 = vld [vmem:[%s14965_s6 + $0x228] sm:$0xff]  ;;  %v9184_v3 = vld [vmem:[#allocation3 + $0x39] sm:$0xff] }
 0x7b6   : > { %9676 = vmatmul.bf16.vlgmr.msra.gmra.mxu0 %v9222_v41  ;;  %10394 = vmatpush.bf16.msra.mxu2 %v11991_v36 }
 0x7b7   : > { %8972 = vmatmul.bf16.gmra.mxu2 %v8863_v40  ;;  %v8829_v40 = vld [vmem:[#allocation3 + $0x70] sm:$0xff] }
 0x7b8   : > { %9319 = vmatmul.bf16.gmra.mxu3 %v9222_v41 }
 0x7ba   : > { %v14190_v59 = vpop.f32.mrf.mxu2 }
 0x7bb   : > { %v7937_v24 = vpop.f32.mrf.mxu3  ;;  %v8296_v61 = vpop.f32.mrf.mxu0 }
 0x7bc   : > { %v8040_v16 = vadd.f32 %v7937_v24, %v14118_v58  ;;  %v14195_v46 = vadd.f32 %v8296_v61, %v8039_v37  ;;  %v8616_v12 = vpop.f32.mrf.mxu1  ;;  %v9223_v37 = vpack.c.bf16 %v9185_v31, %v9184_v3 }
 0x7bd   : > { %v14198_v7 = vadd.f32 %v8616_v12, %v13967_v34  ;;  %v8828_v34 = vld [vmem:[#allocation3 + $0x68] sm:$0xff] }
 0x7be   : > { %8655 = vmatmul.bf16.gmra.mxu1 %v13992_v28  ;;  %v8864_v36 = vpack.c.bf16 %v8829_v40, %v8828_v34 }
 0x7c2   : > { %v14202_v17 = vpop.f32.mrf.mxu2 }
 0x7c3   : > { %v7939_v22 = vpop.f32.mrf.mxu3  ;;  %v8299_v41 = vpop.f32.mrf.mxu0 }
 0x7c4   : > { %v8041_v58 = vadd.f32 %v7939_v22, %v14139_v49  ;;  %v14204_v42 = vadd.f32 %v8299_v41, %v8040_v16  ;;  %v8618_v24 = vpop.f32.mrf.mxu1 }
 0x7c5   : > { %v14207_v61 = vadd.f32 %v8618_v24, %v13978_v23  ;;  %v9187_v23 = vld [vmem:[#allocation3 + $0x51] sm:$0xff] }
 0x7c6   : > { %9681 = vmatmul.bf16.gmra.mxu0 %v9223_v37 }
 0x7c7   : > { %8977 = vmatmul.bf16.gmra.mxu2 %v8864_v36 }
 0x7c8   : > { %9324 = vmatmul.bf16.gmra.mxu3 %v9223_v37  ;;  %v9186_v37 = vld [vmem:[#allocation3 + $0x49] sm:$0xff] }
 0x7c9   : > { %v9224_v36 = vpack.c.bf16 %v9187_v23, %v9186_v37  ;;  %v11982_v23 = vld [vmem:[%s14965_s6 + $0x1e0] sm:$0xff] }
 0x7ca   : > { %v14210_v22 = vpop.f32.mrf.mxu2  ;;  %10033 = vmatpush.bf16.msra.mxu1 %v11982_v23 }
 0x7cb   : > { %v7942_v28 = vpop.f32.mrf.mxu3  ;;  %v8301_v12 = vpop.f32.mrf.mxu0 }
 0x7cc   : > { %v8042_v49 = vadd.f32 %v7942_v28, %v14153_v19  ;;  %v14212_v30 = vadd.f32 %v8301_v12, %v8041_v58  ;;  %v8621_v16 = vpop.f32.mrf.mxu1  ;;  %v8831_v19 = vld [vmem:[#allocation3 + $0x80] sm:$0xff] }
 0x7cd   : > { %v14215_v31 = vadd.f32 %v8621_v16, %v13990_v0  ;;  %v8830_v0 = vld [vmem:[#allocation3 + $0x78] sm:$0xff] }
 0x7ce   : > { %8660 = vmatmul.bf16.gmra.mxu1 %v14015_v56  ;;  %v8865_v12 = vpack.c.bf16 %v8831_v19, %v8830_v0 }
 0x7d2   : > { %v14219_v24 = vpop.f32.mrf.mxu2 }
 0x7d3   : > { %v7944_v41 = vpop.f32.mrf.mxu3  ;;  %v8304_v40 = vpop.f32.mrf.mxu0 }
 0x7d4   : > { %v8043_v3 = vadd.f32 %v7944_v41, %v14162_v14  ;;  %v14221_v34 = vadd.f32 %v8304_v40, %v8042_v49  ;;  %v8623_v58 = vpop.f32.mrf.mxu1  ;;  %v9189_v40 = vld [vmem:[#allocation3 + $0x61] sm:$0xff] }
 0x7d5   : > { %v14224_v28 = vadd.f32 %v8623_v58, %v14004_v18 }
 0x7d6   : > { %9686 = vmatmul.bf16.gmra.mxu0 %v9224_v36 }
 0x7d7   : > { %8982 = vmatmul.bf16.gmra.mxu2 %v8865_v12 }
 0x7d8   : > { %9329 = vmatmul.bf16.gmra.mxu3 %v9224_v36  ;;  %v9188_v36 = vld [vmem:[#allocation3 + $0x59] sm:$0xff] }
 0x7d9   : > { %v9225_v12 = vpack.c.bf16 %v9189_v40, %v9188_v36 }
 0x7da   : > { %v14227_v41 = vpop.f32.mrf.mxu2 }
 0x7db   : > { %v7947_v56 = vpop.f32.mrf.mxu3  ;;  %v8306_v16 = vpop.f32.mrf.mxu0 }
 0x7dc   : > { %v8044_v14 = vadd.f32 %v7947_v56, %v14170_v8  ;;  %v14229_v55 = vadd.f32 %v8306_v16, %v8043_v3  ;;  %v8626_v49 = vpop.f32.mrf.mxu1  ;;  %v8833_v3 = vld [vmem:[#allocation3 + $0x90] sm:$0xff] }
 0x7dd   : > { %v14235_v18 = vadd.f32 %v8626_v49, %v14013_v9  ;;  %v11990_v9 = vld [vmem:[%s14965_s6 + $0x220] sm:$0xff] }
 0x7de   : > { %8665 = vmatmul.bf16.gmra.mxu1 %v14038_v53  ;;  %v8832_v53 = vld [vmem:[#allocation3 + $0x88] sm:$0xff]  ;;  %10395 = vmatpush.bf16.msra.mxu2 %v11990_v9 }
 0x7df   : > { %v8866_v49 = vpack.c.bf16 %v8833_v3, %v8832_v53  ;;  %v9190_v9 = vld [vmem:[#allocation3 + $0x69] sm:$0xff] }
 0x7e2   : > { %v14239_v58 = vpop.f32.mrf.mxu2 }
 0x7e3   : > { %v7949_v37 = vpop.f32.mrf.mxu3  ;;  %v8309_v19 = vpop.f32.mrf.mxu0 }
 0x7e4   : > { %v8045_v8 = vadd.f32 %v7949_v37, %v14179_v26  ;;  %v14241_v0 = vadd.f32 %v8309_v19, %v8044_v14  ;;  %v8628_v56 = vpop.f32.mrf.mxu1 }
 0x7e5   : > { %v14247_v16 = vadd.f32 %v8628_v56, %v14027_v43  ;;  %v9191_v43 = vld [vmem:[#allocation3 + $0x71] sm:$0xff] }
 0x7e6   : > { %9691 = vmatmul.bf16.gmra.mxu0 %v9225_v12 }
 0x7e7   : > { %8987 = vmatmul.bf16.gmra.mxu2 %v8866_v49  ;;  %v8835_v49 = vld [vmem:[#allocation3 + $0xa0] sm:$0xff] }
 0x7e8   : > { %9334 = vmatmul.bf16.gmra.mxu3 %v9225_v12 }
 0x7ea   : > { %v7687_v37 = vpop.f32.mrf.mxu2 }
 0x7eb   : > { %v7952_v26 = vpop.f32.mrf.mxu3  ;;  %v8311_v14 = vpop.f32.mrf.mxu0  ;;  %7731 = vst [vmem:[#allocation4 + $0x58] sm:$0xf] %v7687_v37  ;;  %v8834_v37 = vld [vmem:[#allocation3 + $0x98] sm:$0xff] }
 0x7ec   : > { %v8046_v23 = vadd.f32 %v7952_v26, %v14190_v59  ;;  %v14250_v40 = vadd.f32 %v8311_v14, %v8045_v8  ;;  %v8631_v19 = vpop.f32.mrf.mxu1  ;;  %v9226_v26 = vpack.c.bf16 %v9191_v43, %v9190_v9 }
 0x7ed   : > { %v14253_v36 = vadd.f32 %v8631_v19, %v14036_v11  ;;  %v8867_v11 = vpack.c.bf16 %v8835_v49, %v8834_v37  ;;  %v8837_v37 = vld [vmem:[#allocation3 + $0xb0] sm:$0xff] }
 0x7ee   : > { %8670 = vmatmul.bf16.gmra.mxu1 %v14064_v13 }
 0x7f2   : > { %v7689_v53 = vpop.f32.mrf.mxu2 }
 0x7f3   : > { %v7954_v56 = vpop.f32.mrf.mxu3  ;;  %v8314_v12 = vpop.f32.mrf.mxu0 }
 0x7f4   : > { %v8047_v3 = vadd.f32 %v7954_v56, %v14202_v17  ;;  %v14257_v59 = vadd.f32 %v8314_v12, %v8046_v23  ;;  %v8633_v8 = vpop.f32.mrf.mxu1 }
 0x7f5   : > { %v14260_v14 = vadd.f32 %v8633_v8, %v14049_v47  ;;  %v9193_v47 = vld [vmem:[#allocation3 + $0x81] sm:$0xff] }
 0x7f6   : > { %9696 = vmatmul.bf16.gmra.mxu0 %v9226_v26 }
 0x7f7   : > { %8992 = vmatmul.bf16.gmra.mxu2 %v8867_v11 }
 0x7f8   : > { %9339 = vmatmul.bf16.gmra.mxu3 %v9226_v26  ;;  %v9192_v26 = vld [vmem:[#allocation3 + $0x79] sm:$0xff] }
 0x7f9   : > { %v9227_v11 = vpack.c.bf16 %v9193_v47, %v9192_v26 }
 0x7fa   : > { %v14263_v56 = vpop.f32.mrf.mxu2 }
 0x7fb   : > { %v7957_v13 = vpop.f32.mrf.mxu3  ;;  %v8316_v17 = vpop.f32.mrf.mxu0 }
 0x7fc   : > { %v8048_v19 = vadd.f32 %v7957_v13, %v14210_v22  ;;  %v14265_v53 = vadd.f32 %v8316_v17, %v8047_v3  ;;  %v8636_v23 = vpop.f32.mrf.mxu1  ;;  %v8836_v17 = vld [vmem:[#allocation3 + $0xa8] sm:$0xff] }
 0x7fd   : > { %v14268_v43 = vadd.f32 %v8636_v23, %v14062_v45 }
 0x7fe   : > { %8675 = vmatmul.bf16.gmra.mxu1 %v14102_v63  ;;  %v8868_v63 = vpack.c.bf16 %v8837_v37, %v8836_v17 }
 0x802   : > { %v8955_v8 = vpop.f32.mrf.mxu2 }
 0x803   : > { %v7959_v12 = vpop.f32.mrf.mxu3  ;;  %v8319_v49 = vpop.f32.mrf.mxu0  ;;  %v14275_v3 = vadd.f32 %v8955_v8, %v14070_v60  ;;  %v11989_v60 = vld [vmem:[%s14965_s6 + $0x218] sm:$0xff] }
 0x804   : > { %v8049_v9 = vadd.f32 %v7959_v12, %v14219_v24  ;;  %v14272_v22 = vadd.f32 %v8319_v49, %v8048_v19  ;;  %v8638_v13 = vpop.f32.mrf.mxu1  ;;  %v11981_v19 = vld [vmem:[%s14965_s6 + $0x1d8] sm:$0xff]  ;;  %10396 = vmatpush.bf16.msra.mxu2 %v11989_v60  ;;  %v8495_v60 = vld [vmem:[#allocation3 + $0x14f] sm:$0xff] }
 0x805   : > { %v14278_v45 = vadd.f32 %v8638_v13, %v14079_v20  ;;  %10034 = vmatpush.bf16.msra.mxu1 %v11981_v19  ;;  %v9194_v13 = vld [vmem:[#allocation3 + $0x89] sm:$0xff] }
 0x806   : > { %9701 = vmatmul.bf16.gmra.mxu0 %v9227_v11 }
 0x807   : > { %8997 = vmatmul.bf16.gmra.mxu2 %v8868_v63 }
 0x808   : > { %9344 = vmatmul.bf16.gmra.mxu3 %v9227_v11 }
 0x80a   : > { %v8958_v57 = vpop.f32.mrf.mxu2 }
 0x80b   : > { %v7962_v24 = vpop.f32.mrf.mxu3  ;;  %v8321_v12 = vpop.f32.mrf.mxu0  ;;  %v14290_v49 = vadd.f32 %v8958_v57, %v14088_v51 }
 0x80c   : > { %v8050_v23 = vadd.f32 %v7962_v24, %v14227_v41  ;;  %v14287_v20 = vadd.f32 %v8321_v12, %v8049_v9  ;;  %v8641_v47 = vpop.f32.mrf.mxu1  ;;  %v9195_v41 = vld [vmem:[#allocation3 + $0x91] sm:$0xff]  ;;  %v8839_v9 = vld [vmem:[#allocation3 + $0xc0] sm:$0xff] }
 0x80d   : > { %v14293_v26 = vadd.f32 %v8641_v47, %v14100_v29  ;;  %v9228_v24 = vpack.c.bf16 %v9195_v41, %v9194_v13  ;;  %v8838_v12 = vld [vmem:[#allocation3 + $0xb8] sm:$0xff]  ;;  %v8494_v13 = vld [vmem:[#allocation3 + $0x147] sm:$0xff] }
 0x80e   : > { %8680 = vmatmul.bf16.gmra.mxu1 %v14143_v21  ;;  %v11980_v21 = vld [vmem:[%s14965_s6 + $0x1d0] sm:$0xff] }
 0x80f   : > { %10035 = vmatpush.bf16.msra.mxu1 %v11980_v21 }
 0x812   : > { %v8960_v17 = vpop.f32.mrf.mxu2 }
 0x813   : > { %v7964_v8 = vpop.f32.mrf.mxu3  ;;  %v8324_v11 = vpop.f32.mrf.mxu0  ;;  %v14300_v51 = vadd.f32 %v8960_v17, %v14111_v39  ;;  %v8011_v39 = vld [vmem:[#allocation4 + $0x58] sm:$0xf] }
 0x814   : > { %v8051_v37 = vadd.f32 %v7964_v8, %v14239_v58  ;;  %v14297_v63 = vadd.f32 %v8324_v11, %v8050_v23  ;;  %v8643_v57 = vpop.f32.mrf.mxu1  ;;  %v8869_v58 = vpack.c.bf16 %v8839_v9, %v8838_v12  ;;  %v11979_v23 = vld [vmem:[%s14965_s6 + $0x1c8] sm:$0xff]  ;;  %v9197_v12 = vld [vmem:[#allocation3 + $0xa1] sm:$0xff] }
 0x815   : > { %v14303_v29 = vadd.f32 %v8643_v57, %v14120_v15  ;;  %10036 = vmatpush.bf16.msra.mxu1 %v11979_v23  ;;  %v11978_v57 = vld [vmem:[%s14965_s6 + $0x1c0] sm:$0xff] }
 0x816   : > { %9706 = vmatmul.bf16.gmra.mxu0 %v9228_v24 }
 0x817   : > { %9002 = vmatmul.bf16.gmra.mxu2 %v8869_v58  ;;  %v9196_v58 = vld [vmem:[#allocation3 + $0x99] sm:$0xff] }
 0x818   : > { %9349 = vmatmul.bf16.gmra.mxu3 %v9228_v24  ;;  %v8516_v24 = vpack.c.bf16 %v8495_v60, %v8494_v13  ;;  %v9057_v13 = vld [vmem:[#allocation4 + $0xb0] sm:$0xff] }
 0x819   : > { %10037 = vmatpush.bf16.msra.mxu1 %v11978_v57 }
 0x81a   : > { %v8963_v41 = vpop.f32.mrf.mxu2 }
 0x81b   : > { %v7967_v19 = vpop.f32.mrf.mxu3  ;;  %v8326_v15 = vpop.f32.mrf.mxu0  ;;  %v14314_v17 = vadd.f32 %v8963_v41, %v14129_v2  ;;  %v9229_v2 = vpack.c.bf16 %v9197_v12, %v9196_v58  ;;  %v8840_v41 = vld [vmem:[#allocation3 + $0xc8] sm:$0xff] }
 0x81c   : > { %v8052_v47 = vadd.f32 %v8011_v39, %v7967_v19  ;;  %v14311_v8 = vadd.f32 %v8326_v15, %v8051_v37  ;;  %v8646_v11 = vpop.f32.mrf.mxu1  ;;  %v8841_v19 = vld [vmem:[#allocation3 + $0xd0] sm:$0xff] }
 0x81d   : > { %v14317_v9 = vadd.f32 %v8646_v11, %v14141_v44  ;;  %v8870_v11 = vpack.c.bf16 %v8841_v19, %v8840_v41  ;;  %v9199_v19 = vld [vmem:[#allocation3 + $0xb1] sm:$0xff]  ;;  %v8843_v41 = vld [vmem:[#allocation3 + $0xe0] sm:$0xff] }
 0x81e   : > { %8093 = vst [vmem:[#allocation4 + $0x58] sm:$0xf] %v8052_v47  ;;  %8685 = vmatmul.bf16.gmra.mxu1 %v8516_v24  ;;  %v9098_v24 = vadd.f32 %v9057_v13, %v14263_v56  ;;  %v9198_v56 = vld [vmem:[#allocation3 + $0xa9] sm:$0xff] }
 0x81f   : > { %v9230_v13 = vpack.c.bf16 %v9199_v19, %v9198_v56  ;;  %v9904_v19 = vld [vmem:[#allocation3 + $0x2a] sm:$0xff] }
 0x822   : > { %v8965_v23 = vpop.f32.mrf.mxu2 }
 0x823   : > { %v7969_v21 = vpop.f32.mrf.mxu3  ;;  %v8329_v37 = vpop.f32.mrf.mxu0  ;;  %v14323_v47 = vadd.f32 %v8965_v23, %v14149_v48 }
 0x824   : > { %v8648_v15 = vpop.f32.mrf.mxu1  ;;  %v8496_v21 = vld [vmem:[#allocation3 + $0x157] sm:$0xf] }
 0x825   : > { %v8373_v39 = vld [vmem:[#allocation4 + $0x58] sm:$0xf]  ;;  %v14326_v60 = vadd.f32 %v8648_v15, %v14155_v1  ;;  %v8517_v23 = vpack.c.bf16 %v8496_v21, %v8496_v21 }
 0x826   : > { %v8414_v44 = vadd.f32 %v8373_v39, %v8329_v37  ;;  %9711 = vmatmul.bf16.gmra.mxu0 %v9229_v2 }
 0x827   : > { %9007 = vmatmul.bf16.gmra.mxu2 %v8870_v11 }
 0x828   : > { %8455 = vst [vmem:[#allocation4 + $0x58] sm:$0xf] %v8414_v44  ;;  %9354 = vmatmul.bf16.gmra.mxu3 %v9229_v2 }
 0x82a   : > { %v8968_v38 = vpop.f32.mrf.mxu2 }
 0x82b   : > { %v9315_v57 = vpop.f32.mrf.mxu3  ;;  %v8331_v58 = vpop.f32.mrf.mxu0  ;;  %v14330_v37 = vadd.f32 %v8968_v38, %v14158_v33 }
 0x82c   : > { %v9460_v12 = vadd.f32 %v9315_v57, %v9098_v24  ;;  %v8651_v48 = vpop.f32.mrf.mxu1 }
 0x82d   : > { %v14333_v1 = vadd.f32 %v8651_v48, %v14164_v6  ;;  %v8842_v6 = vld [vmem:[#allocation3 + $0xd8] sm:$0xff] }
 0x82e   : > { %8690 = vmatmul.bf16.gmra.mxu1 %v8517_v23  ;;  %v8871_v57 = vpack.c.bf16 %v8843_v41, %v8842_v6 }
 0x832   : > { %v8970_v44 = vpop.f32.mrf.mxu2 }
 0x833   : > { %v9317_v39 = vpop.f32.mrf.mxu3  ;;  %v9677_v15 = vpop.f32.mrf.mxu0  ;;  %v14339_v38 = vadd.f32 %v8970_v44, %v14167_v32  ;;  %v9201_v44 = vld [vmem:[#allocation3 + $0xc1] sm:$0xff] }
 0x834   : > { %v9461_v2 = vadd.f32 %v9317_v39, %v14275_v3  ;;  %v14336_v11 = vadd.f32 %v9677_v15, %v9460_v12  ;;  %v8653_v24 = vpop.f32.mrf.mxu1  ;;  %v11988_v3 = vld [vmem:[%s14965_s6 + $0x210] sm:$0xff] }
 0x835   : > { %v14342_v33 = vadd.f32 %v8653_v24, %v14172_v50  ;;  %10397 = vmatpush.bf16.msra.mxu2 %v11988_v3  ;;  %v9905_v12 = vld [vmem:[#allocation3 + $0x32] sm:$0xff] }
 0x836   : > { %9716 = vmatmul.bf16.gmra.mxu0 %v9230_v13  ;;  %v9945_v56 = vpack.c.bf16 %v9905_v12, %v9904_v19  ;;  %v8844_v12 = vld [vmem:[#allocation3 + $0xe8] sm:$0xff] }
 0x837   : > { %9012 = vmatmul.bf16.gmra.mxu2 %v8871_v57  ;;  %v8845_v57 = vld [vmem:[#allocation3 + $0xf0] sm:$0xff] }
 0x838   : > { %9359 = vmatmul.bf16.gmra.mxu3 %v9230_v13 }
 0x83a   : > { %v8973_v32 = vpop.f32.mrf.mxu2 }
 0x83b   : > { %v9320_v21 = vpop.f32.mrf.mxu3  ;;  %v9679_v48 = vpop.f32.mrf.mxu0  ;;  %v14351_v39 = vadd.f32 %v8973_v32, %v14175_v27  ;;  %v9907_v32 = vld [vmem:[#allocation3 + $0x42] sm:$0xff] }
 0x83c   : > { %v9462_v58 = vadd.f32 %v9320_v21, %v14290_v49  ;;  %v14348_v23 = vadd.f32 %v9679_v48, %v9461_v2  ;;  %v8656_v50 = vpop.f32.mrf.mxu1  ;;  %v9200_v49 = vld [vmem:[#allocation3 + $0xb9] sm:$0xff]  ;;  %v8872_v48 = vpack.c.bf16 %v8845_v57, %v8844_v12 }
 0x83d   : > { %v14354_v15 = vadd.f32 %v8656_v50, %v14181_v10  ;;  %v9231_v3 = vpack.c.bf16 %v9201_v44, %v9200_v49  ;;  %v9203_v49 = vld [vmem:[#allocation3 + $0xd1] sm:$0xff]  ;;  %v8847_v12 = vld [vmem:[#allocation3 + $0x100] sm:$0xff] }
 0x83e   : > { %10038 = vmatmul.bf16.vlgmr.msra.gmra.mxu1 %v9945_v56 }
 0x842   : > { %v8975_v6 = vpop.f32.mrf.mxu2 }
 0x843   : > { %v9322_v41 = vpop.f32.mrf.mxu3  ;;  %v9682_v24 = vpop.f32.mrf.mxu0  ;;  %v14360_v27 = vadd.f32 %v8975_v6, %v14184_v54 }
 0x844   : > { %v9463_v13 = vadd.f32 %v9322_v41, %v14300_v51  ;;  %v14357_v2 = vadd.f32 %v9682_v24, %v9462_v58  ;;  %v8658_v21 = vpop.f32.mrf.mxu1  ;;  %v9906_v41 = vld [vmem:[#allocation3 + $0x3a] sm:$0xff] }
 0x845   : > { %v14363_v10 = vadd.f32 %v8658_v21, %v14195_v46  ;;  %v9946_v24 = vpack.c.bf16 %v9907_v32, %v9906_v41  ;;  %v8846_v32 = vld [vmem:[#allocation3 + $0xf8] sm:$0xff] }
 0x846   : > { %9721 = vmatmul.bf16.gmra.mxu0 %v9231_v3 }
 0x847   : > { %9017 = vmatmul.bf16.gmra.mxu2 %v8872_v48 }
 0x848   : > { %9364 = vmatmul.bf16.gmra.mxu3 %v9231_v3 }
 0x84a   : > { %v8978_v58 = vpop.f32.mrf.mxu2 }
 0x84b   : > { %v9325_v51 = vpop.f32.mrf.mxu3  ;;  %v9684_v19 = vpop.f32.mrf.mxu0  ;;  %v14369_v54 = vadd.f32 %v8978_v58, %v14198_v7  ;;  %v9909_v58 = vld [vmem:[#allocation3 + $0x52] sm:$0xff] }
 0x84c   : > { %v9464_v50 = vadd.f32 %v9325_v51, %v14314_v17  ;;  %v14366_v56 = vadd.f32 %v9684_v19, %v9463_v13  ;;  %v8661_v44 = vpop.f32.mrf.mxu1  ;;  %v9202_v17 = vld [vmem:[#allocation3 + $0xc9] sm:$0xff]  ;;  %v8873_v19 = vpack.c.bf16 %v8847_v12, %v8846_v32 }
 0x84d   : > { %v14372_v46 = vadd.f32 %v8661_v44, %v14204_v42  ;;  %v9232_v48 = vpack.c.bf16 %v9203_v49, %v9202_v17  ;;  %v9205_v17 = vld [vmem:[#allocation3 + $0xe1] sm:$0xff]  ;;  %v8849_v32 = vld [vmem:[#allocation3 + $0x110] sm:$0xff] }
 0x84e   : > { %10043 = vmatmul.bf16.gmra.mxu1 %v9946_v24 }
 0x852   : > { %v8980_v21 = vpop.f32.mrf.mxu2 }
 0x853   : > { %v9327_v6 = vpop.f32.mrf.mxu3  ;;  %v9687_v3 = vpop.f32.mrf.mxu0  ;;  %v14378_v7 = vadd.f32 %v8980_v21, %v14207_v61 }
 0x854   : > { %v9465_v57 = vadd.f32 %v9327_v6, %v14323_v47  ;;  %v14375_v13 = vadd.f32 %v9687_v3, %v9464_v50  ;;  %v8663_v51 = vpop.f32.mrf.mxu1  ;;  %v9908_v6 = vld [vmem:[#allocation3 + $0x4a] sm:$0xff] }
 0x855   : > { %v14381_v42 = vadd.f32 %v8663_v51, %v14212_v30  ;;  %v9947_v3 = vpack.c.bf16 %v9909_v58, %v9908_v6 }
 0x856   : > { %9726 = vmatmul.bf16.gmra.mxu0 %v9232_v48 }
 0x857   : > { %9022 = vmatmul.bf16.gmra.mxu2 %v8873_v19 }
 0x858   : > { %9369 = vmatmul.bf16.gmra.mxu3 %v9232_v48 }
 0x85a   : > { %v8983_v50 = vpop.f32.mrf.mxu2 }
 0x85b   : > { %v9330_v47 = vpop.f32.mrf.mxu3  ;;  %v9689_v41 = vpop.f32.mrf.mxu0  ;;  %v14387_v61 = vadd.f32 %v8983_v50, %v14215_v31 }
 0x85c   : > { %v9466_v44 = vadd.f32 %v9330_v47, %v14330_v37  ;;  %v14384_v24 = vadd.f32 %v9689_v41, %v9465_v57  ;;  %v8666_v49 = vpop.f32.mrf.mxu1  ;;  %v9204_v37 = vld [vmem:[#allocation3 + $0xd9] sm:$0xff]  ;;  %v11987_v57 = vld [vmem:[%s14965_s6 + $0x208] sm:$0xff]  ;;  %v8848_v41 = vld [vmem:[#allocation3 + $0x108] sm:$0xff] }
 0x85d   : > { %v14390_v30 = vadd.f32 %v8666_v49, %v14221_v34  ;;  %v9233_v31 = vpack.c.bf16 %v9205_v17, %v9204_v37  ;;  %10398 = vmatpush.bf16.msra.mxu2 %v11987_v57  ;;  %v9911_v49 = vld [vmem:[#allocation3 + $0x62] sm:$0xff] }
 0x85e   : > { %10048 = vmatmul.bf16.gmra.mxu1 %v9947_v3 }
 0x862   : > { %v8985_v51 = vpop.f32.mrf.mxu2 }
 0x863   : > { %v9332_v21 = vpop.f32.mrf.mxu3  ;;  %v9692_v48 = vpop.f32.mrf.mxu0  ;;  %v14399_v34 = vadd.f32 %v8985_v51, %v14224_v28  ;;  %v9910_v28 = vld [vmem:[#allocation3 + $0x5a] sm:$0xff]  ;;  %v9207_v51 = vld [vmem:[#allocation3 + $0xf1] sm:$0xff] }
 0x864   : > { %v9467_v12 = vadd.f32 %v9332_v21, %v14339_v38  ;;  %v14396_v19 = vadd.f32 %v9692_v48, %v9466_v44  ;;  %v8668_v47 = vpop.f32.mrf.mxu1  ;;  %v8874_v38 = vpack.c.bf16 %v8849_v32, %v8848_v41  ;;  %v9948_v37 = vpack.c.bf16 %v9911_v49, %v9910_v28  ;;  %v8851_v41 = vld [vmem:[#allocation3 + $0x120] sm:$0xff]  ;;  %v8850_v49 = vld [vmem:[#allocation3 + $0x118] sm:$0xff] }
 0x865   : > { %v14402_v58 = vadd.f32 %v8668_v47, %v14229_v55 }
 0x866   : > { %9731 = vmatmul.bf16.gmra.mxu0 %v9233_v31 }
 0x867   : > { %9027 = vmatmul.bf16.gmra.mxu2 %v8874_v38 }
 0x868   : > { %9374 = vmatmul.bf16.gmra.mxu3 %v9233_v31 }
 0x86a   : > { %v8988_v3 = vpop.f32.mrf.mxu2 }
 0x86b   : > { %v9335_v50 = vpop.f32.mrf.mxu3  ;;  %v9694_v44 = vpop.f32.mrf.mxu0  ;;  %v14408_v48 = vadd.f32 %v8988_v3, %v14235_v18  ;;  %v9913_v3 = vld [vmem:[#allocation3 + $0x72] sm:$0xff] }
 0x86c   : > { %v9468_v6 = vadd.f32 %v9335_v50, %v14351_v39  ;;  %v14405_v17 = vadd.f32 %v9694_v44, %v9467_v12  ;;  %v8671_v21 = vpop.f32.mrf.mxu1  ;;  %v9206_v39 = vld [vmem:[#allocation3 + $0xe9] sm:$0xff]  ;;  %v8875_v44 = vpack.c.bf16 %v8851_v41, %v8850_v49 }
 0x86d   : > { %v14411_v55 = vadd.f32 %v8671_v21, %v14241_v0  ;;  %v9234_v38 = vpack.c.bf16 %v9207_v51, %v9206_v39  ;;  %v9209_v39 = vld [vmem:[#allocation3 + $0x101] sm:$0xff]  ;;  %v8853_v49 = vld [vmem:[#allocation3 + $0x130] sm:$0xff] }
 0x86e   : > { %10053 = vmatmul.bf16.gmra.mxu1 %v9948_v37 }
 0x872   : > { %v8990_v47 = vpop.f32.mrf.mxu2 }
 0x873   : > { %v9337_v32 = vpop.f32.mrf.mxu3  ;;  %v9697_v31 = vpop.f32.mrf.mxu0  ;;  %v14417_v18 = vadd.f32 %v8990_v47, %v14247_v16 }
 0x874   : > { %v9469_v57 = vadd.f32 %v9337_v32, %v14360_v27  ;;  %v14414_v12 = vadd.f32 %v9697_v31, %v9468_v6  ;;  %v8673_v50 = vpop.f32.mrf.mxu1  ;;  %v9912_v32 = vld [vmem:[#allocation3 + $0x6a] sm:$0xff] }
 0x875   : > { %v14420_v0 = vadd.f32 %v8673_v50, %v14250_v40  ;;  %v9949_v31 = vpack.c.bf16 %v9913_v3, %v9912_v32  ;;  %v8852_v3 = vld [vmem:[#allocation3 + $0x128] sm:$0xff] }
 0x876   : > { %9736 = vmatmul.bf16.gmra.mxu0 %v9234_v38 }
 0x877   : > { %9032 = vmatmul.bf16.gmra.mxu2 %v8875_v44 }
 0x878   : > { %9379 = vmatmul.bf16.gmra.mxu3 %v9234_v38 }
 0x87a   : > { %v8993_v6 = vpop.f32.mrf.mxu2 }
 0x87b   : > { %v9340_v27 = vpop.f32.mrf.mxu3  ;;  %v9699_v28 = vpop.f32.mrf.mxu0  ;;  %v14426_v16 = vadd.f32 %v8993_v6, %v14253_v36  ;;  %v9915_v6 = vld [vmem:[#allocation3 + $0x82] sm:$0xff] }
 0x87c   : > { %v9470_v21 = vadd.f32 %v9340_v27, %v14369_v54  ;;  %v14423_v37 = vadd.f32 %v9699_v28, %v9469_v57  ;;  %v8676_v51 = vpop.f32.mrf.mxu1  ;;  %v9208_v54 = vld [vmem:[#allocation3 + $0xf9] sm:$0xff]  ;;  %v8876_v28 = vpack.c.bf16 %v8853_v49, %v8852_v3 }
 0x87d   : > { %v14429_v40 = vadd.f32 %v8676_v51, %v14257_v59  ;;  %v9235_v44 = vpack.c.bf16 %v9209_v39, %v9208_v54  ;;  %v8855_v3 = vld [vmem:[#allocation3 + $0x140] sm:$0xff] }
 0x87e   : > { %10058 = vmatmul.bf16.gmra.mxu1 %v9949_v31 }
 0x882   : > { %v8995_v50 = vpop.f32.mrf.mxu2 }
 0x883   : > { %v9342_v47 = vpop.f32.mrf.mxu3  ;;  %v9702_v38 = vpop.f32.mrf.mxu0  ;;  %v14435_v36 = vadd.f32 %v8995_v50, %v14260_v14 }
 0x884   : > { %v9471_v41 = vadd.f32 %v9342_v47, %v14378_v7  ;;  %v14432_v57 = vadd.f32 %v9702_v38, %v9470_v21  ;;  %v8678_v27 = vpop.f32.mrf.mxu1  ;;  %v9914_v47 = vld [vmem:[#allocation3 + $0x7a] sm:$0xff] }
 0x885   : > { %v14438_v59 = vadd.f32 %v8678_v27, %v14265_v53  ;;  %v11986_v53 = vld [vmem:[%s14965_s6 + $0x200] sm:$0xff]  ;;  %v9950_v54 = vpack.c.bf16 %v9915_v6, %v9914_v47  ;;  %v8854_v6 = vld [vmem:[#allocation3 + $0x138] sm:$0xff] }
 0x886   : > { %9741 = vmatmul.bf16.gmra.mxu0 %v9235_v44  ;;  %10399 = vmatpush.bf16.msra.mxu2 %v11986_v53 }
 0x887   : > { %9037 = vmatmul.bf16.gmra.mxu2 %v8876_v28 }
 0x888   : > { %9384 = vmatmul.bf16.gmra.mxu3 %v9235_v44  ;;  %v9210_v44 = vld [vmem:[#allocation3 + $0x109] sm:$0xff] }
 0x88a   : > { %v8998_v21 = vpop.f32.mrf.mxu2 }
 0x88b   : > { %v9345_v7 = vpop.f32.mrf.mxu3  ;;  %v9704_v32 = vpop.f32.mrf.mxu0  ;;  %v14444_v14 = vadd.f32 %v8998_v21, %v14268_v43  ;;  %v8877_v21 = vpack.c.bf16 %v8855_v3, %v8854_v6  ;;  %v8857_v6 = vld [vmem:[#allocation3 + $0x150] sm:$0xff] }
 0x88c   : > { %v9472_v51 = vadd.f32 %v9345_v7, %v14387_v61  ;;  %v14441_v31 = vadd.f32 %v9704_v32, %v9471_v41  ;;  %v8681_v39 = vpop.f32.mrf.mxu1  ;;  %v9211_v61 = vld [vmem:[#allocation3 + $0x111] sm:$0xff] }
 0x88d   : > { %v14450_v38 = vadd.f32 %v8681_v39, %v14272_v22  ;;  %v9236_v28 = vpack.c.bf16 %v9211_v61, %v9210_v44  ;;  %v9917_v39 = vld [vmem:[#allocation3 + $0x92] sm:$0xff]  ;;  %v9213_v44 = vld [vmem:[#allocation3 + $0x121] sm:$0xff] }
 0x88e   : > { %10063 = vmatmul.bf16.gmra.mxu1 %v9950_v54 }
 0x892   : > { %v9000_v27 = vpop.f32.mrf.mxu2 }
 0x893   : > { %v9347_v50 = vpop.f32.mrf.mxu3  ;;  %v9707_v49 = vpop.f32.mrf.mxu0  ;;  %v14456_v32 = vadd.f32 %v9000_v27, %v14278_v45 }
 0x894   : > { %v9473_v41 = vadd.f32 %v9347_v50, %v14399_v34  ;;  %v14453_v43 = vadd.f32 %v9707_v49, %v9472_v51  ;;  %v8683_v7 = vpop.f32.mrf.mxu1  ;;  %v9916_v50 = vld [vmem:[#allocation3 + $0x8a] sm:$0xff] }
 0x895   : > { %v14459_v22 = vadd.f32 %v8683_v7, %v14287_v20  ;;  %v9951_v49 = vpack.c.bf16 %v9917_v39, %v9916_v50  ;;  %v8856_v39 = vld [vmem:[#allocation3 + $0x148] sm:$0xff] }
 0x896   : > { %9746 = vmatmul.bf16.gmra.mxu0 %v9236_v28 }
 0x897   : > { %9042 = vmatmul.bf16.gmra.mxu2 %v8877_v21 }
 0x898   : > { %9389 = vmatmul.bf16.gmra.mxu3 %v9236_v28 }
 0x89a   : > { %v9003_v51 = vpop.f32.mrf.mxu2 }
 0x89b   : > { %v9350_v34 = vpop.f32.mrf.mxu3  ;;  %v9709_v53 = vpop.f32.mrf.mxu0  ;;  %v14465_v45 = vadd.f32 %v9003_v51, %v14293_v26  ;;  %v9919_v51 = vld [vmem:[#allocation3 + $0xa2] sm:$0xff] }
 0x89c   : > { %v9474_v47 = vadd.f32 %v9350_v34, %v14408_v48  ;;  %v14462_v54 = vadd.f32 %v9709_v53, %v9473_v41  ;;  %v8686_v61 = vpop.f32.mrf.mxu1  ;;  %v9212_v48 = vld [vmem:[#allocation3 + $0x119] sm:$0xff]  ;;  %v8878_v53 = vpack.c.bf16 %v8857_v6, %v8856_v39 }
 0x89d   : > { %v14468_v20 = vadd.f32 %v8686_v61, %v14297_v63  ;;  %v9237_v21 = vpack.c.bf16 %v9213_v44, %v9212_v48 }
 0x89e   : > { %10068 = vmatmul.bf16.gmra.mxu1 %v9951_v49 }
 0x8a2   : > { %v9005_v7 = vpop.f32.mrf.mxu2 }
 0x8a3   : > { %v9352_v27 = vpop.f32.mrf.mxu3  ;;  %v9712_v28 = vpop.f32.mrf.mxu0  ;;  %v14474_v26 = vadd.f32 %v9005_v7, %v14303_v29  ;;  %v9918_v29 = vld [vmem:[#allocation3 + $0x9a] sm:$0xff]  ;;  %v9215_v7 = vld [vmem:[#allocation3 + $0x131] sm:$0xff] }
 0x8a4   : > { %v9475_v3 = vadd.f32 %v9352_v27, %v14417_v18  ;;  %v14471_v41 = vadd.f32 %v9712_v28, %v9474_v47  ;;  %v8688_v34 = vpop.f32.mrf.mxu1  ;;  %v8735_v27 = vld [vmem:[#allocation4 + $0x58] sm:$0xf]  ;;  %v9952_v48 = vpack.c.bf16 %v9919_v51, %v9918_v29 }
 0x8a5   : > { %v14477_v63 = vadd.f32 %v8688_v34, %v14311_v8 }
 0x8a6   : > { %9751 = vmatmul.bf16.gmra.mxu0 %v9237_v21 }
 0x8a7   : > { %9047 = vmatmul.bf16.gmra.mxu2 %v8878_v53  ;;  %v8858_v53 = vld [vmem:[#allocation3 + $0x158] sm:$0xf] }
 0x8a8   : > { %9394 = vmatmul.bf16.gmra.mxu3 %v9237_v21 }
 0x8aa   : > { %v9008_v47 = vpop.f32.mrf.mxu2 }
 0x8ab   : > { %v9355_v18 = vpop.f32.mrf.mxu3  ;;  %v9714_v50 = vpop.f32.mrf.mxu0  ;;  %v14483_v28 = vadd.f32 %v9008_v47, %v14317_v9  ;;  %v8879_v9 = vpack.c.bf16 %v8858_v53, %v8858_v53  ;;  %v9921_v47 = vld [vmem:[#allocation3 + $0xb2] sm:$0xff] }
 0x8ac   : > { %v9476_v61 = vadd.f32 %v9355_v18, %v14426_v16  ;;  %v14480_v49 = vadd.f32 %v9714_v50, %v9475_v3  ;;  %v8691_v44 = vpop.f32.mrf.mxu1  ;;  %v9214_v16 = vld [vmem:[#allocation3 + $0x129] sm:$0xff]  ;;  %v9216_v53 = vld [vmem:[#allocation3 + $0x139] sm:$0xff] }
 0x8ad   : > { %v8776_v8 = vadd.f32 %v8735_v27, %v8691_v44  ;;  %v9238_v18 = vpack.c.bf16 %v9215_v7, %v9214_v16  ;;  %v9217_v7 = vld [vmem:[#allocation3 + $0x141] sm:$0xff] }
 0x8ae   : > { %10073 = vmatmul.bf16.gmra.mxu1 %v9952_v48 }
 0x8af   : > { %8817 = vst [vmem:[#allocation4 + $0x58] sm:$0xf] %v8776_v8  ;;  %v9920_v8 = vld [vmem:[#allocation3 + $0xaa] sm:$0xff] }
 0x8b2   : > { %v9010_v39 = vpop.f32.mrf.mxu2 }
 0x8b3   : > { %v9357_v6 = vpop.f32.mrf.mxu3  ;;  %v9717_v34 = vpop.f32.mrf.mxu0  ;;  %v14489_v4 = vadd.f32 %v9010_v39, %v14326_v60  ;;  %v9953_v60 = vpack.c.bf16 %v9921_v47, %v9920_v8  ;;  %v10266_v47 = vld [vmem:[#allocation3 + $0x2b] sm:$0xff] }
 0x8b4   : > { %v9477_v21 = vadd.f32 %v9357_v6, %v14435_v36  ;;  %v14486_v3 = vadd.f32 %v9717_v34, %v9476_v61  ;;  %v8693_v50 = vpop.f32.mrf.mxu1 }
 0x8b6   : > { %9756 = vmatmul.bf16.gmra.mxu0 %v9238_v18 }
 0x8b7   : > { %9052 = vmatmul.bf16.gmra.mxu2 %v8879_v9  ;;  %v9239_v9 = vpack.c.bf16 %v9217_v7, %v9216_v53 }
 0x8b8   : > { %9399 = vmatmul.bf16.gmra.mxu3 %v9238_v18  ;;  %v10267_v18 = vld [vmem:[#allocation3 + $0x33] sm:$0xff] }
 0x8ba   : > { %v9013_v27 = vpop.f32.mrf.mxu2 }
 0x8bb   : > { %v9360_v51 = vpop.f32.mrf.mxu3  ;;  %v9719_v44 = vpop.f32.mrf.mxu0  ;;  %v14494_v61 = vadd.f32 %v9013_v27, %v14333_v1 }
 0x8bc   : > { %v14491_v36 = vadd.f32 %v9719_v44, %v9477_v21  ;;  %v10039_v29 = vpop.f32.mrf.mxu1  ;;  %v9478_v6 = vadd.f32 %v9360_v51, %v14444_v14  ;;  %v10307_v14 = vpack.c.bf16 %v10267_v18, %v10266_v47  ;;  %v9923_v51 = vld [vmem:[#allocation3 + $0xc2] sm:$0xff] }
 0x8bd   : > { %v14497_v48 = vadd.f32 %v10039_v29, %v14336_v11 }
 0x8be   : > { %10078 = vmatmul.bf16.gmra.mxu1 %v9953_v60 }
 0x8c2   : > { %v9015_v21 = vpop.f32.mrf.mxu2 }
 0x8c3   : > { %v9362_v34 = vpop.f32.mrf.mxu3  ;;  %v9722_v39 = vpop.f32.mrf.mxu0  ;;  %v14504_v44 = vadd.f32 %v9015_v21, %v14342_v33 }
 0x8c4   : > { %v9479_v16 = vadd.f32 %v9362_v34, %v14456_v32  ;;  %v14501_v50 = vadd.f32 %v9722_v39, %v9478_v6  ;;  %v10041_v1 = vpop.f32.mrf.mxu1  ;;  %v9922_v6 = vld [vmem:[#allocation3 + $0xba] sm:$0xff]  ;;  %v9219_v39 = vld [vmem:[#allocation3 + $0x151] sm:$0xff] }
 0x8c5   : > { %v14507_v11 = vadd.f32 %v10041_v1, %v14348_v23  ;;  %v9954_v34 = vpack.c.bf16 %v9923_v51, %v9922_v6  ;;  %v10269_v1 = vld [vmem:[#allocation3 + $0x43] sm:$0xff] }
 0x8c6   : > { %9761 = vmatmul.bf16.gmra.mxu0 %v9239_v9 }
 0x8c7   : > { %10400 = vmatmul.bf16.vlgmr.msra.gmra.mxu2 %v10307_v14 }
 0x8c8   : > { %9404 = vmatmul.bf16.gmra.mxu3 %v9239_v9 }
 0x8ca   : > { %v9018_v8 = vpop.f32.mrf.mxu2 }
 0x8cb   : > { %v9365_v32 = vpop.f32.mrf.mxu3  ;;  %v9724_v29 = vpop.f32.mrf.mxu0  ;;  %v14513_v33 = vadd.f32 %v9018_v8, %v14354_v15 }
 0x8cc   : > { %v9480_v27 = vadd.f32 %v9365_v32, %v14465_v45  ;;  %v14510_v60 = vadd.f32 %v9724_v29, %v9479_v16  ;;  %v10044_v7 = vpop.f32.mrf.mxu1  ;;  %v9218_v45 = vld [vmem:[#allocation3 + $0x149] sm:$0xff]  ;;  %v10268_v32 = vld [vmem:[#allocation3 + $0x3b] sm:$0xff]  ;;  %v9925_v29 = vld [vmem:[#allocation3 + $0xd2] sm:$0xff] }
 0x8cd   : > { %v14516_v23 = vadd.f32 %v10044_v7, %v14357_v2  ;;  %v9240_v47 = vpack.c.bf16 %v9219_v39, %v9218_v45  ;;  %v10308_v51 = vpack.c.bf16 %v10269_v1, %v10268_v32  ;;  %v9924_v39 = vld [vmem:[#allocation3 + $0xca] sm:$0xff]  ;;  %v9581_v45 = vld [vmem:[#allocation3 + $0x161] sm:$0xff]  ;;  %v9220_v1 = vld [vmem:[#allocation3 + $0x159] sm:$0xf] }
 0x8ce   : > { %10083 = vmatmul.bf16.gmra.mxu1 %v9954_v34 }
 0x8d2   : > { %v9020_v9 = vpop.f32.mrf.mxu2 }
 0x8d3   : > { %v9367_v53 = vpop.f32.mrf.mxu3  ;;  %v9727_v18 = vpop.f32.mrf.mxu0  ;;  %v14522_v15 = vadd.f32 %v9020_v9, %v14363_v10 }
 0x8d4   : > { %v9481_v21 = vadd.f32 %v9367_v53, %v14474_v26  ;;  %v14519_v16 = vadd.f32 %v9727_v18, %v9480_v27  ;;  %v10046_v14 = vpop.f32.mrf.mxu1  ;;  %v9955_v53 = vpack.c.bf16 %v9925_v29, %v9924_v39  ;;  %v9580_v18 = vld [vmem:[#allocation3 + $0x159] sm:$0xff] }
 0x8d5   : > { %v14525_v2 = vadd.f32 %v10046_v14, %v14366_v56 }
 0x8d6   : > { %9766 = vmatmul.bf16.gmra.mxu0 %v9240_v47 }
 0x8d7   : > { %10405 = vmatmul.bf16.gmra.mxu2 %v10308_v51  ;;  %v9602_v51 = vpack.c.bf16 %v9581_v45, %v9580_v18 }
 0x8d8   : > { %9409 = vmatmul.bf16.gmra.mxu3 %v9240_v47 }
 0x8da   : > { %v9023_v27 = vpop.f32.mrf.mxu2 }
 0x8db   : > { %v9370_v26 = vpop.f32.mrf.mxu3  ;;  %v9729_v7 = vpop.f32.mrf.mxu0  ;;  %v14531_v10 = vadd.f32 %v9023_v27, %v14372_v46 }
 0x8dc   : > { %v9482_v8 = vadd.f32 %v9370_v26, %v14483_v28  ;;  %v14528_v6 = vadd.f32 %v9729_v7, %v9481_v21  ;;  %v10049_v34 = vpop.f32.mrf.mxu1  ;;  %v10271_v21 = vld [vmem:[#allocation3 + $0x53] sm:$0xff]  ;;  %v10270_v7 = vld [vmem:[#allocation3 + $0x4b] sm:$0xff] }
 0x8dd   : > { %v14534_v56 = vadd.f32 %v10049_v34, %v14375_v13  ;;  %v9241_v13 = vpack.c.bf16 %v9220_v1, %v9220_v1  ;;  %v10309_v27 = vpack.c.bf16 %v10271_v21, %v10270_v7  ;;  %v9927_v34 = vld [vmem:[#allocation3 + $0xe2] sm:$0xff] }
 0x8de   : > { %10088 = vmatmul.bf16.gmra.mxu1 %v9955_v53 }
 0x8e2   : > { %v9025_v14 = vpop.f32.mrf.mxu2 }
 0x8e3   : > { %v9372_v9 = vpop.f32.mrf.mxu3  ;;  %v9732_v47 = vpop.f32.mrf.mxu0  ;;  %v14540_v46 = vadd.f32 %v9025_v14, %v14381_v42  ;;  %v9926_v42 = vld [vmem:[#allocation3 + $0xda] sm:$0xff] }
 0x8e4   : > { %v9483_v28 = vadd.f32 %v9372_v9, %v14489_v4  ;;  %v14537_v32 = vadd.f32 %v9732_v47, %v9482_v8  ;;  %v10051_v26 = vpop.f32.mrf.mxu1  ;;  %v9956_v1 = vpack.c.bf16 %v9927_v34, %v9926_v42  ;;  %v9582_v47 = vld [vmem:[#allocation3 + $0x169] sm:$0xf] }
 0x8e5   : > { %v14543_v29 = vadd.f32 %v10051_v26, %v14384_v24  ;;  %v9603_v21 = vpack.c.bf16 %v9582_v47, %v9582_v47 }
 0x8e6   : > { %9771 = vmatmul.bf16.gmra.mxu0 %v9602_v51 }
 0x8e7   : > { %10410 = vmatmul.bf16.gmra.mxu2 %v10309_v27 }
 0x8e8   : > { %9414 = vmatmul.bf16.gmra.mxu3 %v9241_v13  ;;  %v10273_v13 = vld [vmem:[#allocation3 + $0x63] sm:$0xff] }
 0x8ea   : > { %v9028_v53 = vpop.f32.mrf.mxu2 }
 0x8eb   : > { %v9375_v4 = vpop.f32.mrf.mxu3  ;;  %v9734_v8 = vpop.f32.mrf.mxu0  ;;  %v14549_v9 = vadd.f32 %v9028_v53, %v14390_v30 }
 0x8ec   : > { %v9484_v39 = vadd.f32 %v9375_v4, %v14494_v61  ;;  %v14546_v18 = vadd.f32 %v9734_v8, %v9483_v28  ;;  %v10054_v45 = vpop.f32.mrf.mxu1  ;;  %v9929_v8 = vld [vmem:[#allocation3 + $0xf2] sm:$0xff] }
 0x8ed   : > { %v14552_v24 = vadd.f32 %v10054_v45, %v14396_v19  ;;  %v10272_v19 = vld [vmem:[#allocation3 + $0x5b] sm:$0xff] }
 0x8ee   : > { %10093 = vmatmul.bf16.gmra.mxu1 %v9956_v1  ;;  %v10310_v4 = vpack.c.bf16 %v10273_v13, %v10272_v19  ;;  %v9928_v1 = vld [vmem:[#allocation3 + $0xea] sm:$0xff] }
 0x8ef   : > { %v9957_v47 = vpack.c.bf16 %v9929_v8, %v9928_v1  ;;  %v10274_v19 = vld [vmem:[#allocation3 + $0x6b] sm:$0xff] }
 0x8f2   : > { %v9030_v26 = vpop.f32.mrf.mxu2 }
 0x8f3   : > { %v9377_v14 = vpop.f32.mrf.mxu3  ;;  %v9737_v61 = vpop.f32.mrf.mxu0  ;;  %v14558_v27 = vadd.f32 %v9030_v26, %v14402_v58 }
 0x8f4   : > { %v9485_v51 = vadd.f32 %v9377_v14, %v14504_v44  ;;  %v14555_v28 = vadd.f32 %v9737_v61, %v9484_v39  ;;  %v10056_v7 = vpop.f32.mrf.mxu1 }
 0x8f5   : > { %v14561_v30 = vadd.f32 %v10056_v7, %v14405_v17 }
 0x8f6   : > { %9776 = vmatmul.bf16.gmra.mxu0 %v9603_v21 }
 0x8f7   : > { %10415 = vmatmul.bf16.gmra.mxu2 %v10310_v4 }
 0x8fa   : > { %v9033_v45 = vpop.f32.mrf.mxu2 }
 0x8fb   : > { %v9380_v34 = vpop.f32.mrf.mxu3  ;;  %v9739_v53 = vpop.f32.mrf.mxu0  ;;  %v14567_v58 = vadd.f32 %v9033_v45, %v14411_v55 }
 0x8fc   : > { %v9486_v44 = vadd.f32 %v9380_v34, %v14513_v33  ;;  %v14564_v42 = vadd.f32 %v9739_v53, %v9485_v51  ;;  %v10059_v39 = vpop.f32.mrf.mxu1  ;;  %v10275_v33 = vld [vmem:[#allocation3 + $0x73] sm:$0xff]  ;;  %v9931_v34 = vld [vmem:[#allocation3 + $0x102] sm:$0xff] }
 0x8fd   : > { %v14570_v17 = vadd.f32 %v10059_v39, %v14414_v12  ;;  %v10311_v12 = vpack.c.bf16 %v10275_v33, %v10274_v19  ;;  %v9930_v39 = vld [vmem:[#allocation3 + $0xfa] sm:$0xff] }
 0x8fe   : > { %10098 = vmatmul.bf16.gmra.mxu1 %v9957_v47  ;;  %v10276_v19 = vld [vmem:[#allocation3 + $0x7b] sm:$0xff] }
 0x902   : > { %v9035_v26 = vpop.f32.mrf.mxu2 }
 0x903   : > { %v9382_v14 = vpop.f32.mrf.mxu3  ;;  %v9742_v61 = vpop.f32.mrf.mxu0  ;;  %v14576_v7 = vadd.f32 %v9035_v26, %v14420_v0 }
 0x904   : > { %v9487_v21 = vadd.f32 %v9382_v14, %v14522_v15  ;;  %v14573_v13 = vadd.f32 %v9742_v61, %v9486_v44  ;;  %v10061_v51 = vpop.f32.mrf.mxu1 }
 0x905   : > { %v14579_v55 = vadd.f32 %v10061_v51, %v14423_v37  ;;  %v9958_v37 = vpack.c.bf16 %v9931_v34, %v9930_v39 }
 0x907   : > { %10420 = vmatmul.bf16.gmra.mxu2 %v10311_v12 }
 0x90a   : > { %v9038_v53 = vpop.f32.mrf.mxu2 }
 0x90b   : > { %v9385_v4 = vpop.f32.mrf.mxu3  ;;  %v9744_v15 = vpop.f32.mrf.mxu0  ;;  %v14585_v1 = vadd.f32 %v9038_v53, %v14429_v40 }
 0x90c   : > { %v9488_v8 = vadd.f32 %v9385_v4, %v14531_v10  ;;  %v14582_v45 = vadd.f32 %v9744_v15, %v9487_v21  ;;  %v10064_v44 = vpop.f32.mrf.mxu1  ;;  %v10277_v10 = vld [vmem:[#allocation3 + $0x83] sm:$0xff]  ;;  %v9933_v4 = vld [vmem:[#allocation3 + $0x112] sm:$0xff] }
 0x90d   : > { %v14588_v0 = vadd.f32 %v10064_v44, %v14432_v57  ;;  %v10312_v57 = vpack.c.bf16 %v10277_v10, %v10276_v19  ;;  %v9932_v44 = vld [vmem:[#allocation3 + $0x10a] sm:$0xff] }
 0x90e   : > { %10103 = vmatmul.bf16.gmra.mxu1 %v9958_v37  ;;  %v10278_v19 = vld [vmem:[#allocation3 + $0x8b] sm:$0xff] }
 0x912   : > { %v9040_v26 = vpop.f32.mrf.mxu2 }
 0x913   : > { %v9387_v47 = vpop.f32.mrf.mxu3  ;;  %v9747_v61 = vpop.f32.mrf.mxu0  ;;  %v14594_v51 = vadd.f32 %v9040_v26, %v14438_v59 }
 0x914   : > { %v9489_v14 = vadd.f32 %v9387_v47, %v14540_v46  ;;  %v14591_v33 = vadd.f32 %v9747_v61, %v9488_v8  ;;  %v10066_v21 = vpop.f32.mrf.mxu1 }
 0x915   : > { %v14597_v40 = vadd.f32 %v10066_v21, %v14441_v31  ;;  %v9959_v31 = vpack.c.bf16 %v9933_v4, %v9932_v44 }
 0x917   : > { %10425 = vmatmul.bf16.gmra.mxu2 %v10312_v57 }
 0x91a   : > { %v9043_v15 = vpop.f32.mrf.mxu2 }
 0x91b   : > { %v9390_v12 = vpop.f32.mrf.mxu3  ;;  %v9749_v46 = vpop.f32.mrf.mxu0  ;;  %v14603_v39 = vadd.f32 %v9043_v15, %v14450_v38 }
 0x91c   : > { %v9490_v34 = vadd.f32 %v9390_v12, %v14549_v9  ;;  %v14600_v53 = vadd.f32 %v9749_v46, %v9489_v14  ;;  %v10069_v8 = vpop.f32.mrf.mxu1  ;;  %v10279_v9 = vld [vmem:[#allocation3 + $0x93] sm:$0xff]  ;;  %v9935_v12 = vld [vmem:[#allocation3 + $0x122] sm:$0xff] }
 0x91d   : > { %v14606_v59 = vadd.f32 %v10069_v8, %v14453_v43  ;;  %v10313_v43 = vpack.c.bf16 %v10279_v9, %v10278_v19  ;;  %v9934_v8 = vld [vmem:[#allocation3 + $0x11a] sm:$0xff] }
 0x91e   : > { %10108 = vmatmul.bf16.gmra.mxu1 %v9959_v31  ;;  %v10280_v19 = vld [vmem:[#allocation3 + $0x9b] sm:$0xff] }
 0x922   : > { %v9045_v26 = vpop.f32.mrf.mxu2 }
 0x923   : > { %v9392_v37 = vpop.f32.mrf.mxu3  ;;  %v9752_v61 = vpop.f32.mrf.mxu0  ;;  %v14612_v21 = vadd.f32 %v9045_v26, %v14459_v22 }
 0x924   : > { %v9491_v47 = vadd.f32 %v9392_v37, %v14558_v27  ;;  %v14609_v10 = vadd.f32 %v9752_v61, %v9490_v34  ;;  %v10071_v14 = vpop.f32.mrf.mxu1 }
 0x925   : > { %v14615_v38 = vadd.f32 %v10071_v14, %v14462_v54  ;;  %v9960_v54 = vpack.c.bf16 %v9935_v12, %v9934_v8  ;;  %v9936_v8 = vld [vmem:[#allocation3 + $0x12a] sm:$0xff] }
 0x927   : > { %10430 = vmatmul.bf16.gmra.mxu2 %v10313_v43 }
 0x92a   : > { %v9048_v46 = vpop.f32.mrf.mxu2 }
 0x92b   : > { %v9395_v57 = vpop.f32.mrf.mxu3  ;;  %v9754_v27 = vpop.f32.mrf.mxu0  ;;  %v14621_v44 = vadd.f32 %v9048_v46, %v14468_v20  ;;  %v9097_v46 = vld [vmem:[#allocation4 + $0x58] sm:$0xf] }
 0x92c   : > { %v9492_v4 = vadd.f32 %v9395_v57, %v14567_v58  ;;  %v14618_v15 = vadd.f32 %v9754_v27, %v9491_v47  ;;  %v10074_v34 = vpop.f32.mrf.mxu1  ;;  %v10281_v58 = vld [vmem:[#allocation3 + $0xa3] sm:$0xff]  ;;  %v9937_v57 = vld [vmem:[#allocation3 + $0x132] sm:$0xff] }
 0x92d   : > { %v14624_v22 = vadd.f32 %v10074_v34, %v14471_v41  ;;  %v10314_v41 = vpack.c.bf16 %v10281_v58, %v10280_v19 }
 0x92e   : > { %10113 = vmatmul.bf16.gmra.mxu1 %v9960_v54 }
 0x932   : > { %v9050_v26 = vpop.f32.mrf.mxu2 }
 0x933   : > { %v9397_v31 = vpop.f32.mrf.mxu3  ;;  %v9757_v61 = vpop.f32.mrf.mxu0  ;;  %v14630_v14 = vadd.f32 %v9050_v26, %v14477_v63 }
 0x934   : > { %v9493_v37 = vadd.f32 %v9397_v31, %v14576_v7  ;;  %v14627_v9 = vadd.f32 %v9757_v61, %v9492_v4  ;;  %v10076_v47 = vpop.f32.mrf.mxu1 }
 0x935   : > { %v14633_v20 = vadd.f32 %v10076_v47, %v14480_v49  ;;  %v9961_v49 = vpack.c.bf16 %v9937_v57, %v9936_v8  ;;  %v9938_v8 = vld [vmem:[#allocation3 + $0x13a] sm:$0xff] }
 0x937   : > { %10435 = vmatmul.bf16.gmra.mxu2 %v10314_v41  ;;  %v10282_v41 = vld [vmem:[#allocation3 + $0xab] sm:$0xff] }
 0x93a   : > { %v9053_v27 = vpop.f32.mrf.mxu2 }
 0x93b   : > { %v9400_v43 = vpop.f32.mrf.mxu3  ;;  %v9759_v7 = vpop.f32.mrf.mxu0  ;;  %v9138_v54 = vadd.f32 %v9097_v46, %v9053_v27 }
 0x93c   : > { %v9494_v12 = vadd.f32 %v9400_v43, %v14585_v1  ;;  %v14636_v34 = vadd.f32 %v9759_v7, %v9493_v37  ;;  %v10079_v4 = vpop.f32.mrf.mxu1  ;;  %v10283_v1 = vld [vmem:[#allocation3 + $0xb3] sm:$0xff]  ;;  %v9939_v7 = vld [vmem:[#allocation3 + $0x142] sm:$0xff] }
 0x93d   : > { %v14639_v63 = vadd.f32 %v10079_v4, %v14486_v3  ;;  %9179 = vst [vmem:[#allocation4 + $0x58] sm:$0xf] %v9138_v54  ;;  %v10315_v43 = vpack.c.bf16 %v10283_v1, %v10282_v41 }
 0x93e   : > { %10118 = vmatmul.bf16.gmra.mxu1 %v9961_v49  ;;  %v9962_v49 = vpack.c.bf16 %v9939_v7, %v9938_v8  ;;  %v10715_v8 = vld [vmem:[#allocation2 + $0x20] sm:$0xff] }
 0x942   : > { %v9055_v58 = vpop.f32.mrf.mxu2 }
 0x943   : > { %v9402_v31 = vpop.f32.mrf.mxu3  ;;  %v9762_v26 = vpop.f32.mrf.mxu0  ;;  %v10714_v58 = vld [vmem:[#allocation2 + $0x18] sm:$0xff] }
 0x944   : > { %v9495_v61 = vadd.f32 %v9402_v31, %v14594_v51  ;;  %v14642_v47 = vadd.f32 %v9762_v26, %v9494_v12  ;;  %v10081_v19 = vpop.f32.mrf.mxu1 }
 0x945   : > { %v14645_v37 = vadd.f32 %v10081_v19, %v14491_v36  ;;  %v14654_v36 = vld [vmem:[%s14966_s7] ss:$0 sm:$0xff] }
 0x946   : > { %v10285_v19 = vld [vmem:[#allocation3 + $0xc3] sm:$0xff] }
 0x947   : > { %10440 = vmatmul.bf16.gmra.mxu2 %v10315_v43 }
 0x94a   : > { %v10401_v46 = vpop.f32.mrf.mxu2 }
 0x94b   : > { %v9405_v3 = vpop.f32.mrf.mxu3  ;;  %v9764_v27 = vpop.f32.mrf.mxu0  ;;  %v10546_v12 = vadd.f32 %v10401_v46, %v14497_v48 }
 0x94c   : > { %v9496_v57 = vadd.f32 %v9405_v3, %v14603_v39  ;;  %v14648_v4 = vadd.f32 %v9764_v27, %v9495_v61  ;;  %v10084_v51 = vpop.f32.mrf.mxu1  ;;  %v10942_v39 = vld [vmem:[%s14967_s8 + $0x78] sm:$0xff] }
 0x94d   : > { %v14657_v54 = vadd.f32 %v10084_v51, %v14501_v50  ;;  %10587 = vst [vmem:[#allocation4 + $0xb0] sm:$0xff] %v10546_v12  ;;  %10944 = vmatpush.msrb.mxu3 %v10942_v39  ;;  %v10673_v31 = vadd.f32 %v14654_v36, %v10546_v12  ;;  %v10284_v27 = vld [vmem:[#allocation3 + $0xbb] sm:$0xff] }
 0x94e   : > { %10123 = vmatmul.bf16.gmra.mxu1 %v9962_v49  ;;  %v10316_v51 = vpack.c.bf16 %v10285_v19, %v10284_v27 }
 0x94f   : > { %v10755_v50 = vadd.f32 %v10714_v58, %v10673_v31 }
 0x952   : > { %v10403_v1 = vpop.f32.mrf.mxu2 }
 0x953   : > { %v9407_v61 = vpop.f32.mrf.mxu3  ;;  %v9767_v26 = vpop.f32.mrf.mxu0  ;;  %v10547_v3 = vadd.f32 %v10403_v1, %v14507_v11 }
 0x954   : > { %v9497_v48 = vadd.f32 %v9407_v61, %v14612_v21  ;;  %v14664_v41 = vadd.f32 %v9767_v26, %v9496_v57  ;;  %v10086_v43 = vpop.f32.mrf.mxu1  ;;  %v10796_v21 = vmax.f32 %v10755_v50, 0.0  ;;  %v9941_v57 = vld [vmem:[#allocation3 + $0x152] sm:$0xff] }
 0x955   : > { %v14668_v7 = vadd.f32 %v10086_v43, %v14510_v60  ;;  %10588 = vst [vmem:[#allocation4 + $0xd0] sm:$0xff] %v10547_v3  ;;  %v10674_v46 = vadd.f32 %v14654_v36, %v10547_v3  ;;  %v9940_v43 = vld [vmem:[#allocation3 + $0x14a] sm:$0xff] }
 0x956   : > { %v10837_v11 = vmul.f32 %v10796_v21, %v12998_v5  ;;  %v9963_v3 = vpack.c.bf16 %v9941_v57, %v9940_v43  ;;  %v10941_v5 = vld [vmem:[%s14967_s8 + $0x70] sm:$0xff] }
 0x957   : > { %v10756_v12 = vadd.f32 %v10715_v8, %v10674_v46  ;;  %10445 = vmatmul.bf16.gmra.mxu2 %v10316_v51  ;;  %10945 = vmatpush.msrb.mxu3 %v10941_v5  ;;  %v10287_v21 = vld [vmem:[#allocation3 + $0xd3] sm:$0xff] }
 0x959   : > { %v10797_v39 = vmax.f32 %v10756_v12, 0.0 }
 0x95a   : > { %v10406_v26 = vpop.f32.mrf.mxu2 }
 0x95b   : > { %v9410_v49 = vpop.f32.mrf.mxu3  ;;  %v9769_v61 = vpop.f32.mrf.mxu0  ;;  %v10838_v58 = vmul.f32 %v10797_v39, %v13010_v25  ;;  %v10548_v19 = vadd.f32 %v10406_v26, %v14516_v23  ;;  %v10286_v26 = vld [vmem:[#allocation3 + $0xcb] sm:$0xff] }
 0x95c   : > { %v9498_v31 = vadd.f32 %v9410_v49, %v14621_v44  ;;  %v14673_v60 = vadd.f32 %v9769_v61, %v9497_v48  ;;  %v10089_v1 = vpop.f32.mrf.mxu1  ;;  %v10716_v48 = vld [vmem:[#allocation2 + $0x28] sm:$0xff] }
 0x95d   : > { %v14678_v50 = vadd.f32 %v10089_v1, %v14519_v16  ;;  %v10878_v27 = vadd.f32 %v10838_v58, %v10837_v11  ;;  %10589 = vst [vmem:[#allocation4 + $0x10] sm:$0xff] %v10548_v19  ;;  %v10675_v44 = vadd.f32 %v14654_v36, %v10548_v19  ;;  %v10317_v1 = vpack.c.bf16 %v10287_v21, %v10286_v26 }
 0x95e   : > { %10128 = vmatmul.bf16.gmra.mxu1 %v9963_v3 }
 0x95f   : > { %v10757_v25 = vadd.f32 %v10716_v48, %v10675_v44  ;;  %v9942_v44 = vld [vmem:[#allocation3 + $0x15a] sm:$0xff] }
 0x961   : > { %v10798_v51 = vmax.f32 %v10757_v25, 0.0 }
 0x962   : > { %v10408_v16 = vpop.f32.mrf.mxu2 }
 0x963   : > { %v9412_v46 = vpop.f32.mrf.mxu3  ;;  %v9772_v8 = vpop.f32.mrf.mxu0  ;;  %v10839_v49 = vmul.f32 %v10798_v51, %v13015_v35  ;;  %v10549_v57 = vadd.f32 %v10408_v16, %v14525_v2  ;;  %v9943_v35 = vld [vmem:[#allocation3 + $0x162] sm:$0xff] }
 0x964   : > { %v9499_v23 = vadd.f32 %v9412_v46, %v14630_v14  ;;  %v14685_v12 = vadd.f32 %v9772_v8, %v9498_v31  ;;  %v10091_v39 = vpop.f32.mrf.mxu1  ;;  %v10717_v14 = vld [vmem:[#allocation2 + $0x30] sm:$0xff]  ;;  %v9459_v31 = vld [vmem:[#allocation4 + $0x58] sm:$0xf]  ;;  %v9964_v8 = vpack.c.bf16 %v9943_v35, %v9942_v44 }
 0x965   : > { %v14690_v61 = vadd.f32 %v10091_v39, %v14528_v6  ;;  %v10879_v11 = vadd.f32 %v10878_v27, %v10839_v49  ;;  %10590 = vst [vmem:[#allocation4 + $0x48] sm:$0xff] %v10549_v57  ;;  %v10676_v58 = vadd.f32 %v14654_v36, %v10549_v57  ;;  %v10940_v49 = vld [vmem:[%s14967_s8 + $0x68] sm:$0xff] }
 0x966   : > { %10946 = vmatpush.msrb.mxu3 %v10940_v49 }
 0x967   : > { %v10758_v43 = vadd.f32 %v10717_v14, %v10676_v58  ;;  %10450 = vmatmul.bf16.gmra.mxu2 %v10317_v1  ;;  %v10289_v58 = vld [vmem:[#allocation3 + $0xe3] sm:$0xff] }
 0x969   : > { %v10799_v3 = vmax.f32 %v10758_v43, 0.0 }
 0x96a   : > { %v10411_v2 = vpop.f32.mrf.mxu2 }
 0x96b   : > { %v9415_v19 = vpop.f32.mrf.mxu3  ;;  %v9774_v48 = vpop.f32.mrf.mxu0  ;;  %v10840_v6 = vmul.f32 %v10799_v3, %v13030_v52  ;;  %v10550_v46 = vadd.f32 %v10411_v2, %v14534_v56  ;;  %v9944_v2 = vld [vmem:[#allocation3 + $0x16a] sm:$0xf] }
 0x96c   : > { %v9500_v5 = vadd.f32 %v9459_v31, %v9415_v19  ;;  %v14693_v25 = vadd.f32 %v9774_v48, %v9499_v23  ;;  %v10094_v27 = vpop.f32.mrf.mxu1  ;;  %v10718_v23 = vld [vmem:[#allocation2 + $0x38] sm:$0xff] }
 0x96d   : > { %v14698_v51 = vadd.f32 %v10094_v27, %v14537_v32  ;;  %v10880_v16 = vadd.f32 %v10879_v11, %v10840_v6  ;;  %10591 = vst [vmem:[#allocation4 + $0x120] sm:$0xff] %v10550_v46  ;;  %v10677_v21 = vadd.f32 %v14654_v36, %v10550_v46  ;;  %v10288_v31 = vld [vmem:[#allocation3 + $0xdb] sm:$0xff] }
 0x96e   : > { %9541 = vst [vmem:[#allocation4 + $0x58] sm:$0xf] %v9500_v5  ;;  %10133 = vmatmul.bf16.gmra.mxu1 %v9964_v8  ;;  %v10318_v35 = vpack.c.bf16 %v10289_v58, %v10288_v31  ;;  %v10719_v5 = vld [vmem:[#allocation2 + $0x40] sm:$0xff] }
 0x96f   : > { %v10759_v52 = vadd.f32 %v10718_v23, %v10677_v21  ;;  %v15118_v58 = vld [vmem:[#allocation12_spill] sm:$0xff] }
 0x971   : > { %v10800_v57 = vmax.f32 %v10759_v52, 0.0  ;;  %v10720_v52 = vld [vmem:[#allocation2 + $0x48] sm:$0xff] }
 0x972   : > { %v10413_v26 = vpop.f32.mrf.mxu2 }
 0x973   : > { %v9417_v39 = vpop.f32.mrf.mxu3  ;;  %v9777_v56 = vpop.f32.mrf.mxu0  ;;  %v10841_v1 = vmul.f32 %v10800_v57, %v13035_v62  ;;  %v10551_v14 = vadd.f32 %v10413_v26, %v14543_v29  ;;  %v9965_v62 = vpack.c.bf16 %v9944_v2, %v9944_v2  ;;  %v15117_v29 = vld [vmem:[#allocation11_spill] sm:$0xff]  ;;  %v10291_v26 = vld [vmem:[#allocation3 + $0xf3] sm:$0xff] }
 0x974   : > { %v10096_v11 = vpop.f32.mrf.mxu1 }
 0x975   : > { %v9821_v32 = vld [vmem:[#allocation4 + $0x58] sm:$0xf]  ;;  %v14707_v19 = vadd.f32 %v10096_v11, %v14546_v18  ;;  %v10881_v3 = vadd.f32 %v10880_v16, %v10841_v1  ;;  %10592 = vst [vmem:[#allocation4 + $0x38] sm:$0xff] %v10551_v14  ;;  %v10678_v44 = vadd.f32 %v14654_v36, %v10551_v14 }
 0x976   : > { %v9862_v43 = vadd.f32 %v9821_v32, %v9777_v56 }
 0x977   : > { %v10760_v48 = vadd.f32 %v10719_v5, %v10678_v44  ;;  %10455 = vmatmul.bf16.gmra.mxu2 %v10318_v35  ;;  %v10721_v44 = vld [vmem:[#allocation2 + $0x50] sm:$0xff] }
 0x978   : > { %9903 = vst [vmem:[#allocation4 + $0x58] sm:$0xf] %v9862_v43 }
 0x979   : > { %v10801_v6 = vmax.f32 %v10760_v48, 0.0 }
 0x97a   : > { %v10416_v27 = vpop.f32.mrf.mxu2 }
 0x97b   : > { %v9779_v46 = vpop.f32.mrf.mxu0  ;;  %v10842_v8 = vmul.f32 %v10801_v6, %v15117_v29  ;;  %v10552_v18 = vadd.f32 %v10416_v27, %v14552_v24  ;;  %v10722_v29 = vld [vmem:[#allocation2 + $0x58] sm:$0xff] }
 0x97c   : > { %v10099_v21 = vpop.f32.mrf.mxu1 }
 0x97d   : > { %v14713_v16 = vadd.f32 %v10099_v21, %v14555_v28  ;;  %v10882_v49 = vadd.f32 %v10881_v3, %v10842_v8  ;;  %10593 = vst [vmem:[#allocation4 + $0xf8] sm:$0xff] %v10552_v18  ;;  %v10679_v23 = vadd.f32 %v14654_v36, %v10552_v18  ;;  %v10290_v28 = vld [vmem:[#allocation3 + $0xeb] sm:$0xff] }
 0x97e   : > { %10138 = vmatmul.bf16.gmra.mxu1 %v9965_v62  ;;  %v10319_v31 = vpack.c.bf16 %v10291_v26, %v10290_v28  ;;  %v10939_v3 = vld [vmem:[%s14967_s8 + $0x60] sm:$0xff] }
 0x97f   : > { %v10761_v39 = vadd.f32 %v10720_v52, %v10679_v23  ;;  %10947 = vmatpush.msrb.mxu3 %v10939_v3  ;;  %v15120_v23 = vld [vmem:[#allocation14_spill] sm:$0xff] }
 0x981   : > { %v10802_v57 = vmax.f32 %v10761_v39, 0.0 }
 0x982   : > { %v10418_v56 = vpop.f32.mrf.mxu2 }
 0x983   : > { %v10843_v32 = vmul.f32 %v10802_v57, %v15118_v58  ;;  %v10553_v11 = vadd.f32 %v10418_v56, %v14561_v30  ;;  %v15119_v30 = vld [vmem:[#allocation13_spill] sm:$0xff] }
 0x984   : > { %v10101_v1 = vpop.f32.mrf.mxu1 }
 0x985   : > { %v14719_v24 = vadd.f32 %v10101_v1, %v14564_v42  ;;  %v10883_v14 = vadd.f32 %v10882_v49, %v10843_v32  ;;  %10594 = vst [vmem:[#allocation4 + $0x100] sm:$0xff] %v10553_v11  ;;  %v10680_v43 = vadd.f32 %v14654_v36, %v10553_v11  ;;  %v10293_v49 = vld [vmem:[#allocation3 + $0x103] sm:$0xff] }
 0x986   : > { %v10723_v32 = vld [vmem:[#allocation2 + $0x60] sm:$0xff] }
 0x987   : > { %v10762_v35 = vadd.f32 %v10721_v44, %v10680_v43  ;;  %10460 = vmatmul.bf16.gmra.mxu2 %v10319_v31 }
 0x989   : > { %v10803_v5 = vmax.f32 %v10762_v35, 0.0  ;;  %v10938_v35 = vld [vmem:[%s14967_s8 + $0x58] sm:$0xff] }
 0x98a   : > { %v10421_v48 = vpop.f32.mrf.mxu2  ;;  %10948 = vmatpush.msrb.mxu3 %v10938_v35 }
 0x98b   : > { %v10844_v2 = vmul.f32 %v10803_v5, %v15119_v30  ;;  %v10554_v6 = vadd.f32 %v10421_v48, %v14570_v17  ;;  %v10292_v17 = vld [vmem:[#allocation3 + $0xfb] sm:$0xff]  ;;  %v10724_v5 = vld [vmem:[#allocation2 + $0x68] sm:$0xff] }
 0x98c   : > { %v10104_v42 = vpop.f32.mrf.mxu1  ;;  %v10320_v58 = vpack.c.bf16 %v10293_v49, %v10292_v17  ;;  %v10725_v49 = vld [vmem:[#allocation2 + $0x70] sm:$0xff] }
 0x98d   : > { %v14728_v62 = vadd.f32 %v10104_v42, %v14573_v13  ;;  %v10884_v27 = vadd.f32 %v10883_v14, %v10844_v2  ;;  %10595 = vst [vmem:[#allocation4 + $0x80] sm:$0xff] %v10554_v6  ;;  %v10681_v46 = vadd.f32 %v14654_v36, %v10554_v6  ;;  %v15121_v14 = vld [vmem:[#allocation15_spill] sm:$0xff]  ;;  %v10295_v42 = vld [vmem:[#allocation3 + $0x113] sm:$0xff] }
 0x98e   : > { %v15122_v6 = vld [vmem:[#allocation16_spill] sm:$0xff] }
 0x98f   : > { %v10763_v8 = vadd.f32 %v10722_v29, %v10681_v46  ;;  %v10294_v29 = vld [vmem:[#allocation3 + $0x10b] sm:$0xff] }
 0x991   : > { %v10804_v21 = vmax.f32 %v10763_v8, 0.0 }
 0x992   : > { %v10423_v18 = vpop.f32.mrf.mxu2 }
 0x993   : > { %v10845_v52 = vmul.f32 %v10804_v21, %v15120_v23  ;;  %v10555_v57 = vadd.f32 %v10423_v18, %v14579_v55  ;;  %v10321_v18 = vpack.c.bf16 %v10295_v42, %v10294_v29 }
 0x994   : > { %v10106_v39 = vpop.f32.mrf.mxu1 }
 0x995   : > { %v14734_v56 = vadd.f32 %v10106_v39, %v14582_v45  ;;  %v10885_v13 = vadd.f32 %v10884_v27, %v10845_v52  ;;  %10596 = vst [vmem:[#allocation4 + $0x108] sm:$0xff] %v10555_v57  ;;  %v10682_v26 = vadd.f32 %v14654_v36, %v10555_v57  ;;  %v15123_v57 = vld [vmem:[#allocation17_spill] sm:$0xff] }
 0x997   : > { %v10764_v1 = vadd.f32 %v10723_v32, %v10682_v26  ;;  %10465 = vmatmul.bf16.gmra.mxu2 %v10320_v58  ;;  %v10937_v32 = vld [vmem:[%s14967_s8 + $0x50] sm:$0xff] }
 0x998   : > { %10949 = vmatpush.msrb.mxu3 %v10937_v32  ;;  %v10936_v32 = vld [vmem:[%s14967_s8 + $0x48] sm:$0xff] }
 0x999   : > { %v10805_v11 = vmax.f32 %v10764_v1, 0.0  ;;  %v10726_v1 = vld [vmem:[#allocation2 + $0x78] sm:$0xff] }
 0x99a   : > { %v10426_v28 = vpop.f32.mrf.mxu2  ;;  %10950 = vmatpush.msrb.mxu3 %v10936_v32  ;;  %v15130_v32 = vld [vmem:[#allocation24_spill] sm:$0xff] }
 0x99b   : > { %v10846_v43 = vmul.f32 %v10805_v11, %v15121_v14  ;;  %v10556_v3 = vadd.f32 %v10426_v28, %v14588_v0 }
 0x99c   : > { %v10109_v31 = vpop.f32.mrf.mxu1 }
 0x99d   : > { %v14740_v55 = vadd.f32 %v10109_v31, %v14591_v33  ;;  %v10886_v45 = vadd.f32 %v10885_v13, %v10846_v43  ;;  %10597 = vst [vmem:[#allocation4 + $0x138] sm:$0xff] %v10556_v3  ;;  %v10683_v44 = vadd.f32 %v14654_v36, %v10556_v3  ;;  %v10297_v43 = vld [vmem:[#allocation3 + $0x123] sm:$0xff] }
 0x99e   : > { %v15124_v31 = vld [vmem:[#allocation18_spill] sm:$0xff] }
 0x99f   : > { %v10765_v48 = vadd.f32 %v10724_v5, %v10683_v44  ;;  %v10296_v44 = vld [vmem:[#allocation3 + $0x11b] sm:$0xff] }
 0x9a1   : > { %v10806_v30 = vmax.f32 %v10765_v48, 0.0  ;;  %v10322_v48 = vpack.c.bf16 %v10297_v43, %v10296_v44  ;;  %v10730_v44 = vld [vmem:[#allocation2 + $0x98] sm:$0xff] }
 0x9a2   : > { %v10428_v2 = vpop.f32.mrf.mxu2 }
 0x9a3   : > { %v10847_v27 = vmul.f32 %v10806_v30, %v15122_v6  ;;  %v10557_v33 = vadd.f32 %v10428_v2, %v14597_v40  ;;  %v10727_v30 = vld [vmem:[#allocation2 + $0x80] sm:$0xff] }
 0x9a4   : > { %v10111_v0 = vpop.f32.mrf.mxu1 }
 0x9a5   : > { %v14749_v46 = vadd.f32 %v10111_v0, %v14600_v53  ;;  %v10887_v8 = vadd.f32 %v10886_v45, %v10847_v27  ;;  %10598 = vst [vmem:[#allocation4 + $0xf0] sm:$0xff] %v10557_v33  ;;  %v10684_v21 = vadd.f32 %v14654_v36, %v10557_v33  ;;  %v15125_v27 = vld [vmem:[#allocation19_spill] sm:$0xff] }
 0x9a7   : > { %v10766_v23 = vadd.f32 %v10725_v49, %v10684_v21  ;;  %10470 = vmatmul.bf16.gmra.mxu2 %v10321_v18  ;;  %v10728_v21 = vld [vmem:[#allocation2 + $0x88] sm:$0xff] }
 0x9a9   : > { %v10807_v52 = vmax.f32 %v10766_v23, 0.0 }
 0x9aa   : > { %v10431_v39 = vpop.f32.mrf.mxu2 }
 0x9ab   : > { %v10848_v17 = vmul.f32 %v10807_v52, %v15123_v57  ;;  %v10558_v26 = vadd.f32 %v10431_v39, %v14606_v59  ;;  %v10299_v52 = vld [vmem:[#allocation3 + $0x133] sm:$0xff] }
 0x9ac   : > { %v10114_v13 = vpop.f32.mrf.mxu1  ;;  %v15126_v39 = vld [vmem:[#allocation20_spill] sm:$0xff] }
 0x9ad   : > { %v14755_v40 = vadd.f32 %v10114_v13, %v14609_v10  ;;  %v10888_v53 = vadd.f32 %v10887_v8, %v10848_v17  ;;  %10599 = vst [vmem:[#allocation4 + $0x18] sm:$0xff] %v10558_v26  ;;  %v10685_v58 = vadd.f32 %v14654_v36, %v10558_v26 }
 0x9af   : > { %v10767_v11 = vadd.f32 %v10726_v1, %v10685_v58  ;;  %v10729_v1 = vld [vmem:[#allocation2 + $0x90] sm:$0xff] }
 0x9b1   : > { %v10808_v28 = vmax.f32 %v10767_v11, 0.0 }
 0x9b2   : > { %v10433_v14 = vpop.f32.mrf.mxu2 }
 0x9b3   : > { %v10849_v3 = vmul.f32 %v10808_v28, %v15124_v31  ;;  %v10559_v10 = vadd.f32 %v10433_v14, %v14615_v38 }
 0x9b4   : > { %v10116_v59 = vpop.f32.mrf.mxu1 }
 0x9b5   : > { %v14764_v45 = vadd.f32 %v10116_v59, %v14618_v15  ;;  %v10889_v35 = vadd.f32 %v10888_v53, %v10849_v3  ;;  %10600 = vst [vmem:[#allocation4 + $0xc8] sm:$0xff] %v10559_v10  ;;  %v10686_v5 = vadd.f32 %v14654_v36, %v10559_v10 }
 0x9b7   : > { %v10768_v2 = vadd.f32 %v10727_v30, %v10686_v5  ;;  %10475 = vmatmul.bf16.gmra.mxu2 %v10322_v48  ;;  %v10301_v30 = vld [vmem:[#allocation3 + $0x143] sm:$0xff] }
 0x9b9   : > { %v10809_v42 = vmax.f32 %v10768_v2, 0.0  ;;  %v15128_v2 = vld [vmem:[#allocation22_spill] sm:$0xff] }
 0x9ba   : > { %v10436_v6 = vpop.f32.mrf.mxu2 }
 0x9bb   : > { %v10850_v0 = vmul.f32 %v10809_v42, %v15125_v27  ;;  %v10560_v29 = vadd.f32 %v10436_v6, %v14624_v22  ;;  %v10298_v22 = vld [vmem:[#allocation3 + $0x12b] sm:$0xff] }
 0x9bc   : > { %v10119_v33 = vpop.f32.mrf.mxu1  ;;  %v10323_v58 = vpack.c.bf16 %v10299_v52, %v10298_v22 }
 0x9bd   : > { %v14770_v38 = vadd.f32 %v10119_v33, %v14627_v9  ;;  %v10890_v15 = vadd.f32 %v10889_v35, %v10850_v0  ;;  %10601 = vst [vmem:[#allocation4 + $0x70] sm:$0xff] %v10560_v29  ;;  %v10687_v8 = vadd.f32 %v14654_v36, %v10560_v29 }
 0x9bf   : > { %v10769_v18 = vadd.f32 %v10728_v21, %v10687_v8  ;;  %v10731_v8 = vld [vmem:[#allocation2 + $0xa0] sm:$0xff] }
 0x9c1   : > { %v10810_v49 = vmax.f32 %v10769_v18, 0.0 }
 0x9c2   : > { %v10438_v23 = vpop.f32.mrf.mxu2 }
 0x9c3   : > { %v10851_v57 = vmul.f32 %v10810_v49, %v15126_v39  ;;  %v10561_v13 = vadd.f32 %v10438_v23, %v14633_v20  ;;  %v15127_v20 = vld [vmem:[#allocation21_spill] sm:$0xff] }
 0x9c4   : > { %v10121_v17 = vpop.f32.mrf.mxu1 }
 0x9c5   : > { %v14776_v26 = vadd.f32 %v10121_v17, %v14636_v34  ;;  %v10891_v9 = vadd.f32 %v10890_v15, %v10851_v57  ;;  %10602 = vst [vmem:[#allocation4 + $0x20] sm:$0xff] %v10561_v13  ;;  %v10688_v53 = vadd.f32 %v14654_v36, %v10561_v13  ;;  %v10935_v15 = vld [vmem:[%s14967_s8 + $0x40] sm:$0xff]  ;;  %v10732_v13 = vld [vmem:[#allocation2 + $0xa8] sm:$0xff] }
 0x9c6   : > { %10951 = vmatpush.msrb.mxu3 %v10935_v15 }
 0x9c7   : > { %v10770_v11 = vadd.f32 %v10729_v1, %v10688_v53  ;;  %10480 = vmatmul.bf16.gmra.mxu2 %v10323_v58  ;;  %v10303_v58 = vld [vmem:[#allocation3 + $0x153] sm:$0xff] }
 0x9c9   : > { %v10811_v28 = vmax.f32 %v10770_v11, 0.0 }
 0x9ca   : > { %v10441_v14 = vpop.f32.mrf.mxu2 }
 0x9cb   : > { %v10852_v43 = vmul.f32 %v10811_v28, %v15127_v20  ;;  %v10562_v31 = vadd.f32 %v10441_v14, %v14639_v63  ;;  %v10300_v63 = vld [vmem:[#allocation3 + $0x13b] sm:$0xff] }
 0x9cc   : > { %v10124_v34 = vpop.f32.mrf.mxu1  ;;  %v10324_v29 = vpack.c.bf16 %v10301_v30, %v10300_v63 }
 0x9cd   : > { %v14785_v3 = vadd.f32 %v10124_v34, %v14642_v47  ;;  %v10892_v59 = vadd.f32 %v10891_v9, %v10852_v43  ;;  %10603 = vst [vmem:[#allocation4 + $0x128] sm:$0xff] %v10562_v31  ;;  %v10689_v10 = vadd.f32 %v14654_v36, %v10562_v31  ;;  %v10733_v34 = vld [vmem:[#allocation2 + $0xb0] sm:$0xff] }
 0x9cf   : > { %v10771_v35 = vadd.f32 %v10730_v44, %v10689_v10  ;;  %v15131_v44 = vld [vmem:[#allocation25_spill] sm:$0xff] }
 0x9d1   : > { %v10812_v5 = vmax.f32 %v10771_v35, 0.0 }
 0x9d2   : > { %v10443_v48 = vpop.f32.mrf.mxu2 }
 0x9d3   : > { %v10853_v42 = vmul.f32 %v10812_v5, %v15128_v2  ;;  %v10563_v27 = vadd.f32 %v10443_v48, %v14645_v37  ;;  %v15129_v37 = vld [vmem:[#allocation23_spill] sm:$0xff] }
 0x9d4   : > { %v10126_v6 = vpop.f32.mrf.mxu1  ;;  %v10934_v2 = vld [vmem:[%s14967_s8 + $0x38] sm:$0xff] }
 0x9d5   : > { %v14791_v0 = vadd.f32 %v10126_v6, %v14648_v4  ;;  %v10893_v47 = vadd.f32 %v10892_v59, %v10853_v42  ;;  %10604 = vst [vmem:[#allocation4 + $0x110] sm:$0xff] %v10563_v27  ;;  %v10690_v33 = vadd.f32 %v14654_v36, %v10563_v27  ;;  %v10734_v42 = vld [vmem:[#allocation2 + $0xb8] sm:$0xff]  ;;  %10952 = vmatpush.msrb.mxu3 %v10934_v2 }
 0x9d7   : > { %v10772_v21 = vadd.f32 %v10731_v8, %v10690_v33  ;;  %10485 = vmatmul.bf16.gmra.mxu2 %v10324_v29  ;;  %v10305_v33 = vld [vmem:[#allocation3 + $0x163] sm:$0xff] }
 0x9d8   : > { %v15132_v29 = vld [vmem:[#allocation26_spill] sm:$0xff] }
 0x9d9   : > { %v10813_v18 = vmax.f32 %v10772_v21, 0.0 }
 0x9da   : > { %v10446_v49 = vpop.f32.mrf.mxu2 }
 0x9db   : > { %v10854_v23 = vmul.f32 %v10813_v18, %v15129_v37  ;;  %v10564_v52 = vadd.f32 %v10446_v49, %v14657_v54  ;;  %v10302_v54 = vld [vmem:[#allocation3 + $0x14b] sm:$0xff] }
 0x9dc   : > { %v10129_v4 = vpop.f32.mrf.mxu1  ;;  %v10325_v43 = vpack.c.bf16 %v10303_v58, %v10302_v54  ;;  %v10735_v37 = vld [vmem:[#allocation2 + $0xc0] sm:$0xff]  ;;  %v10736_v58 = vld [vmem:[#allocation2 + $0xc8] sm:$0xff] }
 0x9dd   : > { %v14800_v39 = vadd.f32 %v10129_v4, %v14664_v41  ;;  %v10894_v57 = vadd.f32 %v10893_v47, %v10854_v23  ;;  %10605 = vst [vmem:[#allocation4 + $0x8] sm:$0xff] %v10564_v52  ;;  %v10691_v17 = vadd.f32 %v14654_v36, %v10564_v52  ;;  %v10304_v47 = vld [vmem:[#allocation3 + $0x15b] sm:$0xff]  ;;  %v15134_v54 = vld [vmem:[#allocation28_spill] sm:$0xff] }
 0x9de   : > { %v10326_v49 = vpack.c.bf16 %v10305_v33, %v10304_v47  ;;  %v15136_v47 = vld [vmem:[#allocation30_spill] sm:$0xff] }
 0x9df   : > { %v10773_v22 = vadd.f32 %v10732_v13, %v10691_v17 }
 0x9e1   : > { %v10814_v9 = vmax.f32 %v10773_v22, 0.0  ;;  %v10183_v22 = vld [vmem:[#allocation4 + $0x58] sm:$0xf] }
 0x9e2   : > { %v10448_v53 = vpop.f32.mrf.mxu2 }
 0x9e3   : > { %v10855_v1 = vmul.f32 %v10814_v9, %v15130_v32  ;;  %v10565_v28 = vadd.f32 %v10448_v53, %v14668_v7 }
 0x9e4   : > { %v10131_v11 = vpop.f32.mrf.mxu1 }
 0x9e5   : > { %v14806_v14 = vadd.f32 %v10131_v11, %v14673_v60  ;;  %v10895_v41 = vadd.f32 %v10894_v57, %v10855_v1  ;;  %10606 = vst [vmem:[#allocation4 + $0x98] sm:$0xff] %v10565_v28  ;;  %v10692_v20 = vadd.f32 %v14654_v36, %v10565_v28  ;;  %v15133_v57 = vld [vmem:[#allocation27_spill] sm:$0xff] }
 0x9e6   : > { %v10306_v1 = vld [vmem:[#allocation3 + $0x16b] sm:$0xf] }
 0x9e7   : > { %v10774_v31 = vadd.f32 %v10733_v34, %v10692_v20  ;;  %10490 = vmatmul.bf16.gmra.mxu2 %v10325_v43  ;;  %v10327_v43 = vpack.c.bf16 %v10306_v1, %v10306_v1 }
 0x9e9   : > { %v10815_v59 = vmax.f32 %v10774_v31, 0.0 }
 0x9ea   : > { %v10451_v10 = vpop.f32.mrf.mxu2 }
 0x9eb   : > { %v10856_v35 = vmul.f32 %v10815_v59, %v15131_v44  ;;  %v10566_v48 = vadd.f32 %v10451_v10, %v14678_v50  ;;  %v10933_v59 = vld [vmem:[%s14967_s8 + $0x30] sm:$0xff] }
 0x9ec   : > { %v10134_v5 = vpop.f32.mrf.mxu1  ;;  %v10737_v10 = vld [vmem:[#allocation2 + $0xd0] sm:$0xff]  ;;  %10953 = vmatpush.msrb.mxu3 %v10933_v59 }
 0x9ed   : > { %v14812_v7 = vadd.f32 %v10134_v5, %v14685_v12  ;;  %v10896_v60 = vadd.f32 %v10895_v41, %v10856_v35  ;;  %10607 = vst [vmem:[#allocation4 + $0xa8] sm:$0xff] %v10566_v48  ;;  %v10693_v30 = vadd.f32 %v14654_v36, %v10566_v48  ;;  %v15135_v48 = vld [vmem:[#allocation29_spill] sm:$0xff] }
 0x9ef   : > { %v10775_v6 = vadd.f32 %v10734_v42, %v10693_v30  ;;  %v10738_v42 = vld [vmem:[#allocation2 + $0xd8] sm:$0xff] }
 0x9f1   : > { %v10816_v27 = vmax.f32 %v10775_v6, 0.0 }
 0x9f2   : > { %v10453_v63 = vpop.f32.mrf.mxu2 }
 0x9f3   : > { %v10857_v50 = vmul.f32 %v10816_v27, %v15132_v29  ;;  %v10567_v12 = vadd.f32 %v10453_v63, %v14690_v61 }
 0x9f4   : > { %v10136_v15 = vpop.f32.mrf.mxu1 }
 0x9f5   : > { %v14821_v8 = vadd.f32 %v10136_v15, %v14693_v25  ;;  %v10897_v21 = vadd.f32 %v10896_v60, %v10857_v50  ;;  %10608 = vst [vmem:[#allocation4 + $0x90] sm:$0xff] %v10567_v12  ;;  %v10694_v18 = vadd.f32 %v14654_v36, %v10567_v12  ;;  %v10932_v50 = vld [vmem:[%s14967_s8 + $0x28] sm:$0xff]  ;;  %v10739_v12 = vld [vmem:[#allocation2 + $0xe0] sm:$0xff] }
 0x9f6   : > { %10954 = vmatpush.msrb.mxu3 %v10932_v50 }
 0x9f7   : > { %v10776_v23 = vadd.f32 %v10735_v37, %v10694_v18  ;;  %10495 = vmatmul.bf16.gmra.mxu2 %v10326_v49  ;;  %v15137_v37 = vld [vmem:[#allocation31_spill] sm:$0xff] }
 0x9f9   : > { %v10817_v4 = vmax.f32 %v10776_v23, 0.0 }
 0x9fa   : > { %v10456_v52 = vpop.f32.mrf.mxu2 }
 0x9fb   : > { %v10858_v17 = vmul.f32 %v10817_v4, %v15133_v57  ;;  %v10568_v9 = vadd.f32 %v10456_v52, %v14698_v51  ;;  %v10740_v57 = vld [vmem:[#allocation2 + $0xe8] sm:$0xff] }
 0x9fc   : > { %v10139_v13 = vpop.f32.mrf.mxu1 }
 0x9fd   : > { %v10224_v61 = vadd.f32 %v10183_v22, %v10139_v13  ;;  %v10898_v53 = vadd.f32 %v10897_v21, %v10858_v17  ;;  %10609 = vst [vmem:[#allocation4 + $0xe0] sm:$0xff] %v10568_v9  ;;  %v10695_v25 = vadd.f32 %v14654_v36, %v10568_v9  ;;  %v15138_v9 = vld [vmem:[#allocation32_spill] sm:$0xff] }
 0x9ff   : > { %10265 = vst [vmem:[#allocation4 + $0x58] sm:$0xf] %v10224_v61  ;;  %v10777_v32 = vadd.f32 %v10736_v58, %v10695_v25 }
 0xa01   : > { %v10818_v11 = vmax.f32 %v10777_v32, 0.0  ;;  %v10741_v32 = vld [vmem:[#allocation2 + $0xf0] sm:$0xff] }
 0xa02   : > { %v10458_v28 = vpop.f32.mrf.mxu2 }
 0xa03   : > { %v10859_v41 = vmul.f32 %v10818_v11, %v15134_v54  ;;  %v10569_v20 = vadd.f32 %v10458_v28, %v14707_v19  ;;  %v15139_v54 = vld [vmem:[#allocation33_spill] sm:$0xff] }
 0xa04   : > { %v10141_v34 = vpop.f32.mrf.mxu1 }
 0xa05   : > { %v10899_v31 = vadd.f32 %v10898_v53, %v10859_v41  ;;  %10610 = vst [vmem:[#allocation4 + $0x88] sm:$0xff] %v10569_v20  ;;  %v10696_v51 = vadd.f32 %v14654_v36, %v10569_v20  ;;  %v10742_v34 = vld [vmem:[#allocation2 + $0xf8] sm:$0xff] }
 0xa07   : > { %v10778_v44 = vadd.f32 %v10737_v10, %v10696_v51  ;;  %10500 = vmatmul.bf16.gmra.mxu2 %v10327_v43  ;;  %v15140_v10 = vld [vmem:[#allocation34_spill] sm:$0xff] }
 0xa09   : > { %v10819_v35 = vmax.f32 %v10778_v44, 0.0 }
 0xa0a   : > { %v10461_v5 = vpop.f32.mrf.mxu2 }
 0xa0b   : > { %v10860_v60 = vmul.f32 %v10819_v35, %v15135_v48  ;;  %v10570_v19 = vadd.f32 %v10461_v5, %v14713_v16 }
 0xa0d   : > { %v10900_v30 = vadd.f32 %v10899_v31, %v10860_v60  ;;  %10611 = vst [vmem:[#allocation4 + $0xc0] sm:$0xff] %v10570_v19  ;;  %v10697_v2 = vadd.f32 %v14654_v36, %v10570_v19  ;;  %v10743_v60 = vld [vmem:[#allocation2 + $0x100] sm:$0xff] }
 0xa0f   : > { %v10779_v6 = vadd.f32 %v10738_v42, %v10697_v2  ;;  %v15141_v2 = vld [vmem:[#allocation35_spill] sm:$0xff] }
 0xa11   : > { %v10820_v27 = vmax.f32 %v10779_v6, 0.0 }
 0xa12   : > { %v10463_v63 = vpop.f32.mrf.mxu2 }
 0xa13   : > { %v10861_v33 = vmul.f32 %v10820_v27, %v15136_v47  ;;  %v10571_v29 = vadd.f32 %v10463_v63, %v14719_v24  ;;  %v10930_v63 = vld [vmem:[%s14967_s8 + $0x18] sm:$0xff]  ;;  %v10744_v47 = vld [vmem:[#allocation2 + $0x108] sm:$0xff] }
 0xa15   : > { %v10901_v15 = vadd.f32 %v10900_v30, %v10861_v33  ;;  %10612 = vst [vmem:[#allocation4 + $0x118] sm:$0xff] %v10571_v29  ;;  %v10698_v16 = vadd.f32 %v14654_v36, %v10571_v29 }
 0xa17   : > { %v10780_v21 = vadd.f32 %v10739_v12, %v10698_v16  ;;  %v15142_v16 = vld [vmem:[#allocation36_spill] sm:$0xff] }
 0xa19   : > { %v10821_v18 = vmax.f32 %v10780_v21, 0.0 }
 0xa1a   : > { %v10466_v49 = vpop.f32.mrf.mxu2 }
 0xa1b   : > { %v10862_v23 = vmul.f32 %v10821_v18, %v15137_v37  ;;  %v10572_v4 = vadd.f32 %v10466_v49, %v14728_v62  ;;  %v10931_v62 = vld [vmem:[%s14967_s8 + $0x20] sm:$0xff]  ;;  %v10745_v18 = vld [vmem:[#allocation2 + $0x110] sm:$0xff] }
 0xa1c   : > { %10955 = vmatpush.msrb.mxu3 %v10931_v62 }
 0xa1d   : > { %v10902_v52 = vadd.f32 %v10901_v15, %v10862_v23  ;;  %10613 = vst [vmem:[#allocation4 + $0xd8] sm:$0xff] %v10572_v4  ;;  %v10699_v24 = vadd.f32 %v14654_v36, %v10572_v4 }
 0xa1e   : > { %10956 = vmatpush.msrb.mxu3 %v10930_v63 }
 0xa1f   : > { %v10781_v17 = vadd.f32 %v10740_v57, %v10699_v24 }
 0xa21   : > { %v10822_v13 = vmax.f32 %v10781_v17, 0.0 }
 0xa22   : > { %v10468_v22 = vpop.f32.mrf.mxu2 }
 0xa23   : > { %v10863_v61 = vmul.f32 %v10822_v13, %v15138_v9  ;;  %v10573_v53 = vadd.f32 %v10468_v22, %v14734_v56  ;;  %v10746_v13 = vld [vmem:[#allocation2 + $0x118] sm:$0xff] }
 0xa25   : > { %v10903_v25 = vadd.f32 %v10902_v52, %v10863_v61  ;;  %10614 = vst [vmem:[#allocation4 + $0xa0] sm:$0xff] %v10573_v53  ;;  %v10700_v58 = vadd.f32 %v14654_v36, %v10573_v53  ;;  %v15143_v52 = vld [vmem:[#allocation37_spill] sm:$0xff] }
 0xa27   : > { %v10782_v1 = vadd.f32 %v10741_v32, %v10700_v58 }
 0xa29   : > { %v10823_v11 = vmax.f32 %v10782_v1, 0.0  ;;  %v10747_v1 = vld [vmem:[#allocation2 + $0x120] sm:$0xff] }
 0xa2a   : > { %v10471_v28 = vpop.f32.mrf.mxu2 }
 0xa2b   : > { %v10864_v41 = vmul.f32 %v10823_v11, %v15139_v54  ;;  %v10574_v20 = vadd.f32 %v10471_v28, %v14740_v55 }
 0xa2d   : > { %v10904_v43 = vadd.f32 %v10903_v25, %v10864_v41  ;;  %10615 = vst [vmem:[#allocation4 + $0x68] sm:$0xff] %v10574_v20  ;;  %v10701_v56 = vadd.f32 %v14654_v36, %v10574_v20  ;;  %v15144_v25 = vld [vmem:[#allocation38_spill] sm:$0xff]  ;;  %v15145_v41 = vld [vmem:[#allocation39_spill] sm:$0xff] }
 0xa2f   : > { %v10783_v31 = vadd.f32 %v10742_v34, %v10701_v56  ;;  %v10748_v34 = vld [vmem:[#allocation2 + $0x128] sm:$0xff] }
 0xa31   : > { %v10824_v51 = vmax.f32 %v10783_v31, 0.0 }
 0xa32   : > { %v10473_v59 = vpop.f32.mrf.mxu2 }
 0xa33   : > { %v10865_v44 = vmul.f32 %v10824_v51, %v15140_v10  ;;  %v10575_v35 = vadd.f32 %v10473_v59, %v14749_v46  ;;  %v15146_v10 = vld [vmem:[#allocation40_spill] sm:$0xff] }
 0xa35   : > { %10616 = vst [vmem:[#allocation4 + $0x130] sm:$0xff] %v10575_v35  ;;  %v10702_v5 = vadd.f32 %v14654_v36, %v10575_v35  ;;  %v10905_v48 = vadd.f32 %v10904_v43, %v10865_v44  ;;  %v10928_v35 = vld [vmem:[%s14967_s8 + $0x8] sm:$0xff] }
 0xa37   : > { %v10784_v19 = vadd.f32 %v10743_v60, %v10702_v5 }
 0xa39   : > { %v10825_v30 = vmax.f32 %v10784_v19, 0.0 }
 0xa3a   : > { %v10476_v55 = vpop.f32.mrf.mxu2 }
 0xa3b   : > { %v10866_v42 = vmul.f32 %v10825_v30, %v15141_v2  ;;  %v10576_v6 = vadd.f32 %v10476_v55, %v14755_v40  ;;  %v15147_v2 = vld [vmem:[#allocation41_spill] sm:$0xff] }
 0xa3d   : > { %10617 = vst [vmem:[#allocation4 + $0x50] sm:$0xff] %v10576_v6  ;;  %v10703_v27 = vadd.f32 %v14654_v36, %v10576_v6  ;;  %v10906_v46 = vadd.f32 %v10905_v48, %v10866_v42  ;;  %v10749_v48 = vld [vmem:[#allocation2 + $0x130] sm:$0xff] }
 0xa3f   : > { %v10785_v33 = vadd.f32 %v10744_v47, %v10703_v27  ;;  %v10750_v27 = vld [vmem:[#allocation2 + $0x138] sm:$0xff] }
 0xa41   : > { %v10826_v29 = vmax.f32 %v10785_v33, 0.0  ;;  %v10927_v33 = vld [vmem:[%s14967_s8] sm:$0xff] }
 0xa42   : > { %v10478_v50 = vpop.f32.mrf.mxu2 }
 0xa43   : > { %v10577_v15 = vadd.f32 %v10478_v50, %v14764_v45  ;;  %v10867_v12 = vmul.f32 %v10826_v29, %v15142_v16  ;;  %v10929_v45 = vld [vmem:[%s14967_s8 + $0x10] sm:$0xff] }
 0xa44   : > { %10957 = vmatpush.msrb.mxu3 %v10929_v45  ;;  %v15148_v50 = vld [vmem:[#allocation42_spill] sm:$0xff] }
 0xa45   : > { %10618 = vst [vmem:[#allocation4 + $0xe8] sm:$0xff] %v10577_v15  ;;  %v10704_v40 = vadd.f32 %v14654_v36, %v10577_v15  ;;  %v10907_v21 = vadd.f32 %v10906_v46, %v10867_v12  ;;  %v10751_v12 = vld [vmem:[#allocation2 + $0x140] sm:$0xff] }
 0xa46   : > { %10958 = vmatpush.msrb.mxu3 %v10928_v35 }
 0xa47   : > { %v10786_v49 = vadd.f32 %v10745_v18, %v10704_v40 }
 0xa48   : > { %10959 = vmatpush.msrb.mxu3 %v10927_v33 }
 0xa49   : > { %v10827_v37 = vmax.f32 %v10786_v49, 0.0 }
 0xa4a   : > { %v10481_v23 = vpop.f32.mrf.mxu2 }
 0xa4b   : > { %v10578_v4 = vadd.f32 %v10481_v23, %v14770_v38  ;;  %v10868_v24 = vmul.f32 %v10827_v37, %v15143_v52  ;;  %v15149_v37 = vld [vmem:[#allocation43_spill] sm:$0xff] }
 0xa4d   : > { %10619 = vst [vmem:[#allocation4] sm:$0xff] %v10578_v4  ;;  %v10705_v57 = vadd.f32 %v14654_v36, %v10578_v4  ;;  %v10908_v17 = vadd.f32 %v10907_v21, %v10868_v24 }
 0xa4f   : > { %v10787_v22 = vadd.f32 %v10746_v13, %v10705_v57  ;;  %v15150_v13 = vld [vmem:[#allocation44_spill] sm:$0xff] }
 0xa51   : > { %v10828_v9 = vmax.f32 %v10787_v22, 0.0 }
 0xa52   : > { %v10483_v61 = vpop.f32.mrf.mxu2 }
 0xa53   : > { %v10579_v53 = vadd.f32 %v10483_v61, %v14776_v26  ;;  %v10869_v58 = vmul.f32 %v10828_v9, %v15144_v25  ;;  %v12052_v9 = vld [vmem:[%s14966_s7] ss:$0 sm:$0xff] }
 0xa55   : > { %10620 = vst [vmem:[#allocation4 + $0x40] sm:$0xff] %v10579_v53  ;;  %v10706_v38 = vadd.f32 %v14654_v36, %v10579_v53  ;;  %v10909_v32 = vadd.f32 %v10908_v17, %v10869_v58  ;;  %v10753_v53 = vld [vmem:[#allocation2 + $0x150] sm:$0xff] }
 0xa57   : > { %v10788_v11 = vadd.f32 %v10747_v1, %v10706_v38  ;;  %v10545_v38 = vld [vmem:[#allocation4 + $0x58] sm:$0xf]  ;;  %v15151_v1 = vld [vmem:[#allocation45_spill] sm:$0xff] }
 0xa59   : > { %v10829_v62 = vmax.f32 %v10788_v11, 0.0 }
 0xa5a   : > { %v10486_v28 = vpop.f32.mrf.mxu2 }
 0xa5b   : > { %v10580_v54 = vadd.f32 %v10486_v28, %v14785_v3  ;;  %v10870_v20 = vmul.f32 %v10829_v62, %v15145_v41  ;;  %v10754_v41 = vld [vmem:[#allocation2 + $0x158] sm:$0xf] }
 0xa5d   : > { %10621 = vst [vmem:[#allocation4 + $0x78] sm:$0xff] %v10580_v54  ;;  %v10707_v43 = vadd.f32 %v14654_v36, %v10580_v54  ;;  %v10910_v56 = vadd.f32 %v10909_v32, %v10870_v20 }
 0xa5f   : > { %v10789_v26 = vadd.f32 %v10748_v34, %v10707_v43 }
 0xa61   : > { %v10830_v31 = vmax.f32 %v10789_v26, 0.0 }
 0xa62   : > { %v10488_v51 = vpop.f32.mrf.mxu2 }
 0xa63   : > { %v10581_v59 = vadd.f32 %v10488_v51, %v14791_v0  ;;  %v10871_v44 = vmul.f32 %v10830_v31, %v15146_v10 }
 0xa65   : > { %10622 = vst [vmem:[#allocation4 + $0x30] sm:$0xff] %v10581_v59  ;;  %v10708_v3 = vadd.f32 %v14654_v36, %v10581_v59  ;;  %v10911_v5 = vadd.f32 %v10910_v56, %v10871_v44  ;;  %v15152_v56 = vld [vmem:[#allocation46_spill] sm:$0xff] }
 0xa67   : > { %v10790_v60 = vadd.f32 %v10749_v48, %v10708_v3 }
 0xa69   : > { %v10831_v19 = vmax.f32 %v10790_v60, 0.0 }
 0xa6a   : > { %v10491_v30 = vpop.f32.mrf.mxu2 }
 0xa6b   : > { %v10582_v55 = vadd.f32 %v10491_v30, %v14800_v39  ;;  %v10872_v42 = vmul.f32 %v10831_v19, %v15147_v2 }
 0xa6d   : > { %10623 = vst [vmem:[#allocation4 + $0xb8] sm:$0xff] %v10582_v55  ;;  %v10709_v0 = vadd.f32 %v14654_v36, %v10582_v55  ;;  %v10912_v6 = vadd.f32 %v10911_v5, %v10872_v42 }
 0xa6f   : > { %v10791_v63 = vadd.f32 %v10750_v27, %v10709_v0 }
 0xa71   : > { %v10832_v46 = vmax.f32 %v10791_v63, 0.0 }
 0xa72   : > { %v10493_v47 = vpop.f32.mrf.mxu2 }
 0xa73   : > { %v10583_v29 = vadd.f32 %v10493_v47, %v14806_v14  ;;  %v10873_v15 = vmul.f32 %v10832_v46, %v15148_v50  ;;  %v10752_v14 = vld [vmem:[#allocation2 + $0x148] sm:$0xff] }
 0xa75   : > { %10624 = vst [vmem:[#allocation4 + $0x60] sm:$0xff] %v10583_v29  ;;  %v10710_v39 = vadd.f32 %v14654_v36, %v10583_v29  ;;  %v10913_v16 = vadd.f32 %v10912_v6, %v10873_v15 }
 0xa77   : > { %v10792_v40 = vadd.f32 %v10751_v12, %v10710_v39 }
 0xa79   : > { %v10833_v21 = vmax.f32 %v10792_v40, 0.0 }
 0xa7a   : > { %v10496_v18 = vpop.f32.mrf.mxu2 }
 0xa7b   : > { %v10584_v49 = vadd.f32 %v10496_v18, %v14812_v7  ;;  %v10874_v23 = vmul.f32 %v10833_v21, %v15149_v37 }
 0xa7d   : > { %10625 = vst [vmem:[#allocation4 + $0x28] sm:$0xff] %v10584_v49  ;;  %v10711_v4 = vadd.f32 %v14654_v36, %v10584_v49  ;;  %v10914_v52 = vadd.f32 %v10913_v16, %v10874_v23 }
 0xa7f   : > { %v10793_v24 = vadd.f32 %v10752_v14, %v10711_v4 }
 0xa81   : > { %v10834_v57 = vmax.f32 %v10793_v24, 0.0 }
 0xa82   : > { %v10498_v45 = vpop.f32.mrf.mxu2 }
 0xa83   : > { %v10585_v17 = vadd.f32 %v10498_v45, %v14821_v8  ;;  %v10875_v22 = vmul.f32 %v10834_v57, %v15150_v13 }
 0xa85   : > { %10626 = vst [vmem:[#allocation4 + $0x140] sm:$0xff] %v10585_v17  ;;  %v10712_v7 = vadd.f32 %v12052_v9, %v10585_v17  ;;  %v10915_v61 = vadd.f32 %v10914_v52, %v10875_v22 }
 0xa87   : > { %v10794_v25 = vadd.f32 %v10753_v53, %v10712_v7 }
 0xa89   : > { %v10835_v58 = vmax.f32 %v10794_v25, 0.0 }
 0xa8a   : > { %v10501_v36 = vpop.f32.mrf.mxu2 }
 0xa8b   : > { %v10586_v32 = vadd.f32 %v10545_v38, %v10501_v36  ;;  %v10876_v11 = vmul.f32 %v10835_v58, %v15151_v1 }
 0xa8d   : > { %10627 = vst [vmem:[#allocation4 + $0x58] sm:$0xf] %v10586_v32  ;;  %v10916_v8 = vadd.f32 %v10915_v61, %v10876_v11 }
 0xa92   : > { %v10503_v62 = vpop.f32.mrf.mxu2 }
 0xa94   : > { %v10668_v28 = vld [vmem:[#allocation4 + $0x58] sm:$0xf] }
 0xa95   : > { %v10713_v54 = vadd.f32 %v12052_v9, %v10668_v28 }
 0xa97   : > { %v10795_v20 = vadd.f32 %v10754_v41, %v10713_v54 }
 0xa99   : > { %v10836_v43 = vmax.f32 %v10795_v20, 0.0 }
 0xa9b   : > { %v10877_v34 = vmul.f32 %v10836_v43, %v15152_v56 }
 0xa9d   : > { %v10917_v26 = vsel %vm575_vm0, %v10877_v34, 0.0 }
 0xa9e   : > { %v10918_v31 = vadd.f32 %v10917_v26, %v10916_v8 }
 0xaa0   : > { %v10919_v51 = vrot.slane %v10918_v31, 4 }
 0xaa2   : > { %v10920_v59 = vadd.f32 %v10919_v51, %v10918_v31 }
 0xaa4   : > { %v10921_v10 = vrot.slane %v10920_v59, 2 }
 0xaa6   : > { %v10922_v44 = vadd.f32 %v10921_v10, %v10920_v59 }
 0xaa8   : > { %v10923_v35 = vrot.slane %v10922_v44, 1 }
 0xaaa   : > { %v10924_v3 = vadd.f32 %v10923_v35, %v10922_v44 }
 0xaac   : > { %v10925_v5 = vmul.f32 0.00390625, %v10924_v3 }
 0xaae   : > { %10960 = vmatmul.f32.vlgmr.msrb.gmra.mxu3 %v10925_v5  ;;  %10926 = vst [vmem:[%s382_s16] sm:$0x1] %v10925_v5 }
 0xaaf   : > { %12080 = shalt.err (!%p12077_p3)
}
 0xab0   : > { %11998 = dma.vmem_to_hbm [thread:$0]  (%p12249_p5), %s10981_s29, 16, %s10983_s30, %s10966_s13   ;;  %v10943_v48 = vld [vmem:[%s14968_s9] sm:$0x1] }
 0xab1   : > { %s10991_s0 = scalar_lea.hbm %s14970_s11, %s12232_s21  ;;  %s388_s3 = scalar_lea.vmem [#allocation7], %s14905_s15 }
 0xab2   : > { %s10993_s2 = sshll.u32 %s388_s3, 4  ;;  %s10995_s4 = sshll.u32 %s10991_s0, 4  ;;  %s10994_s2 = int_to_ptr.vmem [resolvable:$true] %s10993_s2  ;;  %s10996_s4 = int_to_ptr.hbm [resolvable:$true] %s10995_s4 }
 0xab3   : > { %s10970_s25 = scalar_lea.sflag [#allocation8], %s14905_s15  ;;  %s12095_s12 = sshra.s32 %s10996_s4, 4  ;;  %s12096_s12 = int_to_ptr.hbm [resolvable:$true] %s12095_s12 }
 0xab4   : > { %s12097_s29 = scalar_lea.hbm %s12096_s12, 1  ;;  %s12101_s13 = scalar_lea.hbm %s14970_s11, 2 }
 0xab5   : > { %p12098_p4 = scmp.ne.s32.totalorder %s12096_s12, %s12097_s29  ;;  %p12102_p9 = scmp.lt.s32.totalorder %s12096_s12, %s14970_s11 }
 0xab6   : > { %p12103_p10 = scmp.lt.s32.totalorder %s12101_s13, %s12097_s29 }
 0xab7   : > { %p12099_p7 = pnand %p12098_p4, %p12249_p5 }
 0xab8   : > { %p12104_p11 = por %p12103_p10, %p12102_p9 }
 0xab9   : > { %p12100_p8 = pneg %p12099_p7 }
 0xabb   : > { %p12105_p12 = pnand %p12104_p11, %p12100_p8 }
 0xb31   : > { %v10961_v60 = vpop.f32.mrf.mxu3 }
 0xb32   : > { %v10962_v19 = vadd.f32 %v10961_v60, %v10943_v48 }
 0xb34   : > { %10964 = vst [vmem:[%s388_s3] sm:$0x1] %v10962_v19 }
 0xb35   : > { %12108 = shalt.err (!%p12105_p12)
}
 0xb36   : > { %11999 = dma.vmem_to_hbm [thread:$0]  (%p12249_p5), %s10994_s2, 16, %s10996_s4, %s10970_s25  }
 0xb37 PF: > { %p12009_p13 = scmp.ge.s32.totalorder %s12147_s20, 2  ;;  %s11007_s15 = sand.u32 1, %s12135_s17  }
 0xb38   : > { %s11008_s22 = scalar_lea.sflag [#allocation6], %s11007_s15 }
 0xb39   : > { %p12003_p0 = pnand %p12009_p13, %p12253_p6 }
 0xb3b   : > { %p12004_p1 = pneg %p12003_p0 }
 0xb3d   : > { %12126 = dma.done.wait (%p12004_p1), %s11008_s22, 16  }
 0xb3e   : > { %12128 = vsyncadd (%p12004_p1), %s11008_s22, 4294967280  ;;  %s11017_s0 = scalar_lea.sflag [#allocation8], %s11007_s15 }
 0xb3f   : > { %12130 = dma.done.wait (%p12004_p1), %s11017_s0, 16  }
 0xb40   : > { %12132 = vsyncadd (%p12004_p1), %s11017_s0, 4294967280  ;;  %p25_p5 = scmp.ge.s32.totalorder %s12236_s23, 4   ;;  %s15153_s17 = smov %s12139_s18 }
 0xb41   : > { %s15154_s18 = smov %s12143_s19  ;;  %s15155_s19 = smov %s12247_s26 }
 0xb42   : > { %s15156_s20 = smov %s12236_s23  ;;  %27 = sbr.rel (!%p25_p5) target bundleno = 11 (0xb), region = 112 }
 0xb47   :  { %11022 = vsyncpa [#allocation6], 1 }
 0xb48   :  { %11024 = vsyncpa [#allocation6 + $0x1], 1 }
 0xb49   :  { %11025 = vsyncpa [#allocation8], 1 }
 0xb4a   :  { %11027 = vsyncpa [#allocation8 + $0x1], 1 }

</bundles_post_ra>
